<compile_context>
chip_gen: v6e
topology: v6e:2x2x1
jax: 0.10.0
libtpu: 0.0.40
codegen_flags: <defaults>
</compile_context>

<pallas_src>
import math

import jax
import jax.numpy as jnp
from jax.experimental import pallas as pl
from jax.experimental.pallas import tpu as pltpu

F32 = jnp.float32
BF16 = jnp.bfloat16

N_IMG_TOKENS = 21  # image_feat.expand(-1, 21, -1) in the PyTorch module


# -----------------------------------------------------------------------------
# Kernel 1: backbone grid projection + global pooling + image-feat MLP,
#           tiled over the 2048 output dim (tn=1024, "parallel" grid).
# -----------------------------------------------------------------------------
def _image_feat_kernel(tok_ref, wg_ref, bg_ref, pool_ref, wi_ref, bi_ref,
                       img_ref):
    # grid tokens -> 1024-dim features (K=3 contraction, trivially cheap;
    # recomputed per N-tile to keep the intermediate out of HBM)
    g = jnp.dot(tok_ref[...], wg_ref[...], preferred_element_type=jnp.float32)
    g = jnp.maximum(g + bg_ref[...], 0.0)                                # (M, 1024)
    # per-batch mean over the 49 grid tokens as a constant pooling matmul
    pooled = jnp.dot(pool_ref[...], g, preferred_element_type=jnp.float32)  # (B, 1024)
    # image_feat tile = relu(pooled @ bb_wi_tile + bb_bi_tile)   (bf16 weights)
    img = jnp.dot(pooled.astype(BF16), wi_ref[...],
                  preferred_element_type=jnp.float32)
    img_ref[...] = jnp.maximum(img + bi_ref[...], 0.0).astype(img_ref.dtype)


def _image_feat_call(params, tokens, pool, B):
    M = tokens.shape[0]                       # B * 49
    K1 = params["bb_wg"].shape[1]             # 1024
    N = params["bb_wi"].shape[1]              # 2048
    tn = 1024 if N % 1024 == 0 else N         # 2 tiles -> both v7x cores busy
    assert N % tn == 0, (N, tn)

    bg = params["bb_bg"].reshape(1, -1).astype(F32)
    bi = params["bb_bi"].reshape(1, -1).astype(F32)

    return pl.pallas_call(
        _image_feat_kernel,
        out_shape=jax.ShapeDtypeStruct((B, N), BF16),
        grid=(N // tn,),
        in_specs=[
            pl.BlockSpec((M, 3), lambda j: (0, 0)),       # tokens (const)
            pl.BlockSpec((3, K1), lambda j: (0, 0)),      # bb_wg (const)
            pl.BlockSpec((1, K1), lambda j: (0, 0)),      # bb_bg (const)
            pl.BlockSpec((B, M), lambda j: (0, 0)),       # pooling matrix (const)
            pl.BlockSpec((K1, tn), lambda j: (0, j)),     # bb_wi tile (bf16)
            pl.BlockSpec((1, tn), lambda j: (0, j)),      # bb_bi tile
        ],
        out_specs=pl.BlockSpec((B, tn), lambda j: (0, j)),
        compiler_params=pltpu.CompilerParams(dimension_semantics=("parallel",)),
    )(tokens.astype(F32), params["bb_wg"].astype(F32), bg,
      pool.astype(F32), params["bb_wi"], bi)


# -----------------------------------------------------------------------------
# Kernel 2: sequence assembly (in VMEM) + transformer encoder + cam head,
#           one grid step per batch item ("parallel" -> v7x 2-TC split).
#           (On single-TC v5e/v6e this is a 2-step serial loop; acceptable since
#            the kernel is tiny.)
# -----------------------------------------------------------------------------
def _encoder_kernel(img_ref, tok_ref, wemb_ref, bemb_ref, wg_ref, bg_ref,
                    fw_ref, fb_ref, wqkv_ref, bqkv_ref, wo_ref, bo_ref,
                    w1_ref, b1_ref, w2_ref, b2_ref, wout_ref, bout_ref,
                    wc_ref, bc_ref, cw2_ref, cb2_ref,
                    feats_ref, cam_ref, h_scr):
    n_img = feats_ref.shape[1]                 # 21
    token = tok_ref.shape[1]                   # 49
    S = n_img + token                          # 70
    H = wemb_ref.shape[1]                      # 64

    # --- embed the (single distinct) image token and the 49 grid tokens ------
    h_img = (jnp.dot(img_ref[0], wemb_ref[...],
                     preferred_element_type=jnp.float32) + bemb_ref[...])      # (1, 64)
    g = jnp.dot(tok_ref[0], wg_ref[...], preferred_element_type=jnp.float32)
    g = jnp.maximum(g + bg_ref[...], 0.0)                                       # (49, 1024)
    # folded grid_feat_dim @ enc_wemb  (fold_b already contains enc_bemb)
    h_grid = (jnp.dot(g.astype(BF16), fw_ref[...],
                      preferred_element_type=jnp.float32) + fb_ref[...])        # (49, 64)

    # assemble the 70-token sequence entirely in VMEM
    h_scr[0:n_img, :] = jnp.broadcast_to(h_img, (n_img, H))
    h_scr[n_img:, :] = h_grid
    h = h_scr[...]                                                               # (70, 64) f32

    # --- fused QKV (scale folded into the Q columns) --------------------------
    hb = h.astype(BF16)
    qkv = jnp.dot(hb, wqkv_ref[...], preferred_element_type=jnp.float32) + bqkv_ref[...]
    q = qkv[:, :H].astype(BF16).reshape(1, S, H)
    k = qkv[:, H:2 * H].astype(BF16).reshape(1, S, H)
    v = qkv[:, 2 * H:].astype(BF16).reshape(1, S, H)

    s = jnp.einsum("bqd,bkd->bqk", q, k, preferred_element_type=jnp.float32)
    s = s - jnp.max(s, axis=-1, keepdims=True)
    p = jnp.exp(s)
    p = p * pl.reciprocal(jnp.sum(p, axis=-1, keepdims=True), approx=True)
    ctx = jnp.einsum("bqk,bkd->bqd", p.astype(BF16), v,
                     preferred_element_type=jnp.float32).reshape(S, H)

    h = h + jnp.dot(ctx.astype(BF16), wo_ref[...],
                    preferred_element_type=jnp.float32) + bo_ref[...]
    ff = jnp.dot(h.astype(BF16), w1_ref[...],
                 preferred_element_type=jnp.float32) + b1_ref[...]
    ff = jnp.maximum(ff, 0.0)
    h = h + jnp.dot(ff.astype(BF16), w2_ref[...],
                    preferred_element_type=jnp.float32) + b2_ref[...]

    # --- per-token 3-dim output: only the first 21 tokens are returned -------
    feats = jnp.dot(h[:n_img].astype(BF16), wout_ref[...],
                    preferred_element_type=jnp.float32) + bout_ref[...]          # (21, 3)
    feats_ref[...] = feats.reshape(1, n_img, 3).astype(feats_ref.dtype)

    # --- cam head from h (wc = enc_wout @ cam1_w^T pre-folded) ----------------
    # cw2 has its first 21 rows zeroed, which is exactly the `[:, 21:, :]` slice.
    t = jnp.dot(h, wc_ref[...], preferred_element_type=jnp.float32) + bc_ref[...]  # (70, 1)
    cam = jnp.sum(t * cw2_ref[...], axis=0, keepdims=True) + cb2_ref[...]           # (1, 7)
    cam_ref[...] = cam.reshape(1, 1, 7).astype(cam_ref.dtype)


def _encoder_call(params, image_feat, tokens_b):
    B, D = image_feat.shape
    token = tokens_b.shape[1]                 # 49
    n_img = N_IMG_TOKENS                      # 21
    S = n_img + token
    H = params["enc_wemb"].shape[1]           # 64
    Fh = params["enc_w1"].shape[1]            # 128

    operands = [
        image_feat.reshape(B, 1, D),                                # (B,1,2048) bf16
        tokens_b.astype(F32),                                       # (B,49,3)
        params["enc_wemb"],                                         # (2048,64) bf16
        params["enc_bemb"].reshape(1, H).astype(F32),
        params["bb_wg"].astype(F32),                                # (3,1024)
        params["bb_bg"].reshape(1, -1).astype(F32),
        params["drv_fold_w"],                                       # (1024,64) bf16
        params["drv_fold_b"],                                       # (1,64)
        params["drv_wqkv"],                                         # (64,192) bf16
        params["drv_bqkv"],                                         # (1,192)
        params["enc_wo"], params["enc_bo"].reshape(1, H).astype(F32),
        params["enc_w1"], params["enc_b1"].reshape(1, Fh).astype(F32),
        params["enc_w2"], params["enc_b2"].reshape(1, H).astype(F32),
        params["enc_wout"], params["enc_bout"].reshape(1, 3).astype(F32),
        params["drv_cam_wc"], params["drv_cam_bc"],                 # (64,1), (1,1)
        params["drv_cw2pad"], params["drv_cb2"],                    # (S,7), (1,7)
    ]

    def _const_spec(shape):
        nd = len(shape)
        return pl.BlockSpec(shape, lambda b, _nd=nd: (0,) * _nd)

    in_specs = [pl.BlockSpec((1, 1, D), lambda b: (b, 0, 0)),
                pl.BlockSpec((1, token, 3), lambda b: (b, 0, 0))]
    in_specs += [_const_spec(op.shape) for op in operands[2:]]

    return pl.pallas_call(
        _encoder_kernel,
        out_shape=(jax.ShapeDtypeStruct((B, n_img, 3), F32),   # pred_3d_joints
                   jax.ShapeDtypeStruct((B, 1, 7), F32)),      # cam params
        grid=(B,),
        in_specs=in_specs,
        out_specs=(pl.BlockSpec((1, n_img, 3), lambda b: (b, 0, 0)),
                   pl.BlockSpec((1, 1, 7), lambda b: (b, 0, 0))),
        scratch_shapes=[pltpu.VMEM((S, H), jnp.float32)],
        compiler_params=pltpu.CompilerParams(dimension_semantics=("parallel",)),
    )(*operands)


# -----------------------------------------------------------------------------
# Parameters (deterministic, synthetic) + one-time inference weight preparation
# -----------------------------------------------------------------------------
def _derive_inference_params(p):
    """One-time weight folding (would happen at checkpoint-load time)."""
    scale = 1.0 / math.sqrt(p["enc_wq"].shape[1])
    wemb32 = p["enc_wemb"].astype(F32)
    d = {}
    # grid_feat_dim folded into the encoder embedding (no nonlinearity between them)
    d["drv_fold_w"] = jnp.dot(p["grid_w"].astype(F32), wemb32).astype(BF16)     # (1024,64)
    d["drv_fold_b"] = (jnp.dot(p["grid_b"].astype(F32), wemb32)
                       + p["enc_bemb"].astype(F32)).reshape(1, -1)              # (1,64)
    # fused QKV with the 1/sqrt(H) scale folded into the Q columns
    d["drv_wqkv"] = jnp.concatenate(
        [p["enc_wq"].astype(F32) * scale, p["enc_wk"].astype(F32),
         p["enc_wv"].astype(F32)], axis=1).astype(BF16)                         # (64,192)
    d["drv_bqkv"] = jnp.concatenate(
        [p["enc_bq"] * scale, p["enc_bk"], p["enc_bv"]]).reshape(1, -1).astype(F32)
    # cam head folded onto the 64-dim hidden state: wc = enc_wout @ cam1_w^T
    d["drv_cam_wc"] = jnp.dot(p["enc_wout"].astype(F32),
                              p["cam1_w"].T.astype(F32))                        # (64,1)
    d["drv_cam_bc"] = (jnp.dot(p["enc_bout"], p["cam1_w"][0])
                       + p["cam1_b"][0]).reshape(1, 1).astype(F32)              # (1,1)
    token = p["cam2_w"].shape[1]                                                # 49
    d["drv_cw2pad"] = jnp.concatenate(
        [jnp.zeros((N_IMG_TOKENS, 7), F32), p["cam2_w"].T.astype(F32)], axis=0)  # (70,7)
    d["drv_cb2"] = p["cam2_b"].reshape(1, 7).astype(F32)
    del token
    return d


def init_params(key):
    ks = iter(jax.random.split(key, 32))

    def w(shape, fan_in, dtype=F32):
        return (jax.random.normal(next(ks), shape, F32) / math.sqrt(fan_in)).astype(dtype)

    def b(shape):
        return jax.random.normal(next(ks), shape, F32) * 0.01

    p = {}
    # synthetic backbone
    p["bb_wg"], p["bb_bg"] = w((3, 1024), 3), b((1024,))                        # tiny, f32
    p["bb_wi"], p["bb_bi"] = w((1024, 2048), 1024, BF16), b((2048,))            # bf16 weight
    # grid_feat_dim = Linear(1024, 2048)
    p["grid_w"], p["grid_b"] = w((1024, 2048), 1024, BF16), b((2048,))
    # synthetic trans_encoder (1-block transformer, hidden 64, per-token output dim 3)
    p["enc_wemb"], p["enc_bemb"] = w((2048, 64), 2048, BF16), b((64,))
    for n in ("q", "k", "v", "o"):
        p[f"enc_w{n}"], p[f"enc_b{n}"] = w((64, 64), 64, BF16), b((64,))
    p["enc_w1"], p["enc_b1"] = w((64, 128), 64, BF16), b((128,))
    p["enc_w2"], p["enc_b2"] = w((128, 64), 128, BF16), b((64,))
    p["enc_wout"], p["enc_bout"] = w((64, 3), 64, BF16), b((3,))
    # cam_param_fc = Linear(3, 1), cam_param_fc2 = Linear(token=49, 7)  (PyTorch (out,in))
    p["cam1_w"], p["cam1_b"] = w((1, 3), 3), b((1,))
    p["cam2_w"], p["cam2_b"] = w((7, 49), 49), b((7,))
    p.update(_derive_inference_params(p))
    return p


# -----------------------------------------------------------------------------
# Forward pass (2 Pallas launches total; no HBM-materialized (B,70,2048) tensor)
# -----------------------------------------------------------------------------
def graphormer_hand_forward(params, images):
    # layout: images NCHW (B, 3, 14, 14); grid tokens channel-last (B*49, 3).
    B = images.shape[0]

    # backbone stem (cheap glue in plain JAX): 2x2 average pool + NCHW -> tokens
    x = images.reshape(B, 3, 7, 2, 7, 2).mean(axis=(3, 5))            # (B, 3, 7, 7)
    tokens = x.transpose(0, 2, 3, 1).reshape(B * 49, 3)               # (B*49, 3)

    # constant per-batch mean-pooling matrix (mean over the 49 grid tokens)
    pool = jnp.kron(jnp.eye(B, dtype=F32),
                    jnp.full((1, 49), 1.0 / 49.0, F32))               # (B, B*49)

    image_feat = _image_feat_call(params, tokens, pool, B)            # (B, 2048) bf16
    feats, cam = _encoder_call(params, image_feat,
                               tokens.reshape(B, 49, 3))              # (B,21,3), (B,1,7)

    pred_3d_joints = feats                                            # (B, 21, 3)
    # NOTE: mirrors torch .squeeze(); would also drop the batch dim if B == 1.
    cam_param = jnp.squeeze(cam)
    return cam_param, pred_3d_joints


# -----------------------------------------------------------------------------
# Pure-JAX reference replicating the original (unfolded) module structure
# -----------------------------------------------------------------------------
def reference_forward(params, images):
    B = images.shape[0]

    def bdot(a, w):
        return jnp.dot(a.astype(BF16), w.astype(BF16), preferred_element_type=F32)

    x = images.reshape(B, 3, 7, 2, 7, 2).mean(axis=(3, 5))
    tokens = x.transpose(0, 2, 3, 1).reshape(B * 49, 3)
    g = jnp.maximum(jnp.dot(tokens, params["bb_wg"]) + params["bb_bg"], 0.0)
    pooled = g.reshape(B, 49, 1024).mean(axis=1)
    image_feat = jnp.maximum(bdot(pooled, params["bb_wi"]) + params["bb_bi"], 0.0).astype(BF16)
    grid_tok = (bdot(g, params["grid_w"]) + params["grid_b"]).astype(BF16).reshape(B, 49, 2048)
    image_tok = jnp.broadcast_to(image_feat[:, None, :], (B, 21, 2048))
    features = jnp.concatenate([image_tok, grid_tok], axis=1)
    S = features.shape[1]

    h = bdot(features.reshape(B * S, 2048), params["enc_wemb"]) + params["enc_bemb"]
    q = (bdot(h, params["enc_wq"]) + params["enc_bq"]).reshape(B, S, 64)
    k = (bdot(h, params["enc_wk"]) + params["enc_bk"]).reshape(B, S, 64)
    v = (bdot(h, params["enc_wv"]) + params["enc_bv"]).reshape(B, S, 64)
    h = h.reshape(B, S, 64)
    s = jnp.einsum("bqd,bkd->bqk", q, k) / math.sqrt(64)
    s = s - jnp.max(s, axis=-1, keepdims=True)
    p = jnp.exp(s)
    p = p / jnp.sum(p, axis=-1, keepdims=True)
    ctx = jnp.einsum("bqk,bkd->bqd", p, v)
    h = h + (bdot(ctx.reshape(B * S, 64), params["enc_wo"])
             + params["enc_bo"]).reshape(B, S, 64)
    h2 = h.reshape(B * S, 64)
    ff = jnp.maximum(bdot(h2, params["enc_w1"]) + params["enc_b1"], 0.0)
    h2 = h2 + bdot(ff, params["enc_w2"]) + params["enc_b2"]
    feats = (bdot(h2, params["enc_wout"]) + params["enc_bout"]).reshape(B, S, 3)

    pred = feats[:, :21, :]
    tail = feats[:, 21:, :]
    x1 = jnp.einsum("btc,oc->bto", tail, params["cam1_w"]) + params["cam1_b"]   # (B,49,1)
    x1 = jnp.swapaxes(x1, 1, 2)                                                 # (B,1,49)
    x2 = jnp.einsum("bit,ot->bio", x1, params["cam2_w"]) + params["cam2_b"]     # (B,1,7)
    cam = jnp.squeeze(jnp.swapaxes(x2, 1, 2))
    return cam, pred


# -----------------------------------------------------------------------------
if __name__ == "__main__":
    key = jax.random.PRNGKey(0)
    pkey, ikey = jax.random.split(key)
    params = init_params(pkey)
    images = jax.random.normal(ikey, (2, 3, 14, 14), jnp.float32)   # NCHW, like PyTorch

    fwd = jax.jit(graphormer_hand_forward)
    cam_param, pred_3d_joints = fwd(params, images)
    jax.block_until_ready((cam_param, pred_3d_joints))

    assert cam_param.shape == (2, 7), cam_param.shape
    assert pred_3d_joints.shape == (2, 21, 3), pred_3d_joints.shape

    ref_cam, ref_pred = reference_forward(params, images)
    err = max(float(jnp.max(jnp.abs(cam_param - ref_cam))),
              float(jnp.max(jnp.abs(pred_3d_joints - ref_pred))))
    assert err < 3e-2, f"mismatch vs pure-JAX reference: {err}"

    print("KERNEL_OK")
</pallas_src>

<mosaic_0001>
module attributes {stable_mosaic.version = 11 : i64} {
  func.func @_image_feat_kernel(%arg0: i32, %arg1: memref<98x3xf32, #tpu.memory_space<vmem>>, %arg2: memref<3x1024xf32, #tpu.memory_space<vmem>>, %arg3: memref<1x1024xf32, #tpu.memory_space<vmem>>, %arg4: memref<2x98xf32, #tpu.memory_space<vmem>>, %arg5: memref<1024x1024xbf16, #tpu.memory_space<vmem>>, %arg6: memref<1x1024xf32, #tpu.memory_space<vmem>>, %arg7: memref<2x1024xbf16, #tpu.memory_space<vmem>>) attributes {dimension_semantics = [#tpu.dimension_semantics<parallel>], iteration_bounds = array<i64: 2>, scalar_prefetch = 0 : i64, scratch_operands = 0 : i64, tpu.core_type = #tpu.core_type<tc>, window_params = [{pipeline_mode = #tpu.pipeline_mode<synchronous>, transform_indices = @transform_0, window_bounds = array<i64: 98, 3>}, {pipeline_mode = #tpu.pipeline_mode<synchronous>, transform_indices = @transform_1, window_bounds = array<i64: 3, 1024>}, {pipeline_mode = #tpu.pipeline_mode<synchronous>, transform_indices = @transform_2, window_bounds = array<i64: 1, 1024>}, {pipeline_mode = #tpu.pipeline_mode<synchronous>, transform_indices = @transform_3, window_bounds = array<i64: 2, 98>}, {transform_indices = @transform_4, window_bounds = array<i64: 1024, 1024>}, {transform_indices = @transform_5, window_bounds = array<i64: 1, 1024>}, {transform_indices = @transform_6, window_bounds = array<i64: 2, 1024>}]} {
    %c0 = arith.constant 0 : index
    %c0_0 = arith.constant 0 : index
    %0 = vector.load %arg1[%c0, %c0_0] : memref<98x3xf32, #tpu.memory_space<vmem>>, vector<98x3xf32>
    %c0_1 = arith.constant 0 : index
    %c0_2 = arith.constant 0 : index
    %1 = vector.load %arg2[%c0_1, %c0_2] : memref<3x1024xf32, #tpu.memory_space<vmem>>, vector<3x1024xf32>
    %cst = arith.constant dense<0.000000e+00> : vector<98x1024xf32>
    %2 = tpu.matmul %0, %1, %cst {dimension_numbers = #tpu.dot_dimension_numbers<[1], [0], [0], [1], [0, 0, 1, 1], [], []>} : vector<98x3xf32>, vector<3x1024xf32>, vector<98x1024xf32> -> vector<98x1024xf32>
    %c0_3 = arith.constant 0 : index
    %c0_4 = arith.constant 0 : index
    %3 = vector.load %arg3[%c0_3, %c0_4] : memref<1x1024xf32, #tpu.memory_space<vmem>>, vector<1x1024xf32>
    %4 = vector.broadcast %3 : vector<1x1024xf32> to vector<98x1024xf32>
    %5 = arith.addf %2, %4 : vector<98x1024xf32>
    %cst_5 = arith.constant 0.000000e+00 : f32
    %6 = vector.broadcast %cst_5 : f32 to vector<98x1024xf32>
    %7 = arith.maximumf %5, %6 : vector<98x1024xf32>
    %c0_6 = arith.constant 0 : index
    %c0_7 = arith.constant 0 : index
    %8 = vector.load %arg4[%c0_6, %c0_7] : memref<2x98xf32, #tpu.memory_space<vmem>>, vector<2x98xf32>
    %cst_8 = arith.constant dense<0.000000e+00> : vector<2x1024xf32>
    %9 = tpu.matmul %8, %7, %cst_8 {dimension_numbers = #tpu.dot_dimension_numbers<[1], [0], [0], [1], [0, 0, 1, 1], [], []>} : vector<2x98xf32>, vector<98x1024xf32>, vector<2x1024xf32> -> vector<2x1024xf32>
    %10 = arith.truncf %9 : vector<2x1024xf32> to vector<2x1024xbf16>
    %c0_9 = arith.constant 0 : index
    %c0_10 = arith.constant 0 : index
    %11 = vector.load %arg5[%c0_9, %c0_10] : memref<1024x1024xbf16, #tpu.memory_space<vmem>>, vector<1024x1024xbf16>
    %cst_11 = arith.constant dense<0.000000e+00> : vector<2x1024xf32>
    %12 = tpu.matmul %10, %11, %cst_11 {dimension_numbers = #tpu.dot_dimension_numbers<[1], [0], [0], [1], [0, 0, 1, 1], [], []>} : vector<2x1024xbf16>, vector<1024x1024xbf16>, vector<2x1024xf32> -> vector<2x1024xf32>
    %c0_12 = arith.constant 0 : index
    %c0_13 = arith.constant 0 : index
    %13 = vector.load %arg6[%c0_12, %c0_13] : memref<1x1024xf32, #tpu.memory_space<vmem>>, vector<1x1024xf32>
    %14 = vector.broadcast %13 : vector<1x1024xf32> to vector<2x1024xf32>
    %15 = arith.addf %12, %14 : vector<2x1024xf32>
    %cst_14 = arith.constant 0.000000e+00 : f32
    %16 = vector.broadcast %cst_14 : f32 to vector<2x1024xf32>
    %17 = arith.maximumf %15, %16 : vector<2x1024xf32>
    %18 = arith.truncf %17 : vector<2x1024xf32> to vector<2x1024xbf16>
    %c0_15 = arith.constant 0 : index
    %c0_16 = arith.constant 0 : index
    %19 = vector.load %arg7[%c0_15, %c0_16] : memref<2x1024xbf16, #tpu.memory_space<vmem>>, vector<2x1024xbf16>
    tpu.vector_store %arg7[%c0_15, %c0_16], %18 {strides = array<i32>} : memref<2x1024xbf16, #tpu.memory_space<vmem>>, vector<2x1024xbf16>,
    return
  }
  func.func @transform_0(%arg0: i32) -> (i32, i32) {
    %c0_i32 = arith.constant 0 : i32
    %c0_i32_0 = arith.constant 0 : i32
    %c0_i32_1 = arith.constant 0 : i32
    return %c0_i32, %c0_i32_0 : i32, i32
  }
  func.func @transform_1(%arg0: i32) -> (i32, i32) {
    %c0_i32 = arith.constant 0 : i32
    %c0_i32_0 = arith.constant 0 : i32
    %c0_i32_1 = arith.constant 0 : i32
    return %c0_i32, %c0_i32_0 : i32, i32
  }
  func.func @transform_2(%arg0: i32) -> (i32, i32) {
    %c0_i32 = arith.constant 0 : i32
    %c0_i32_0 = arith.constant 0 : i32
    %c0_i32_1 = arith.constant 0 : i32
    return %c0_i32, %c0_i32_0 : i32, i32
  }
  func.func @transform_3(%arg0: i32) -> (i32, i32) {
    %c0_i32 = arith.constant 0 : i32
    %c0_i32_0 = arith.constant 0 : i32
    %c0_i32_1 = arith.constant 0 : i32
    return %c0_i32, %c0_i32_0 : i32, i32
  }
  func.func @transform_4(%arg0: i32) -> (i32, i32) {
    %c0_i32 = arith.constant 0 : i32
    %c0_i32_0 = arith.constant 0 : i32
    return %c0_i32, %arg0 : i32, i32
  }
  func.func @transform_5(%arg0: i32) -> (i32, i32) {
    %c0_i32 = arith.constant 0 : i32
    %c0_i32_0 = arith.constant 0 : i32
    return %c0_i32, %arg0 : i32, i32
  }
  func.func @transform_6(%arg0: i32) -> (i32, i32) {
    %c0_i32 = arith.constant 0 : i32
    %c0_i32_0 = arith.constant 0 : i32
    return %c0_i32, %arg0 : i32, i32
  }
}

module attributes {stable_mosaic.version = 11 : i64} {
  func.func @_encoder_kernel(%arg0: i32, %arg1: memref<1x1x2048xbf16, #tpu.memory_space<vmem>>, %arg2: memref<1x49x3xf32, #tpu.memory_space<vmem>>, %arg3: memref<2048x64xbf16, #tpu.memory_space<vmem>>, %arg4: memref<1x64xf32, #tpu.memory_space<vmem>>, %arg5: memref<3x1024xf32, #tpu.memory_space<vmem>>, %arg6: memref<1x1024xf32, #tpu.memory_space<vmem>>, %arg7: memref<1024x64xbf16, #tpu.memory_space<vmem>>, %arg8: memref<1x64xf32, #tpu.memory_space<vmem>>, %arg9: memref<64x192xbf16, #tpu.memory_space<vmem>>, %arg10: memref<1x192xf32, #tpu.memory_space<vmem>>, %arg11: memref<64x64xbf16, #tpu.memory_space<vmem>>, %arg12: memref<1x64xf32, #tpu.memory_space<vmem>>, %arg13: memref<64x128xbf16, #tpu.memory_space<vmem>>, %arg14: memref<1x128xf32, #tpu.memory_space<vmem>>, %arg15: memref<128x64xbf16, #tpu.memory_space<vmem>>, %arg16: memref<1x64xf32, #tpu.memory_space<vmem>>, %arg17: memref<64x3xbf16, #tpu.memory_space<vmem>>, %arg18: memref<1x3xf32, #tpu.memory_space<vmem>>, %arg19: memref<64x1xf32, #tpu.memory_space<vmem>>, %arg20: memref<1x1xf32, #tpu.memory_space<vmem>>, %arg21: memref<70x7xf32, #tpu.memory_space<vmem>>, %arg22: memref<1x7xf32, #tpu.memory_space<vmem>>, %arg23: memref<1x21x3xf32, #tpu.memory_space<vmem>>, %arg24: memref<1x1x7xf32, #tpu.memory_space<vmem>>, %arg25: memref<70x64xf32, #tpu.memory_space<vmem>>) attributes {dimension_semantics = [#tpu.dimension_semantics<parallel>], iteration_bounds = array<i64: 2>, scalar_prefetch = 0 : i64, scratch_operands = 1 : i64, tpu.core_type = #tpu.core_type<tc>, window_params = [{transform_indices = @transform_0, window_bounds = array<i64: 1, 1, 2048>}, {transform_indices = @transform_1, window_bounds = array<i64: 1, 49, 3>}, {pipeline_mode = #tpu.pipeline_mode<synchronous>, transform_indices = @transform_2, window_bounds = array<i64: 2048, 64>}, {pipeline_mode = #tpu.pipeline_mode<synchronous>, transform_indices = @transform_3, window_bounds = array<i64: 1, 64>}, {pipeline_mode = #tpu.pipeline_mode<synchronous>, transform_indices = @transform_4, window_bounds = array<i64: 3, 1024>}, {pipeline_mode = #tpu.pipeline_mode<synchronous>, transform_indices = @transform_5, window_bounds = array<i64: 1, 1024>}, {pipeline_mode = #tpu.pipeline_mode<synchronous>, transform_indices = @transform_6, window_bounds = array<i64: 1024, 64>}, {pipeline_mode = #tpu.pipeline_mode<synchronous>, transform_indices = @transform_7, window_bounds = array<i64: 1, 64>}, {pipeline_mode = #tpu.pipeline_mode<synchronous>, transform_indices = @transform_8, window_bounds = array<i64: 64, 192>}, {pipeline_mode = #tpu.pipeline_mode<synchronous>, transform_indices = @transform_9, window_bounds = array<i64: 1, 192>}, {pipeline_mode = #tpu.pipeline_mode<synchronous>, transform_indices = @transform_10, window_bounds = array<i64: 64, 64>}, {pipeline_mode = #tpu.pipeline_mode<synchronous>, transform_indices = @transform_11, window_bounds = array<i64: 1, 64>}, {pipeline_mode = #tpu.pipeline_mode<synchronous>, transform_indices = @transform_12, window_bounds = array<i64: 64, 128>}, {pipeline_mode = #tpu.pipeline_mode<synchronous>, transform_indices = @transform_13, window_bounds = array<i64: 1, 128>}, {pipeline_mode = #tpu.pipeline_mode<synchronous>, transform_indices = @transform_14, window_bounds = array<i64: 128, 64>}, {pipeline_mode = #tpu.pipeline_mode<synchronous>, transform_indices = @transform_15, window_bounds = array<i64: 1, 64>}, {pipeline_mode = #tpu.pipeline_mode<synchronous>, transform_indices = @transform_16, window_bounds = array<i64: 64, 3>}, {pipeline_mode = #tpu.pipeline_mode<synchronous>, transform_indices = @transform_17, window_bounds = array<i64: 1, 3>}, {pipeline_mode = #tpu.pipeline_mode<synchronous>, transform_indices = @transform_18, window_bounds = array<i64: 64, 1>}, {pipeline_mode = #tpu.pipeline_mode<synchronous>, transform_indices = @transform_19, window_bounds = array<i64: 1, 1>}, {pipeline_mode = #tpu.pipeline_mode<synchronous>, transform_indices = @transform_20, window_bounds = array<i64: 70, 7>}, {pipeline_mode = #tpu.pipeline_mode<synchronous>, transform_indices = @transform_21, window_bounds = array<i64: 1, 7>}, {transform_indices = @transform_22, window_bounds = array<i64: 1, 21, 3>}, {transform_indices = @transform_23, window_bounds = array<i64: 1, 1, 7>}]} {
    %c0 = arith.constant 0 : index
    %c0_0 = arith.constant 0 : index
    %c0_1 = arith.constant 0 : index
    %0 = vector.load %arg1[%c0, %c0_0, %c0_1] : memref<1x1x2048xbf16, #tpu.memory_space<vmem>>, vector<1x1x2048xbf16>
    %1 = vector.shape_cast %0 : vector<1x1x2048xbf16> to vector<1x2048xbf16>
    %c0_2 = arith.constant 0 : index
    %c0_3 = arith.constant 0 : index
    %2 = vector.load %arg3[%c0_2, %c0_3] : memref<2048x64xbf16, #tpu.memory_space<vmem>>, vector<2048x64xbf16>
    %cst = arith.constant dense<0.000000e+00> : vector<1x64xf32>
    %3 = tpu.matmul %1, %2, %cst {dimension_numbers = #tpu.dot_dimension_numbers<[1], [0], [0], [1], [0, 0, 1, 1], [], []>} : vector<1x2048xbf16>, vector<2048x64xbf16>, vector<1x64xf32> -> vector<1x64xf32>
    %c0_4 = arith.constant 0 : index
    %c0_5 = arith.constant 0 : index
    %4 = vector.load %arg4[%c0_4, %c0_5] : memref<1x64xf32, #tpu.memory_space<vmem>>, vector<1x64xf32>
    %5 = arith.addf %3, %4 : vector<1x64xf32>
    %c0_6 = arith.constant 0 : index
    %c0_7 = arith.constant 0 : index
    %c0_8 = arith.constant 0 : index
    %6 = vector.load %arg2[%c0_6, %c0_7, %c0_8] : memref<1x49x3xf32, #tpu.memory_space<vmem>>, vector<1x49x3xf32>
    %7 = vector.shape_cast %6 : vector<1x49x3xf32> to vector<49x3xf32>
    %c0_9 = arith.constant 0 : index
    %c0_10 = arith.constant 0 : index
    %8 = vector.load %arg5[%c0_9, %c0_10] : memref<3x1024xf32, #tpu.memory_space<vmem>>, vector<3x1024xf32>
    %cst_11 = arith.constant dense<0.000000e+00> : vector<49x1024xf32>
    %9 = tpu.matmul %7, %8, %cst_11 {dimension_numbers = #tpu.dot_dimension_numbers<[1], [0], [0], [1], [0, 0, 1, 1], [], []>} : vector<49x3xf32>, vector<3x1024xf32>, vector<49x1024xf32> -> vector<49x1024xf32>
    %c0_12 = arith.constant 0 : index
    %c0_13 = arith.constant 0 : index
    %10 = vector.load %arg6[%c0_12, %c0_13] : memref<1x1024xf32, #tpu.memory_space<vmem>>, vector<1x1024xf32>
    %11 = vector.broadcast %10 : vector<1x1024xf32> to vector<49x1024xf32>
    %12 = arith.addf %9, %11 : vector<49x1024xf32>
    %cst_14 = arith.constant 0.000000e+00 : f32
    %13 = vector.broadcast %cst_14 : f32 to vector<49x1024xf32>
    %14 = arith.maximumf %12, %13 : vector<49x1024xf32>
    %15 = arith.truncf %14 : vector<49x1024xf32> to vector<49x1024xbf16>
    %c0_15 = arith.constant 0 : index
    %c0_16 = arith.constant 0 : index
    %16 = vector.load %arg7[%c0_15, %c0_16] : memref<1024x64xbf16, #tpu.memory_space<vmem>>, vector<1024x64xbf16>
    %cst_17 = arith.constant dense<0.000000e+00> : vector<49x64xf32>
    %17 = tpu.matmul %15, %16, %cst_17 {dimension_numbers = #tpu.dot_dimension_numbers<[1], [0], [0], [1], [0, 0, 1, 1], [], []>} : vector<49x1024xbf16>, vector<1024x64xbf16>, vector<49x64xf32> -> vector<49x64xf32>
    %c0_18 = arith.constant 0 : index
    %c0_19 = arith.constant 0 : index
    %18 = vector.load %arg8[%c0_18, %c0_19] : memref<1x64xf32, #tpu.memory_space<vmem>>, vector<1x64xf32>
    %19 = vector.broadcast %18 : vector<1x64xf32> to vector<49x64xf32>
    %20 = arith.addf %17, %19 : vector<49x64xf32>
    %21 = vector.shape_cast %5 : vector<1x64xf32> to vector<1x64xf32>
    %22 = vector.broadcast %21 : vector<1x64xf32> to vector<21x64xf32>
    %c0_20 = arith.constant 0 : index
    %c0_21 = arith.constant 0 : index
    %23 = vector.load %arg25[%c0_20, %c0_21] : memref<70x64xf32, #tpu.memory_space<vmem>>, vector<21x64xf32>
    tpu.vector_store %arg25[%c0_20, %c0_21], %22 {strides = array<i32>} : memref<70x64xf32, #tpu.memory_space<vmem>>, vector<21x64xf32>,
    %c21 = arith.constant 21 : index
    %c0_22 = arith.constant 0 : index
    %24 = vector.load %arg25[%c21, %c0_22] : memref<70x64xf32, #tpu.memory_space<vmem>>, vector<49x64xf32>
    tpu.vector_store %arg25[%c21, %c0_22], %20 {strides = array<i32>} : memref<70x64xf32, #tpu.memory_space<vmem>>, vector<49x64xf32>,
    %c0_23 = arith.constant 0 : index
    %c0_24 = arith.constant 0 : index
    %25 = vector.load %arg25[%c0_23, %c0_24] : memref<70x64xf32, #tpu.memory_space<vmem>>, vector<70x64xf32>
    %26 = arith.truncf %25 : vector<70x64xf32> to vector<70x64xbf16>
    %c0_25 = arith.constant 0 : index
    %c0_26 = arith.constant 0 : index
    %27 = vector.load %arg9[%c0_25, %c0_26] : memref<64x192xbf16, #tpu.memory_space<vmem>>, vector<64x192xbf16>
    %cst_27 = arith.constant dense<0.000000e+00> : vector<70x192xf32>
    %28 = tpu.matmul %26, %27, %cst_27 {dimension_numbers = #tpu.dot_dimension_numbers<[1], [0], [0], [1], [0, 0, 1, 1], [], []>} : vector<70x64xbf16>, vector<64x192xbf16>, vector<70x192xf32> -> vector<70x192xf32>
    %c0_28 = arith.constant 0 : index
    %c0_29 = arith.constant 0 : index
    %29 = vector.load %arg10[%c0_28, %c0_29] : memref<1x192xf32, #tpu.memory_space<vmem>>, vector<1x192xf32>
    %30 = vector.broadcast %29 : vector<1x192xf32> to vector<70x192xf32>
    %31 = arith.addf %28, %30 : vector<70x192xf32>
    %32 = vector.extract_strided_slice %31 {offsets = [0, 0], sizes = [70, 64], strides = [1, 1]} : vector<70x192xf32> to vector<70x64xf32>
    %33 = arith.truncf %32 : vector<70x64xf32> to vector<70x64xbf16>
    %34 = vector.shape_cast %33 : vector<70x64xbf16> to vector<1x70x64xbf16>
    %35 = vector.extract_strided_slice %31 {offsets = [0, 64], sizes = [70, 64], strides = [1, 1]} : vector<70x192xf32> to vector<70x64xf32>
    %36 = arith.truncf %35 : vector<70x64xf32> to vector<70x64xbf16>
    %37 = vector.shape_cast %36 : vector<70x64xbf16> to vector<1x70x64xbf16>
    %38 = vector.extract_strided_slice %31 {offsets = [0, 128], sizes = [70, 64], strides = [1, 1]} : vector<70x192xf32> to vector<70x64xf32>
    %39 = arith.truncf %38 : vector<70x64xf32> to vector<70x64xbf16>
    %40 = vector.shape_cast %39 : vector<70x64xbf16> to vector<1x70x64xbf16>
    "tpu.trace_start"() <{level = 10 : i32, message = "bqd,bkd->bqk"}> : () -> ()
    %cst_30 = arith.constant dense<0.000000e+00> : vector<1x70x70xf32>
    %41 = tpu.matmul %34, %37, %cst_30 {dimension_numbers = #tpu.dot_dimension_numbers<[2], [2], [1], [1], [0, 0, 0, 1, 1, 1], [0], [0]>} : vector<1x70x64xbf16>, vector<1x70x64xbf16>, vector<1x70x70xf32> -> vector<1x70x70xf32>
    "tpu.trace_stop"() : () -> ()
    %cst_31 = arith.constant dense<0xFF800000> : vector<1x70xf32>
    %42 = vector.multi_reduction <maximumf>, %41, %cst_31 [2] : vector<1x70x70xf32> to vector<1x70xf32>
    %43 = vector.shape_cast %42 : vector<1x70xf32> to vector<1x70x1xf32>
    %44 = vector.broadcast %43 : vector<1x70x1xf32> to vector<1x70x70xf32>
    %45 = arith.subf %41, %44 : vector<1x70x70xf32>
    %46 = math.exp %45 : vector<1x70x70xf32>
    %cst_32 = arith.constant dense<0.000000e+00> : vector<1x70xf32>
    %47 = vector.multi_reduction <add>, %46, %cst_32 [2] : vector<1x70x70xf32> to vector<1x70xf32>
    %48 = vector.shape_cast %47 : vector<1x70xf32> to vector<1x70x1xf32>
    %49 = tpu.reciprocal %48 {approx = true} : vector<1x70x1xf32> -> vector<1x70x1xf32>
    %50 = vector.broadcast %49 : vector<1x70x1xf32> to vector<1x70x70xf32>
    %51 = arith.mulf %46, %50 : vector<1x70x70xf32>
    %52 = arith.truncf %51 : vector<1x70x70xf32> to vector<1x70x70xbf16>
    "tpu.trace_start"() <{level = 10 : i32, message = "bqk,bkd->bqd"}> : () -> ()
    %cst_33 = arith.constant dense<0.000000e+00> : vector<1x70x64xf32>
    %53 = tpu.matmul %52, %40, %cst_33 {dimension_numbers = #tpu.dot_dimension_numbers<[2], [1], [1], [2], [0, 0, 0, 1, 1, 2], [0], [0]>} : vector<1x70x70xbf16>, vector<1x70x64xbf16>, vector<1x70x64xf32> -> vector<1x70x64xf32>
    "tpu.trace_stop"() : () -> ()
    %54 = vector.shape_cast %53 : vector<1x70x64xf32> to vector<70x64xf32>
    %55 = arith.truncf %54 : vector<70x64xf32> to vector<70x64xbf16>
    %c0_34 = arith.constant 0 : index
    %c0_35 = arith.constant 0 : index
    %56 = vector.load %arg11[%c0_34, %c0_35] : memref<64x64xbf16, #tpu.memory_space<vmem>>, vector<64x64xbf16>
    %cst_36 = arith.constant dense<0.000000e+00> : vector<70x64xf32>
    %57 = tpu.matmul %55, %56, %cst_36 {dimension_numbers = #tpu.dot_dimension_numbers<[1], [0], [0], [1], [0, 0, 1, 1], [], []>} : vector<70x64xbf16>, vector<64x64xbf16>, vector<70x64xf32> -> vector<70x64xf32>
    %58 = arith.addf %25, %57 : vector<70x64xf32>
    %c0_37 = arith.constant 0 : index
    %c0_38 = arith.constant 0 : index
    %59 = vector.load %arg12[%c0_37, %c0_38] : memref<1x64xf32, #tpu.memory_space<vmem>>, vector<1x64xf32>
    %60 = vector.broadcast %59 : vector<1x64xf32> to vector<70x64xf32>
    %61 = arith.addf %58, %60 : vector<70x64xf32>
    %62 = arith.truncf %61 : vector<70x64xf32> to vector<70x64xbf16>
    %c0_39 = arith.constant 0 : index
    %c0_40 = arith.constant 0 : index
    %63 = vector.load %arg13[%c0_39, %c0_40] : memref<64x128xbf16, #tpu.memory_space<vmem>>, vector<64x128xbf16>
    %cst_41 = arith.constant dense<0.000000e+00> : vector<70x128xf32>
    %64 = tpu.matmul %62, %63, %cst_41 {dimension_numbers = #tpu.dot_dimension_numbers<[1], [0], [0], [1], [0, 0, 1, 1], [], []>} : vector<70x64xbf16>, vector<64x128xbf16>, vector<70x128xf32> -> vector<70x128xf32>
    %c0_42 = arith.constant 0 : index
    %c0_43 = arith.constant 0 : index
    %65 = vector.load %arg14[%c0_42, %c0_43] : memref<1x128xf32, #tpu.memory_space<vmem>>, vector<1x128xf32>
    %66 = vector.broadcast %65 : vector<1x128xf32> to vector<70x128xf32>
    %67 = arith.addf %64, %66 : vector<70x128xf32>
    %cst_44 = arith.constant 0.000000e+00 : f32
    %68 = vector.broadcast %cst_44 : f32 to vector<70x128xf32>
    %69 = arith.maximumf %67, %68 : vector<70x128xf32>
    %70 = arith.truncf %69 : vector<70x128xf32> to vector<70x128xbf16>
    %c0_45 = arith.constant 0 : index
    %c0_46 = arith.constant 0 : index
    %71 = vector.load %arg15[%c0_45, %c0_46] : memref<128x64xbf16, #tpu.memory_space<vmem>>, vector<128x64xbf16>
    %cst_47 = arith.constant dense<0.000000e+00> : vector<70x64xf32>
    %72 = tpu.matmul %70, %71, %cst_47 {dimension_numbers = #tpu.dot_dimension_numbers<[1], [0], [0], [1], [0, 0, 1, 1], [], []>} : vector<70x128xbf16>, vector<128x64xbf16>, vector<70x64xf32> -> vector<70x64xf32>
    %73 = arith.addf %61, %72 : vector<70x64xf32>
    %c0_48 = arith.constant 0 : index
    %c0_49 = arith.constant 0 : index
    %74 = vector.load %arg16[%c0_48, %c0_49] : memref<1x64xf32, #tpu.memory_space<vmem>>, vector<1x64xf32>
    %75 = vector.broadcast %74 : vector<1x64xf32> to vector<70x64xf32>
    %76 = arith.addf %73, %75 : vector<70x64xf32>
    %77 = vector.extract_strided_slice %76 {offsets = [0, 0], sizes = [21, 64], strides = [1, 1]} : vector<70x64xf32> to vector<21x64xf32>
    %78 = arith.truncf %77 : vector<21x64xf32> to vector<21x64xbf16>
    %c0_50 = arith.constant 0 : index
    %c0_51 = arith.constant 0 : index
    %79 = vector.load %arg17[%c0_50, %c0_51] : memref<64x3xbf16, #tpu.memory_space<vmem>>, vector<64x3xbf16>
    %cst_52 = arith.constant dense<0.000000e+00> : vector<21x3xf32>
    %80 = tpu.matmul %78, %79, %cst_52 {dimension_numbers = #tpu.dot_dimension_numbers<[1], [0], [0], [1], [0, 0, 1, 1], [], []>} : vector<21x64xbf16>, vector<64x3xbf16>, vector<21x3xf32> -> vector<21x3xf32>
    %c0_53 = arith.constant 0 : index
    %c0_54 = arith.constant 0 : index
    %81 = vector.load %arg18[%c0_53, %c0_54] : memref<1x3xf32, #tpu.memory_space<vmem>>, vector<1x3xf32>
    %82 = vector.broadcast %81 : vector<1x3xf32> to vector<21x3xf32>
    %83 = arith.addf %80, %82 : vector<21x3xf32>
    %84 = vector.shape_cast %83 : vector<21x3xf32> to vector<1x21x3xf32>
    %c0_55 = arith.constant 0 : index
    %c0_56 = arith.constant 0 : index
    %c0_57 = arith.constant 0 : index
    %85 = vector.load %arg23[%c0_55, %c0_56, %c0_57] : memref<1x21x3xf32, #tpu.memory_space<vmem>>, vector<1x21x3xf32>
    tpu.vector_store %arg23[%c0_55, %c0_56, %c0_57], %84 {strides = array<i32>} : memref<1x21x3xf32, #tpu.memory_space<vmem>>, vector<1x21x3xf32>,
    %c0_58 = arith.constant 0 : index
    %c0_59 = arith.constant 0 : index
    %86 = vector.load %arg19[%c0_58, %c0_59] : memref<64x1xf32, #tpu.memory_space<vmem>>, vector<64x1xf32>
    %cst_60 = arith.constant dense<0.000000e+00> : vector<70x1xf32>
    %87 = tpu.matmul %76, %86, %cst_60 {dimension_numbers = #tpu.dot_dimension_numbers<[1], [0], [0], [1], [0, 0, 1, 1], [], []>} : vector<70x64xf32>, vector<64x1xf32>, vector<70x1xf32> -> vector<70x1xf32>
    %c0_61 = arith.constant 0 : index
    %c0_62 = arith.constant 0 : index
    %88 = vector.load %arg20[%c0_61, %c0_62] : memref<1x1xf32, #tpu.memory_space<vmem>>, vector<1x1xf32>
    %89 = vector.broadcast %88 : vector<1x1xf32> to vector<70x1xf32>
    %90 = arith.addf %87, %89 : vector<70x1xf32>
    %c0_63 = arith.constant 0 : index
    %c0_64 = arith.constant 0 : index
    %91 = vector.load %arg21[%c0_63, %c0_64] : memref<70x7xf32, #tpu.memory_space<vmem>>, vector<70x7xf32>
    %92 = vector.broadcast %90 : vector<70x1xf32> to vector<70x7xf32>
    %93 = arith.mulf %92, %91 : vector<70x7xf32>
    %cst_65 = arith.constant dense<0.000000e+00> : vector<7xf32>
    %94 = vector.multi_reduction <add>, %93, %cst_65 [0] : vector<70x7xf32> to vector<7xf32>
    %95 = vector.shape_cast %94 : vector<7xf32> to vector<1x7xf32>
    %c0_66 = arith.constant 0 : index
    %c0_67 = arith.constant 0 : index
    %96 = vector.load %arg22[%c0_66, %c0_67] : memref<1x7xf32, #tpu.memory_space<vmem>>, vector<1x7xf32>
    %97 = arith.addf %95, %96 : vector<1x7xf32>
    %98 = vector.shape_cast %97 : vector<1x7xf32> to vector<1x1x7xf32>
    %c0_68 = arith.constant 0 : index
    %c0_69 = arith.constant 0 : index
    %c0_70 = arith.constant 0 : index
    %99 = vector.load %arg24[%c0_68, %c0_69, %c0_70] : memref<1x1x7xf32, #tpu.memory_space<vmem>>, vector<1x1x7xf32>
    tpu.vector_store %arg24[%c0_68, %c0_69, %c0_70], %98 {strides = array<i32>} : memref<1x1x7xf32, #tpu.memory_space<vmem>>, vector<1x1x7xf32>,
    return
  }
  func.func @transform_0(%arg0: i32) -> (i32, i32, i32) {
    %c0_i32 = arith.constant 0 : i32
    %c0_i32_0 = arith.constant 0 : i32
    %c0_i32_1 = arith.constant 0 : i32
    return %arg0, %c0_i32, %c0_i32_0 : i32, i32, i32
  }
  func.func @transform_1(%arg0: i32) -> (i32, i32, i32) {
    %c0_i32 = arith.constant 0 : i32
    %c0_i32_0 = arith.constant 0 : i32
    %c0_i32_1 = arith.constant 0 : i32
    return %arg0, %c0_i32, %c0_i32_0 : i32, i32, i32
  }
  func.func @transform_2(%arg0: i32) -> (i32, i32) {
    %c0_i32 = arith.constant 0 : i32
    %c0_i32_0 = arith.constant 0 : i32
    %c0_i32_1 = arith.constant 0 : i32
    return %c0_i32, %c0_i32_0 : i32, i32
  }
  func.func @transform_3(%arg0: i32) -> (i32, i32) {
    %c0_i32 = arith.constant 0 : i32
    %c0_i32_0 = arith.constant 0 : i32
    %c0_i32_1 = arith.constant 0 : i32
    return %c0_i32, %c0_i32_0 : i32, i32
  }
  func.func @transform_4(%arg0: i32) -> (i32, i32) {
    %c0_i32 = arith.constant 0 : i32
    %c0_i32_0 = arith.constant 0 : i32
    %c0_i32_1 = arith.constant 0 : i32
    return %c0_i32, %c0_i32_0 : i32, i32
  }
  func.func @transform_5(%arg0: i32) -> (i32, i32) {
    %c0_i32 = arith.constant 0 : i32
    %c0_i32_0 = arith.constant 0 : i32
    %c0_i32_1 = arith.constant 0 : i32
    return %c0_i32, %c0_i32_0 : i32, i32
  }
  func.func @transform_6(%arg0: i32) -> (i32, i32) {
    %c0_i32 = arith.constant 0 : i32
    %c0_i32_0 = arith.constant 0 : i32
    %c0_i32_1 = arith.constant 0 : i32
    return %c0_i32, %c0_i32_0 : i32, i32
  }
  func.func @transform_7(%arg0: i32) -> (i32, i32) {
    %c0_i32 = arith.constant 0 : i32
    %c0_i32_0 = arith.constant 0 : i32
    %c0_i32_1 = arith.constant 0 : i32
    return %c0_i32, %c0_i32_0 : i32, i32
  }
  func.func @transform_8(%arg0: i32) -> (i32, i32) {
    %c0_i32 = arith.constant 0 : i32
    %c0_i32_0 = arith.constant 0 : i32
    %c0_i32_1 = arith.constant 0 : i32
    return %c0_i32, %c0_i32_0 : i32, i32
  }
  func.func @transform_9(%arg0: i32) -> (i32, i32) {
    %c0_i32 = arith.constant 0 : i32
    %c0_i32_0 = arith.constant 0 : i32
    %c0_i32_1 = arith.constant 0 : i32
    return %c0_i32, %c0_i32_0 : i32, i32
  }
  func.func @transform_10(%arg0: i32) -> (i32, i32) {
    %c0_i32 = arith.constant 0 : i32
    %c0_i32_0 = arith.constant 0 : i32
    %c0_i32_1 = arith.constant 0 : i32
    return %c0_i32, %c0_i32_0 : i32, i32
  }
  func.func @transform_11(%arg0: i32) -> (i32, i32) {
    %c0_i32 = arith.constant 0 : i32
    %c0_i32_0 = arith.constant 0 : i32
    %c0_i32_1 = arith.constant 0 : i32
    return %c0_i32, %c0_i32_0 : i32, i32
  }
  func.func @transform_12(%arg0: i32) -> (i32, i32) {
    %c0_i32 = arith.constant 0 : i32
    %c0_i32_0 = arith.constant 0 : i32
    %c0_i32_1 = arith.constant 0 : i32
    return %c0_i32, %c0_i32_0 : i32, i32
  }
  func.func @transform_13(%arg0: i32) -> (i32, i32) {
    %c0_i32 = arith.constant 0 : i32
    %c0_i32_0 = arith.constant 0 : i32
    %c0_i32_1 = arith.constant 0 : i32
    return %c0_i32, %c0_i32_0 : i32, i32
  }
  func.func @transform_14(%arg0: i32) -> (i32, i32) {
    %c0_i32 = arith.constant 0 : i32
    %c0_i32_0 = arith.constant 0 : i32
    %c0_i32_1 = arith.constant 0 : i32
    return %c0_i32, %c0_i32_0 : i32, i32
  }
  func.func @transform_15(%arg0: i32) -> (i32, i32) {
    %c0_i32 = arith.constant 0 : i32
    %c0_i32_0 = arith.constant 0 : i32
    %c0_i32_1 = arith.constant 0 : i32
    return %c0_i32, %c0_i32_0 : i32, i32
  }
  func.func @transform_16(%arg0: i32) -> (i32, i32) {
    %c0_i32 = arith.constant 0 : i32
    %c0_i32_0 = arith.constant 0 : i32
    %c0_i32_1 = arith.constant 0 : i32
    return %c0_i32, %c0_i32_0 : i32, i32
  }
  func.func @transform_17(%arg0: i32) -> (i32, i32) {
    %c0_i32 = arith.constant 0 : i32
    %c0_i32_0 = arith.constant 0 : i32
    %c0_i32_1 = arith.constant 0 : i32
    return %c0_i32, %c0_i32_0 : i32, i32
  }
  func.func @transform_18(%arg0: i32) -> (i32, i32) {
    %c0_i32 = arith.constant 0 : i32
    %c0_i32_0 = arith.constant 0 : i32
    %c0_i32_1 = arith.constant 0 : i32
    return %c0_i32, %c0_i32_0 : i32, i32
  }
  func.func @transform_19(%arg0: i32) -> (i32, i32) {
    %c0_i32 = arith.constant 0 : i32
    %c0_i32_0 = arith.constant 0 : i32
    %c0_i32_1 = arith.constant 0 : i32
    return %c0_i32, %c0_i32_0 : i32, i32
  }
  func.func @transform_20(%arg0: i32) -> (i32, i32) {
    %c0_i32 = arith.constant 0 : i32
    %c0_i32_0 = arith.constant 0 : i32
    %c0_i32_1 = arith.constant 0 : i32
    return %c0_i32, %c0_i32_0 : i32, i32
  }
  func.func @transform_21(%arg0: i32) -> (i32, i32) {
    %c0_i32 = arith.constant 0 : i32
    %c0_i32_0 = arith.constant 0 : i32
    %c0_i32_1 = arith.constant 0 : i32
    return %c0_i32, %c0_i32_0 : i32, i32
  }
  func.func @transform_22(%arg0: i32) -> (i32, i32, i32) {
    %c0_i32 = arith.constant 0 : i32
    %c0_i32_0 = arith.constant 0 : i32
    %c0_i32_1 = arith.constant 0 : i32
    return %arg0, %c0_i32, %c0_i32_0 : i32, i32, i32
  }
  func.func @transform_23(%arg0: i32) -> (i32, i32, i32) {
    %c0_i32 = arith.constant 0 : i32
    %c0_i32_0 = arith.constant 0 : i32
    %c0_i32_1 = arith.constant 0 : i32
    return %arg0, %c0_i32, %c0_i32_0 : i32, i32, i32
  }
}

</mosaic_0001>

<bundles_post_ra>
// kernel: graphormer_hand_forward.2
= control target key start
LH: loop header
LB: loop body
LE: loop exit
PB: predicated region body
PF: predicated region fallthrough
CT: control target
= control target key end

     0   :  { %11 = vsyncpa [#allocation3], 0  ;;  %s7666_s0 = inlined_call_operand.vmem [shape: f32[98,3], index: 0, kind: input, shape index: {}]   ;;  %s7667_s1 = inlined_call_operand.hbm [shape: f32[3,1024], index: 1, kind: input, shape index: {}]   ;;  %s7668_s2 = inlined_call_operand.hbm [shape: f32[1,1024], index: 2, kind: input, shape index: {}]   ;;  %s7669_s3 = inlined_call_operand.vmem [shape: f32[2,98], index: 3, kind: input, shape index: {}]   ;;  %s7670_s4 = inlined_call_operand.hbm [shape: bf16[1024,2048], index: 4, kind: input, shape index: {}]   ;;  %s7671_s5 = inlined_call_operand.hbm [shape: f32[1,2048], index: 5, kind: input, shape index: {}]   ;;  %s7672_s6 = inlined_call_operand.vmem [shape: bf16[2,2048], index: 6, kind: output, shape index: {}]  }
   0x1   :  { %12 = vsyncpa [#allocation5], 0  ;;  %s6279_s21 = smov 0   ;;  %s6281_s22 = smov 0  }
   0x2   :  { %s6283_s23 = smov 0   ;;  %s6285_s24 = smov 0  }
   0x3 LB: > { %s6298_s25 = sadd.s32 4294967295, %s6233_s24   ;;  %s6301_s26 = sadd.s32 1, %s6233_s24   ;;  %s6233_s24 = sphi %s6285_s24, %s7749_s24   ;;  %s6229_s23 = sphi %s6283_s23, %s7748_s23   ;;  %s6225_s22 = sphi %s6281_s22, %s7747_s22   ;;  %s6221_s21 = sphi %s6279_s21, %s7746_s21  }
   0x4   : > { %s106_s27 = ssub.s32 %s6233_s24, %s6301_s26  ;;  %s109_s28 = sadd.s32 1, %s6229_s23 }
   0x5   : > { %p107_p0 = scmp.eq.s32.totalorder %s106_s27, 0  ;;  %p116_p1 = scmp.ne.s32.totalorder %s6229_s23, %s6225_s22 }
   0x6   : > { %p117_p2 = scmp.eq.s32.totalorder %s6233_s24, 0  ;;  %p122_p3 = scmp.ne.s32.totalorder %s6225_s22, %s6221_s21 }
   0x7   : > { %s6311_s29 = scalar_select %p107_p0, %s6229_s23, %s109_s28  }
   0x8   : > { %p6313_p4 = por %p117_p2, %p116_p1  ;;  %p7673_p5 = scmp.eq.s32.totalorder %s6298_s25, 0 }
   0x9   : > { %p5400_p6 = scmp.ge.s32.totalorder %s6233_s24, 1  ;;  %p185_p7 = scmp.lt.s32.totalorder %s6233_s24, 3 }
   0xa   : > { %p6322_p8 = por %p7673_p5, %p122_p3  ;;  %s6235_s9 = smov [#allocation2]  }
   0xb   : > { %p6326_p9 = pnand %p5400_p6, %p185_p7  ;;  %s201_s10 = sshll.u32 %s6235_s9, 4  ;;  %s202_s10 = int_to_ptr.vmem [resolvable:$true] %s201_s10 }
   0xc   : > { %s7695_s7 = scalar_select %p6322_p8, 1, 0 }
   0xd   : > { %s7696_s8 = scalar_select %p6326_p9, 1, 0 }
   0xe   : > { %p6020_p10 = pneg %p6326_p9  ;;  %p6036_p11 = scmp.lt.s32.totalorder %s6233_s24, 2 }
   0xf   : > { %s226_s11 = sand.u32 1, %s6233_s24   ;;  %s228_s14 = sand.u32 1, %s6229_s23  }
  0x10   : > { %p6336_p12 = pnand %p6020_p10, %p7673_p5  ;;  %p6342_p13 = pnand %p6036_p11, %p6313_p4 }
  0x11   : > { %s5404_s15 = sshll.u32 %s228_s14, 12  ;;  %s6094_s16 = scalar_lea.vmem %s202_s10, 512 }
  0x12   : > { %p7674_p0 = pneg %p6336_p12  ;;  %p6095_p1 = scmp.ne.s32.totalorder %s202_s10, %s6094_s16 }
  0x13   : > { %p6102_p6 = scmp.lt.s32.totalorder %s202_s10, %s202_s10  ;;  %p6103_p7 = scmp.lt.s32.totalorder %s6094_s16, %s6094_s16 }
  0x14   : > { %p6097_p2 = pnand %p6095_p1, %p7674_p0 }
  0x15   : > { %p6104_p10 = por %p6103_p7, %p6102_p6 }
  0x16   : > { %p6098_p3 = pneg %p6097_p2 }
  0x18   : > { %p6105_p5 = pnand %p6104_p10, %p6098_p3 }
  0x1a   : > { %6108 = shalt.err (!%p6105_p5)
}
  0x1b   : > { %6023 = dma.hbm_to_vmem [thread:$0]  (!%p6336_p12), %s7667_s1, 512, %s202_s10, [#allocation3]  }
  0x1c   : > { %s6006_s19 = sshll.u32 %s6233_s24, 9  ;;  %s230_s20 = scalar_lea.vmem [#allocation6], %s5404_s15 }
  0x1d   : > { %s237_s21 = sshll.u32 %s230_s20, 4  ;;  %s6363_s30 = scalar_lea.hbm %s7670_s4, %s6006_s19  ;;  %s6365_s21 = int_to_ptr.vmem [resolvable:$true] %s237_s21 }
  0x1e   : > { %s6367_s9 = scalar_lea.sflag [#allocation3], %s226_s11  ;;  %s6109_s16 = scalar_lea.hbm %s6363_s30, 65536 }
  0x1f   : > { %p6110_p4 = scmp.ne.s32.totalorder %s6363_s30, %s6109_s16  ;;  %p6111_p5 = pneg %p6342_p13 }
  0x20   : > { %s6114_s17 = scalar_lea.hbm %s7670_s4, 131072  ;;  %p6115_p2 = scmp.lt.s32.totalorder %s6363_s30, %s7670_s4 }
  0x21   : > { %p6112_p11 = pnand %p6111_p5, %p6110_p4  ;;  %p6116_p3 = scmp.lt.s32.totalorder %s6114_s17, %s6109_s16 }
  0x23   : > { %p6113_p1 = pneg %p6112_p11  ;;  %p6117_p6 = por %p6116_p3, %p6115_p2 }
  0x25   : > { %p6118_p7 = pnand %p6117_p6, %p6113_p1 }
  0x27   : > { %6121 = shalt.err (!%p6118_p7)
}
  0x28   : > { %s6122_s11 = scalar_lea.vmem %s6365_s21, 65536  ;;  %s6236_s20 = smov [#allocation6]  }
  0x29   : > { %p6123_p10 = scmp.ne.s32.totalorder %s6365_s21, %s6122_s11  ;;  %s6127_s27 = sshll.u32 %s6236_s20, 4  ;;  %s6128_s27 = int_to_ptr.vmem [resolvable:$false] %s6127_s27 }
  0x2a   : > { %s6129_s28 = scalar_lea.vmem %s6128_s27, 131072  ;;  %p6130_p0 = scmp.lt.s32.totalorder %s6365_s21, %s6128_s27 }
  0x2b   : > { %p6125_p4 = pnand %p6123_p10, %p6111_p5  ;;  %p6131_p8 = scmp.lt.s32.totalorder %s6129_s28, %s6122_s11 }
  0x2d   : > { %p6126_p11 = pneg %p6125_p4  ;;  %p6132_p9 = por %p6131_p8, %p6130_p0 }
  0x2f   : > { %p6133_p2 = pnand %p6132_p9, %p6126_p11 }
  0x31   : > { %6136 = shalt.err (!%p6133_p2)
}
  0x32   : > { %s6237_s16 = smov 1024   ;;  %s6238_s10 = smov 512  }
  0x33   : > { %s6239_s15 = smov 32   ;;  %s6240_s17 = smov [#allocation4]  }
  0x34   : > { %6030 = dma.hbm_to_vmem [thread:$0]  (!%p6342_p13), %s6363_s30, 65536, %s6365_s21, %s6367_s9, %s6237_s16, %s6238_s10, %s6239_s15  }
  0x35   : > { %s212_s18 = sshll.u32 %s6240_s17, 4  ;;  %s5407_s19 = sshll.u32 %s228_s14, 3  ;;  %s213_s18 = int_to_ptr.vmem [resolvable:$true] %s212_s18 }
  0x36   : > { %s6148_s11 = scalar_lea.vmem %s213_s18, 128  ;;  %p7699_p9 = pneg %p6336_p12 }
  0x37   : > { %p6149_p8 = scmp.ne.s32.totalorder %s213_s18, %s6148_s11  ;;  %p6156_p3 = scmp.lt.s32.totalorder %s213_s18, %s213_s18 }
  0x38   : > { %p6157_p6 = scmp.lt.s32.totalorder %s6148_s11, %s6148_s11 }
  0x39   : > { %p6151_p0 = pnand %p6149_p8, %p7699_p9 }
  0x3a   : > { %p6158_p7 = por %p6157_p6, %p6156_p3 }
  0x3b   : > { %p6152_p1 = pneg %p6151_p0 }
  0x3d   : > { %p6159_p10 = pnand %p6158_p7, %p6152_p1 }
  0x3f   : > { %6162 = shalt.err (!%p6159_p10)
}
  0x40   : > { %6026 = dma.hbm_to_vmem [thread:$0]  (!%p6336_p12), %s7668_s2, 128, %s213_s18, [#allocation5]  }
  0x41   : > { %s6007_s14 = sshll.u32 %s6233_s24, 7  ;;  %s251_s30 = scalar_lea.vmem [#allocation7], %s5407_s19 }
  0x42   : > { %s259_s27 = sshll.u32 %s251_s30, 4  ;;  %s257_s10 = scalar_lea.hbm %s7671_s5, %s6007_s14  ;;  %s260_s27 = int_to_ptr.vmem [resolvable:$true] %s259_s27 }
  0x43   : > { %s6163_s15 = scalar_lea.hbm %s257_s10, 128  ;;  %s6168_s11 = scalar_lea.hbm %s7671_s5, 256 }
  0x44   : > { %p6164_p4 = scmp.ne.s32.totalorder %s257_s10, %s6163_s15  ;;  %p6169_p12 = scmp.lt.s32.totalorder %s257_s10, %s7671_s5 }
  0x45   : > { %p6170_p8 = scmp.lt.s32.totalorder %s6168_s11, %s6163_s15 }
  0x46   : > { %p6166_p11 = pnand %p6164_p4, %p6111_p5 }
  0x47   : > { %p6171_p9 = por %p6170_p8, %p6169_p12 }
  0x48   : > { %p6167_p2 = pneg %p6166_p11 }
  0x4a   : > { %p6172_p0 = pnand %p6171_p9, %p6167_p2 }
  0x4c   : > { %6175 = shalt.err (!%p6172_p0)
}
  0x4d   : > { %s6176_s24 = scalar_lea.vmem %s260_s27, 128  ;;  %s6241_s19 = smov [#allocation7]  }
  0x4e   : > { %p6177_p1 = scmp.ne.s32.totalorder %s260_s27, %s6176_s24  ;;  %s6181_s21 = sshll.u32 %s6241_s19, 4  ;;  %s6182_s21 = int_to_ptr.vmem [resolvable:$false] %s6181_s21 }
  0x4f   : > { %s6183_s14 = scalar_lea.vmem %s6182_s21, 256  ;;  %p6184_p7 = scmp.lt.s32.totalorder %s260_s27, %s6182_s21 }
  0x50   : > { %p6179_p3 = pnand %p6177_p1, %p6111_p5  ;;  %p6185_p10 = scmp.lt.s32.totalorder %s6183_s14, %s6176_s24 }
  0x52   : > { %p6180_p6 = pneg %p6179_p3  ;;  %p6186_p4 = por %p6185_p10, %p6184_p7 }
  0x54   : > { %p6187_p11 = pnand %p6186_p4, %p6180_p6 }
  0x56   : > { %6190 = shalt.err (!%p6187_p11)
}
  0x57   : > { %6033 = dma.hbm_to_vmem [thread:$0]  (!%p6342_p13), %s257_s10, 128, %s260_s27, %s6367_s9  }
  0x58   : > { %p7700_p2 = scmp.ne.s32.totalorder %s7696_s8, 0 }
  0x5a   : > { %268 = sbr.rel (%p7700_p2) target bundleno = 1243 (0x4db), region = 44 }
  0x5f   : > { %p7701_p12 = scmp.eq.s32.totalorder %s6298_s25, 0 }
  0x61   : > { %6208 = dma.done.wait (%p7701_p12), [#allocation3], 512   ;;  %p7702_p5 = pmov %p7701_p12 }
  0x63   : > { %6210 = vsyncadd (%p7702_p5), [#allocation3], 4294966784  ;;  %p7703_p8 = pmov %p7702_p5 }
  0x64   : > { %p7704_p9 = pmov %p7702_p5 }
  0x65   : > { %6212 = dma.done.wait (%p7703_p8), [#allocation5], 128  }
  0x66   : > { %6214 = vsyncadd (%p7704_p9), [#allocation5], 4294967168  ;;  %s278_s13 = sand.u32 1, %s6298_s25   ;;  %s280_s9 = sand.u32 1, %s6225_s22  }
  0x67   : > { %s5413_s8 = sshll.u32 %s280_s9, 12  ;;  %s279_s30 = scalar_lea.sflag [#allocation3], %s278_s13 }
  0x68   : > { %s6437_s27 = scalar_lea.vmem [#allocation6], %s5413_s8  ;;  %p7705_p13 = scmp.ne.s32.totalorder %s7695_s7, 0 }
  0x6a   : > { %6216 = dma.done.wait (%p7705_p13), %s279_s30, 65664  }
  0x6b   : > { %6218 = vsyncadd (%p7705_p13), %s279_s30, 4294901632  ;;  %v7679_v0 = vmov 0.0   ;;  %v344_v1 = vld [vmem:[#allocation2] sm:$0x77]  ;;  %vm438_vm0 = vcmask 1042432   ;;  %vm398_vm1 = vcmask 23552   ;;  %v350_v58 = vlaneseq }
  0x6c   : > { %519 = vmatprep.mubr.f32.mxu0 %v7679_v0  ;;  %662 = vmatprep.mubr.f32.mxu1 %v7679_v0  ;;  %v345_v2 = vld [vmem:[#allocation2 + $0x8] sm:$0x77]  ;;  %v394_v3 = vcombine.high %v344_v1, %v344_v1  ;;  %v6448_v5 = vld [vmem:[%s7666_s0] sm:$0xff]  ;;  %v346_v6 = vld [vmem:[#allocation2 + $0x10] sm:$0x77]  ;;  %vm1136_vm2 = vcmask 1041408  }
  0x6d   : > { %v395_v4 = vcombine.high %v345_v2, %v345_v2  ;;  %v347_v7 = vld [vmem:[#allocation2 + $0x18] sm:$0x77]  ;;  %v396_v8 = vcombine.high %v346_v6, %v346_v6  ;;  %v6463_v10 = vld [vmem:[%s7666_s0 + $0x8] sm:$0xff]  ;;  %v6478_v11 = vld [vmem:[%s7666_s0 + $0x10] sm:$0xff]  ;;  %v6692_v63 = vshrl.u32 %v350_v58, 7  ;;  %vm1132_vm3 = vcmask 801792  }
  0x6e   : > { %5416 = vmatprep.subr.msk.mxu0 %vm438_vm0, %v394_v3  ;;  %v397_v9 = vcombine.high %v347_v7, %v347_v7  ;;  %v6489_v12 = vld [vmem:[%s7666_s0 + $0x18] sm:$0xff]  ;;  %v335_v13 = vld [vmem:[%s7666_s0 + $0x20] sm:$0xff]  ;;  %v336_v14 = vld [vmem:[%s7666_s0 + $0x28] sm:$0xff]  ;;  %s7319_s19 = sshll.u32 %s280_s9, 3 }
  0x6f   : > { %5431 = vmatprep.subr.msk.mxu1 %vm438_vm0, %v395_v4  ;;  %5417 = vmatpush1.msk.msra.mxu0 %vm438_vm0, %v344_v1  ;;  %v337_v15 = vld [vmem:[%s7666_s0 + $0x30] sm:$0xff]  ;;  %v338_v16 = vld [vmem:[%s7666_s0 + $0x38] sm:$0xff]  ;;  %v339_v17 = vld [vmem:[%s7666_s0 + $0x40] sm:$0xff]  ;;  %7711 = vst [vmem:[#allocation16_spill] sm:$0xff] %v6692_v63  ;;  %s291_s9 = scalar_lea.vmem [#allocation7], %s7319_s19 }
  0x70   : > { %5432 = vmatpush1.msk.msra.mxu1 %vm438_vm0, %v345_v2  ;;  %5418 = vmatmul.mubr.msk.f32.vlgmr.msra.gmra.mxu0 %vm398_vm1, %v6448_v5  ;;  %v340_v18 = vld [vmem:[%s7666_s0 + $0x48] sm:$0xff]  ;;  %v341_v19 = vld [vmem:[%s7666_s0 + $0x50] sm:$0xff]  ;;  %v342_v20 = vld [vmem:[%s7666_s0 + $0x58] sm:$0xff] }
  0x71   : > { %5433 = vmatmul.mubr.msk.f32.vlgmr.msra.gmra.mxu1 %vm398_vm1, %v6448_v5  ;;  %525 = vmatprep.mubr.f32.mxu0 %v7679_v0  ;;  %v343_v21 = vld [vmem:[%s7666_s0 + $0x60] sm:$0x3] }
  0x72   : > { %668 = vmatprep.mubr.f32.mxu1 %v7679_v0  ;;  %5446 = vmatprep.subr.msk.mxu0 %vm438_vm0, %v396_v8 }
  0x73   : > { %5461 = vmatprep.subr.msk.mxu1 %vm438_vm0, %v397_v9  ;;  %5447 = vmatpush1.msk.msra.mxu0 %vm438_vm0, %v346_v6  ;;  %v7678_v6 = vsub.s32 0, %v6692_v63  ;;  %v6696_v9 = vld [vmem:[#allocation4] sm:$0xff] }
  0x74   : > { %5462 = vmatpush1.msk.msra.mxu1 %vm438_vm0, %v347_v7  ;;  %5419 = vmatmul.mubr.msk.f32.gmra.mxu0 %vm398_vm1, %v6463_v10  ;;  %7712 = vst [vmem:[#allocation17_spill] sm:$0xff] %v6696_v9 }
  0x75   : > { %5434 = vmatmul.mubr.msk.f32.gmra.mxu1 %vm398_vm1, %v6463_v10  ;;  %531 = vmatprep.mubr.f32.mxu0 %v7679_v0 }
  0x76   : > { %674 = vmatprep.mubr.f32.mxu1 %v7679_v0 }
  0x78   : > { %5420 = vmatmul.mubr.msk.f32.gmra.mxu0 %vm398_vm1, %v6478_v11 }
  0x79   : > { %5435 = vmatmul.mubr.msk.f32.gmra.mxu1 %vm398_vm1, %v6478_v11  ;;  %537 = vmatprep.mubr.f32.mxu0 %v7679_v0 }
  0x7a   : > { %680 = vmatprep.mubr.f32.mxu1 %v7679_v0 }
  0x7c   : > { %5421 = vmatmul.mubr.msk.f32.gmra.mxu0 %vm398_vm1, %v6489_v12 }
  0x7d   : > { %5436 = vmatmul.mubr.msk.f32.gmra.mxu1 %vm398_vm1, %v6489_v12  ;;  %543 = vmatprep.mubr.f32.mxu0 %v7679_v0 }
  0x7e   : > { %686 = vmatprep.mubr.f32.mxu1 %v7679_v0 }
  0x80   : > { %5422 = vmatmul.mubr.msk.f32.gmra.mxu0 %vm398_vm1, %v335_v13 }
  0x81   : > { %5437 = vmatmul.mubr.msk.f32.gmra.mxu1 %vm398_vm1, %v335_v13  ;;  %549 = vmatprep.mubr.f32.mxu0 %v7679_v0 }
  0x82   : > { %692 = vmatprep.mubr.f32.mxu1 %v7679_v0 }
  0x84   : > { %5423 = vmatmul.mubr.msk.f32.gmra.mxu0 %vm398_vm1, %v336_v14 }
  0x85   : > { %5438 = vmatmul.mubr.msk.f32.gmra.mxu1 %vm398_vm1, %v336_v14  ;;  %555 = vmatprep.mubr.f32.mxu0 %v7679_v0 }
  0x86   : > { %698 = vmatprep.mubr.f32.mxu1 %v7679_v0 }
  0x88   : > { %5424 = vmatmul.mubr.msk.f32.gmra.mxu0 %vm398_vm1, %v337_v15 }
  0x89   : > { %5439 = vmatmul.mubr.msk.f32.gmra.mxu1 %vm398_vm1, %v337_v15  ;;  %561 = vmatprep.mubr.f32.mxu0 %v7679_v0 }
  0x8a   : > { %704 = vmatprep.mubr.f32.mxu1 %v7679_v0 }
  0x8c   : > { %5425 = vmatmul.mubr.msk.f32.gmra.mxu0 %vm398_vm1, %v338_v16 }
  0x8d   : > { %5440 = vmatmul.mubr.msk.f32.gmra.mxu1 %vm398_vm1, %v338_v16  ;;  %567 = vmatprep.mubr.f32.mxu0 %v7679_v0 }
  0x8e   : > { %710 = vmatprep.mubr.f32.mxu1 %v7679_v0 }
  0x90   : > { %5426 = vmatmul.mubr.msk.f32.gmra.mxu0 %vm398_vm1, %v339_v17 }
  0x91   : > { %5441 = vmatmul.mubr.msk.f32.gmra.mxu1 %vm398_vm1, %v339_v17  ;;  %573 = vmatprep.mubr.f32.mxu0 %v7679_v0 }
  0x92   : > { %716 = vmatprep.mubr.f32.mxu1 %v7679_v0 }
  0x94   : > { %5427 = vmatmul.mubr.msk.f32.gmra.mxu0 %vm398_vm1, %v340_v18 }
  0x95   : > { %5442 = vmatmul.mubr.msk.f32.gmra.mxu1 %vm398_vm1, %v340_v18  ;;  %579 = vmatprep.mubr.f32.mxu0 %v7679_v0 }
  0x96   : > { %722 = vmatprep.mubr.f32.mxu1 %v7679_v0 }
  0x98   : > { %5428 = vmatmul.mubr.msk.f32.gmra.mxu0 %vm398_vm1, %v341_v19 }
  0x99   : > { %5443 = vmatmul.mubr.msk.f32.gmra.mxu1 %vm398_vm1, %v341_v19  ;;  %585 = vmatprep.mubr.f32.mxu0 %v7679_v0 }
  0x9a   : > { %728 = vmatprep.mubr.f32.mxu1 %v7679_v0 }
  0x9c   : > { %5429 = vmatmul.mubr.msk.f32.gmra.mxu0 %vm398_vm1, %v342_v20 }
  0x9d   : > { %5444 = vmatmul.mubr.msk.f32.gmra.mxu1 %vm398_vm1, %v342_v20  ;;  %591 = vmatprep.mubr.f32.mxu0 %v7679_v0 }
  0x9e   : > { %734 = vmatprep.mubr.f32.mxu1 %v7679_v0 }
  0xa0   : > { %5430 = vmatmul.mubr.msk.f32.gmra.mxu0 %vm398_vm1, %v343_v21 }
  0xa1   : > { %5445 = vmatmul.mubr.msk.f32.gmra.mxu1 %vm398_vm1, %v343_v21  ;;  %805 = vmatprep.mubr.f32.mxu0 %v7679_v0 }
  0xa2   : > { %948 = vmatprep.mubr.f32.mxu1 %v7679_v0 }
  0xa4   : > { %5448 = vmatmul.mubr.msk.f32.vlgmr.msra.gmra.mxu0 %vm398_vm1, %v6448_v5 }
  0xa5   : > { %5463 = vmatmul.mubr.msk.f32.vlgmr.msra.gmra.mxu1 %vm398_vm1, %v6448_v5  ;;  %811 = vmatprep.mubr.f32.mxu0 %v7679_v0  ;;  %v7677_v5 = vsub.s32 2, %v6692_v63 }
  0xa6   : > { %954 = vmatprep.mubr.f32.mxu1 %v7679_v0 }
  0xa8   : > { %5449 = vmatmul.mubr.msk.f32.gmra.mxu0 %vm398_vm1, %v6463_v10 }
  0xa9   : > { %5464 = vmatmul.mubr.msk.f32.gmra.mxu1 %vm398_vm1, %v6463_v10  ;;  %817 = vmatprep.mubr.f32.mxu0 %v7679_v0  ;;  %v7681_v10 = vsub.s32 1, %v6692_v63 }
  0xaa   : > { %960 = vmatprep.mubr.f32.mxu1 %v7679_v0 }
  0xac   : > { %5450 = vmatmul.mubr.msk.f32.gmra.mxu0 %vm398_vm1, %v6478_v11 }
  0xad   : > { %5465 = vmatmul.mubr.msk.f32.gmra.mxu1 %vm398_vm1, %v6478_v11  ;;  %823 = vmatprep.mubr.f32.mxu0 %v7679_v0  ;;  %v7684_v11 = vsub.s32 3, %v6692_v63 }
  0xae   : > { %966 = vmatprep.mubr.f32.mxu1 %v7679_v0 }
  0xb0   : > { %5451 = vmatmul.mubr.msk.f32.gmra.mxu0 %vm398_vm1, %v6489_v12 }
  0xb1   : > { %5466 = vmatmul.mubr.msk.f32.gmra.mxu1 %vm398_vm1, %v6489_v12  ;;  %829 = vmatprep.mubr.f32.mxu0 %v7679_v0 }
  0xb2   : > { %972 = vmatprep.mubr.f32.mxu1 %v7679_v0 }
  0xb4   : > { %5452 = vmatmul.mubr.msk.f32.gmra.mxu0 %vm398_vm1, %v335_v13 }
  0xb5   : > { %5467 = vmatmul.mubr.msk.f32.gmra.mxu1 %vm398_vm1, %v335_v13  ;;  %835 = vmatprep.mubr.f32.mxu0 %v7679_v0 }
  0xb6   : > { %978 = vmatprep.mubr.f32.mxu1 %v7679_v0 }
  0xb8   : > { %5453 = vmatmul.mubr.msk.f32.gmra.mxu0 %vm398_vm1, %v336_v14 }
  0xb9   : > { %5468 = vmatmul.mubr.msk.f32.gmra.mxu1 %vm398_vm1, %v336_v14  ;;  %841 = vmatprep.mubr.f32.mxu0 %v7679_v0  ;;  %v6703_v14 = vrot.slane %v6696_v9, %v7677_v5 }
  0xba   : > { %984 = vmatprep.mubr.f32.mxu1 %v7679_v0 }
  0xbc   : > { %5454 = vmatmul.mubr.msk.f32.gmra.mxu0 %vm398_vm1, %v337_v15 }
  0xbd   : > { %5469 = vmatmul.mubr.msk.f32.gmra.mxu1 %vm398_vm1, %v337_v15  ;;  %847 = vmatprep.mubr.f32.mxu0 %v7679_v0  ;;  %v6708_v15 = vrot.slane %v6696_v9, %v7678_v6 }
  0xbe   : > { %990 = vmatprep.mubr.f32.mxu1 %v7679_v0 }
  0xc0   : > { %5455 = vmatmul.mubr.msk.f32.gmra.mxu0 %vm398_vm1, %v338_v16 }
  0xc1   : > { %5470 = vmatmul.mubr.msk.f32.gmra.mxu1 %vm398_vm1, %v338_v16  ;;  %853 = vmatprep.mubr.f32.mxu0 %v7679_v0 }
  0xc2   : > { %996 = vmatprep.mubr.f32.mxu1 %v7679_v0 }
  0xc4   : > { %5456 = vmatmul.mubr.msk.f32.gmra.mxu0 %vm398_vm1, %v339_v17 }
  0xc5   : > { %5471 = vmatmul.mubr.msk.f32.gmra.mxu1 %vm398_vm1, %v339_v17  ;;  %859 = vmatprep.mubr.f32.mxu0 %v7679_v0 }
  0xc6   : > { %1002 = vmatprep.mubr.f32.mxu1 %v7679_v0 }
  0xc8   : > { %5457 = vmatmul.mubr.msk.f32.gmra.mxu0 %vm398_vm1, %v340_v18 }
  0xc9   : > { %5472 = vmatmul.mubr.msk.f32.gmra.mxu1 %vm398_vm1, %v340_v18  ;;  %865 = vmatprep.mubr.f32.mxu0 %v7679_v0  ;;  %v6713_v18 = vrot.slane %v6696_v9, %v7681_v10 }
  0xca   : > { %1008 = vmatprep.mubr.f32.mxu1 %v7679_v0 }
  0xcc   : > { %5458 = vmatmul.mubr.msk.f32.gmra.mxu0 %vm398_vm1, %v341_v19 }
  0xcd   : > { %5473 = vmatmul.mubr.msk.f32.gmra.mxu1 %vm398_vm1, %v341_v19  ;;  %871 = vmatprep.mubr.f32.mxu0 %v7679_v0  ;;  %v6718_v19 = vrot.slane %v6696_v9, %v7684_v11 }
  0xce   : > { %1014 = vmatprep.mubr.f32.mxu1 %v7679_v0 }
  0xd0   : > { %5459 = vmatmul.mubr.msk.f32.gmra.mxu0 %vm398_vm1, %v342_v20 }
  0xd1   : > { %5474 = vmatmul.mubr.msk.f32.gmra.mxu1 %vm398_vm1, %v342_v20  ;;  %877 = vmatprep.mubr.f32.mxu0 %v7679_v0 }
  0xd2   : > { %1020 = vmatprep.mubr.f32.mxu1 %v7679_v0 }
  0xd4   : > { %5460 = vmatmul.mubr.msk.f32.gmra.mxu0 %vm398_vm1, %v343_v21 }
  0xd5   : > { %5475 = vmatmul.mubr.msk.f32.gmra.mxu1 %vm398_vm1, %v343_v21  ;;  %1225 = vmatprep.mubr.f32.mxu0 %v7679_v0 }
  0xd6   : > { %1296 = vmatprep.mubr.f32.mxu1 %v7679_v0 }
 0x130   : > { %v6620_v22 = vpop.f32.mrf.mxu0 }
 0x131   : > { %7706 = vst [vmem:[#allocation11_spill] sm:$0xff] %v6620_v22  ;;  %v6622_v23 = vpop.f32.mrf.mxu1 }
 0x132   : > { %7707 = vst [vmem:[#allocation12_spill] sm:$0xff] %v6622_v23  ;;  %v6624_v24 = vpop.f32.mrf.mxu0 }
 0x133   : > { %7708 = vst [vmem:[#allocation13_spill] sm:$0xff] %v6624_v24  ;;  %v6626_v25 = vpop.f32.mrf.mxu1 }
 0x134   : > { %7709 = vst [vmem:[#allocation14_spill] sm:$0xff] %v6626_v25  ;;  %v6628_v26 = vpop.f32.mrf.mxu0 }
 0x135   : > { %v6630_v27 = vpop.f32.mrf.mxu1 }
 0x136   : > { %7710 = vst [vmem:[#allocation15_spill] sm:$0xff] %v6630_v27  ;;  %v6632_v28 = vpop.f32.mrf.mxu0 }
 0x137   : > { %v6634_v29 = vpop.f32.mrf.mxu1 }
 0x138   : > { %v6636_v30 = vpop.f32.mrf.mxu0 }
 0x139   : > { %v6638_v31 = vpop.f32.mrf.mxu1 }
 0x13a   : > { %v6640_v32 = vpop.f32.mrf.mxu0 }
 0x13b   : > { %v6642_v33 = vpop.f32.mrf.mxu1 }
 0x13c   : > { %v6644_v34 = vpop.f32.mrf.mxu0 }
 0x13d   : > { %v6646_v35 = vpop.f32.mrf.mxu1 }
 0x13e   : > { %v6648_v36 = vpop.f32.mrf.mxu0 }
 0x13f   : > { %v6650_v37 = vpop.f32.mrf.mxu1 }
 0x140   : > { %v6652_v38 = vpop.f32.mrf.mxu0 }
 0x141   : > { %v6654_v39 = vpop.f32.mrf.mxu1 }
 0x142   : > { %v6656_v40 = vpop.f32.mrf.mxu0 }
 0x143   : > { %v6658_v41 = vpop.f32.mrf.mxu1 }
 0x144   : > { %v6660_v42 = vpop.f32.mrf.mxu0 }
 0x145   : > { %v6662_v43 = vpop.f32.mrf.mxu1 }
 0x146   : > { %v6664_v44 = vpop.f32.mrf.mxu0 }
 0x147   : > { %v6666_v45 = vpop.f32.mrf.mxu1 }
 0x148   : > { %v6668_v46 = vpop.f32.mrf.mxu0 }
 0x149   : > { %v6670_v47 = vpop.f32.mrf.mxu1 }
 0x14a   : > { %v6672_v48 = vpop.f32.mrf.mxu0 }
 0x14b   : > { %v6674_v49 = vpop.f32.mrf.mxu1 }
 0x14c   : > { %v6676_v50 = vpop.f32.mrf.mxu0 }
 0x14d   : > { %v6678_v51 = vpop.f32.mrf.mxu1 }
 0x14e   : > { %v6680_v52 = vpop.f32.mrf.mxu0 }
 0x14f   : > { %v6682_v53 = vpop.f32.mrf.mxu1 }
 0x150   : > { %v6684_v54 = vpop.f32.mrf.mxu0 }
 0x151   : > { %v6686_v55 = vpop.f32.mrf.mxu1 }
 0x152   : > { %v6688_v56 = vpop.f32.mrf.mxu0 }
 0x153   : > { %v6690_v57 = vpop.f32.mrf.mxu1 }
 0x154   : > { %v575_v59 = vpop.f32.mrf.mxu0 }
 0x155   : > { %v718_v60 = vpop.f32.mrf.mxu1 }
 0x156   : > { %v577_v61 = vpop.f32.mrf.mxu0 }
 0x157   : > { %v720_v62 = vpop.f32.mrf.mxu1 }
 0x158   : > { %v581_v1 = vpop.f32.mrf.mxu0 }
 0x159   : > { %v724_v2 = vpop.f32.mrf.mxu1 }
 0x15a   : > { %v583_v3 = vpop.f32.mrf.mxu0 }
 0x15b   : > { %v726_v4 = vpop.f32.mrf.mxu1 }
 0x15c   : > { %v587_v7 = vpop.f32.mrf.mxu0 }
 0x15d   : > { %v730_v8 = vpop.f32.mrf.mxu1  ;;  %v588_v22 = vadd.f32 %v587_v7, %v6708_v15 }
 0x15e   : > { %v589_v12 = vpop.f32.mrf.mxu0  ;;  %v731_v63 = vadd.f32 %v730_v8, %v6703_v14 }
 0x15f   : > { %v732_v13 = vpop.f32.mrf.mxu1  ;;  %v590_v6 = vadd.f32 %v589_v12, %v6713_v18  ;;  %v727_v12 = vadd.f32 %v726_v4, %v6718_v19 }
 0x160   : > { %v593_v16 = vpop.f32.mrf.mxu0  ;;  %v733_v0 = vadd.f32 %v732_v13, %v6718_v19 }
 0x161   : > { %v736_v17 = vpop.f32.mrf.mxu1  ;;  %v594_v21 = vadd.f32 %v593_v16, %v6708_v15  ;;  %v584_v16 = vadd.f32 %v583_v3, %v6713_v18  ;;  %v1117_v3 = vmax.f32 %v731_v63, 0.0 }
 0x162   : > { %v737_v20 = vadd.f32 %v736_v17, %v6703_v14  ;;  %v595_v58 = vpop.f32.mrf.mxu0  ;;  %v1118_v27 = vmax.f32 %v733_v0, 0.0  ;;  %v572_v0 = vadd.f32 %v6688_v56, %v6713_v18  ;;  %v566_v56 = vadd.f32 %v6680_v52, %v6713_v18 }
 0x163   : > { %v738_v5 = vpop.f32.mrf.mxu1  ;;  %v596_v23 = vadd.f32 %v595_v58, %v6713_v18  ;;  %v582_v58 = vadd.f32 %v581_v1, %v6708_v15  ;;  %v1123_v24 = vmax.f32 %v594_v21, 0.0  ;;  %v719_v1 = vadd.f32 %v718_v60, %v6703_v14 }
 0x164   : > { %v739_v10 = vadd.f32 %v738_v5, %v6718_v19  ;;  %v1125_v11 = vmax.f32 %v737_v20, 0.0  ;;  %v6728_v9 = vpop.f32.mrf.mxu0  ;;  %v725_v5 = vadd.f32 %v724_v2, %v6703_v14  ;;  %v578_v20 = vadd.f32 %v577_v61, %v6713_v18 }
 0x165   : > { %7713 = vst [vmem:[#allocation18_spill] sm:$0xff] %v6728_v9  ;;  %v6730_v17 = vpop.f32.mrf.mxu1  ;;  %v1124_v25 = vmax.f32 %v596_v23, 0.0  ;;  %v1116_v9 = vmax.f32 %v590_v6, 0.0  ;;  %v576_v23 = vadd.f32 %v575_v59, %v6708_v15  ;;  %v1115_v2 = vmax.f32 %v588_v22, 0.0 }
 0x166   : > { %7714 = vst [vmem:[#allocation19_spill] sm:$0xff] %v6730_v17  ;;  %v1126_v13 = vmax.f32 %v739_v10, 0.0  ;;  %v6736_v7 = vpop.f32.mrf.mxu0  ;;  %v721_v17 = vadd.f32 %v720_v62, %v6718_v19  ;;  %v1108_v61 = vmax.f32 %v584_v16, 0.0  ;;  %v1110_v59 = vmax.f32 %v727_v12, 0.0 }
 0x167   : > { %7715 = vst [vmem:[#allocation20_spill] sm:$0xff] %v6736_v7  ;;  %v6738_v8 = vpop.f32.mrf.mxu1  ;;  %5476 = vmatprep.subr.msk.mxu0 %vm1136_vm2, %v1124_v25  ;;  %v715_v25 = vadd.f32 %v6690_v57, %v6718_v19  ;;  %v570_v22 = vadd.f32 %v6684_v54, %v6708_v15  ;;  %v713_v60 = vadd.f32 %v6686_v55, %v6703_v14  ;;  %v1107_v62 = vmax.f32 %v582_v58, 0.0 }
 0x168   : > { %7716 = vst [vmem:[#allocation21_spill] sm:$0xff] %v6738_v8  ;;  %5479 = vmatprep.subr.msk.mxu1 %vm1136_vm2, %v1126_v13  ;;  %v6746_v4 = vpop.f32.mrf.mxu0  ;;  %5477 = vmatpush1.msk.msra.mxu0 %vm1136_vm2, %v1123_v24  ;;  %v1109_v24 = vmax.f32 %v725_v5, 0.0  ;;  %v1100_v57 = vmax.f32 %v578_v20, 0.0  ;;  %v564_v54 = vadd.f32 %v6676_v50, %v6708_v15  ;;  %v707_v55 = vadd.f32 %v6678_v51, %v6703_v14 }
 0x169   : > { %7717 = vst [vmem:[#allocation22_spill] sm:$0xff] %v6746_v4  ;;  %v6748_v10 = vpop.f32.mrf.mxu1  ;;  %5480 = vmatpush1.msk.msra.mxu1 %vm1136_vm2, %v1125_v11  ;;  %1169 = vmatprep.subr.mxu0 %v1116_v9  ;;  %v1102_v9 = vmax.f32 %v721_v17, 0.0  ;;  %v1099_v11 = vmax.f32 %v576_v23, 0.0  ;;  %v1101_v21 = vmax.f32 %v719_v1, 0.0  ;;  %v560_v52 = vadd.f32 %v6672_v48, %v6713_v18 }
 0x16a   : > { %7718 = vst [vmem:[#allocation23_spill] sm:$0xff] %v6748_v10  ;;  %1240 = vmatprep.subr.mxu1 %v1118_v27  ;;  %v6760_v63 = vpop.f32.mrf.mxu0  ;;  %1170 = vmatpush1.msra.mxu0 %v1115_v2  ;;  %v709_v27 = vadd.f32 %v6682_v53, %v6718_v19  ;;  %v703_v53 = vadd.f32 %v6674_v49, %v6718_v19  ;;  %v1092_v17 = vmax.f32 %v572_v0, 0.0  ;;  %v1094_v13 = vmax.f32 %v715_v25, 0.0 }
 0x16b   : > { %v6762_v6 = vpop.f32.mrf.mxu1  ;;  %1241 = vmatpush1.msra.mxu1 %v1117_v3  ;;  %1171 = vmatprep.subr.mxu0 %v1108_v61  ;;  %v558_v50 = vadd.f32 %v6668_v46, %v6708_v15  ;;  %v701_v51 = vadd.f32 %v6670_v47, %v6703_v14  ;;  %v1091_v58 = vmax.f32 %v570_v22, 0.0  ;;  %v1093_v5 = vmax.f32 %v713_v60, 0.0 }
 0x16c   : > { %7719 = vst [vmem:[#allocation24_spill] sm:$0xff] %v6762_v6  ;;  %1242 = vmatprep.subr.mxu1 %v1110_v59  ;;  %v6772_v16 = vpop.f32.mrf.mxu0  ;;  %1172 = vmatpush1.msra.mxu0 %v1107_v62  ;;  %v554_v48 = vadd.f32 %v6664_v44, %v6713_v18  ;;  %v697_v49 = vadd.f32 %v6666_v45, %v6718_v19  ;;  %v1084_v1 = vmax.f32 %v566_v56, 0.0  ;;  %v1086_v2 = vmax.f32 %v709_v27, 0.0 }
 0x16d   : > { %v6774_v12 = vpop.f32.mrf.mxu1  ;;  %1243 = vmatpush1.msra.mxu1 %v1109_v24  ;;  %1173 = vmatprep.subr.mxu0 %v1100_v57  ;;  %v552_v46 = vadd.f32 %v6660_v42, %v6708_v15  ;;  %v695_v47 = vadd.f32 %v6662_v43, %v6703_v14  ;;  %v1083_v3 = vmax.f32 %v564_v54, 0.0  ;;  %v1085_v0 = vmax.f32 %v707_v55, 0.0 }
 0x16e   : > { %1244 = vmatprep.subr.mxu1 %v1102_v9  ;;  %v6784_v20 = vpop.f32.mrf.mxu0  ;;  %1174 = vmatpush1.msra.mxu0 %v1099_v11  ;;  %v548_v44 = vadd.f32 %v6656_v40, %v6713_v18  ;;  %v691_v45 = vadd.f32 %v6658_v41, %v6718_v19  ;;  %v1076_v59 = vmax.f32 %v560_v52, 0.0  ;;  %v1078_v22 = vmax.f32 %v703_v53, 0.0 }
 0x16f   : > { %v6786_v23 = vpop.f32.mrf.mxu1  ;;  %1245 = vmatpush1.msra.mxu1 %v1101_v21  ;;  %1175 = vmatprep.subr.mxu0 %v1092_v17  ;;  %v546_v42 = vadd.f32 %v6652_v38, %v6708_v15  ;;  %v689_v43 = vadd.f32 %v6654_v39, %v6703_v14  ;;  %v1075_v60 = vmax.f32 %v558_v50, 0.0  ;;  %v1077_v62 = vmax.f32 %v701_v51, 0.0 }
 0x170   : > { %1246 = vmatprep.subr.mxu1 %v1094_v13  ;;  %v6796_v25 = vpop.f32.mrf.mxu0  ;;  %1176 = vmatpush1.msra.mxu0 %v1091_v58  ;;  %v542_v40 = vadd.f32 %v6648_v36, %v6713_v18  ;;  %v685_v41 = vadd.f32 %v6650_v37, %v6718_v19  ;;  %v1068_v27 = vmax.f32 %v554_v48, 0.0  ;;  %v1070_v57 = vmax.f32 %v697_v49, 0.0 }
 0x171   : > { %v6798_v61 = vpop.f32.mrf.mxu1  ;;  %1247 = vmatpush1.msra.mxu1 %v1093_v5  ;;  %1177 = vmatprep.subr.mxu0 %v1084_v1  ;;  %v540_v38 = vadd.f32 %v6644_v34, %v6708_v15  ;;  %v683_v39 = vadd.f32 %v6646_v35, %v6703_v14  ;;  %v1067_v9 = vmax.f32 %v552_v46, 0.0  ;;  %v1069_v54 = vmax.f32 %v695_v47, 0.0  ;;  %v7722_v46 = vld [vmem:[#allocation14_spill] sm:$0xff] }
 0x172   : > { %1248 = vmatprep.subr.mxu1 %v1086_v2  ;;  %v6808_v24 = vpop.f32.mrf.mxu0  ;;  %1178 = vmatpush1.msra.mxu0 %v1083_v3  ;;  %v536_v36 = vadd.f32 %v6640_v32, %v6713_v18  ;;  %v679_v37 = vadd.f32 %v6642_v33, %v6718_v19  ;;  %v1060_v21 = vmax.f32 %v548_v44, 0.0  ;;  %v1062_v52 = vmax.f32 %v691_v45, 0.0  ;;  %v7724_v45 = vld [vmem:[#allocation12_spill] sm:$0xff] }
 0x173   : > { %v6810_v56 = vpop.f32.mrf.mxu1  ;;  %1249 = vmatpush1.msra.mxu1 %v1085_v0  ;;  %1179 = vmatprep.subr.mxu0 %v1076_v59  ;;  %v534_v34 = vadd.f32 %v6636_v30, %v6708_v15  ;;  %v677_v35 = vadd.f32 %v6638_v31, %v6703_v14  ;;  %v1059_v53 = vmax.f32 %v546_v42, 0.0  ;;  %v1061_v17 = vmax.f32 %v689_v43, 0.0  ;;  %v7720_v31 = vld [vmem:[#allocation15_spill] sm:$0xff] }
 0x174   : > { %1250 = vmatprep.subr.mxu1 %v1078_v22  ;;  %v6820_v55 = vpop.f32.mrf.mxu0  ;;  %1180 = vmatpush1.msra.mxu0 %v1075_v60  ;;  %v530_v32 = vadd.f32 %v6632_v28, %v6713_v18  ;;  %v673_v33 = vadd.f32 %v6634_v29, %v6718_v19  ;;  %v1052_v51 = vmax.f32 %v542_v40, 0.0  ;;  %v1054_v58 = vmax.f32 %v685_v41, 0.0  ;;  %v7721_v28 = vld [vmem:[#allocation13_spill] sm:$0xff] }
 0x175   : > { %v6822_v11 = vpop.f32.mrf.mxu1  ;;  %1251 = vmatpush1.msra.mxu1 %v1077_v62  ;;  %1181 = vmatprep.subr.mxu0 %v1068_v27  ;;  %v528_v30 = vadd.f32 %v6628_v26, %v6708_v15  ;;  %v671_v5 = vadd.f32 %v7720_v31, %v6703_v14  ;;  %v1051_v48 = vmax.f32 %v540_v38, 0.0  ;;  %v1053_v49 = vmax.f32 %v683_v39, 0.0  ;;  %v7723_v26 = vld [vmem:[#allocation11_spill] sm:$0xff] }
 0x176   : > { %1252 = vmatprep.subr.mxu1 %v1070_v57  ;;  %v6832_v13 = vpop.f32.mrf.mxu0  ;;  %1182 = vmatpush1.msra.mxu0 %v1067_v9  ;;  %v524_v29 = vadd.f32 %v7721_v28, %v6713_v18  ;;  %v667_v47 = vadd.f32 %v7722_v46, %v6718_v19  ;;  %v1044_v3 = vmax.f32 %v536_v36, 0.0  ;;  %v1046_v0 = vmax.f32 %v679_v37, 0.0  ;;  %v7727_v28 = vld [vmem:[#allocation16_spill] sm:$0xff] }
 0x177   : > { %v6834_v50 = vpop.f32.mrf.mxu1  ;;  %1253 = vmatpush1.msra.mxu1 %v1069_v54  ;;  %1183 = vmatprep.subr.mxu0 %v1060_v21  ;;  %v522_v44 = vadd.f32 %v7723_v26, %v6708_v15  ;;  %v665_v59 = vadd.f32 %v7724_v45, %v6703_v14  ;;  %v1043_v22 = vmax.f32 %v534_v34, 0.0  ;;  %v1045_v42 = vmax.f32 %v677_v35, 0.0  ;;  %v6871_v54 = vld [vmem:[%s7669_s3] sm:$0x3] }
 0x178   : > { %1254 = vmatprep.subr.mxu1 %v1062_v52  ;;  %v6844_v1 = vpop.f32.mrf.mxu0  ;;  %1184 = vmatpush1.msra.mxu0 %v1059_v53  ;;  %v1036_v18 = vmax.f32 %v530_v32, 0.0  ;;  %v1038_v19 = vmax.f32 %v673_v33, 0.0  ;;  %v1035_v62 = vmax.f32 %v528_v30, 0.0  ;;  %v1037_v40 = vmax.f32 %v671_v5, 0.0  ;;  %7725 = vst [vmem:[#allocation15_spill] sm:$0xff] %v6871_v54 }
 0x179   : > { %v6846_v2 = vpop.f32.mrf.mxu1  ;;  %1255 = vmatpush1.msra.mxu1 %v1061_v17  ;;  %1185 = vmatprep.subr.mxu0 %v1052_v51  ;;  %v1028_v14 = vmax.f32 %v524_v29, 0.0  ;;  %v1030_v27 = vmax.f32 %v667_v47, 0.0  ;;  %v1027_v57 = vmax.f32 %v522_v44, 0.0  ;;  %v1029_v38 = vmax.f32 %v665_v59, 0.0  ;;  %v7728_v59 = vld [vmem:[#allocation17_spill] sm:$0xff] }
 0x17a   : > { %1256 = vmatprep.subr.mxu1 %v1054_v58  ;;  %v6856_v43 = vpop.f32.mrf.mxu0  ;;  %1186 = vmatpush1.msra.mxu0 %v1051_v48  ;;  %v7726_v34 = vmov 0.0   ;;  %v7689_v29 = vsub.s32 4, %v7727_v28  ;;  %v7687_v46 = vsub.s32 6, %v7727_v28  ;;  %v7688_v47 = vsub.s32 5, %v7727_v28 }
 0x17b   : > { %v6858_v60 = vpop.f32.mrf.mxu1  ;;  %1257 = vmatpush1.msra.mxu1 %v1053_v49  ;;  %1187 = vmatprep.subr.mxu0 %v1044_v3  ;;  %v7691_v3 = vsub.s32 7, %v7727_v28 }
 0x17c   : > { %1258 = vmatprep.subr.mxu1 %v1046_v0  ;;  %v6860_v41 = vpop.f32.mrf.mxu0  ;;  %1188 = vmatpush1.msra.mxu0 %v1043_v22  ;;  %v6898_v22 = vrot.slane %v7728_v59, %v7689_v29 }
 0x17d   : > { %v6862_v15 = vpop.f32.mrf.mxu1  ;;  %1259 = vmatpush1.msra.mxu1 %v1045_v42  ;;  %1189 = vmatprep.subr.mxu0 %v1036_v18  ;;  %v6903_v42 = vrot.slane %v7728_v59, %v7687_v46  ;;  %v6908_v18 = vrot.slane %v7728_v59, %v7688_v47 }
 0x17e   : > { %1260 = vmatprep.subr.mxu1 %v1038_v19  ;;  %v6864_v39 = vpop.f32.mrf.mxu0  ;;  %1190 = vmatpush1.msra.mxu0 %v1035_v62  ;;  %v6913_v19 = vrot.slane %v7728_v59, %v7691_v3 }
 0x17f   : > { %v6866_v9 = vpop.f32.mrf.mxu1  ;;  %1261 = vmatpush1.msra.mxu1 %v1037_v40  ;;  %1191 = vmatprep.subr.mxu0 %v1028_v14 }
 0x180   : > { %1262 = vmatprep.subr.mxu1 %v1030_v27  ;;  %v6873_v36 = vpop.f32.mrf.mxu0  ;;  %1192 = vmatpush1.msra.mxu0 %v1027_v57 }
 0x181   : > { %v6875_v37 = vpop.f32.mrf.mxu1  ;;  %1263 = vmatpush1.msra.mxu1 %v1029_v38  ;;  %5478 = vmatmul.mubr.msk.f32.vlgmr.msra.gmra.mxu0 %vm1132_vm3, %v6871_v54 }
 0x182   : > { %5481 = vmatmul.mubr.msk.f32.vlgmr.msra.gmra.mxu1 %vm1132_vm3, %v6871_v54  ;;  %v6881_v21 = vpop.f32.mrf.mxu0  ;;  %1367 = vmatprep.mubr.f32.mxu0 %v7726_v34 }
 0x183   : > { %v6883_v52 = vpop.f32.mrf.mxu1  ;;  %1438 = vmatprep.mubr.f32.mxu1 %v7726_v34 }
 0x184   : > { %v6887_v35 = vpop.f32.mrf.mxu0 }
 0x185   : > { %v6889_v53 = vpop.f32.mrf.mxu1 }
 0x186   : > { %v857_v17 = vpop.f32.mrf.mxu0 }
 0x187   : > { %v1000_v32 = vpop.f32.mrf.mxu1 }
 0x188   : > { %v861_v33 = vpop.f32.mrf.mxu0 }
 0x189   : > { %v1004_v51 = vpop.f32.mrf.mxu1 }
 0x18a   : > { %v863_v58 = vpop.f32.mrf.mxu0 }
 0x18b   : > { %v1006_v30 = vpop.f32.mrf.mxu1 }
 0x18c   : > { %v867_v31 = vpop.f32.mrf.mxu0 }
 0x18d   : > { %v1010_v5 = vpop.f32.mrf.mxu1 }
 0x18e   : > { %v869_v48 = vpop.f32.mrf.mxu0 }
 0x18f   : > { %v1012_v49 = vpop.f32.mrf.mxu1 }
 0x190   : > { %v873_v0 = vpop.f32.mrf.mxu0  ;;  %v1013_v28 = vadd.f32 %v1012_v49, %v6913_v19  ;;  %v864_v49 = vadd.f32 %v863_v58, %v6908_v18  ;;  %v1001_v58 = vadd.f32 %v1000_v32, %v6913_v19 }
 0x191   : > { %v1016_v26 = vpop.f32.mrf.mxu1  ;;  %v874_v34 = vadd.f32 %v873_v0, %v6898_v22 }
 0x192   : > { %v875_v44 = vpop.f32.mrf.mxu0  ;;  %v1017_v46 = vadd.f32 %v1016_v26, %v6903_v42  ;;  %v868_v26 = vadd.f32 %v867_v31, %v6898_v22  ;;  %v1114_v6 = vmax.f32 %v1013_v28, 0.0  ;;  %v858_v31 = vadd.f32 %v857_v17, %v6908_v18 }
 0x193   : > { %v1018_v45 = vpop.f32.mrf.mxu1  ;;  %v876_v14 = vadd.f32 %v875_v44, %v6908_v18  ;;  %v1011_v44 = vadd.f32 %v1010_v5, %v6903_v42  ;;  %v1119_v10 = vmax.f32 %v874_v34, 0.0  ;;  %v862_v5 = vadd.f32 %v861_v33, %v6898_v22 }
 0x194   : > { %v879_v62 = vpop.f32.mrf.mxu0  ;;  %v1019_v27 = vadd.f32 %v1018_v45, %v6913_v19  ;;  %v870_v45 = vadd.f32 %v869_v48, %v6908_v18  ;;  %v1121_v4 = vmax.f32 %v1017_v46, 0.0  ;;  %v1005_v48 = vadd.f32 %v1004_v51, %v6903_v42 }
 0x195   : > { %v1022_v40 = vpop.f32.mrf.mxu1  ;;  %v880_v57 = vadd.f32 %v879_v62, %v6898_v22  ;;  %v1120_v8 = vmax.f32 %v876_v14, 0.0  ;;  %v999_v33 = vadd.f32 %v6889_v53, %v6903_v42  ;;  %v995_v17 = vadd.f32 %v6883_v52, %v6913_v19 }
 0x196   : > { %v1023_v38 = vadd.f32 %v1022_v40, %v6903_v42  ;;  %v881_v47 = vpop.f32.mrf.mxu0  ;;  %v1122_v40 = vmax.f32 %v1019_v27, 0.0  ;;  %v1112_v46 = vmax.f32 %v870_v45, 0.0  ;;  %v1104_v51 = vmax.f32 %v864_v49, 0.0 }
 0x197   : > { %v1024_v29 = vpop.f32.mrf.mxu1  ;;  %v882_v59 = vadd.f32 %v881_v47, %v6908_v18  ;;  %v1127_v54 = vmax.f32 %v880_v57, 0.0  ;;  %v1007_v47 = vadd.f32 %v1006_v30, %v6913_v19  ;;  %v1111_v30 = vmax.f32 %v868_v26, 0.0 }
 0x198   : > { %v1025_v3 = vadd.f32 %v1024_v29, %v6913_v19  ;;  %v1129_v62 = vmax.f32 %v1023_v38, 0.0  ;;  %v1113_v29 = vmax.f32 %v1011_v44, 0.0  ;;  %v1103_v53 = vmax.f32 %v862_v5, 0.0 }
 0x199   : > { %v1128_v7 = vmax.f32 %v882_v59, 0.0  ;;  %v1106_v32 = vmax.f32 %v1007_v47, 0.0  ;;  %v1105_v28 = vmax.f32 %v1005_v48, 0.0  ;;  %v1098_v52 = vmax.f32 %v1001_v58, 0.0 }
 0x19a   : > { %v1130_v0 = vmax.f32 %v1025_v3, 0.0  ;;  %v1097_v3 = vmax.f32 %v999_v33, 0.0  ;;  %v1090_v27 = vmax.f32 %v995_v17, 0.0  ;;  %v7733_v17 = vld [vmem:[#allocation21_spill] sm:$0xff] }
 0x19b   : > { %5482 = vmatprep.subr.msk.mxu0 %vm1136_vm2, %v1128_v7  ;;  %v856_v7 = vadd.f32 %v6887_v35, %v6898_v22  ;;  %v993_v35 = vadd.f32 %v6875_v37, %v6903_v42 }
 0x19c   : > { %5485 = vmatprep.subr.msk.mxu1 %vm1136_vm2, %v1130_v0  ;;  %5483 = vmatpush1.msk.msra.mxu0 %vm1136_vm2, %v1127_v54  ;;  %v852_v54 = vadd.f32 %v6881_v21, %v6908_v18  ;;  %v1096_v21 = vmax.f32 %v858_v31, 0.0 }
 0x19d   : > { %5486 = vmatpush1.msk.msra.mxu1 %vm1136_vm2, %v1129_v62  ;;  %1311 = vmatprep.subr.mxu0 %v1120_v8  ;;  %v850_v8 = vadd.f32 %v6873_v36, %v6898_v22  ;;  %v987_v36 = vadd.f32 %v6862_v15, %v6903_v42  ;;  %v1095_v37 = vmax.f32 %v856_v7, 0.0  ;;  %v981_v15 = vadd.f32 %v6846_v2, %v6903_v42  ;;  %v7731_v7 = vld [vmem:[#allocation23_spill] sm:$0xff] }
 0x19e   : > { %1382 = vmatprep.subr.mxu1 %v1122_v40  ;;  %1312 = vmatpush1.msra.mxu0 %v1119_v10  ;;  %v989_v10 = vadd.f32 %v6866_v9, %v6913_v19  ;;  %v983_v9 = vadd.f32 %v6858_v60, %v6913_v19  ;;  %v1088_v14 = vmax.f32 %v852_v54, 0.0  ;;  %v1089_v38 = vmax.f32 %v993_v35, 0.0  ;;  %v7734_v35 = vld [vmem:[#allocation18_spill] sm:$0xff] }
 0x19f   : > { %1383 = vmatpush1.msra.mxu1 %v1121_v4  ;;  %1313 = vmatprep.subr.mxu0 %v1112_v46  ;;  %v846_v4 = vadd.f32 %v6864_v39, %v6908_v18  ;;  %v840_v39 = vadd.f32 %v6856_v43, %v6908_v18  ;;  %v1087_v57 = vmax.f32 %v850_v8, 0.0  ;;  %v834_v43 = vadd.f32 %v6832_v13, %v6908_v18  ;;  %v7730_v46 = vld [vmem:[#allocation22_spill] sm:$0xff] }
 0x1a0   : > { %1384 = vmatprep.subr.mxu1 %v1114_v6  ;;  %1314 = vmatpush1.msra.mxu0 %v1111_v30  ;;  %v844_v6 = vadd.f32 %v6860_v41, %v6898_v22  ;;  %v838_v41 = vadd.f32 %v6844_v1, %v6898_v22  ;;  %v977_v60 = vadd.f32 %v6834_v50, %v6913_v19  ;;  %v1082_v59 = vmax.f32 %v989_v10, 0.0 }
 0x1a1   : > { %1385 = vmatpush1.msra.mxu1 %v1113_v29  ;;  %1315 = vmatprep.subr.mxu0 %v1104_v51  ;;  %v1080_v34 = vmax.f32 %v846_v4, 0.0  ;;  %v832_v1 = vadd.f32 %v6820_v55, %v6898_v22  ;;  %v975_v2 = vadd.f32 %v6822_v11, %v6903_v42  ;;  %v1081_v45 = vmax.f32 %v987_v36, 0.0  ;;  %v7729_v29 = vld [vmem:[#allocation24_spill] sm:$0xff]  ;;  %v1637_v36 = vld [vmem:[%s6437_s27 + $0x5c0] sm:$0xff] }
 0x1a2   : > { %1386 = vmatprep.subr.mxu1 %v1106_v32  ;;  %1316 = vmatpush1.msra.mxu0 %v1103_v53  ;;  %v1079_v44 = vmax.f32 %v844_v6, 0.0  ;;  %v828_v13 = vadd.f32 %v6808_v24, %v6908_v18  ;;  %v971_v50 = vadd.f32 %v6810_v56, %v6913_v19  ;;  %v1072_v62 = vmax.f32 %v840_v39, 0.0  ;;  %v1513_v6 = vld [vmem:[%s6437_s27 + $0x1e0] sm:$0xff] }
 0x1a3   : > { %1387 = vmatpush1.msra.mxu1 %v1105_v28  ;;  %1317 = vmatprep.subr.mxu0 %v1096_v21  ;;  %v1074_v40 = vmax.f32 %v983_v9, 0.0  ;;  %v826_v55 = vadd.f32 %v6796_v25, %v6898_v22  ;;  %v969_v11 = vadd.f32 %v6798_v61, %v6903_v42  ;;  %v1071_v0 = vmax.f32 %v838_v41, 0.0  ;;  %v7735_v28 = vld [vmem:[#allocation19_spill] sm:$0xff]  ;;  %v1633_v41 = vld [vmem:[%s6437_s27 + $0x5a0] sm:$0xff] }
 0x1a4   : > { %1388 = vmatprep.subr.mxu1 %v1098_v52  ;;  %1318 = vmatpush1.msra.mxu0 %v1095_v37  ;;  %v1073_v26 = vmax.f32 %v981_v15, 0.0  ;;  %v822_v24 = vadd.f32 %v6784_v20, %v6908_v18  ;;  %v965_v56 = vadd.f32 %v6786_v23, %v6913_v19  ;;  %v1064_v49 = vmax.f32 %v834_v43, 0.0  ;;  %v1641_v37 = vld [vmem:[%s6437_s27 + $0x5e0] sm:$0xff] }
 0x1a5   : > { %1389 = vmatpush1.msra.mxu1 %v1097_v3  ;;  %1319 = vmatprep.subr.mxu0 %v1088_v14  ;;  %v1066_v47 = vmax.f32 %v977_v60, 0.0  ;;  %v820_v25 = vadd.f32 %v6772_v16, %v6898_v22  ;;  %v963_v61 = vadd.f32 %v6774_v12, %v6903_v42  ;;  %v1063_v5 = vmax.f32 %v832_v1, 0.0  ;;  %v1505_v14 = vld [vmem:[%s6437_s27 + $0x1a0] sm:$0xff] }
 0x1a6   : > { %1390 = vmatprep.subr.mxu1 %v1090_v27  ;;  %1320 = vmatpush1.msra.mxu0 %v1087_v57  ;;  %v1065_v48 = vmax.f32 %v975_v2, 0.0  ;;  %v816_v20 = vadd.f32 %v6760_v63, %v6908_v18  ;;  %v959_v23 = vadd.f32 %v7729_v29, %v6913_v19  ;;  %v1056_v31 = vmax.f32 %v828_v13, 0.0  ;;  %v7732_v63 = vld [vmem:[#allocation20_spill] sm:$0xff]  ;;  %v1629_v27 = vld [vmem:[%s6437_s27 + $0x580] sm:$0xff] }
 0x1a7   : > { %1391 = vmatpush1.msra.mxu1 %v1089_v38  ;;  %1321 = vmatprep.subr.mxu0 %v1080_v34  ;;  %v1058_v58 = vmax.f32 %v971_v50, 0.0  ;;  %v814_v16 = vadd.f32 %v7730_v46, %v6898_v22  ;;  %v957_v12 = vadd.f32 %v7731_v7, %v6903_v42  ;;  %v1055_v33 = vmax.f32 %v826_v55, 0.0  ;;  %v1493_v2 = vld [vmem:[%s6437_s27 + $0x140] sm:$0xff] }
 0x1a8   : > { %1392 = vmatprep.subr.mxu1 %v1082_v59  ;;  %1322 = vmatpush1.msra.mxu0 %v1079_v44  ;;  %v1057_v30 = vmax.f32 %v969_v11, 0.0  ;;  %v810_v54 = vadd.f32 %v7732_v63, %v6908_v18  ;;  %v953_v51 = vadd.f32 %v7733_v17, %v6913_v19  ;;  %v1048_v32 = vmax.f32 %v822_v24, 0.0  ;;  %v1509_v18 = vld [vmem:[%s6437_s27 + $0x1c0] sm:$0xff]  ;;  %v7736_v44 = vld [vmem:[#allocation15_spill] sm:$0xff] }
 0x1a9   : > { %1393 = vmatpush1.msra.mxu1 %v1081_v45  ;;  %1323 = vmatprep.subr.mxu0 %v1072_v62  ;;  %v1050_v8 = vmax.f32 %v965_v56, 0.0  ;;  %v808_v53 = vadd.f32 %v7734_v35, %v6898_v22  ;;  %v951_v4 = vadd.f32 %v7735_v28, %v6903_v42  ;;  %v1047_v10 = vmax.f32 %v820_v25, 0.0  ;;  %v1501_v42 = vld [vmem:[%s6437_s27 + $0x180] sm:$0xff] }
 0x1aa   : > { %1394 = vmatprep.subr.mxu1 %v1074_v40  ;;  %1324 = vmatpush1.msra.mxu0 %v1071_v0  ;;  %v1049_v21 = vmax.f32 %v963_v61, 0.0  ;;  %v1040_v19 = vmax.f32 %v816_v20, 0.0  ;;  %v1042_v52 = vmax.f32 %v959_v23, 0.0  ;;  %v1039_v22 = vmax.f32 %v814_v16, 0.0  ;;  %v1497_v45 = vld [vmem:[%s6437_s27 + $0x160] sm:$0xff] }
 0x1ab   : > { %1395 = vmatpush1.msra.mxu1 %v1073_v26  ;;  %1325 = vmatprep.subr.mxu0 %v1064_v49  ;;  %v1041_v3 = vmax.f32 %v957_v12, 0.0  ;;  %v1032_v39 = vmax.f32 %v810_v54, 0.0  ;;  %v1034_v9 = vmax.f32 %v953_v51, 0.0  ;;  %v1031_v15 = vmax.f32 %v808_v53, 0.0  ;;  %v1621_v13 = vld [vmem:[%s6437_s27 + $0x540] sm:$0xff] }
 0x1ac   : > { %1396 = vmatprep.subr.mxu1 %v1066_v47  ;;  %1326 = vmatpush1.msra.mxu0 %v1063_v5  ;;  %v1033_v57 = vmax.f32 %v951_v4, 0.0  ;;  %v5545_v38 = vcombine.high %v1509_v18, %v1513_v6  ;;  %v5673_v43 = vcombine.high %v1637_v36, %v1641_v37  ;;  %v5544_v60 = vcombine.low %v1509_v18, %v1513_v6  ;;  %v1625_v50 = vld [vmem:[%s6437_s27 + $0x560] sm:$0xff] }
 0x1ad   : > { %1397 = vmatpush1.msra.mxu1 %v1065_v48  ;;  %1327 = vmatprep.subr.mxu0 %v1056_v31  ;;  %v5672_v34 = vcombine.low %v1637_v36, %v1641_v37  ;;  %v5537_v59 = vcombine.high %v1501_v42, %v1505_v14  ;;  %v5665_v1 = vcombine.high %v1629_v27, %v1633_v41  ;;  %v1485_v0 = vld [vmem:[%s6437_s27 + $0x100] sm:$0xff] }
 0x1ae   : > { %1398 = vmatprep.subr.mxu1 %v1058_v58  ;;  %1328 = vmatpush1.msra.mxu0 %v1055_v33  ;;  %v5536_v62 = vcombine.low %v1501_v42, %v1505_v14  ;;  %v5664_v40 = vcombine.low %v1629_v27, %v1633_v41  ;;  %v5529_v55 = vcombine.high %v1493_v2, %v1497_v45  ;;  %v1489_v26 = vld [vmem:[%s6437_s27 + $0x120] sm:$0xff] }
 0x1af   : > { %1399 = vmatpush1.msra.mxu1 %v1057_v30  ;;  %1329 = vmatprep.subr.mxu0 %v1048_v32  ;;  %v5657_v11 = vcombine.high %v1621_v13, %v1625_v50  ;;  %v1613_v24 = vld [vmem:[%s6437_s27 + $0x500] sm:$0xff]  ;;  %v5528_v49 = vcombine.low %v1493_v2, %v1497_v45  ;;  %v5656_v47 = vcombine.low %v1621_v13, %v1625_v50 }
 0x1b0   : > { %1400 = vmatprep.subr.mxu1 %v1050_v8  ;;  %1330 = vmatpush1.msra.mxu0 %v1047_v10  ;;  %v1617_v56 = vld [vmem:[%s6437_s27 + $0x520] sm:$0xff]  ;;  %v5521_v25 = vcombine.high %v1485_v0, %v1489_v26  ;;  %v5520_v23 = vcombine.low %v1485_v0, %v1489_v26 }
 0x1b1   : > { %1401 = vmatpush1.msra.mxu1 %v1049_v21  ;;  %1331 = vmatprep.subr.mxu0 %v1040_v19  ;;  %v5649_v61 = vcombine.high %v1613_v24, %v1617_v56  ;;  %v1477_v5 = vld [vmem:[%s6437_s27 + $0xc0] sm:$0xff]  ;;  %v5648_v31 = vcombine.low %v1613_v24, %v1617_v56 }
 0x1b2   : > { %1402 = vmatprep.subr.mxu1 %v1042_v52  ;;  %1332 = vmatpush1.msra.mxu0 %v1039_v22  ;;  %v1481_v48 = vld [vmem:[%s6437_s27 + $0xe0] sm:$0xff] }
 0x1b3   : > { %1403 = vmatpush1.msra.mxu1 %v1041_v3  ;;  %1333 = vmatprep.subr.mxu0 %v1032_v39  ;;  %v1605_v20 = vld [vmem:[%s6437_s27 + $0x4c0] sm:$0xff]  ;;  %v5513_v58 = vcombine.high %v1477_v5, %v1481_v48  ;;  %v5512_v30 = vcombine.low %v1477_v5, %v1481_v48 }
 0x1b4   : > { %1404 = vmatprep.subr.mxu1 %v1034_v9  ;;  %1334 = vmatpush1.msra.mxu0 %v1031_v15  ;;  %v1609_v29 = vld [vmem:[%s6437_s27 + $0x4e0] sm:$0xff] }
 0x1b5   : > { %1405 = vmatpush1.msra.mxu1 %v1033_v57  ;;  %5484 = vmatmul.mubr.msk.f32.vlgmr.msra.gmra.mxu0 %vm1132_vm3, %v7736_v44  ;;  %v5641_v46 = vcombine.high %v1605_v20, %v1609_v29  ;;  %v1469_v16 = vld [vmem:[%s6437_s27 + $0x80] sm:$0xff]  ;;  %v5640_v63 = vcombine.low %v1605_v20, %v1609_v29 }
 0x1b6   : > { %5487 = vmatmul.mubr.msk.f32.vlgmr.msra.gmra.mxu1 %vm1132_vm3, %v7736_v44  ;;  %4567 = vmatprep.subr.bf16.mxu0 %v5545_v38  ;;  %v1473_v7 = vld [vmem:[%s6437_s27 + $0xa0] sm:$0xff] }
 0x1b7   : > { %4608 = vmatprep.subr.bf16.mxu1 %v5673_v43  ;;  %4568 = vmatpush1.bf16.msra.mxu0 %v5544_v60  ;;  %v1597_v12 = vld [vmem:[%s6437_s27 + $0x480] sm:$0xff]  ;;  %v5505_v32 = vcombine.high %v1469_v16, %v1473_v7  ;;  %v5504_v19 = vcombine.low %v1469_v16, %v1473_v7 }
 0x1b8   : > { %4609 = vmatpush1.bf16.msra.mxu1 %v5672_v34  ;;  %4569 = vmatprep.subr.bf16.mxu0 %v5537_v59  ;;  %v1601_v33 = vld [vmem:[%s6437_s27 + $0x4a0] sm:$0xff] }
 0x1b9   : > { %4610 = vmatprep.subr.bf16.mxu1 %v5665_v1  ;;  %v7034_v54 = vld [vmem:[%s6437_s27 + $0x9c0] sm:$0xff]  ;;  %v5633_v8 = vcombine.high %v1597_v12, %v1601_v33  ;;  %v5632_v52 = vcombine.low %v1597_v12, %v1601_v33 }
 0x1ba   : > { %v7037_v17 = vld [vmem:[%s6437_s27 + $0x9e0] sm:$0xff] }
 0x1bb   : > { %4570 = vmatpush1.bf16.msra.mxu0 %v5536_v62  ;;  %v7040_v51 = vld [vmem:[%s6437_s27 + $0xdc0] sm:$0xff]  ;;  %v5800_v21 = vcombine.low %v7034_v54, %v7037_v17 }
 0x1bc   : > { %4611 = vmatpush1.bf16.msra.mxu1 %v5664_v40  ;;  %4571 = vmatprep.subr.bf16.mxu0 %v5529_v55  ;;  %v1461_v35 = vld [vmem:[%s6437_s27 + $0x40] sm:$0xff] }
 0x1bd   : > { %4612 = vmatprep.subr.bf16.mxu1 %v5657_v11  ;;  %v7044_v53 = vld [vmem:[%s6437_s27 + $0xde0] sm:$0xff] }
 0x1be   : > { %v1465_v28 = vld [vmem:[%s6437_s27 + $0x60] sm:$0xff]  ;;  %v5928_v18 = vcombine.low %v7040_v51, %v7044_v53 }
 0x1bf   : > { %4572 = vmatpush1.bf16.msra.mxu0 %v5528_v49  ;;  %v1589_v4 = vld [vmem:[%s6437_s27 + $0x440] sm:$0xff]  ;;  %v5497_v6 = vcombine.high %v1461_v35, %v1465_v28  ;;  %v5496_v39 = vcombine.low %v1461_v35, %v1465_v28 }
 0x1c0   : > { %4613 = vmatpush1.bf16.msra.mxu1 %v5656_v47  ;;  %4573 = vmatprep.subr.bf16.mxu0 %v5521_v25  ;;  %v1593_v10 = vld [vmem:[%s6437_s27 + $0x460] sm:$0xff] }
 0x1c1   : > { %4614 = vmatprep.subr.bf16.mxu1 %v5649_v61  ;;  %v5625_v36 = vcombine.high %v1589_v4, %v1593_v10  ;;  %v1453_v37 = vld [vmem:[%s6437_s27] sm:$0xff]  ;;  %v5624_v9 = vcombine.low %v1589_v4, %v1593_v10 }
 0x1c2   : > { %v1457_v22 = vld [vmem:[%s6437_s27 + $0x20] sm:$0xff] }
 0x1c3   : > { %4574 = vmatpush1.bf16.msra.mxu0 %v5520_v23  ;;  %v1581_v3 = vld [vmem:[%s6437_s27 + $0x400] sm:$0xff]  ;;  %v5489_v14 = vcombine.high %v1453_v37, %v1457_v22  ;;  %v5488_v43 = vcombine.low %v1453_v37, %v1457_v22 }
 0x1c4   : > { %4615 = vmatpush1.bf16.msra.mxu1 %v5648_v31  ;;  %4575 = vmatprep.subr.bf16.mxu0 %v5513_v58  ;;  %v1585_v42 = vld [vmem:[%s6437_s27 + $0x420] sm:$0xff] }
 0x1c5   : > { %4616 = vmatprep.subr.bf16.mxu1 %v5641_v46  ;;  %v5617_v27 = vcombine.high %v1581_v3, %v1585_v42  ;;  %v1573_v41 = vld [vmem:[%s6437_s27 + $0x3c0] sm:$0xff]  ;;  %v5616_v60 = vcombine.low %v1581_v3, %v1585_v42 }
 0x1c6   : > { %v1577_v15 = vld [vmem:[%s6437_s27 + $0x3e0] sm:$0xff] }
 0x1c7   : > { %4576 = vmatpush1.bf16.msra.mxu0 %v5512_v30  ;;  %v1701_v57 = vld [vmem:[%s6437_s27 + $0x7c0] sm:$0xff]  ;;  %v5609_v34 = vcombine.high %v1573_v41, %v1577_v15  ;;  %v5608_v13 = vcombine.low %v1573_v41, %v1577_v15 }
 0x1c8   : > { %4617 = vmatpush1.bf16.msra.mxu1 %v5640_v63  ;;  %4577 = vmatprep.subr.bf16.mxu0 %v5505_v32  ;;  %v1705_v38 = vld [vmem:[%s6437_s27 + $0x7e0] sm:$0xff] }
 0x1c9   : > { %4618 = vmatprep.subr.bf16.mxu1 %v5633_v8  ;;  %v5737_v59 = vcombine.high %v1701_v57, %v1705_v38  ;;  %v1565_v1 = vld [vmem:[%s6437_s27 + $0x380] sm:$0xff]  ;;  %v5736_v50 = vcombine.low %v1701_v57, %v1705_v38 }
 0x1ca   : > { %v1569_v2 = vld [vmem:[%s6437_s27 + $0x3a0] sm:$0xff] }
 0x1cb   : > { %4578 = vmatpush1.bf16.msra.mxu0 %v5504_v19  ;;  %v1693_v44 = vld [vmem:[%s6437_s27 + $0x780] sm:$0xff]  ;;  %v5601_v62 = vcombine.high %v1565_v1, %v1569_v2  ;;  %v5600_v24 = vcombine.low %v1565_v1, %v1569_v2  ;;  %v5801_v1 = vcombine.high %v7034_v54, %v7037_v17  ;;  %v5929_v2 = vcombine.high %v7040_v51, %v7044_v53 }
 0x1cc   : > { %4619 = vmatpush1.bf16.msra.mxu1 %v5632_v52  ;;  %4579 = vmatprep.subr.bf16.mxu0 %v5497_v6  ;;  %v1697_v45 = vld [vmem:[%s6437_s27 + $0x7a0] sm:$0xff] }
 0x1cd   : > { %4620 = vmatprep.subr.bf16.mxu1 %v5625_v36  ;;  %v5729_v40 = vcombine.high %v1693_v44, %v1697_v45  ;;  %v1557_v55 = vld [vmem:[%s6437_s27 + $0x340] sm:$0xff]  ;;  %v5728_v56 = vcombine.low %v1693_v44, %v1697_v45 }
 0x1ce   : > { %v1561_v11 = vld [vmem:[%s6437_s27 + $0x360] sm:$0xff] }
 0x1cf   : > { %4580 = vmatpush1.bf16.msra.mxu0 %v5496_v39  ;;  %v1685_v0 = vld [vmem:[%s6437_s27 + $0x740] sm:$0xff]  ;;  %v5593_v49 = vcombine.high %v1557_v55, %v1561_v11  ;;  %v5592_v20 = vcombine.low %v1557_v55, %v1561_v11 }
 0x1d0   : > { %4621 = vmatpush1.bf16.msra.mxu1 %v5624_v9  ;;  %4581 = vmatprep.subr.bf16.mxu0 %v5489_v14  ;;  %v1689_v26 = vld [vmem:[%s6437_s27 + $0x760] sm:$0xff] }
 0x1d1   : > { %4622 = vmatprep.subr.bf16.mxu1 %v5617_v27  ;;  %v5721_v47 = vcombine.high %v1685_v0, %v1689_v26  ;;  %v1549_v25 = vld [vmem:[%s6437_s27 + $0x300] sm:$0xff]  ;;  %v5720_v29 = vcombine.low %v1685_v0, %v1689_v26 }
 0x1d2   : > { %v1553_v61 = vld [vmem:[%s6437_s27 + $0x320] sm:$0xff] }
 0x1d3   : > { %4582 = vmatpush1.bf16.msra.mxu0 %v5488_v43  ;;  %v1677_v5 = vld [vmem:[%s6437_s27 + $0x700] sm:$0xff]  ;;  %v5585_v23 = vcombine.high %v1549_v25, %v1553_v61  ;;  %v5584_v12 = vcombine.low %v1549_v25, %v1553_v61 }
 0x1d4   : > { %4623 = vmatpush1.bf16.msra.mxu1 %v5616_v60  ;;  %4583 = vmatprep.subr.bf16.mxu0 %v5609_v34  ;;  %v1681_v48 = vld [vmem:[%s6437_s27 + $0x720] sm:$0xff] }
 0x1d5   : > { %4624 = vmatprep.subr.bf16.mxu1 %v5737_v59  ;;  %v5713_v31 = vcombine.high %v1677_v5, %v1681_v48  ;;  %v1541_v58 = vld [vmem:[%s6437_s27 + $0x2c0] sm:$0xff]  ;;  %v5712_v33 = vcombine.low %v1677_v5, %v1681_v48 }
 0x1d6   : > { %v1545_v46 = vld [vmem:[%s6437_s27 + $0x2e0] sm:$0xff] }
 0x1d7   : > { %4584 = vmatpush2.bf16.msra.mxu0 %v5608_v13  ;;  %v1669_v16 = vld [vmem:[%s6437_s27 + $0x6c0] sm:$0xff]  ;;  %v5577_v30 = vcombine.high %v1541_v58, %v1545_v46  ;;  %v5576_v4 = vcombine.low %v1541_v58, %v1545_v46 }
 0x1d8   : > { %4625 = vmatpush2.bf16.msra.mxu1 %v5736_v50  ;;  %4585 = vmatprep.subr.bf16.mxu0 %v5601_v62  ;;  %v1673_v7 = vld [vmem:[%s6437_s27 + $0x6e0] sm:$0xff] }
 0x1d9   : > { %4626 = vmatprep.subr.bf16.mxu1 %v5729_v40  ;;  %v5705_v63 = vcombine.high %v1669_v16, %v1673_v7  ;;  %v1533_v32 = vld [vmem:[%s6437_s27 + $0x280] sm:$0xff]  ;;  %v5704_v10 = vcombine.low %v1669_v16, %v1673_v7 }
 0x1da   : > { %v1537_v8 = vld [vmem:[%s6437_s27 + $0x2a0] sm:$0xff] }
 0x1db   : > { %4586 = vmatpush2.bf16.msra.mxu0 %v5600_v24  ;;  %v1661_v35 = vld [vmem:[%s6437_s27 + $0x680] sm:$0xff]  ;;  %v5569_v19 = vcombine.high %v1533_v32, %v1537_v8  ;;  %v5568_v3 = vcombine.low %v1533_v32, %v1537_v8 }
 0x1dc   : > { %4627 = vmatpush2.bf16.msra.mxu1 %v5728_v56  ;;  %4587 = vmatprep.subr.bf16.mxu0 %v5593_v49  ;;  %v1665_v28 = vld [vmem:[%s6437_s27 + $0x6a0] sm:$0xff] }
 0x1dd   : > { %4628 = vmatprep.subr.bf16.mxu1 %v5721_v47  ;;  %v5697_v52 = vcombine.high %v1661_v35, %v1665_v28  ;;  %v1525_v6 = vld [vmem:[%s6437_s27 + $0x240] sm:$0xff]  ;;  %v5696_v42 = vcombine.low %v1661_v35, %v1665_v28 }
 0x1de   : > { %v1529_v36 = vld [vmem:[%s6437_s27 + $0x260] sm:$0xff] }
 0x1df   : > { %4588 = vmatpush2.bf16.msra.mxu0 %v5592_v20  ;;  %v1653_v37 = vld [vmem:[%s6437_s27 + $0x640] sm:$0xff]  ;;  %v5561_v39 = vcombine.high %v1525_v6, %v1529_v36  ;;  %v5560_v57 = vcombine.low %v1525_v6, %v1529_v36 }
 0x1e0   : > { %4629 = vmatpush2.bf16.msra.mxu1 %v5720_v29  ;;  %4589 = vmatprep.subr.bf16.mxu0 %v5585_v23  ;;  %v1657_v22 = vld [vmem:[%s6437_s27 + $0x660] sm:$0xff] }
 0x1e1   : > { %4630 = vmatprep.subr.bf16.mxu1 %v5713_v31  ;;  %v5689_v9 = vcombine.high %v1653_v37, %v1657_v22  ;;  %v1517_v14 = vld [vmem:[%s6437_s27 + $0x200] sm:$0xff]  ;;  %v5688_v38 = vcombine.low %v1653_v37, %v1657_v22 }
 0x1e2   : > { %v1521_v27 = vld [vmem:[%s6437_s27 + $0x220] sm:$0xff] }
 0x1e3   : > { %4590 = vmatpush2.bf16.msra.mxu0 %v5584_v12  ;;  %v1645_v41 = vld [vmem:[%s6437_s27 + $0x600] sm:$0xff]  ;;  %v5553_v43 = vcombine.high %v1517_v14, %v1521_v27  ;;  %v5552_v34 = vcombine.low %v1517_v14, %v1521_v27 }
 0x1e4   : > { %4631 = vmatpush2.bf16.msra.mxu1 %v5712_v33  ;;  %4591 = vmatprep.subr.bf16.mxu0 %v5577_v30  ;;  %v1649_v15 = vld [vmem:[%s6437_s27 + $0x620] sm:$0xff] }
 0x1e5   : > { %4632 = vmatprep.subr.bf16.mxu1 %v5705_v63  ;;  %v5681_v60 = vcombine.high %v1645_v41, %v1649_v15  ;;  %v5680_v59 = vcombine.low %v1645_v41, %v1649_v15  ;;  %v1757_v13 = vld [vmem:[%s6437_s27 + $0x980] sm:$0xff] }
 0x1e6   : > { %v1761_v50 = vld [vmem:[%s6437_s27 + $0x9a0] sm:$0xff] }
 0x1e7   : > { %4592 = vmatpush2.bf16.msra.mxu0 %v5576_v4  ;;  %v1885_v62 = vld [vmem:[%s6437_s27 + $0xd80] sm:$0xff]  ;;  %v5793_v49 = vcombine.high %v1757_v13, %v1761_v50  ;;  %v5792_v20 = vcombine.low %v1757_v13, %v1761_v50 }
 0x1e8   : > { %4633 = vmatpush2.bf16.msra.mxu1 %v5704_v10  ;;  %4593 = vmatprep.subr.bf16.mxu0 %v5569_v19  ;;  %v1889_v40 = vld [vmem:[%s6437_s27 + $0xda0] sm:$0xff] }
 0x1e9   : > { %4634 = vmatprep.subr.bf16.mxu1 %v5697_v52  ;;  %v5921_v47 = vcombine.high %v1885_v62, %v1889_v40  ;;  %v1749_v25 = vld [vmem:[%s6437_s27 + $0x940] sm:$0xff]  ;;  %v5920_v29 = vcombine.low %v1885_v62, %v1889_v40 }
 0x1ea   : > { %v1753_v61 = vld [vmem:[%s6437_s27 + $0x960] sm:$0xff] }
 0x1eb   : > { %4594 = vmatpush2.bf16.msra.mxu0 %v5568_v3  ;;  %v1877_v5 = vld [vmem:[%s6437_s27 + $0xd40] sm:$0xff]  ;;  %v5785_v23 = vcombine.high %v1749_v25, %v1753_v61  ;;  %v5784_v54 = vcombine.low %v1749_v25, %v1753_v61 }
 0x1ec   : > { %4635 = vmatpush2.bf16.msra.mxu1 %v5696_v42  ;;  %4595 = vmatprep.subr.bf16.mxu0 %v5561_v39  ;;  %v1881_v48 = vld [vmem:[%s6437_s27 + $0xd60] sm:$0xff] }
 0x1ed   : > { %4636 = vmatprep.subr.bf16.mxu1 %v5689_v9  ;;  %v5913_v31 = vcombine.high %v1877_v5, %v1881_v48  ;;  %v1741_v58 = vld [vmem:[%s6437_s27 + $0x900] sm:$0xff]  ;;  %v5912_v17 = vcombine.low %v1877_v5, %v1881_v48 }
 0x1ee   : > { %v1745_v46 = vld [vmem:[%s6437_s27 + $0x920] sm:$0xff] }
 0x1ef   : > { %4596 = vmatpush2.bf16.msra.mxu0 %v5560_v57  ;;  %v1869_v16 = vld [vmem:[%s6437_s27 + $0xd00] sm:$0xff]  ;;  %v5777_v51 = vcombine.high %v1741_v58, %v1745_v46  ;;  %v5776_v30 = vcombine.low %v1741_v58, %v1745_v46 }
 0x1f0   : > { %4637 = vmatpush2.bf16.msra.mxu1 %v5688_v38  ;;  %4597 = vmatprep.subr.bf16.mxu0 %v5553_v43  ;;  %v1873_v7 = vld [vmem:[%s6437_s27 + $0xd20] sm:$0xff] }
 0x1f1   : > { %4638 = vmatprep.subr.bf16.mxu1 %v5681_v60  ;;  %v5905_v53 = vcombine.high %v1869_v16, %v1873_v7  ;;  %v1861_v12 = vld [vmem:[%s6437_s27 + $0xcc0] sm:$0xff]  ;;  %v5904_v63 = vcombine.low %v1869_v16, %v1873_v7 }
 0x1f2   : > { %v1865_v33 = vld [vmem:[%s6437_s27 + $0xce0] sm:$0xff] }
 0x1f3   : > { %4598 = vmatpush2.bf16.msra.mxu0 %v5552_v34  ;;  %v5897_v8 = vcombine.high %v1861_v12, %v1865_v33  ;;  %v1725_v35 = vld [vmem:[%s6437_s27 + $0x880] sm:$0xff]  ;;  %v5896_v52 = vcombine.low %v1861_v12, %v1865_v33 }
 0x1f4   : > { %4639 = vmatpush2.bf16.msra.mxu1 %v5680_v59  ;;  %4649 = vmatprep.subr.bf16.mxu0 %v5801_v1  ;;  %v1729_v28 = vld [vmem:[%s6437_s27 + $0x8a0] sm:$0xff] }
 0x1f5   : > { %4690 = vmatprep.subr.bf16.mxu1 %v5929_v2  ;;  %v1853_v4 = vld [vmem:[%s6437_s27 + $0xc80] sm:$0xff]  ;;  %v5761_v6 = vcombine.high %v1725_v35, %v1729_v28  ;;  %v5760_v39 = vcombine.low %v1725_v35, %v1729_v28 }
 0x1f6   : > { %v1857_v10 = vld [vmem:[%s6437_s27 + $0xca0] sm:$0xff] }
 0x1f7   : > { %v5889_v36 = vcombine.high %v1853_v4, %v1857_v10  ;;  %v1717_v37 = vld [vmem:[%s6437_s27 + $0x840] sm:$0xff]  ;;  %v5888_v9 = vcombine.low %v1853_v4, %v1857_v10 }
 0x1f8   : > { %v1721_v22 = vld [vmem:[%s6437_s27 + $0x860] sm:$0xff] }
 0x1f9   : > { %v1845_v3 = vld [vmem:[%s6437_s27 + $0xc40] sm:$0xff]  ;;  %v5753_v14 = vcombine.high %v1717_v37, %v1721_v22  ;;  %v5752_v43 = vcombine.low %v1717_v37, %v1721_v22 }
 0x1fa   : > { %v1849_v42 = vld [vmem:[%s6437_s27 + $0xc60] sm:$0xff] }
 0x1fb   : > { %v5881_v27 = vcombine.high %v1845_v3, %v1849_v42  ;;  %v1709_v41 = vld [vmem:[%s6437_s27 + $0x800] sm:$0xff]  ;;  %v5880_v60 = vcombine.low %v1845_v3, %v1849_v42 }
 0x1fc   : > { %v1713_v15 = vld [vmem:[%s6437_s27 + $0x820] sm:$0xff] }
 0x1fd   : > { %v1837_v57 = vld [vmem:[%s6437_s27 + $0xc00] sm:$0xff]  ;;  %v5745_v34 = vcombine.high %v1709_v41, %v1713_v15  ;;  %v5744_v13 = vcombine.low %v1709_v41, %v1713_v15 }
 0x1fe   : > { %v1841_v38 = vld [vmem:[%s6437_s27 + $0xc20] sm:$0xff] }
 0x1ff   : > { %v5873_v59 = vcombine.high %v1837_v57, %v1841_v38  ;;  %v1829_v1 = vld [vmem:[%s6437_s27 + $0xbc0] sm:$0xff]  ;;  %v5872_v50 = vcombine.low %v1837_v57, %v1841_v38 }
 0x200   : > { %v1833_v2 = vld [vmem:[%s6437_s27 + $0xbe0] sm:$0xff] }
 0x201   : > { %v5865_v62 = vcombine.high %v1829_v1, %v1833_v2  ;;  %v5864_v25 = vcombine.low %v1829_v1, %v1833_v2  ;;  %v1909_v41 = vld [vmem:[%s6437_s27 + $0xe40] sm:$0xff] }
 0x202   : > { %v1913_v15 = vld [vmem:[%s6437_s27 + $0xe60] sm:$0xff] }
 0x203   : > { %v5945_v2 = vcombine.high %v1909_v41, %v1913_v15 }
 0x241   : > { %v1227_v44 = vpop.f32.mrf.mxu0 }
 0x242   : > { %v1298_v45 = vpop.f32.mrf.mxu1  ;;  %v7103_v56 = vpack.c.bf16 %v1227_v44, %v1227_v44  ;;  %v1957_v44 = vld [vmem:[%s6437_s27 + $0xfc0] sm:$0xff] }
 0x243   : > { %v7097_v55 = vpack.c.bf16 %v1298_v45, %v1298_v45  ;;  %v1229_v11 = vpop.f32.mrf.mxu0  ;;  %v1961_v45 = vld [vmem:[%s6437_s27 + $0xfe0] sm:$0xff] }
 0x244   : > { %v1300_v0 = vpop.f32.mrf.mxu1  ;;  %v7099_v26 = vpack.c.bf16 %v1229_v11, %v1229_v11  ;;  %v5993_v40 = vcombine.high %v1957_v44, %v1961_v45  ;;  %v1821_v11 = vld [vmem:[%s6437_s27 + $0xb80] sm:$0xff]  ;;  %v5992_v61 = vcombine.low %v1957_v44, %v1961_v45 }
 0x245   : > { %v7101_v24 = vpack.c.bf16 %v1300_v0, %v1300_v0  ;;  %v1825_v0 = vld [vmem:[%s6437_s27 + $0xba0] sm:$0xff] }
 0x246   : > { %4599 = vmatprep.mubr.bf16.mxu0 %v7099_v26  ;;  %v5857_v5 = vcombine.high %v1821_v11, %v1825_v0  ;;  %v5856_v58 = vcombine.low %v1821_v11, %v1825_v0  ;;  %v1773_v44 = vld [vmem:[%s6437_s27 + $0xa00] sm:$0xff] }
 0x247   : > { %4640 = vmatprep.mubr.bf16.mxu1 %v7101_v24  ;;  %4600 = vmatmul.mubr.bf16.vlgmr.msra.gmra.mxu0 %v7103_v56  ;;  %v1777_v45 = vld [vmem:[%s6437_s27 + $0xa20] sm:$0xff] }
 0x248   : > { %4641 = vmatmul.mubr.bf16.vlgmr.msra.gmra.mxu1 %v7097_v55  ;;  %4650 = vmatpush1.bf16.msra.mxu0 %v5800_v21  ;;  %v1733_v21 = vld [vmem:[%s6437_s27 + $0x8c0] sm:$0xff]  ;;  %v5809_v11 = vcombine.high %v1773_v44, %v1777_v45 }
 0x249   : > { %4691 = vmatpush1.bf16.msra.mxu1 %v5928_v18  ;;  %4651 = vmatprep.subr.bf16.mxu0 %v5793_v49  ;;  %v1737_v18 = vld [vmem:[%s6437_s27 + $0x8e0] sm:$0xff] }
 0x24a   : > { %4692 = vmatprep.subr.bf16.mxu1 %v5921_v47  ;;  %v5769_v32 = vcombine.high %v1733_v21, %v1737_v18  ;;  %v5768_v19 = vcombine.low %v1733_v21, %v1737_v18  ;;  %v1949_v49 = vld [vmem:[%s6437_s27 + $0xf80] sm:$0xff] }
 0x24b   : > { %v1953_v47 = vld [vmem:[%s6437_s27 + $0xfa0] sm:$0xff] }
 0x24c   : > { %4652 = vmatpush1.bf16.msra.mxu0 %v5792_v20  ;;  %v5985_v48 = vcombine.high %v1949_v49, %v1953_v47  ;;  %v1813_v20 = vld [vmem:[%s6437_s27 + $0xb40] sm:$0xff]  ;;  %v5984_v46 = vcombine.low %v1949_v49, %v1953_v47  ;;  %v1510_v49 = vld [vmem:[%s6437_s27 + $0x1c8] sm:$0xff] }
 0x24d   : > { %4693 = vmatpush1.bf16.msra.mxu1 %v5920_v29  ;;  %4653 = vmatprep.subr.bf16.mxu0 %v5785_v23  ;;  %v1817_v29 = vld [vmem:[%s6437_s27 + $0xb60] sm:$0xff]  ;;  %v1514_v47 = vld [vmem:[%s6437_s27 + $0x1e8] sm:$0xff] }
 0x24e   : > { %4694 = vmatprep.subr.bf16.mxu1 %v5913_v31  ;;  %v1941_v23 = vld [vmem:[%s6437_s27 + $0xf40] sm:$0xff]  ;;  %v5849_v16 = vcombine.high %v1813_v20, %v1817_v29  ;;  %v5848_v21 = vcombine.low %v1813_v20, %v1817_v29  ;;  %v5547_v20 = vcombine.high %v1510_v49, %v1514_v47 }
 0x24f   : > { %v1945_v31 = vld [vmem:[%s6437_s27 + $0xf60] sm:$0xff] }
 0x250   : > { %4654 = vmatpush1.bf16.msra.mxu0 %v5784_v54  ;;  %v5977_v7 = vcombine.high %v1941_v23, %v1945_v31  ;;  %v1805_v54 = vld [vmem:[%s6437_s27 + $0xb00] sm:$0xff]  ;;  %v5976_v18 = vcombine.low %v1941_v23, %v1945_v31  ;;  %v1502_v23 = vld [vmem:[%s6437_s27 + $0x188] sm:$0xff] }
 0x251   : > { %4695 = vmatpush1.bf16.msra.mxu1 %v5912_v17  ;;  %4655 = vmatprep.subr.bf16.mxu0 %v5777_v51  ;;  %v1809_v17 = vld [vmem:[%s6437_s27 + $0xb20] sm:$0xff] }
 0x252   : > { %4696 = vmatprep.subr.bf16.mxu1 %v5905_v53  ;;  %v1933_v51 = vld [vmem:[%s6437_s27 + $0xf00] sm:$0xff]  ;;  %v5841_v12 = vcombine.high %v1805_v54, %v1809_v17  ;;  %v5840_v35 = vcombine.low %v1805_v54, %v1809_v17 }
 0x253   : > { %v1937_v53 = vld [vmem:[%s6437_s27 + $0xf20] sm:$0xff] }
 0x254   : > { %4656 = vmatpush1.bf16.msra.mxu0 %v5776_v30  ;;  %v5969_v33 = vcombine.high %v1933_v51, %v1937_v53  ;;  %v1797_v30 = vld [vmem:[%s6437_s27 + $0xac0] sm:$0xff]  ;;  %v5968_v28 = vcombine.low %v1933_v51, %v1937_v53 }
 0x255   : > { %4697 = vmatpush1.bf16.msra.mxu1 %v5904_v63  ;;  %4657 = vmatprep.subr.bf16.mxu0 %v5769_v32  ;;  %v1801_v63 = vld [vmem:[%s6437_s27 + $0xae0] sm:$0xff] }
 0x256   : > { %4698 = vmatprep.subr.bf16.mxu1 %v5897_v8  ;;  %v1925_v32 = vld [vmem:[%s6437_s27 + $0xec0] sm:$0xff]  ;;  %v5833_v4 = vcombine.high %v1797_v30, %v1801_v63  ;;  %v5832_v37 = vcombine.low %v1797_v30, %v1801_v63 }
 0x257   : > { %v1929_v8 = vld [vmem:[%s6437_s27 + $0xee0] sm:$0xff] }
 0x258   : > { %4658 = vmatpush1.bf16.msra.mxu0 %v5768_v19  ;;  %v5961_v10 = vcombine.high %v1925_v32, %v1929_v8  ;;  %v1789_v19 = vld [vmem:[%s6437_s27 + $0xa80] sm:$0xff]  ;;  %v5960_v22 = vcombine.low %v1925_v32, %v1929_v8 }
 0x259   : > { %4699 = vmatpush1.bf16.msra.mxu1 %v5896_v52  ;;  %4659 = vmatprep.subr.bf16.mxu0 %v5761_v6  ;;  %v1793_v52 = vld [vmem:[%s6437_s27 + $0xaa0] sm:$0xff] }
 0x25a   : > { %4700 = vmatprep.subr.bf16.mxu1 %v5889_v36  ;;  %v1917_v6 = vld [vmem:[%s6437_s27 + $0xe80] sm:$0xff]  ;;  %v5825_v3 = vcombine.high %v1789_v19, %v1793_v52  ;;  %v5824_v57 = vcombine.low %v1789_v19, %v1793_v52 }
 0x25b   : > { %v1921_v36 = vld [vmem:[%s6437_s27 + $0xea0] sm:$0xff] }
 0x25c   : > { %4660 = vmatpush1.bf16.msra.mxu0 %v5760_v39  ;;  %v5953_v42 = vcombine.high %v1917_v6, %v1921_v36  ;;  %v1781_v39 = vld [vmem:[%s6437_s27 + $0xa40] sm:$0xff] }
 0x25d   : > { %4701 = vmatpush1.bf16.msra.mxu1 %v5888_v9  ;;  %4661 = vmatprep.subr.bf16.mxu0 %v5753_v14 }
 0x25e   : > { %4702 = vmatprep.subr.bf16.mxu1 %v5881_v27  ;;  %v1785_v27 = vld [vmem:[%s6437_s27 + $0xa60] sm:$0xff] }
 0x25f   : > { %v5817_v1 = vcombine.high %v1781_v39, %v1785_v27 }
 0x260   : > { %4662 = vmatpush1.bf16.msra.mxu0 %v5752_v43 }
 0x261   : > { %4703 = vmatpush1.bf16.msra.mxu1 %v5880_v60  ;;  %4663 = vmatprep.subr.bf16.mxu0 %v5745_v34  ;;  %v5952_v60 = vcombine.low %v1917_v6, %v1921_v36 }
 0x262   : > { %4704 = vmatprep.subr.bf16.mxu1 %v5873_v59 }
 0x264   : > { %4664 = vmatpush1.bf16.msra.mxu0 %v5744_v13  ;;  %v1901_v13 = vld [vmem:[%s6437_s27 + $0xe00] sm:$0xff] }
 0x265   : > { %4705 = vmatpush1.bf16.msra.mxu1 %v5872_v50  ;;  %4665 = vmatprep.subr.bf16.mxu0 %v5865_v62  ;;  %v1905_v50 = vld [vmem:[%s6437_s27 + $0xe20] sm:$0xff]  ;;  %v5816_v62 = vcombine.low %v1781_v39, %v1785_v27 }
 0x266   : > { %4706 = vmatprep.subr.bf16.mxu1 %v5993_v40  ;;  %v5944_v40 = vcombine.low %v1909_v41, %v1913_v15  ;;  %v5937_v0 = vcombine.high %v1901_v13, %v1905_v50  ;;  %v1470_v41 = vld [vmem:[%s6437_s27 + $0x88] sm:$0xff] }
 0x267   : > { %v1474_v15 = vld [vmem:[%s6437_s27 + $0xa8] sm:$0xff] }
 0x268   : > { %4666 = vmatpush2.bf16.msra.mxu0 %v5864_v25  ;;  %v1638_v25 = vld [vmem:[%s6437_s27 + $0x5c8] sm:$0xff] }
 0x269   : > { %4707 = vmatpush2.bf16.msra.mxu1 %v5992_v61  ;;  %4667 = vmatprep.subr.bf16.mxu0 %v5857_v5  ;;  %v1642_v61 = vld [vmem:[%s6437_s27 + $0x5e8] sm:$0xff]  ;;  %v5808_v5 = vcombine.low %v1773_v44, %v1777_v45 }
 0x26a   : > { %4708 = vmatprep.subr.bf16.mxu1 %v5985_v48  ;;  %v5936_v48 = vcombine.low %v1901_v13, %v1905_v50  ;;  %v5675_v29 = vcombine.high %v1638_v25, %v1642_v61  ;;  %v5674_v17 = vcombine.low %v1638_v25, %v1642_v61  ;;  %v1462_v44 = vld [vmem:[%s6437_s27 + $0x48] sm:$0xff] }
 0x26b   : > { %v1466_v45 = vld [vmem:[%s6437_s27 + $0x68] sm:$0xff] }
 0x26c   : > { %4668 = vmatpush2.bf16.msra.mxu0 %v5856_v58  ;;  %v1506_v58 = vld [vmem:[%s6437_s27 + $0x1a8] sm:$0xff] }
 0x26d   : > { %4709 = vmatpush2.bf16.msra.mxu1 %v5984_v46  ;;  %4669 = vmatprep.subr.bf16.mxu0 %v5849_v16  ;;  %v1630_v46 = vld [vmem:[%s6437_s27 + $0x588] sm:$0xff]  ;;  %v5539_v51 = vcombine.high %v1502_v23, %v1506_v58  ;;  %v5538_v30 = vcombine.low %v1502_v23, %v1506_v58 }
 0x26e   : > { %4710 = vmatprep.subr.bf16.mxu1 %v5977_v7  ;;  %v1634_v16 = vld [vmem:[%s6437_s27 + $0x5a8] sm:$0xff]  ;;  %v5546_v7 = vcombine.low %v1510_v49, %v1514_v47 }
 0x26f   : > { %v5667_v53 = vcombine.high %v1630_v46, %v1634_v16  ;;  %v5666_v63 = vcombine.low %v1630_v46, %v1634_v16  ;;  %v1590_v13 = vld [vmem:[%s6437_s27 + $0x448] sm:$0xff] }
 0x270   : > { %4670 = vmatpush2.bf16.msra.mxu0 %v5848_v21  ;;  %v1494_v21 = vld [vmem:[%s6437_s27 + $0x148] sm:$0xff] }
 0x271   : > { %4711 = vmatpush2.bf16.msra.mxu1 %v5976_v18  ;;  %4671 = vmatprep.subr.bf16.mxu0 %v5841_v12  ;;  %v1498_v18 = vld [vmem:[%s6437_s27 + $0x168] sm:$0xff] }
 0x272   : > { %4712 = vmatprep.subr.bf16.mxu1 %v5969_v33  ;;  %v1622_v12 = vld [vmem:[%s6437_s27 + $0x548] sm:$0xff]  ;;  %v5531_v32 = vcombine.high %v1494_v21, %v1498_v18  ;;  %v5530_v19 = vcombine.low %v1494_v21, %v1498_v18 }
 0x273   : > { %v1626_v33 = vld [vmem:[%s6437_s27 + $0x568] sm:$0xff] }
 0x274   : > { %4672 = vmatpush2.bf16.msra.mxu0 %v5840_v35  ;;  %v5659_v8 = vcombine.high %v1622_v12, %v1626_v33  ;;  %v1486_v35 = vld [vmem:[%s6437_s27 + $0x108] sm:$0xff]  ;;  %v5658_v52 = vcombine.low %v1622_v12, %v1626_v33 }
 0x275   : > { %4713 = vmatpush2.bf16.msra.mxu1 %v5968_v28  ;;  %4673 = vmatprep.subr.bf16.mxu0 %v5833_v4  ;;  %v1369_v9 = vpop.f32.mrf.mxu0  ;;  %v1490_v28 = vld [vmem:[%s6437_s27 + $0x128] sm:$0xff] }
 0x276   : > { %4714 = vmatprep.subr.bf16.mxu1 %v5961_v10  ;;  %v1440_v14 = vpop.f32.mrf.mxu1  ;;  %v7187_v54 = vpack.c.bf16 %v1369_v9, %v1369_v9  ;;  %v1614_v4 = vld [vmem:[%s6437_s27 + $0x508] sm:$0xff]  ;;  %v5523_v6 = vcombine.high %v1486_v35, %v1490_v28  ;;  %v5522_v39 = vcombine.low %v1486_v35, %v1490_v28 }
 0x277   : > { %v1371_v38 = vpop.f32.mrf.mxu0  ;;  %v7182_v31 = vpack.c.bf16 %v1440_v14, %v1440_v14  ;;  %v1618_v10 = vld [vmem:[%s6437_s27 + $0x528] sm:$0xff] }
 0x278   : > { %v1442_v43 = vpop.f32.mrf.mxu1  ;;  %4674 = vmatpush2.bf16.msra.mxu0 %v5832_v37  ;;  %v7167_v34 = vpack.c.bf16 %v1371_v38, %v1371_v38  ;;  %v5651_v36 = vcombine.high %v1614_v4, %v1618_v10  ;;  %v1478_v37 = vld [vmem:[%s6437_s27 + $0xc8] sm:$0xff]  ;;  %v5650_v9 = vcombine.low %v1614_v4, %v1618_v10 }
 0x279   : > { %4715 = vmatpush2.bf16.msra.mxu1 %v5960_v22  ;;  %v7169_v59 = vpack.c.bf16 %v1442_v43, %v1442_v43  ;;  %4675 = vmatprep.subr.bf16.mxu0 %v5825_v3  ;;  %v1482_v22 = vld [vmem:[%s6437_s27 + $0xe8] sm:$0xff] }
 0x27a   : > { %4716 = vmatprep.subr.bf16.mxu1 %v5953_v42  ;;  %4681 = vmatprep.mubr.bf16.mxu0 %v7167_v34  ;;  %v1606_v3 = vld [vmem:[%s6437_s27 + $0x4c8] sm:$0xff]  ;;  %v5515_v14 = vcombine.high %v1478_v37, %v1482_v22  ;;  %v5514_v43 = vcombine.low %v1478_v37, %v1482_v22 }
 0x27b   : > { %4722 = vmatprep.mubr.bf16.mxu1 %v7169_v59  ;;  %v1610_v42 = vld [vmem:[%s6437_s27 + $0x4e8] sm:$0xff] }
 0x27c   : > { %4676 = vmatpush2.bf16.msra.mxu0 %v5824_v57  ;;  %v5643_v27 = vcombine.high %v1606_v3, %v1610_v42  ;;  %v1598_v57 = vld [vmem:[%s6437_s27 + $0x488] sm:$0xff] }
 0x27d   : > { %4717 = vmatpush2.bf16.msra.mxu1 %v5952_v60  ;;  %4677 = vmatprep.subr.bf16.mxu0 %v5817_v1  ;;  %v1602_v38 = vld [vmem:[%s6437_s27 + $0x4a8] sm:$0xff]  ;;  %v5642_v60 = vcombine.low %v1606_v3, %v1610_v42  ;;  %v5507_v1 = vcombine.high %v1470_v41, %v1474_v15 }
 0x27e   : > { %4718 = vmatprep.subr.bf16.mxu1 %v5945_v2  ;;  %v5635_v2 = vcombine.high %v1598_v57, %v1602_v38  ;;  %v1594_v50 = vld [vmem:[%s6437_s27 + $0x468] sm:$0xff] }
 0x27f   : > { %v1454_v49 = vld [vmem:[%s6437_s27 + $0x8] sm:$0xff] }
 0x280   : > { %4678 = vmatpush2.bf16.msra.mxu0 %v5816_v62  ;;  %v5506_v62 = vcombine.low %v1470_v41, %v1474_v15  ;;  %v1458_v47 = vld [vmem:[%s6437_s27 + $0x28] sm:$0xff] }
 0x281   : > { %4719 = vmatpush2.bf16.msra.mxu1 %v5944_v40  ;;  %4679 = vmatprep.subr.bf16.mxu0 %v5809_v11  ;;  %v5634_v40 = vcombine.low %v1598_v57, %v1602_v38  ;;  %v5499_v11 = vcombine.high %v1462_v44, %v1466_v45  ;;  %v1582_v25 = vld [vmem:[%s6437_s27 + $0x408] sm:$0xff] }
 0x282   : > { %4720 = vmatprep.subr.bf16.mxu1 %v5937_v0  ;;  %v5627_v0 = vcombine.high %v1590_v13, %v1594_v50  ;;  %v1586_v61 = vld [vmem:[%s6437_s27 + $0x428] sm:$0xff] }
 0x283   : > { %v1574_v23 = vld [vmem:[%s6437_s27 + $0x3c8] sm:$0xff] }
 0x284   : > { %4680 = vmatpush2.bf16.msra.mxu0 %v5808_v5  ;;  %v5498_v5 = vcombine.low %v1462_v44, %v1466_v45  ;;  %v1578_v58 = vld [vmem:[%s6437_s27 + $0x3e8] sm:$0xff] }
 0x285   : > { %4721 = vmatpush2.bf16.msra.mxu1 %v5936_v48  ;;  %4731 = vmatprep.subr.bf16.mxu0 %v5547_v20  ;;  %v5626_v48 = vcombine.low %v1590_v13, %v1594_v50  ;;  %v5491_v20 = vcombine.high %v1454_v49, %v1458_v47  ;;  %v1702_v46 = vld [vmem:[%s6437_s27 + $0x7c8] sm:$0xff] }
 0x286   : > { %4772 = vmatprep.subr.bf16.mxu1 %v5675_v29  ;;  %v5619_v29 = vcombine.high %v1582_v25, %v1586_v61  ;;  %v1706_v16 = vld [vmem:[%s6437_s27 + $0x7e8] sm:$0xff] }
 0x287   : > { %4682 = vmatmul.mubr.bf16.vlgmr.msra.gmra.mxu0 %v7187_v54  ;;  %v1566_v21 = vld [vmem:[%s6437_s27 + $0x388] sm:$0xff] }
 0x288   : > { %4723 = vmatmul.mubr.bf16.vlgmr.msra.gmra.mxu1 %v7182_v31  ;;  %4732 = vmatpush1.bf16.msra.mxu0 %v5546_v7  ;;  %v5490_v7 = vcombine.low %v1454_v49, %v1458_v47  ;;  %v1570_v18 = vld [vmem:[%s6437_s27 + $0x3a8] sm:$0xff] }
 0x289   : > { %4763 = vmatprep.mubr.bf16.mxu0 %v7099_v26  ;;  %4773 = vmatpush1.bf16.msra.mxu1 %v5674_v17  ;;  %v5618_v17 = vcombine.low %v1582_v25, %v1586_v61  ;;  %v1694_v12 = vld [vmem:[%s6437_s27 + $0x788] sm:$0xff] }
 0x28a   : > { %4804 = vmatprep.mubr.bf16.mxu1 %v7101_v24  ;;  %4733 = vmatprep.subr.bf16.mxu0 %v5539_v51  ;;  %v5611_v51 = vcombine.high %v1574_v23, %v1578_v58  ;;  %v1698_v33 = vld [vmem:[%s6437_s27 + $0x7a8] sm:$0xff] }
 0x28b   : > { %4774 = vmatprep.subr.bf16.mxu1 %v5667_v53  ;;  %v5739_v53 = vcombine.high %v1702_v46, %v1706_v16  ;;  %v1558_v35 = vld [vmem:[%s6437_s27 + $0x348] sm:$0xff] }
 0x28c   : > { %4734 = vmatpush1.bf16.msra.mxu0 %v5538_v30  ;;  %v5610_v30 = vcombine.low %v1574_v23, %v1578_v58  ;;  %v1562_v28 = vld [vmem:[%s6437_s27 + $0x368] sm:$0xff] }
 0x28d   : > { %4775 = vmatpush1.bf16.msra.mxu1 %v5666_v63  ;;  %4735 = vmatprep.subr.bf16.mxu0 %v5531_v32  ;;  %v5738_v63 = vcombine.low %v1702_v46, %v1706_v16  ;;  %v5603_v32 = vcombine.high %v1566_v21, %v1570_v18  ;;  %v1686_v4 = vld [vmem:[%s6437_s27 + $0x748] sm:$0xff] }
 0x28e   : > { %4776 = vmatprep.subr.bf16.mxu1 %v5659_v8  ;;  %v5731_v8 = vcombine.high %v1694_v12, %v1698_v33  ;;  %v1690_v10 = vld [vmem:[%s6437_s27 + $0x768] sm:$0xff] }
 0x28f   : > { %v1550_v37 = vld [vmem:[%s6437_s27 + $0x308] sm:$0xff] }
 0x290   : > { %4736 = vmatpush1.bf16.msra.mxu0 %v5530_v19  ;;  %v5602_v19 = vcombine.low %v1566_v21, %v1570_v18  ;;  %v1554_v22 = vld [vmem:[%s6437_s27 + $0x328] sm:$0xff] }
 0x291   : > { %4777 = vmatpush1.bf16.msra.mxu1 %v5658_v52  ;;  %4737 = vmatprep.subr.bf16.mxu0 %v5523_v6  ;;  %v5730_v52 = vcombine.low %v1694_v12, %v1698_v33  ;;  %v5595_v6 = vcombine.high %v1558_v35, %v1562_v28  ;;  %v1678_v3 = vld [vmem:[%s6437_s27 + $0x708] sm:$0xff] }
 0x292   : > { %4778 = vmatprep.subr.bf16.mxu1 %v5651_v36  ;;  %v5723_v36 = vcombine.high %v1686_v4, %v1690_v10  ;;  %v1682_v42 = vld [vmem:[%s6437_s27 + $0x728] sm:$0xff] }
 0x293   : > { %v1542_v41 = vld [vmem:[%s6437_s27 + $0x2c8] sm:$0xff] }
 0x294   : > { %4738 = vmatpush1.bf16.msra.mxu0 %v5522_v39  ;;  %v5594_v39 = vcombine.low %v1558_v35, %v1562_v28  ;;  %v1546_v15 = vld [vmem:[%s6437_s27 + $0x2e8] sm:$0xff] }
 0x295   : > { %4779 = vmatpush1.bf16.msra.mxu1 %v5650_v9  ;;  %4739 = vmatprep.subr.bf16.mxu0 %v5515_v14  ;;  %v5722_v9 = vcombine.low %v1686_v4, %v1690_v10  ;;  %v5587_v14 = vcombine.high %v1550_v37, %v1554_v22  ;;  %v1670_v57 = vld [vmem:[%s6437_s27 + $0x6c8] sm:$0xff] }
 0x296   : > { %4780 = vmatprep.subr.bf16.mxu1 %v5643_v27  ;;  %v5715_v27 = vcombine.high %v1678_v3, %v1682_v42  ;;  %v1674_v38 = vld [vmem:[%s6437_s27 + $0x6e8] sm:$0xff] }
 0x297   : > { %v1534_v44 = vld [vmem:[%s6437_s27 + $0x288] sm:$0xff] }
 0x298   : > { %4740 = vmatpush1.bf16.msra.mxu0 %v5514_v43  ;;  %v5586_v43 = vcombine.low %v1550_v37, %v1554_v22  ;;  %v1538_v45 = vld [vmem:[%s6437_s27 + $0x2a8] sm:$0xff] }
 0x299   : > { %4781 = vmatpush1.bf16.msra.mxu1 %v5642_v60  ;;  %4741 = vmatprep.subr.bf16.mxu0 %v5507_v1  ;;  %v5714_v60 = vcombine.low %v1678_v3, %v1682_v42  ;;  %v5579_v1 = vcombine.high %v1542_v41, %v1546_v15  ;;  %v1662_v13 = vld [vmem:[%s6437_s27 + $0x688] sm:$0xff] }
 0x29a   : > { %4782 = vmatprep.subr.bf16.mxu1 %v5635_v2  ;;  %v5707_v2 = vcombine.high %v1670_v57, %v1674_v38  ;;  %v1666_v50 = vld [vmem:[%s6437_s27 + $0x6a8] sm:$0xff] }
 0x29b   : > { %v1526_v49 = vld [vmem:[%s6437_s27 + $0x248] sm:$0xff] }
 0x29c   : > { %4742 = vmatpush1.bf16.msra.mxu0 %v5506_v62  ;;  %v5578_v62 = vcombine.low %v1542_v41, %v1546_v15  ;;  %v1530_v47 = vld [vmem:[%s6437_s27 + $0x268] sm:$0xff] }
 0x29d   : > { %4783 = vmatpush1.bf16.msra.mxu1 %v5634_v40  ;;  %4743 = vmatprep.subr.bf16.mxu0 %v5499_v11  ;;  %v5706_v40 = vcombine.low %v1670_v57, %v1674_v38  ;;  %v5571_v11 = vcombine.high %v1534_v44, %v1538_v45  ;;  %v1654_v25 = vld [vmem:[%s6437_s27 + $0x648] sm:$0xff] }
 0x29e   : > { %4784 = vmatprep.subr.bf16.mxu1 %v5627_v0  ;;  %v5699_v0 = vcombine.high %v1662_v13, %v1666_v50  ;;  %v1658_v61 = vld [vmem:[%s6437_s27 + $0x668] sm:$0xff] }
 0x29f   : > { %v1518_v23 = vld [vmem:[%s6437_s27 + $0x208] sm:$0xff] }
 0x2a0   : > { %4744 = vmatpush1.bf16.msra.mxu0 %v5498_v5  ;;  %v5570_v5 = vcombine.low %v1534_v44, %v1538_v45  ;;  %v1522_v58 = vld [vmem:[%s6437_s27 + $0x228] sm:$0xff] }
 0x2a1   : > { %4785 = vmatpush1.bf16.msra.mxu1 %v5626_v48  ;;  %4745 = vmatprep.subr.bf16.mxu0 %v5491_v20  ;;  %v5698_v48 = vcombine.low %v1662_v13, %v1666_v50  ;;  %v5563_v20 = vcombine.high %v1526_v49, %v1530_v47  ;;  %v1646_v46 = vld [vmem:[%s6437_s27 + $0x608] sm:$0xff] }
 0x2a2   : > { %4786 = vmatprep.subr.bf16.mxu1 %v5619_v29  ;;  %v5691_v29 = vcombine.high %v1654_v25, %v1658_v61  ;;  %v1650_v16 = vld [vmem:[%s6437_s27 + $0x628] sm:$0xff] }
 0x2a3   : > { %v1766_v21 = vld [vmem:[%s6437_s27 + $0x9c8] sm:$0xff] }
 0x2a4   : > { %4746 = vmatpush1.bf16.msra.mxu0 %v5490_v7  ;;  %v5562_v7 = vcombine.low %v1526_v49, %v1530_v47  ;;  %v1770_v18 = vld [vmem:[%s6437_s27 + $0x9e8] sm:$0xff] }
 0x2a5   : > { %4787 = vmatpush1.bf16.msra.mxu1 %v5618_v17  ;;  %4747 = vmatprep.subr.bf16.mxu0 %v5611_v51  ;;  %v5690_v17 = vcombine.low %v1654_v25, %v1658_v61  ;;  %v5555_v51 = vcombine.high %v1518_v23, %v1522_v58  ;;  %v1894_v12 = vld [vmem:[%s6437_s27 + $0xdc8] sm:$0xff]  ;;  %v5802_v4 = vcombine.low %v1766_v21, %v1770_v18 }
 0x2a6   : > { %4788 = vmatprep.subr.bf16.mxu1 %v5739_v53  ;;  %v5683_v53 = vcombine.high %v1646_v46, %v1650_v16  ;;  %v1898_v33 = vld [vmem:[%s6437_s27 + $0xde8] sm:$0xff] }
 0x2a7   : > { %v1758_v35 = vld [vmem:[%s6437_s27 + $0x988] sm:$0xff] }
 0x2a8   : > { %4748 = vmatpush2.bf16.msra.mxu0 %v5610_v30  ;;  %v5554_v30 = vcombine.low %v1518_v23, %v1522_v58  ;;  %v1762_v28 = vld [vmem:[%s6437_s27 + $0x9a8] sm:$0xff] }
 0x2a9   : > { %4789 = vmatpush2.bf16.msra.mxu1 %v5738_v63  ;;  %4749 = vmatprep.subr.bf16.mxu0 %v5603_v32  ;;  %v5682_v63 = vcombine.low %v1646_v46, %v1650_v16  ;;  %v5803_v32 = vcombine.high %v1766_v21, %v1770_v18  ;;  %v1886_v10 = vld [vmem:[%s6437_s27 + $0xd88] sm:$0xff] }
 0x2aa   : > { %4790 = vmatprep.subr.bf16.mxu1 %v5731_v8  ;;  %v5931_v8 = vcombine.high %v1894_v12, %v1898_v33  ;;  %v1754_v37 = vld [vmem:[%s6437_s27 + $0x968] sm:$0xff] }
 0x2ab   : > { %v1878_v3 = vld [vmem:[%s6437_s27 + $0xd48] sm:$0xff] }
 0x2ac   : > { %4750 = vmatpush2.bf16.msra.mxu0 %v5602_v19  ;;  %v1890_v19 = vld [vmem:[%s6437_s27 + $0xda8] sm:$0xff] }
 0x2ad   : > { %4791 = vmatpush2.bf16.msra.mxu1 %v5730_v52  ;;  %4751 = vmatprep.subr.bf16.mxu0 %v5595_v6  ;;  %v5930_v52 = vcombine.low %v1894_v12, %v1898_v33  ;;  %v5795_v6 = vcombine.high %v1758_v35, %v1762_v28  ;;  %v5923_v22 = vcombine.high %v1886_v10, %v1890_v19  ;;  %v1882_v42 = vld [vmem:[%s6437_s27 + $0xd68] sm:$0xff] }
 0x2ae   : > { %4792 = vmatprep.subr.bf16.mxu1 %v5723_v36  ;;  %v1750_v36 = vld [vmem:[%s6437_s27 + $0x948] sm:$0xff] }
 0x2af   : > { %v1742_v41 = vld [vmem:[%s6437_s27 + $0x908] sm:$0xff] }
 0x2b0   : > { %4752 = vmatpush2.bf16.msra.mxu0 %v5594_v39  ;;  %v5794_v39 = vcombine.low %v1758_v35, %v1762_v28  ;;  %v1746_v15 = vld [vmem:[%s6437_s27 + $0x928] sm:$0xff] }
 0x2b1   : > { %4793 = vmatpush2.bf16.msra.mxu1 %v5722_v9  ;;  %4753 = vmatprep.subr.bf16.mxu0 %v5587_v14  ;;  %v5922_v9 = vcombine.low %v1886_v10, %v1890_v19  ;;  %v5787_v14 = vcombine.high %v1750_v36, %v1754_v37  ;;  %v1870_v57 = vld [vmem:[%s6437_s27 + $0xd08] sm:$0xff] }
 0x2b2   : > { %4794 = vmatprep.subr.bf16.mxu1 %v5715_v27  ;;  %v5915_v27 = vcombine.high %v1878_v3, %v1882_v42  ;;  %v1874_v38 = vld [vmem:[%s6437_s27 + $0xd28] sm:$0xff] }
 0x2b3   : > { %v1734_v44 = vld [vmem:[%s6437_s27 + $0x8c8] sm:$0xff] }
 0x2b4   : > { %4754 = vmatpush2.bf16.msra.mxu0 %v5586_v43  ;;  %v5786_v43 = vcombine.low %v1750_v36, %v1754_v37  ;;  %v1738_v45 = vld [vmem:[%s6437_s27 + $0x8e8] sm:$0xff] }
 0x2b5   : > { %4795 = vmatpush2.bf16.msra.mxu1 %v5714_v60  ;;  %4755 = vmatprep.subr.bf16.mxu0 %v5579_v1  ;;  %v5914_v60 = vcombine.low %v1878_v3, %v1882_v42  ;;  %v5779_v1 = vcombine.high %v1742_v41, %v1746_v15  ;;  %v1862_v13 = vld [vmem:[%s6437_s27 + $0xcc8] sm:$0xff] }
 0x2b6   : > { %4796 = vmatprep.subr.bf16.mxu1 %v5707_v2  ;;  %v5907_v2 = vcombine.high %v1870_v57, %v1874_v38  ;;  %v1866_v50 = vld [vmem:[%s6437_s27 + $0xce8] sm:$0xff] }
 0x2b7   : > { %v1726_v49 = vld [vmem:[%s6437_s27 + $0x888] sm:$0xff] }
 0x2b8   : > { %4756 = vmatpush2.bf16.msra.mxu0 %v5578_v62  ;;  %v5778_v62 = vcombine.low %v1742_v41, %v1746_v15  ;;  %v1730_v47 = vld [vmem:[%s6437_s27 + $0x8a8] sm:$0xff] }
 0x2b9   : > { %4797 = vmatpush2.bf16.msra.mxu1 %v5706_v40  ;;  %4757 = vmatprep.subr.bf16.mxu0 %v5571_v11  ;;  %v5906_v40 = vcombine.low %v1870_v57, %v1874_v38  ;;  %v5771_v11 = vcombine.high %v1734_v44, %v1738_v45  ;;  %v1854_v25 = vld [vmem:[%s6437_s27 + $0xc88] sm:$0xff] }
 0x2ba   : > { %4798 = vmatprep.subr.bf16.mxu1 %v5699_v0  ;;  %v5899_v0 = vcombine.high %v1862_v13, %v1866_v50  ;;  %v1858_v61 = vld [vmem:[%s6437_s27 + $0xca8] sm:$0xff] }
 0x2bb   : > { %v1718_v23 = vld [vmem:[%s6437_s27 + $0x848] sm:$0xff] }
 0x2bc   : > { %4758 = vmatpush2.bf16.msra.mxu0 %v5570_v5  ;;  %v5770_v5 = vcombine.low %v1734_v44, %v1738_v45  ;;  %v1722_v58 = vld [vmem:[%s6437_s27 + $0x868] sm:$0xff] }
 0x2bd   : > { %4799 = vmatpush2.bf16.msra.mxu1 %v5698_v48  ;;  %4759 = vmatprep.subr.bf16.mxu0 %v5563_v20  ;;  %v5898_v48 = vcombine.low %v1862_v13, %v1866_v50  ;;  %v5763_v20 = vcombine.high %v1726_v49, %v1730_v47  ;;  %v1846_v46 = vld [vmem:[%s6437_s27 + $0xc48] sm:$0xff] }
 0x2be   : > { %4800 = vmatprep.subr.bf16.mxu1 %v5691_v29  ;;  %v5891_v29 = vcombine.high %v1854_v25, %v1858_v61  ;;  %v1850_v16 = vld [vmem:[%s6437_s27 + $0xc68] sm:$0xff] }
 0x2bf   : > { %v1710_v21 = vld [vmem:[%s6437_s27 + $0x808] sm:$0xff] }
 0x2c0   : > { %4760 = vmatpush2.bf16.msra.mxu0 %v5562_v7  ;;  %v5762_v7 = vcombine.low %v1726_v49, %v1730_v47  ;;  %v1714_v18 = vld [vmem:[%s6437_s27 + $0x828] sm:$0xff] }
 0x2c1   : > { %4801 = vmatpush2.bf16.msra.mxu1 %v5690_v17  ;;  %4761 = vmatprep.subr.bf16.mxu0 %v5555_v51  ;;  %v5890_v17 = vcombine.low %v1854_v25, %v1858_v61  ;;  %v5755_v51 = vcombine.high %v1718_v23, %v1722_v58  ;;  %v1838_v12 = vld [vmem:[%s6437_s27 + $0xc08] sm:$0xff]  ;;  %v5746_v19 = vcombine.low %v1710_v21, %v1714_v18 }
 0x2c2   : > { %4802 = vmatprep.subr.bf16.mxu1 %v5683_v53  ;;  %v5883_v53 = vcombine.high %v1846_v46, %v1850_v16  ;;  %v1842_v33 = vld [vmem:[%s6437_s27 + $0xc28] sm:$0xff] }
 0x2c3   : > { %v1830_v35 = vld [vmem:[%s6437_s27 + $0xbc8] sm:$0xff] }
 0x2c4   : > { %4762 = vmatpush2.bf16.msra.mxu0 %v5554_v30  ;;  %v5754_v30 = vcombine.low %v1718_v23, %v1722_v58  ;;  %v1834_v28 = vld [vmem:[%s6437_s27 + $0xbe8] sm:$0xff] }
 0x2c5   : > { %4803 = vmatpush2.bf16.msra.mxu1 %v5682_v63  ;;  %4813 = vmatprep.subr.bf16.mxu0 %v5803_v32  ;;  %v5882_v63 = vcombine.low %v1846_v46, %v1850_v16  ;;  %v5747_v32 = vcombine.high %v1710_v21, %v1714_v18  ;;  %v1962_v10 = vld [vmem:[%s6437_s27 + $0xfe8] sm:$0xff] }
 0x2c6   : > { %4854 = vmatprep.subr.bf16.mxu1 %v5931_v8  ;;  %v5875_v8 = vcombine.high %v1838_v12, %v1842_v33  ;;  %v1822_v37 = vld [vmem:[%s6437_s27 + $0xb88] sm:$0xff] }
 0x2c7   : > { %4764 = vmatmul.mubr.bf16.vlgmr.msra.gmra.mxu0 %v7103_v56  ;;  %v1950_v3 = vld [vmem:[%s6437_s27 + $0xf88] sm:$0xff] }
 0x2c8   : > { %4805 = vmatmul.mubr.bf16.vlgmr.msra.gmra.mxu1 %v7097_v55  ;;  %4814 = vmatpush1.bf16.msra.mxu0 %v5802_v4  ;;  %v1958_v4 = vld [vmem:[%s6437_s27 + $0xfc8] sm:$0xff] }
 0x2c9   : > { %4845 = vmatprep.mubr.bf16.mxu0 %v7167_v34  ;;  %4855 = vmatpush1.bf16.msra.mxu1 %v5930_v52  ;;  %v5874_v52 = vcombine.low %v1838_v12, %v1842_v33  ;;  %v5995_v36 = vcombine.high %v1958_v4, %v1962_v10  ;;  %v1954_v42 = vld [vmem:[%s6437_s27 + $0xfa8] sm:$0xff] }
 0x2ca   : > { %4886 = vmatprep.mubr.bf16.mxu1 %v7169_v59  ;;  %4815 = vmatprep.subr.bf16.mxu0 %v5795_v6  ;;  %v5867_v6 = vcombine.high %v1830_v35, %v1834_v28  ;;  %v1814_v41 = vld [vmem:[%s6437_s27 + $0xb48] sm:$0xff] }
 0x2cb   : > { %4856 = vmatprep.subr.bf16.mxu1 %v5923_v22  ;;  %v1826_v22 = vld [vmem:[%s6437_s27 + $0xba8] sm:$0xff] }
 0x2cc   : > { %4816 = vmatpush1.bf16.msra.mxu0 %v5794_v39  ;;  %v5866_v39 = vcombine.low %v1830_v35, %v1834_v28  ;;  %v1818_v15 = vld [vmem:[%s6437_s27 + $0xb68] sm:$0xff] }
 0x2cd   : > { %4857 = vmatpush1.bf16.msra.mxu1 %v5922_v9  ;;  %4817 = vmatprep.subr.bf16.mxu0 %v5787_v14  ;;  %v5994_v9 = vcombine.low %v1958_v4, %v1962_v10  ;;  %v5859_v14 = vcombine.high %v1822_v37, %v1826_v22  ;;  %v1942_v57 = vld [vmem:[%s6437_s27 + $0xf48] sm:$0xff] }
 0x2ce   : > { %4858 = vmatprep.subr.bf16.mxu1 %v5915_v27  ;;  %v5987_v27 = vcombine.high %v1950_v3, %v1954_v42  ;;  %v1946_v38 = vld [vmem:[%s6437_s27 + $0xf68] sm:$0xff] }
 0x2cf   : > { %v1806_v44 = vld [vmem:[%s6437_s27 + $0xb08] sm:$0xff] }
 0x2d0   : > { %4818 = vmatpush1.bf16.msra.mxu0 %v5786_v43  ;;  %v5858_v43 = vcombine.low %v1822_v37, %v1826_v22  ;;  %v1810_v45 = vld [vmem:[%s6437_s27 + $0xb28] sm:$0xff]  ;;  %v1511_v37 = vld [vmem:[%s6437_s27 + $0x1d0] sm:$0xff] }
 0x2d1   : > { %4859 = vmatpush1.bf16.msra.mxu1 %v5914_v60  ;;  %4819 = vmatprep.subr.bf16.mxu0 %v5779_v1  ;;  %v5986_v60 = vcombine.low %v1950_v3, %v1954_v42  ;;  %v5851_v1 = vcombine.high %v1814_v41, %v1818_v15  ;;  %v1934_v13 = vld [vmem:[%s6437_s27 + $0xf08] sm:$0xff]  ;;  %v1515_v22 = vld [vmem:[%s6437_s27 + $0x1f0] sm:$0xff] }
 0x2d2   : > { %4860 = vmatprep.subr.bf16.mxu1 %v5907_v2  ;;  %v5979_v2 = vcombine.high %v1942_v57, %v1946_v38  ;;  %v1938_v50 = vld [vmem:[%s6437_s27 + $0xf28] sm:$0xff]  ;;  %v1639_v3 = vld [vmem:[%s6437_s27 + $0x5d0] sm:$0xff] }
 0x2d3   : > { %v1798_v49 = vld [vmem:[%s6437_s27 + $0xac8] sm:$0xff]  ;;  %v1643_v42 = vld [vmem:[%s6437_s27 + $0x5f0] sm:$0xff] }
 0x2d4   : > { %4820 = vmatpush1.bf16.msra.mxu0 %v5778_v62  ;;  %v5850_v62 = vcombine.low %v1814_v41, %v1818_v15  ;;  %v1802_v47 = vld [vmem:[%s6437_s27 + $0xae8] sm:$0xff]  ;;  %v5677_v41 = vcombine.high %v1639_v3, %v1643_v42  ;;  %v1503_v15 = vld [vmem:[%s6437_s27 + $0x190] sm:$0xff] }
 0x2d5   : > { %4861 = vmatpush1.bf16.msra.mxu1 %v5906_v40  ;;  %4821 = vmatprep.subr.bf16.mxu0 %v5771_v11  ;;  %v5978_v40 = vcombine.low %v1942_v57, %v1946_v38  ;;  %v5843_v11 = vcombine.high %v1806_v44, %v1810_v45  ;;  %v1926_v25 = vld [vmem:[%s6437_s27 + $0xec8] sm:$0xff]  ;;  %v1507_v57 = vld [vmem:[%s6437_s27 + $0x1b0] sm:$0xff]  ;;  %v5548_v38 = vcombine.low %v1511_v37, %v1515_v22 }
 0x2d6   : > { %4862 = vmatprep.subr.bf16.mxu1 %v5899_v0  ;;  %v5971_v0 = vcombine.high %v1934_v13, %v1938_v50  ;;  %v1930_v61 = vld [vmem:[%s6437_s27 + $0xee8] sm:$0xff] }
 0x2d7   : > { %v1790_v23 = vld [vmem:[%s6437_s27 + $0xa88] sm:$0xff] }
 0x2d8   : > { %4822 = vmatpush1.bf16.msra.mxu0 %v5770_v5  ;;  %v5842_v5 = vcombine.low %v1806_v44, %v1810_v45  ;;  %v1794_v58 = vld [vmem:[%s6437_s27 + $0xaa8] sm:$0xff]  ;;  %v5676_v45 = vcombine.low %v1639_v3, %v1643_v42  ;;  %v1471_v3 = vld [vmem:[%s6437_s27 + $0x90] sm:$0xff] }
 0x2d9   : > { %4863 = vmatpush1.bf16.msra.mxu1 %v5898_v48  ;;  %4823 = vmatprep.subr.bf16.mxu0 %v5763_v20  ;;  %v5970_v48 = vcombine.low %v1934_v13, %v1938_v50  ;;  %v5835_v20 = vcombine.high %v1798_v49, %v1802_v47  ;;  %v1918_v46 = vld [vmem:[%s6437_s27 + $0xe88] sm:$0xff]  ;;  %v5541_v13 = vcombine.high %v1503_v15, %v1507_v57  ;;  %v1495_v50 = vld [vmem:[%s6437_s27 + $0x150] sm:$0xff] }
 0x2da   : > { %4864 = vmatprep.subr.bf16.mxu1 %v5891_v29  ;;  %v5963_v29 = vcombine.high %v1926_v25, %v1930_v61  ;;  %v1922_v16 = vld [vmem:[%s6437_s27 + $0xea8] sm:$0xff]  ;;  %v1475_v42 = vld [vmem:[%s6437_s27 + $0xb0] sm:$0xff] }
 0x2db   : > { %v1782_v21 = vld [vmem:[%s6437_s27 + $0xa48] sm:$0xff] }
 0x2dc   : > { %4824 = vmatpush1.bf16.msra.mxu0 %v5762_v7  ;;  %v5834_v7 = vcombine.low %v1798_v49, %v1802_v47  ;;  %v1786_v18 = vld [vmem:[%s6437_s27 + $0xa68] sm:$0xff]  ;;  %v1623_v49 = vld [vmem:[%s6437_s27 + $0x550] sm:$0xff] }
 0x2dd   : > { %4865 = vmatpush1.bf16.msra.mxu1 %v5890_v17  ;;  %4825 = vmatprep.subr.bf16.mxu0 %v5755_v51  ;;  %v5962_v17 = vcombine.low %v1926_v25, %v1930_v61  ;;  %v5827_v51 = vcombine.high %v1790_v23, %v1794_v58  ;;  %v1910_v12 = vld [vmem:[%s6437_s27 + $0xe48] sm:$0xff]  ;;  %v1627_v47 = vld [vmem:[%s6437_s27 + $0x570] sm:$0xff] }
 0x2de   : > { %4866 = vmatprep.subr.bf16.mxu1 %v5883_v53  ;;  %v5955_v53 = vcombine.high %v1918_v46, %v1922_v16  ;;  %v1914_v33 = vld [vmem:[%s6437_s27 + $0xe68] sm:$0xff] }
 0x2df   : > { %v1774_v35 = vld [vmem:[%s6437_s27 + $0xa08] sm:$0xff] }
 0x2e0   : > { %4826 = vmatpush1.bf16.msra.mxu0 %v5754_v30  ;;  %v5826_v30 = vcombine.low %v1790_v23, %v1794_v58  ;;  %v1778_v28 = vld [vmem:[%s6437_s27 + $0xa28] sm:$0xff] }
 0x2e1   : > { %4867 = vmatpush1.bf16.msra.mxu1 %v5882_v63  ;;  %4827 = vmatprep.subr.bf16.mxu0 %v5747_v32  ;;  %v5954_v63 = vcombine.low %v1918_v46, %v1922_v16  ;;  %v5819_v32 = vcombine.high %v1782_v21, %v1786_v18  ;;  %v1902_v4 = vld [vmem:[%s6437_s27 + $0xe08] sm:$0xff]  ;;  %v5661_v46 = vcombine.high %v1623_v49, %v1627_v47  ;;  %v1487_v16 = vld [vmem:[%s6437_s27 + $0x110] sm:$0xff] }
 0x2e2   : > { %4868 = vmatprep.subr.bf16.mxu1 %v5875_v8  ;;  %v5947_v8 = vcombine.high %v1910_v12, %v1914_v33  ;;  %v1906_v10 = vld [vmem:[%s6437_s27 + $0xe28] sm:$0xff] }
 0x2e4   : > { %4828 = vmatpush1.bf16.msra.mxu0 %v5746_v19  ;;  %v5818_v19 = vcombine.low %v1782_v21, %v1786_v18  ;;  %v1619_v21 = vld [vmem:[%s6437_s27 + $0x530] sm:$0xff] }
 0x2e5   : > { %4869 = vmatpush1.bf16.msra.mxu1 %v5874_v52  ;;  %4829 = vmatprep.subr.bf16.mxu0 %v5867_v6  ;;  %v5946_v52 = vcombine.low %v1910_v12, %v1914_v33  ;;  %v5811_v6 = vcombine.high %v1774_v35, %v1778_v28 }
 0x2e6   : > { %4870 = vmatprep.subr.bf16.mxu1 %v5995_v36  ;;  %v5939_v36 = vcombine.high %v1902_v4, %v1906_v10 }
 0x2e8   : > { %4830 = vmatpush2.bf16.msra.mxu0 %v5866_v39  ;;  %v5810_v39 = vcombine.low %v1774_v35, %v1778_v28 }
 0x2e9   : > { %4871 = vmatpush2.bf16.msra.mxu1 %v5994_v9  ;;  %4831 = vmatprep.subr.bf16.mxu0 %v5859_v14  ;;  %v5938_v9 = vcombine.low %v1902_v4, %v1906_v10  ;;  %v5549_v14 = vcombine.high %v1511_v37, %v1515_v22  ;;  %v1479_v4 = vld [vmem:[%s6437_s27 + $0xd0] sm:$0xff] }
 0x2ea   : > { %4872 = vmatprep.subr.bf16.mxu1 %v5987_v27  ;;  %v7328_v27 = vld [vmem:[%s291_s9] sm:$0xff]  ;;  %v1483_v10 = vld [vmem:[%s6437_s27 + $0xf0] sm:$0xff] }
 0x2eb   : > { %v5517_v37 = vcombine.high %v1479_v4, %v1483_v10 }
 0x2ec   : > { %4832 = vmatpush2.bf16.msra.mxu0 %v5858_v43  ;;  %v1631_v43 = vld [vmem:[%s6437_s27 + $0x590] sm:$0xff] }
 0x2ed   : > { %4873 = vmatpush2.bf16.msra.mxu1 %v5986_v60  ;;  %4833 = vmatprep.subr.bf16.mxu0 %v5851_v1  ;;  %v1635_v60 = vld [vmem:[%s6437_s27 + $0x5b0] sm:$0xff]  ;;  %v7737_v1 = vld [vmem:[#allocation16_spill] sm:$0xff] }
 0x2ee   : > { %4874 = vmatprep.subr.bf16.mxu1 %v5979_v2  ;;  %v7738_v2 = vsub.s32 0, %v7737_v1 }
 0x2f0   : > { %4834 = vmatpush2.bf16.msra.mxu0 %v5850_v62  ;;  %v1970_v44 = vrot.slane %v7328_v27, %v7738_v2  ;;  %v1499_v62 = vld [vmem:[%s6437_s27 + $0x170] sm:$0xff] }
 0x2f1   : > { %4875 = vmatpush2.bf16.msra.mxu1 %v5978_v40  ;;  %4835 = vmatprep.subr.bf16.mxu0 %v5843_v11  ;;  %v7739_v40 = vsub.s32 1, %v7737_v1  ;;  %v5532_v33 = vcombine.low %v1495_v50, %v1499_v62  ;;  %v1595_v2 = vld [vmem:[%s6437_s27 + $0x470] sm:$0xff] }
 0x2f2   : > { %4876 = vmatprep.subr.bf16.mxu1 %v5971_v0  ;;  %v5669_v0 = vcombine.high %v1631_v43, %v1635_v60 }
 0x2f3   : > { %v1974_v11 = vrot.slane %v7328_v27, %v7739_v40  ;;  %v1459_v40 = vld [vmem:[%s6437_s27 + $0x30] sm:$0xff] }
 0x2f4   : > { %4836 = vmatpush2.bf16.msra.mxu0 %v5842_v5  ;;  %v5540_v5 = vcombine.low %v1503_v15, %v1507_v57  ;;  %v5509_v15 = vcombine.high %v1471_v3, %v1475_v42 }
 0x2f5   : > { %4877 = vmatpush2.bf16.msra.mxu1 %v5970_v48  ;;  %4837 = vmatprep.subr.bf16.mxu0 %v5835_v20  ;;  %v5668_v20 = vcombine.low %v1631_v43, %v1635_v60  ;;  %v1467_v43 = vld [vmem:[%s6437_s27 + $0x70] sm:$0xff] }
 0x2f6   : > { %4878 = vmatprep.subr.bf16.mxu1 %v5963_v29  ;;  %v5533_v29 = vcombine.high %v1495_v50, %v1499_v62  ;;  %v1591_v60 = vld [vmem:[%s6437_s27 + $0x450] sm:$0xff] }
 0x2f7   : > { %v5629_v50 = vcombine.high %v1591_v60, %v1595_v2  ;;  %v1455_v62 = vld [vmem:[%s6437_s27 + $0x10] sm:$0xff] }
 0x2f8   : > { %4838 = vmatpush2.bf16.msra.mxu0 %v5834_v7  ;;  %v1491_v7 = vld [vmem:[%s6437_s27 + $0x130] sm:$0xff] }
 0x2f9   : > { %4879 = vmatpush2.bf16.msra.mxu1 %v5962_v17  ;;  %4839 = vmatprep.subr.bf16.mxu0 %v5827_v51 }
 0x2fa   : > { %4880 = vmatprep.subr.bf16.mxu1 %v5955_v53  ;;  %v1615_v53 = vld [vmem:[%s6437_s27 + $0x510] sm:$0xff] }
 0x2fb   : > { %v5653_v28 = vcombine.high %v1615_v53, %v1619_v21 }
 0x2fc   : > { %4840 = vmatpush2.bf16.msra.mxu0 %v5826_v30 }
 0x2fd   : > { %4881 = vmatpush2.bf16.msra.mxu1 %v5954_v63  ;;  %4841 = vmatprep.subr.bf16.mxu0 %v5819_v32  ;;  %v5660_v63 = vcombine.low %v1623_v49, %v1627_v47  ;;  %v5525_v32 = vcombine.high %v1487_v16, %v1491_v7  ;;  %v5628_v47 = vcombine.low %v1591_v60, %v1595_v2 }
 0x2fe   : > { %4882 = vmatprep.subr.bf16.mxu1 %v5947_v8 }
 0x300   : > { %4842 = vmatpush2.bf16.msra.mxu0 %v5818_v19  ;;  %v1607_v19 = vld [vmem:[%s6437_s27 + $0x4d0] sm:$0xff] }
 0x301   : > { %4883 = vmatpush2.bf16.msra.mxu1 %v5946_v52  ;;  %4843 = vmatprep.subr.bf16.mxu0 %v5811_v6  ;;  %v1611_v52 = vld [vmem:[%s6437_s27 + $0x4f0] sm:$0xff]  ;;  %v5524_v6 = vcombine.low %v1487_v16, %v1491_v7 }
 0x302   : > { %4884 = vmatprep.subr.bf16.mxu1 %v5939_v36  ;;  %v5652_v36 = vcombine.low %v1615_v53, %v1619_v21  ;;  %v5645_v22 = vcombine.high %v1607_v19, %v1611_v52  ;;  %v1567_v7 = vld [vmem:[%s6437_s27 + $0x390] sm:$0xff] }
 0x303   : > { %v1695_v53 = vld [vmem:[%s6437_s27 + $0x790] sm:$0xff] }
 0x304   : > { %4844 = vmatpush2.bf16.msra.mxu0 %v5810_v39  ;;  %v1599_v39 = vld [vmem:[%s6437_s27 + $0x490] sm:$0xff] }
 0x305   : > { %4885 = vmatpush2.bf16.msra.mxu1 %v5938_v9  ;;  %4895 = vmatprep.subr.bf16.mxu0 %v5549_v14  ;;  %v1603_v9 = vld [vmem:[%s6437_s27 + $0x4b0] sm:$0xff]  ;;  %v5516_v14 = vcombine.low %v1479_v4, %v1483_v10 }
 0x306   : > { %4936 = vmatprep.subr.bf16.mxu1 %v5677_v41  ;;  %v5644_v41 = vcombine.low %v1607_v19, %v1611_v52  ;;  %v5637_v57 = vcombine.high %v1599_v39, %v1603_v9  ;;  %v1699_v21 = vld [vmem:[%s6437_s27 + $0x7b0] sm:$0xff] }
 0x307   : > { %4846 = vmatmul.mubr.bf16.vlgmr.msra.gmra.mxu0 %v7187_v54  ;;  %v4601_v25 = vpop.f32.mrf.mxu0  ;;  %v5732_v10 = vcombine.low %v1695_v53, %v1699_v21 }
 0x308   : > { %v4642_v61 = vpop.f32.mrf.mxu1  ;;  %4887 = vmatmul.mubr.bf16.vlgmr.msra.gmra.mxu1 %v7182_v31  ;;  %4896 = vmatpush1.bf16.msra.mxu0 %v5548_v38  ;;  %v4602_v48 = vadd.f32 %v4601_v25, %v1970_v44  ;;  %v1463_v38 = vld [vmem:[%s6437_s27 + $0x50] sm:$0xff]  ;;  %v5508_v44 = vcombine.low %v1471_v3, %v1475_v42  ;;  %v5493_v25 = vcombine.high %v1455_v62, %v1459_v40 }
 0x309   : > { %4927 = vmatprep.mubr.bf16.mxu0 %v7099_v26  ;;  %4937 = vmatpush1.bf16.msra.mxu1 %v5676_v45  ;;  %v4603_v23 = vpop.f32.mrf.mxu0  ;;  %v5636_v45 = vcombine.low %v1599_v39, %v1603_v9  ;;  %v5500_v49 = vcombine.low %v1463_v38, %v1467_v43 }
 0x30a   : > { %v4644_v58 = vpop.f32.mrf.mxu1  ;;  %4968 = vmatprep.mubr.bf16.mxu1 %v7101_v24  ;;  %4897 = vmatprep.subr.bf16.mxu0 %v5541_v13  ;;  %v4604_v17 = vadd.f32 %v4603_v23, %v1974_v11  ;;  %v7350_v51 = vadd.f32 %v4642_v61, %v4602_v48  ;;  %v5501_v13 = vcombine.high %v1463_v38, %v1467_v43  ;;  %v1583_v11 = vld [vmem:[%s6437_s27 + $0x410] sm:$0xff] }
 0x30b   : > { %4938 = vmatprep.subr.bf16.mxu1 %v5669_v0  ;;  %v4605_v18 = vpop.f32.mrf.mxu0  ;;  %v1587_v0 = vld [vmem:[%s6437_s27 + $0x430] sm:$0xff]  ;;  %v5492_v23 = vcombine.low %v1455_v62, %v1459_v40 }
 0x30c   : > { %v4646_v12 = vpop.f32.mrf.mxu1  ;;  %4898 = vmatpush1.bf16.msra.mxu0 %v5540_v5  ;;  %v7354_v30 = vadd.f32 %v4644_v58, %v4604_v17  ;;  %v5621_v61 = vcombine.high %v1583_v11, %v1587_v0  ;;  %v1575_v5 = vld [vmem:[%s6437_s27 + $0x3d0] sm:$0xff]  ;;  %v5620_v58 = vcombine.low %v1583_v11, %v1587_v0 }
 0x30d   : > { %4939 = vmatpush1.bf16.msra.mxu1 %v5668_v20  ;;  %4899 = vmatprep.subr.bf16.mxu0 %v5533_v29  ;;  %v4606_v8 = vpop.f32.mrf.mxu0  ;;  %v1579_v48 = vld [vmem:[%s6437_s27 + $0x3f0] sm:$0xff] }
 0x30e   : > { %v4647_v35 = vpop.f32.mrf.mxu1  ;;  %4940 = vmatprep.subr.bf16.mxu1 %v5661_v46  ;;  %v1703_v20 = vld [vmem:[%s6437_s27 + $0x7d0] sm:$0xff]  ;;  %v5613_v46 = vcombine.high %v1575_v5, %v1579_v48  ;;  %v5612_v18 = vcombine.low %v1575_v5, %v1579_v48 }
 0x30f   : > { %v1707_v29 = vld [vmem:[%s6437_s27 + $0x7f0] sm:$0xff] }
 0x310   : > { %4900 = vmatpush1.bf16.msra.mxu0 %v5532_v33  ;;  %v5741_v16 = vcombine.high %v1703_v20, %v1707_v29  ;;  %v1571_v17 = vld [vmem:[%s6437_s27 + $0x3b0] sm:$0xff]  ;;  %v5740_v12 = vcombine.low %v1703_v20, %v1707_v29 }
 0x311   : > { %4941 = vmatpush1.bf16.msra.mxu1 %v5660_v63  ;;  %4901 = vmatprep.subr.bf16.mxu0 %v5525_v32  ;;  %v5605_v33 = vcombine.high %v1567_v7, %v1571_v17  ;;  %v5733_v63 = vcombine.high %v1695_v53, %v1699_v21  ;;  %v1559_v32 = vld [vmem:[%s6437_s27 + $0x350] sm:$0xff]  ;;  %v5604_v4 = vcombine.low %v1567_v7, %v1571_v17 }
 0x312   : > { %4942 = vmatprep.subr.bf16.mxu1 %v5653_v28  ;;  %v1563_v8 = vld [vmem:[%s6437_s27 + $0x370] sm:$0xff] }
 0x313   : > { %v1687_v35 = vld [vmem:[%s6437_s27 + $0x750] sm:$0xff]  ;;  %v5597_v19 = vcombine.high %v1559_v32, %v1563_v8  ;;  %v5596_v3 = vcombine.low %v1559_v32, %v1563_v8 }
 0x314   : > { %4902 = vmatpush1.bf16.msra.mxu0 %v5524_v6  ;;  %v1691_v28 = vld [vmem:[%s6437_s27 + $0x770] sm:$0xff] }
 0x315   : > { %4943 = vmatpush1.bf16.msra.mxu1 %v5652_v36  ;;  %4903 = vmatprep.subr.bf16.mxu0 %v5517_v37  ;;  %v5725_v52 = vcombine.high %v1687_v35, %v1691_v28  ;;  %v1551_v6 = vld [vmem:[%s6437_s27 + $0x310] sm:$0xff]  ;;  %v5724_v42 = vcombine.low %v1687_v35, %v1691_v28 }
 0x316   : > { %4944 = vmatprep.subr.bf16.mxu1 %v5645_v22  ;;  %v1555_v36 = vld [vmem:[%s6437_s27 + $0x330] sm:$0xff] }
 0x317   : > { %v1679_v37 = vld [vmem:[%s6437_s27 + $0x710] sm:$0xff]  ;;  %v5589_v39 = vcombine.high %v1551_v6, %v1555_v36  ;;  %v5588_v38 = vcombine.low %v1551_v6, %v1555_v36 }
 0x318   : > { %4904 = vmatpush1.bf16.msra.mxu0 %v5516_v14  ;;  %v1683_v22 = vld [vmem:[%s6437_s27 + $0x730] sm:$0xff] }
 0x319   : > { %4945 = vmatpush1.bf16.msra.mxu1 %v5644_v41  ;;  %4905 = vmatprep.subr.bf16.mxu0 %v5509_v15  ;;  %v5717_v9 = vcombine.high %v1679_v37, %v1683_v22  ;;  %v1543_v14 = vld [vmem:[%s6437_s27 + $0x2d0] sm:$0xff]  ;;  %v5716_v43 = vcombine.low %v1679_v37, %v1683_v22 }
 0x31a   : > { %4946 = vmatprep.subr.bf16.mxu1 %v5637_v57  ;;  %v1547_v41 = vld [vmem:[%s6437_s27 + $0x2f0] sm:$0xff] }
 0x31b   : > { %v1671_v15 = vld [vmem:[%s6437_s27 + $0x6d0] sm:$0xff]  ;;  %v5581_v60 = vcombine.high %v1543_v14, %v1547_v41  ;;  %v5580_v62 = vcombine.low %v1543_v14, %v1547_v41 }
 0x31c   : > { %4906 = vmatpush1.bf16.msra.mxu0 %v5508_v44  ;;  %v1675_v57 = vld [vmem:[%s6437_s27 + $0x6f0] sm:$0xff] }
 0x31d   : > { %4947 = vmatpush1.bf16.msra.mxu1 %v5636_v45  ;;  %4907 = vmatprep.subr.bf16.mxu0 %v5501_v13  ;;  %v5709_v2 = vcombine.high %v1671_v15, %v1675_v57  ;;  %v1535_v44 = vld [vmem:[%s6437_s27 + $0x290] sm:$0xff]  ;;  %v5708_v40 = vcombine.low %v1671_v15, %v1675_v57 }
 0x31e   : > { %4948 = vmatprep.subr.bf16.mxu1 %v5629_v50  ;;  %v1539_v45 = vld [vmem:[%s6437_s27 + $0x2b0] sm:$0xff] }
 0x31f   : > { %v1663_v13 = vld [vmem:[%s6437_s27 + $0x690] sm:$0xff]  ;;  %v5573_v11 = vcombine.high %v1535_v44, %v1539_v45  ;;  %v5572_v5 = vcombine.low %v1535_v44, %v1539_v45 }
 0x320   : > { %4908 = vmatpush1.bf16.msra.mxu0 %v5500_v49  ;;  %v1667_v50 = vld [vmem:[%s6437_s27 + $0x6b0] sm:$0xff] }
 0x321   : > { %4949 = vmatpush1.bf16.msra.mxu1 %v5628_v47  ;;  %4909 = vmatprep.subr.bf16.mxu0 %v5493_v25  ;;  %v5701_v0 = vcombine.high %v1663_v13, %v1667_v50  ;;  %v1527_v49 = vld [vmem:[%s6437_s27 + $0x250] sm:$0xff]  ;;  %v5700_v48 = vcombine.low %v1663_v13, %v1667_v50 }
 0x322   : > { %4950 = vmatprep.subr.bf16.mxu1 %v5621_v61  ;;  %v1531_v47 = vld [vmem:[%s6437_s27 + $0x270] sm:$0xff] }
 0x323   : > { %v1655_v25 = vld [vmem:[%s6437_s27 + $0x650] sm:$0xff]  ;;  %v5565_v20 = vcombine.high %v1527_v49, %v1531_v47  ;;  %v5564_v7 = vcombine.low %v1527_v49, %v1531_v47 }
 0x324   : > { %4910 = vmatpush1.bf16.msra.mxu0 %v5492_v23  ;;  %v1659_v61 = vld [vmem:[%s6437_s27 + $0x670] sm:$0xff] }
 0x325   : > { %4951 = vmatpush1.bf16.msra.mxu1 %v5620_v58  ;;  %4911 = vmatprep.subr.bf16.mxu0 %v5613_v46  ;;  %v5693_v29 = vcombine.high %v1655_v25, %v1659_v61  ;;  %v1519_v23 = vld [vmem:[%s6437_s27 + $0x210] sm:$0xff]  ;;  %v5692_v17 = vcombine.low %v1655_v25, %v1659_v61 }
 0x326   : > { %4952 = vmatprep.subr.bf16.mxu1 %v5741_v16  ;;  %v1523_v58 = vld [vmem:[%s6437_s27 + $0x230] sm:$0xff] }
 0x327   : > { %v1647_v46 = vld [vmem:[%s6437_s27 + $0x610] sm:$0xff]  ;;  %v5557_v53 = vcombine.high %v1519_v23, %v1523_v58  ;;  %v5556_v32 = vcombine.low %v1519_v23, %v1523_v58 }
 0x328   : > { %4912 = vmatpush2.bf16.msra.mxu0 %v5612_v18  ;;  %v1651_v16 = vld [vmem:[%s6437_s27 + $0x630] sm:$0xff] }
 0x329   : > { %4953 = vmatpush2.bf16.msra.mxu1 %v5740_v12  ;;  %4913 = vmatprep.subr.bf16.mxu0 %v5605_v33  ;;  %v5685_v21 = vcombine.high %v1647_v46, %v1651_v16  ;;  %v1767_v18 = vld [vmem:[%s6437_s27 + $0x9d0] sm:$0xff]  ;;  %v5684_v8 = vcombine.low %v1647_v46, %v1651_v16 }
 0x32a   : > { %4954 = vmatprep.subr.bf16.mxu1 %v5733_v63  ;;  %v1771_v12 = vld [vmem:[%s6437_s27 + $0x9f0] sm:$0xff] }
 0x32b   : > { %v1895_v33 = vld [vmem:[%s6437_s27 + $0xdd0] sm:$0xff]  ;;  %v5805_v35 = vcombine.high %v1767_v18, %v1771_v12 }
 0x32c   : > { %4914 = vmatpush2.bf16.msra.mxu0 %v5604_v4  ;;  %v1899_v63 = vld [vmem:[%s6437_s27 + $0xdf0] sm:$0xff] }
 0x32d   : > { %4955 = vmatpush2.bf16.msra.mxu1 %v5732_v10  ;;  %4915 = vmatprep.subr.bf16.mxu0 %v5597_v19  ;;  %v5933_v28 = vcombine.high %v1895_v33, %v1899_v63  ;;  %v1759_v4 = vld [vmem:[%s6437_s27 + $0x990] sm:$0xff]  ;;  %v5804_v19 = vcombine.low %v1767_v18, %v1771_v12  ;;  %v5932_v36 = vcombine.low %v1895_v33, %v1899_v63 }
 0x32e   : > { %4956 = vmatprep.subr.bf16.mxu1 %v5725_v52  ;;  %v1763_v10 = vld [vmem:[%s6437_s27 + $0x9b0] sm:$0xff] }
 0x32f   : > { %v1887_v52 = vld [vmem:[%s6437_s27 + $0xd90] sm:$0xff]  ;;  %v5797_v37 = vcombine.high %v1759_v4, %v1763_v10  ;;  %v5796_v57 = vcombine.low %v1759_v4, %v1763_v10 }
 0x330   : > { %4916 = vmatpush2.bf16.msra.mxu0 %v5596_v3  ;;  %v1891_v6 = vld [vmem:[%s6437_s27 + $0xdb0] sm:$0xff] }
 0x331   : > { %4957 = vmatpush2.bf16.msra.mxu1 %v5724_v42  ;;  %4917 = vmatprep.subr.bf16.mxu0 %v5589_v39  ;;  %v1751_v22 = vld [vmem:[%s6437_s27 + $0x950] sm:$0xff] }
 0x332   : > { %4958 = vmatprep.subr.bf16.mxu1 %v5717_v9  ;;  %v1755_v3 = vld [vmem:[%s6437_s27 + $0x970] sm:$0xff]  ;;  %v5925_v9 = vcombine.high %v1887_v52, %v1891_v6 }
 0x333   : > { %v1879_v14 = vld [vmem:[%s6437_s27 + $0xd50] sm:$0xff]  ;;  %v5788_v47 = vcombine.low %v1751_v22, %v1755_v3 }
 0x334   : > { %4918 = vmatpush2.bf16.msra.mxu0 %v5588_v38  ;;  %v1883_v41 = vld [vmem:[%s6437_s27 + $0xd70] sm:$0xff] }
 0x335   : > { %4959 = vmatpush2.bf16.msra.mxu1 %v5716_v43  ;;  %4919 = vmatprep.subr.bf16.mxu0 %v5581_v60  ;;  %v5924_v60 = vcombine.low %v1887_v52, %v1891_v6  ;;  %v1743_v13 = vld [vmem:[%s6437_s27 + $0x910] sm:$0xff] }
 0x336   : > { %4960 = vmatprep.subr.bf16.mxu1 %v5709_v2  ;;  %v5789_v2 = vcombine.high %v1751_v22, %v1755_v3  ;;  %v1747_v50 = vld [vmem:[%s6437_s27 + $0x930] sm:$0xff] }
 0x337   : > { %v5781_v25 = vcombine.high %v1743_v13, %v1747_v50  ;;  %v1735_v23 = vld [vmem:[%s6437_s27 + $0x8d0] sm:$0xff] }
 0x338   : > { %4920 = vmatpush2.bf16.msra.mxu0 %v5580_v62  ;;  %v1871_v62 = vld [vmem:[%s6437_s27 + $0xd10] sm:$0xff] }
 0x339   : > { %4961 = vmatpush2.bf16.msra.mxu1 %v5708_v40  ;;  %4921 = vmatprep.subr.bf16.mxu0 %v5573_v11  ;;  %v1875_v40 = vld [vmem:[%s6437_s27 + $0xd30] sm:$0xff] }
 0x33a   : > { %4962 = vmatprep.subr.bf16.mxu1 %v5701_v0  ;;  %v1739_v58 = vld [vmem:[%s6437_s27 + $0x8f0] sm:$0xff] }
 0x33b   : > { %v1863_v46 = vld [vmem:[%s6437_s27 + $0xcd0] sm:$0xff] }
 0x33c   : > { %4922 = vmatpush2.bf16.msra.mxu0 %v5572_v5  ;;  %v1867_v16 = vld [vmem:[%s6437_s27 + $0xcf0] sm:$0xff] }
 0x33d   : > { %4963 = vmatpush2.bf16.msra.mxu1 %v5700_v48  ;;  %4923 = vmatprep.subr.bf16.mxu0 %v5565_v20  ;;  %v5901_v18 = vcombine.high %v1863_v46, %v1867_v16  ;;  %v1727_v12 = vld [vmem:[%s6437_s27 + $0x890] sm:$0xff] }
 0x33e   : > { %4964 = vmatprep.subr.bf16.mxu1 %v5693_v29  ;;  %v5909_v29 = vcombine.high %v1871_v62, %v1875_v40  ;;  %v1731_v33 = vld [vmem:[%s6437_s27 + $0x8b0] sm:$0xff] }
 0x33f   : > { %v1855_v63 = vld [vmem:[%s6437_s27 + $0xc90] sm:$0xff] }
 0x340   : > { %4924 = vmatpush2.bf16.msra.mxu0 %v5564_v7  ;;  %v1719_v10 = vld [vmem:[%s6437_s27 + $0x850] sm:$0xff] }
 0x341   : > { %4965 = vmatpush2.bf16.msra.mxu1 %v5692_v17  ;;  %4925 = vmatprep.subr.bf16.mxu0 %v5557_v53  ;;  %v5780_v17 = vcombine.low %v1743_v13, %v1747_v50  ;;  %v5908_v53 = vcombine.low %v1871_v62, %v1875_v40  ;;  %v1847_v52 = vld [vmem:[%s6437_s27 + $0xc50] sm:$0xff] }
 0x342   : > { %4966 = vmatprep.subr.bf16.mxu1 %v5685_v21  ;;  %v5773_v21 = vcombine.high %v1735_v23, %v1739_v58  ;;  %v1851_v6 = vld [vmem:[%s6437_s27 + $0xc70] sm:$0xff] }
 0x343   : > { %v5885_v3 = vcombine.high %v1847_v52, %v1851_v6  ;;  %v1823_v62 = vld [vmem:[%s6437_s27 + $0xb90] sm:$0xff] }
 0x344   : > { %4926 = vmatpush2.bf16.msra.mxu0 %v5556_v32  ;;  %v1859_v32 = vld [vmem:[%s6437_s27 + $0xcb0] sm:$0xff] }
 0x345   : > { %4967 = vmatpush2.bf16.msra.mxu1 %v5684_v8  ;;  %4977 = vmatprep.subr.bf16.mxu0 %v5805_v35  ;;  %v5772_v8 = vcombine.low %v1735_v23, %v1739_v58  ;;  %v5900_v35 = vcombine.low %v1863_v46, %v1867_v16  ;;  %v5893_v4 = vcombine.high %v1855_v63, %v1859_v32  ;;  %v1827_v40 = vld [vmem:[%s6437_s27 + $0xbb0] sm:$0xff] }
 0x346   : > { %5018 = vmatprep.subr.bf16.mxu1 %v5933_v28  ;;  %v5765_v28 = vcombine.high %v1727_v12, %v1731_v33  ;;  %v1807_v16 = vld [vmem:[%s6437_s27 + $0xb10] sm:$0xff] }
 0x347   : > { %v4683_v42 = vpop.f32.mrf.mxu0  ;;  %4928 = vmatmul.mubr.bf16.vlgmr.msra.gmra.mxu0 %v7103_v56 }
 0x348   : > { %v4724_v39 = vpop.f32.mrf.mxu1  ;;  %v4684_v15 = vadd.f32 %v4683_v42, %v7350_v51  ;;  %4969 = vmatmul.mubr.bf16.vlgmr.msra.gmra.mxu1 %v7097_v55  ;;  %4978 = vmatpush1.bf16.msra.mxu0 %v5804_v19  ;;  %v5917_v51 = vcombine.high %v1879_v14, %v1883_v41  ;;  %v1723_v19 = vld [vmem:[%s6437_s27 + $0x870] sm:$0xff] }
 0x349   : > { %5009 = vmatprep.mubr.bf16.mxu0 %v7167_v34  ;;  %5019 = vmatpush1.bf16.msra.mxu1 %v5932_v36  ;;  %v4685_v38 = vpop.f32.mrf.mxu0  ;;  %v5764_v36 = vcombine.low %v1727_v12, %v1731_v33  ;;  %v5757_v22 = vcombine.high %v1719_v10, %v1723_v19  ;;  %v1711_v42 = vld [vmem:[%s6437_s27 + $0x810] sm:$0xff] }
 0x34a   : > { %v4726_v43 = vpop.f32.mrf.mxu1  ;;  %5050 = vmatprep.mubr.bf16.mxu1 %v7169_v59  ;;  %v4686_v44 = vadd.f32 %v4685_v38, %v7354_v30  ;;  %v4725_v45 = vadd.f32 %v4724_v39, %v4684_v15  ;;  %4979 = vmatprep.subr.bf16.mxu0 %v5797_v37  ;;  %v5916_v30 = vcombine.low %v1879_v14, %v1883_v41  ;;  %v1715_v39 = vld [vmem:[%s6437_s27 + $0x830] sm:$0xff] }
 0x34b   : > { %5020 = vmatprep.subr.bf16.mxu1 %v5925_v9  ;;  %v4687_v11 = vpop.f32.mrf.mxu0  ;;  %v5892_v37 = vcombine.low %v1855_v63, %v1859_v32  ;;  %v1839_v9 = vld [vmem:[%s6437_s27 + $0xc10] sm:$0xff]  ;;  %v5756_v41 = vcombine.low %v1719_v10, %v1723_v19  ;;  %v5884_v15 = vcombine.low %v1847_v52, %v1851_v6 }
 0x34c   : > { %v4728_v0 = vpop.f32.mrf.mxu1  ;;  %v4727_v49 = vadd.f32 %v4726_v43, %v4686_v44  ;;  %4980 = vmatpush1.bf16.msra.mxu0 %v5796_v57  ;;  %v5223_v48 = vmax.f32 %v4725_v45, 0.0  ;;  %v1843_v14 = vld [vmem:[%s6437_s27 + $0xc30] sm:$0xff]  ;;  %v5749_v57 = vcombine.high %v1711_v42, %v1715_v39  ;;  %v5748_v45 = vcombine.low %v1711_v42, %v1715_v39 }
 0x34d   : > { %5021 = vmatpush1.bf16.msra.mxu1 %v5924_v60  ;;  %4981 = vmatprep.subr.bf16.mxu0 %v5789_v2  ;;  %v4688_v61 = vpop.f32.mrf.mxu0  ;;  %v5877_v38 = vcombine.high %v1839_v9, %v1843_v14  ;;  %v1831_v43 = vld [vmem:[%s6437_s27 + $0xbd0] sm:$0xff] }
 0x34e   : > { %v4729_v5 = vpop.f32.mrf.mxu1  ;;  %v5224_v20 = vmax.f32 %v4727_v49, 0.0  ;;  %5022 = vmatprep.subr.bf16.mxu1 %v5917_v51  ;;  %v1835_v60 = vld [vmem:[%s6437_s27 + $0xbf0] sm:$0xff]  ;;  %v5876_v51 = vcombine.low %v1839_v9, %v1843_v14 }
 0x34f   : > { %v1959_v2 = vld [vmem:[%s6437_s27 + $0xfd0] sm:$0xff]  ;;  %v5869_v13 = vcombine.high %v1831_v43, %v1835_v60  ;;  %v5868_v49 = vcombine.low %v1831_v43, %v1835_v60 }
 0x350   : > { %v7430_v7 = vpack.c.bf16 %v5224_v20, %v5223_v48  ;;  %4982 = vmatpush1.bf16.msra.mxu0 %v5788_v47  ;;  %v1963_v44 = vld [vmem:[%s6437_s27 + $0xff0] sm:$0xff] }
 0x351   : > { %5023 = vmatpush1.bf16.msra.mxu1 %v5916_v30  ;;  %4983 = vmatprep.subr.bf16.mxu0 %v5781_v25  ;;  %v5997_v50 = vcombine.high %v1959_v2, %v1963_v44  ;;  %v1951_v11 = vld [vmem:[%s6437_s27 + $0xf90] sm:$0xff]  ;;  %v5996_v47 = vcombine.low %v1959_v2, %v1963_v44  ;;  %v5861_v30 = vcombine.high %v1823_v62, %v1827_v40 }
 0x352   : > { %5024 = vmatprep.subr.bf16.mxu1 %v5909_v29  ;;  %v1955_v0 = vld [vmem:[%s6437_s27 + $0xfb0] sm:$0xff]  ;;  %v5860_v29 = vcombine.low %v1823_v62, %v1827_v40 }
 0x353   : > { %v5989_v25 = vcombine.high %v1951_v11, %v1955_v0  ;;  %v1815_v61 = vld [vmem:[%s6437_s27 + $0xb50] sm:$0xff]  ;;  %v5988_v23 = vcombine.low %v1951_v11, %v1955_v0  ;;  %v1512_v0 = vld [vmem:[%s6437_s27 + $0x1d8] sm:$0xff] }
 0x354   : > { %4984 = vmatpush1.bf16.msra.mxu0 %v5780_v17  ;;  %v1819_v5 = vld [vmem:[%s6437_s27 + $0xb70] sm:$0xff] }
 0x355   : > { %5025 = vmatpush1.bf16.msra.mxu1 %v5908_v53  ;;  %4985 = vmatprep.subr.bf16.mxu0 %v5773_v21  ;;  %v1943_v48 = vld [vmem:[%s6437_s27 + $0xf50] sm:$0xff]  ;;  %v5853_v58 = vcombine.high %v1815_v61, %v1819_v5 }
 0x356   : > { %5026 = vmatprep.subr.bf16.mxu1 %v5901_v18  ;;  %v1947_v20 = vld [vmem:[%s6437_s27 + $0xf70] sm:$0xff]  ;;  %v5852_v18 = vcombine.low %v1815_v61, %v1819_v5 }
 0x357   : > { %v5981_v46 = vcombine.high %v1943_v48, %v1947_v20  ;;  %v1811_v17 = vld [vmem:[%s6437_s27 + $0xb30] sm:$0xff]  ;;  %v5980_v12 = vcombine.low %v1943_v48, %v1947_v20  ;;  %v1504_v20 = vld [vmem:[%s6437_s27 + $0x198] sm:$0xff] }
 0x358   : > { %4986 = vmatpush1.bf16.msra.mxu0 %v5772_v8  ;;  %v1935_v53 = vld [vmem:[%s6437_s27 + $0xf10] sm:$0xff]  ;;  %v5845_v33 = vcombine.high %v1807_v16, %v1811_v17 }
 0x359   : > { %5027 = vmatpush1.bf16.msra.mxu1 %v5900_v35  ;;  %4987 = vmatprep.subr.bf16.mxu0 %v5765_v28  ;;  %v1939_v21 = vld [vmem:[%s6437_s27 + $0xf30] sm:$0xff] }
 0x35a   : > { %5028 = vmatprep.subr.bf16.mxu1 %v5893_v4  ;;  %v5973_v63 = vcombine.high %v1935_v53, %v1939_v21  ;;  %v1799_v32 = vld [vmem:[%s6437_s27 + $0xad0] sm:$0xff]  ;;  %v5844_v4 = vcombine.low %v1807_v16, %v1811_v17  ;;  %v5972_v10 = vcombine.low %v1935_v53, %v1939_v21  ;;  %v1632_v16 = vld [vmem:[%s6437_s27 + $0x598] sm:$0xff]  ;;  %v7741_v21 = vsub.s32 3, %v7737_v1 }
 0x35b   : > { %v1803_v8 = vld [vmem:[%s6437_s27 + $0xaf0] sm:$0xff]  ;;  %v1636_v17 = vld [vmem:[%s6437_s27 + $0x5b8] sm:$0xff] }
 0x35c   : > { %4988 = vmatpush1.bf16.msra.mxu0 %v5764_v36  ;;  %v1927_v35 = vld [vmem:[%s6437_s27 + $0xed0] sm:$0xff]  ;;  %v5837_v19 = vcombine.high %v1799_v32, %v1803_v8 }
 0x35d   : > { %5029 = vmatpush1.bf16.msra.mxu1 %v5892_v37  ;;  %4989 = vmatprep.subr.bf16.mxu0 %v5757_v22  ;;  %v1931_v28 = vld [vmem:[%s6437_s27 + $0xef0] sm:$0xff] }
 0x35e   : > { %5030 = vmatprep.subr.bf16.mxu1 %v5885_v3  ;;  %v5965_v52 = vcombine.high %v1927_v35, %v1931_v28  ;;  %v1791_v6 = vld [vmem:[%s6437_s27 + $0xa90] sm:$0xff]  ;;  %v5836_v3 = vcombine.low %v1799_v32, %v1803_v8  ;;  %v5964_v42 = vcombine.low %v1927_v35, %v1931_v28  ;;  %v5671_v8 = vcombine.high %v1632_v16, %v1636_v17  ;;  %v1624_v35 = vld [vmem:[%s6437_s27 + $0x558] sm:$0xff] }
 0x35f   : > { %v1795_v36 = vld [vmem:[%s6437_s27 + $0xab0] sm:$0xff]  ;;  %v1628_v28 = vld [vmem:[%s6437_s27 + $0x578] sm:$0xff] }
 0x360   : > { %4990 = vmatpush1.bf16.msra.mxu0 %v5756_v41  ;;  %v1919_v37 = vld [vmem:[%s6437_s27 + $0xe90] sm:$0xff]  ;;  %v5829_v39 = vcombine.high %v1791_v6, %v1795_v36 }
 0x361   : > { %5031 = vmatpush1.bf16.msra.mxu1 %v5884_v15  ;;  %4991 = vmatprep.subr.bf16.mxu0 %v5749_v57  ;;  %v1923_v22 = vld [vmem:[%s6437_s27 + $0xeb0] sm:$0xff] }
 0x362   : > { %5032 = vmatprep.subr.bf16.mxu1 %v5877_v38  ;;  %v5957_v9 = vcombine.high %v1919_v37, %v1923_v22  ;;  %v1783_v14 = vld [vmem:[%s6437_s27 + $0xa50] sm:$0xff]  ;;  %v5828_v38 = vcombine.low %v1791_v6, %v1795_v36  ;;  %v5956_v43 = vcombine.low %v1919_v37, %v1923_v22 }
 0x363   : > { %v1787_v41 = vld [vmem:[%s6437_s27 + $0xa70] sm:$0xff] }
 0x364   : > { %4992 = vmatpush1.bf16.msra.mxu0 %v5748_v45  ;;  %v1911_v15 = vld [vmem:[%s6437_s27 + $0xe50] sm:$0xff]  ;;  %v5821_v60 = vcombine.high %v1783_v14, %v1787_v41 }
 0x365   : > { %5033 = vmatpush1.bf16.msra.mxu1 %v5876_v51  ;;  %4993 = vmatprep.subr.bf16.mxu0 %v5869_v13  ;;  %v1915_v57 = vld [vmem:[%s6437_s27 + $0xe70] sm:$0xff] }
 0x366   : > { %5034 = vmatprep.subr.bf16.mxu1 %v5997_v50  ;;  %v5949_v2 = vcombine.high %v1911_v15, %v1915_v57  ;;  %v1775_v44 = vld [vmem:[%s6437_s27 + $0xa10] sm:$0xff]  ;;  %v5820_v50 = vcombine.low %v1783_v14, %v1787_v41  ;;  %v5948_v62 = vcombine.low %v1911_v15, %v1915_v57  ;;  %v1620_v14 = vld [vmem:[%s6437_s27 + $0x538] sm:$0xff] }
 0x367   : > { %v1779_v45 = vld [vmem:[%s6437_s27 + $0xa30] sm:$0xff] }
 0x368   : > { %4994 = vmatpush2.bf16.msra.mxu0 %v5868_v49  ;;  %v1903_v51 = vld [vmem:[%s6437_s27 + $0xe10] sm:$0xff]  ;;  %v5813_v40 = vcombine.high %v1775_v44, %v1779_v45  ;;  %v1516_v49 = vld [vmem:[%s6437_s27 + $0x1f8] sm:$0xff] }
 0x369   : > { %5035 = vmatpush2.bf16.msra.mxu1 %v5996_v47  ;;  %4995 = vmatprep.subr.bf16.mxu0 %v5861_v30  ;;  %v1907_v13 = vld [vmem:[%s6437_s27 + $0xe30] sm:$0xff]  ;;  %v1640_v47 = vld [vmem:[%s6437_s27 + $0x5d8] sm:$0xff]  ;;  %v5551_v5 = vcombine.high %v1512_v0, %v1516_v49 }
 0x36a   : > { %5036 = vmatprep.subr.bf16.mxu1 %v5989_v25  ;;  %v5941_v11 = vcombine.high %v1903_v51, %v1907_v13  ;;  %v1644_v30 = vld [vmem:[%s6437_s27 + $0x5f8] sm:$0xff]  ;;  %v5812_v25 = vcombine.low %v1775_v44, %v1779_v45  ;;  %v5940_v61 = vcombine.low %v1903_v51, %v1907_v13 }
 0x36b   : > { %v5679_v48 = vcombine.high %v1640_v47, %v1644_v30  ;;  %v5678_v53 = vcombine.low %v1640_v47, %v1644_v30  ;;  %v1480_v44 = vld [vmem:[%s6437_s27 + $0xd8] sm:$0xff] }
 0x36c   : > { %4996 = vmatpush2.bf16.msra.mxu0 %v5860_v29  ;;  %v1508_v29 = vld [vmem:[%s6437_s27 + $0x1b8] sm:$0xff] }
 0x36d   : > { %5037 = vmatpush2.bf16.msra.mxu1 %v5988_v23  ;;  %4997 = vmatprep.subr.bf16.mxu0 %v5853_v58  ;;  %v7740_v23 = vsub.s32 2, %v7737_v1  ;;  %v1484_v45 = vld [vmem:[%s6437_s27 + $0xf8] sm:$0xff] }
 0x36e   : > { %5038 = vmatprep.subr.bf16.mxu1 %v5981_v46  ;;  %v5550_v46 = vcombine.low %v1512_v0, %v1516_v49  ;;  %v1608_v51 = vld [vmem:[%s6437_s27 + $0x4d8] sm:$0xff] }
 0x36f   : > { %v1978_v58 = vrot.slane %v7328_v27, %v7740_v23  ;;  %v1612_v13 = vld [vmem:[%s6437_s27 + $0x4f8] sm:$0xff] }
 0x370   : > { %4998 = vmatpush2.bf16.msra.mxu0 %v5852_v18  ;;  %v1982_v18 = vrot.slane %v7328_v27, %v7741_v21  ;;  %v1472_v0 = vld [vmem:[%s6437_s27 + $0x98] sm:$0xff] }
 0x371   : > { %5039 = vmatpush2.bf16.msra.mxu1 %v5980_v12  ;;  %4999 = vmatprep.subr.bf16.mxu0 %v5845_v33  ;;  %v5543_v12 = vcombine.high %v1504_v20, %v1508_v29  ;;  %v1496_v33 = vld [vmem:[%s6437_s27 + $0x158] sm:$0xff] }
 0x372   : > { %5040 = vmatprep.subr.bf16.mxu1 %v5973_v63  ;;  %v1500_v63 = vld [vmem:[%s6437_s27 + $0x178] sm:$0xff] }
 0x373   : > { %v5535_v6 = vcombine.high %v1496_v33, %v1500_v63  ;;  %v5534_v57 = vcombine.low %v1496_v33, %v1500_v63  ;;  %v1476_v49 = vld [vmem:[%s6437_s27 + $0xb8] sm:$0xff] }
 0x374   : > { %5000 = vmatpush2.bf16.msra.mxu0 %v5844_v4  ;;  %v1600_v47 = vld [vmem:[%s6437_s27 + $0x498] sm:$0xff] }
 0x375   : > { %5041 = vmatpush2.bf16.msra.mxu1 %v5972_v10  ;;  %5001 = vmatprep.subr.bf16.mxu0 %v5837_v19  ;;  %v5542_v19 = vcombine.low %v1504_v20, %v1508_v29  ;;  %v1604_v30 = vld [vmem:[%s6437_s27 + $0x4b8] sm:$0xff] }
 0x376   : > { %5042 = vmatprep.subr.bf16.mxu1 %v5965_v52  ;;  %v5670_v52 = vcombine.low %v1632_v16, %v1636_v17  ;;  %v1464_v20 = vld [vmem:[%s6437_s27 + $0x58] sm:$0xff]  ;;  %v5638_v16 = vcombine.low %v1600_v47, %v1604_v30 }
 0x377   : > { %v1468_v29 = vld [vmem:[%s6437_s27 + $0x78] sm:$0xff] }
 0x378   : > { %5002 = vmatpush2.bf16.msra.mxu0 %v5836_v3  ;;  %v5663_v3 = vcombine.high %v1624_v35, %v1628_v28  ;;  %v1592_v23 = vld [vmem:[%s6437_s27 + $0x458] sm:$0xff]  ;;  %v5503_v17 = vcombine.high %v1464_v20, %v1468_v29  ;;  %v5502_v63 = vcombine.low %v1464_v20, %v1468_v29 }
 0x379   : > { %5043 = vmatpush2.bf16.msra.mxu1 %v5964_v42  ;;  %5003 = vmatprep.subr.bf16.mxu0 %v5829_v39  ;;  %v1488_v42 = vld [vmem:[%s6437_s27 + $0x118] sm:$0xff] }
 0x37a   : > { %5044 = vmatprep.subr.bf16.mxu1 %v5957_v9  ;;  %v1492_v39 = vld [vmem:[%s6437_s27 + $0x138] sm:$0xff] }
 0x37b   : > { %v1456_v21 = vld [vmem:[%s6437_s27 + $0x18] sm:$0xff] }
 0x37c   : > { %5004 = vmatpush2.bf16.msra.mxu0 %v5828_v38  ;;  %v5662_v38 = vcombine.low %v1624_v35, %v1628_v28  ;;  %v1588_v33 = vld [vmem:[%s6437_s27 + $0x438] sm:$0xff] }
 0x37d   : > { %5045 = vmatpush2.bf16.msra.mxu1 %v5956_v43  ;;  %5005 = vmatprep.subr.bf16.mxu0 %v5821_v60  ;;  %v5527_v43 = vcombine.high %v1488_v42, %v1492_v39  ;;  %v1576_v28 = vld [vmem:[%s6437_s27 + $0x3d8] sm:$0xff] }
 0x37e   : > { %5046 = vmatprep.subr.bf16.mxu1 %v5949_v2 }
 0x380   : > { %5006 = vmatpush2.bf16.msra.mxu0 %v5820_v50  ;;  %v5526_v50 = vcombine.low %v1488_v42, %v1492_v39  ;;  %v1696_v42 = vld [vmem:[%s6437_s27 + $0x798] sm:$0xff] }
 0x381   : > { %5047 = vmatpush2.bf16.msra.mxu1 %v5948_v62  ;;  %5007 = vmatprep.subr.bf16.mxu0 %v5813_v40  ;;  %v5519_v40 = vcombine.high %v1480_v44, %v1484_v45  ;;  %v1700_v39 = vld [vmem:[%s6437_s27 + $0x7b8] sm:$0xff] }
 0x382   : > { %5048 = vmatprep.subr.bf16.mxu1 %v5941_v11  ;;  %v5647_v11 = vcombine.high %v1608_v51, %v1612_v13 }
 0x384   : > { %5008 = vmatpush2.bf16.msra.mxu0 %v5812_v25  ;;  %v5518_v25 = vcombine.low %v1480_v44, %v1484_v45 }
 0x385   : > { %5049 = vmatpush2.bf16.msra.mxu1 %v5940_v61  ;;  %5059 = vmatprep.subr.bf16.mxu0 %v5551_v5  ;;  %v5646_v61 = vcombine.low %v1608_v51, %v1612_v13  ;;  %v5511_v5 = vcombine.high %v1472_v0, %v1476_v49  ;;  %v1552_v51 = vld [vmem:[%s6437_s27 + $0x318] sm:$0xff] }
 0x386   : > { %5100 = vmatprep.subr.bf16.mxu1 %v5679_v48  ;;  %v5639_v48 = vcombine.high %v1600_v47, %v1604_v30  ;;  %v1556_v13 = vld [vmem:[%s6437_s27 + $0x338] sm:$0xff] }
 0x387   : > { %v4765_v32 = vpop.f32.mrf.mxu0  ;;  %5010 = vmatmul.mubr.bf16.vlgmr.msra.gmra.mxu0 %v7187_v54  ;;  %v1544_v47 = vld [vmem:[%s6437_s27 + $0x2d8] sm:$0xff] }
 0x388   : > { %v4766_v4 = vadd.f32 %v4765_v32, %v1978_v58  ;;  %v4806_v10 = vpop.f32.mrf.mxu1  ;;  %5051 = vmatmul.mubr.bf16.vlgmr.msra.gmra.mxu1 %v7182_v31  ;;  %5060 = vmatpush1.bf16.msra.mxu0 %v5550_v46  ;;  %v1596_v58 = vld [vmem:[%s6437_s27 + $0x478] sm:$0xff]  ;;  %v5510_v46 = vcombine.low %v1472_v0, %v1476_v49  ;;  %v5591_v0 = vcombine.high %v1552_v51, %v1556_v13 }
 0x389   : > { %5091 = vmatprep.mubr.bf16.mxu0 %v7099_v26  ;;  %5101 = vmatpush1.bf16.msra.mxu1 %v5678_v53  ;;  %v4767_v27 = vpop.f32.mrf.mxu0  ;;  %v1616_v26 = vld [vmem:[%s6437_s27 + $0x518] sm:$0xff]  ;;  %v5631_v53 = vcombine.high %v1592_v23, %v1596_v58  ;;  %v5630_v32 = vcombine.low %v1592_v23, %v1596_v58 }
 0x38a   : > { %v7497_v36 = vadd.f32 %v4806_v10, %v4766_v4  ;;  %5132 = vmatprep.mubr.bf16.mxu1 %v7101_v24  ;;  %v4768_v37 = vadd.f32 %v4767_v27, %v1982_v18  ;;  %v4808_v22 = vpop.f32.mrf.mxu1  ;;  %5061 = vmatprep.subr.bf16.mxu0 %v5543_v12  ;;  %v5655_v2 = vcombine.high %v1616_v26, %v1620_v14  ;;  %v1460_v18 = vld [vmem:[%s6437_s27 + $0x38] sm:$0xff] }
 0x38b   : > { %v4769_v9 = vpop.f32.mrf.mxu0  ;;  %5102 = vmatprep.subr.bf16.mxu1 %v5671_v8  ;;  %v5654_v62 = vcombine.low %v1616_v26, %v1620_v14  ;;  %v1584_v12 = vld [vmem:[%s6437_s27 + $0x418] sm:$0xff]  ;;  %v5495_v8 = vcombine.high %v1456_v21, %v1460_v18  ;;  %v5494_v27 = vcombine.low %v1456_v21, %v1460_v18 }
 0x38c   : > { %v7504_v41 = vadd.f32 %v4808_v22, %v4768_v37  ;;  %v4810_v15 = vpop.f32.mrf.mxu1  ;;  %5062 = vmatpush1.bf16.msra.mxu0 %v5542_v19  ;;  %v5623_v35 = vcombine.high %v1584_v12, %v1588_v33  ;;  %v1580_v4 = vld [vmem:[%s6437_s27 + $0x3f8] sm:$0xff] }
 0x38d   : > { %5103 = vmatpush1.bf16.msra.mxu1 %v5670_v52  ;;  %v4770_v24 = vpop.f32.mrf.mxu0  ;;  %5063 = vmatprep.subr.bf16.mxu0 %v5535_v6  ;;  %v1704_v10 = vld [vmem:[%s6437_s27 + $0x7d8] sm:$0xff]  ;;  %v5622_v52 = vcombine.low %v1584_v12, %v1588_v33  ;;  %v5615_v6 = vcombine.high %v1576_v28, %v1580_v4  ;;  %v5614_v9 = vcombine.low %v1576_v28, %v1580_v4 }
 0x38e   : > { %v4811_v60 = vpop.f32.mrf.mxu1  ;;  %5104 = vmatprep.subr.bf16.mxu1 %v5663_v3  ;;  %v1708_v19 = vld [vmem:[%s6437_s27 + $0x7f8] sm:$0xff]  ;;  %v5735_v15 = vcombine.high %v1696_v42, %v1700_v39 }
 0x38f   : > { %v5743_v37 = vcombine.high %v1704_v10, %v1708_v19  ;;  %v1568_v22 = vld [vmem:[%s6437_s27 + $0x398] sm:$0xff]  ;;  %v5742_v26 = vcombine.low %v1704_v10, %v1708_v19 }
 0x390   : > { %5064 = vmatpush1.bf16.msra.mxu0 %v5534_v57  ;;  %v1572_v3 = vld [vmem:[%s6437_s27 + $0x3b8] sm:$0xff] }
 0x391   : > { %5105 = vmatpush1.bf16.msra.mxu1 %v5662_v38  ;;  %5065 = vmatprep.subr.bf16.mxu0 %v5527_v43  ;;  %v5607_v14 = vcombine.high %v1568_v22, %v1572_v3  ;;  %v1560_v57 = vld [vmem:[%s6437_s27 + $0x358] sm:$0xff]  ;;  %v5606_v60 = vcombine.low %v1568_v22, %v1572_v3 }
 0x392   : > { %5106 = vmatprep.subr.bf16.mxu1 %v5655_v2  ;;  %v1564_v24 = vld [vmem:[%s6437_s27 + $0x378] sm:$0xff]  ;;  %v5734_v2 = vcombine.low %v1696_v42, %v1700_v39 }
 0x393   : > { %v1688_v38 = vld [vmem:[%s6437_s27 + $0x758] sm:$0xff]  ;;  %v5599_v44 = vcombine.high %v1560_v57, %v1564_v24 }
 0x394   : > { %5066 = vmatpush1.bf16.msra.mxu0 %v5526_v50  ;;  %v1692_v43 = vld [vmem:[%s6437_s27 + $0x778] sm:$0xff] }
 0x395   : > { %5107 = vmatpush1.bf16.msra.mxu1 %v5654_v62  ;;  %5067 = vmatprep.subr.bf16.mxu0 %v5519_v40  ;;  %v5727_v45 = vcombine.high %v1688_v38, %v1692_v43  ;;  %v1680_v50 = vld [vmem:[%s6437_s27 + $0x718] sm:$0xff]  ;;  %v5598_v40 = vcombine.low %v1560_v57, %v1564_v24 }
 0x396   : > { %5108 = vmatprep.subr.bf16.mxu1 %v5647_v11  ;;  %v1684_v62 = vld [vmem:[%s6437_s27 + $0x738] sm:$0xff]  ;;  %v5726_v11 = vcombine.low %v1688_v38, %v1692_v43 }
 0x397   : > { %v5719_v49 = vcombine.high %v1680_v50, %v1684_v62  ;;  %v1548_v30 = vld [vmem:[%s6437_s27 + $0x2f8] sm:$0xff] }
 0x398   : > { %5068 = vmatpush1.bf16.msra.mxu0 %v5518_v25  ;;  %v1672_v25 = vld [vmem:[%s6437_s27 + $0x6d8] sm:$0xff]  ;;  %v5583_v20 = vcombine.high %v1544_v47, %v1548_v30 }
 0x399   : > { %5109 = vmatpush1.bf16.msra.mxu1 %v5646_v61  ;;  %5069 = vmatprep.subr.bf16.mxu0 %v5511_v5  ;;  %v1676_v61 = vld [vmem:[%s6437_s27 + $0x6f8] sm:$0xff]  ;;  %v5590_v5 = vcombine.low %v1552_v51, %v1556_v13  ;;  %v6243_v51 = vmov 1966171168  }
 0x39a   : > { %5110 = vmatprep.subr.bf16.mxu1 %v5639_v48  ;;  %v5718_v48 = vcombine.low %v1680_v50, %v1684_v62  ;;  %v5711_v29 = vcombine.high %v1672_v25, %v1676_v61  ;;  %v1536_v23 = vld [vmem:[%s6437_s27 + $0x298] sm:$0xff]  ;;  %v5252_v13 = vunpack.c.l.s4 %v6243_v51 }
 0x39b   : > { %v1540_v58 = vld [vmem:[%s6437_s27 + $0x2b8] sm:$0xff] }
 0x39c   : > { %5070 = vmatpush1.bf16.msra.mxu0 %v5510_v46  ;;  %v1664_v46 = vld [vmem:[%s6437_s27 + $0x698] sm:$0xff]  ;;  %v5575_v21 = vcombine.high %v1536_v23, %v1540_v58 }
 0x39d   : > { %5111 = vmatpush1.bf16.msra.mxu1 %v5638_v16  ;;  %5071 = vmatprep.subr.bf16.mxu0 %v5503_v17  ;;  %v1668_v16 = vld [vmem:[%s6437_s27 + $0x6b8] sm:$0xff]  ;;  %v5582_v17 = vcombine.low %v1544_v47, %v1548_v30 }
 0x39e   : > { %5112 = vmatprep.subr.bf16.mxu1 %v5631_v53  ;;  %v5710_v53 = vcombine.low %v1672_v25, %v1676_v61  ;;  %v5703_v18 = vcombine.high %v1664_v46, %v1668_v16  ;;  %v1528_v12 = vld [vmem:[%s6437_s27 + $0x258] sm:$0xff] }
 0x39f   : > { %v1532_v33 = vld [vmem:[%s6437_s27 + $0x278] sm:$0xff] }
 0x3a0   : > { %5072 = vmatpush1.bf16.msra.mxu0 %v5502_v63  ;;  %v1656_v63 = vld [vmem:[%s6437_s27 + $0x658] sm:$0xff]  ;;  %v5567_v28 = vcombine.high %v1528_v12, %v1532_v33 }
 0x3a1   : > { %5113 = vmatpush1.bf16.msra.mxu1 %v5630_v32  ;;  %5073 = vmatprep.subr.bf16.mxu0 %v5495_v8  ;;  %v1660_v32 = vld [vmem:[%s6437_s27 + $0x678] sm:$0xff]  ;;  %v5574_v8 = vcombine.low %v1536_v23, %v1540_v58 }
 0x3a2   : > { %5114 = vmatprep.subr.bf16.mxu1 %v5623_v35  ;;  %v5702_v35 = vcombine.low %v1664_v46, %v1668_v16  ;;  %v5695_v4 = vcombine.high %v1656_v63, %v1660_v32  ;;  %v1520_v10 = vld [vmem:[%s6437_s27 + $0x218] sm:$0xff] }
 0x3a3   : > { %v1524_v19 = vld [vmem:[%s6437_s27 + $0x238] sm:$0xff] }
 0x3a4   : > { %5074 = vmatpush1.bf16.msra.mxu0 %v5494_v27  ;;  %v1648_v27 = vld [vmem:[%s6437_s27 + $0x618] sm:$0xff]  ;;  %v5559_v22 = vcombine.high %v1520_v10, %v1524_v19 }
 0x3a5   : > { %5115 = vmatpush1.bf16.msra.mxu1 %v5622_v52  ;;  %5075 = vmatprep.subr.bf16.mxu0 %v5615_v6  ;;  %v1652_v52 = vld [vmem:[%s6437_s27 + $0x638] sm:$0xff]  ;;  %v5566_v6 = vcombine.low %v1528_v12, %v1532_v33 }
 0x3a6   : > { %5116 = vmatprep.subr.bf16.mxu1 %v5743_v37  ;;  %v5694_v37 = vcombine.low %v1656_v63, %v1660_v32  ;;  %v5687_v3 = vcombine.high %v1648_v27, %v1652_v52  ;;  %v1768_v42 = vld [vmem:[%s6437_s27 + $0x9d8] sm:$0xff] }
 0x3a7   : > { %v1772_v39 = vld [vmem:[%s6437_s27 + $0x9f8] sm:$0xff] }
 0x3a8   : > { %5076 = vmatpush2.bf16.msra.mxu0 %v5614_v9  ;;  %v1896_v9 = vld [vmem:[%s6437_s27 + $0xdd8] sm:$0xff]  ;;  %v5807_v57 = vcombine.high %v1768_v42, %v1772_v39 }
 0x3a9   : > { %5117 = vmatpush2.bf16.msra.mxu1 %v5742_v26  ;;  %5077 = vmatprep.subr.bf16.mxu0 %v5607_v14  ;;  %v1900_v26 = vld [vmem:[%s6437_s27 + $0xdf8] sm:$0xff]  ;;  %v5558_v14 = vcombine.low %v1520_v10, %v1524_v19 }
 0x3aa   : > { %5118 = vmatprep.subr.bf16.mxu1 %v5735_v15  ;;  %v5686_v15 = vcombine.low %v1648_v27, %v1652_v52  ;;  %v5935_v24 = vcombine.high %v1896_v9, %v1900_v26  ;;  %v1760_v38 = vld [vmem:[%s6437_s27 + $0x998] sm:$0xff] }
 0x3ab   : > { %v1764_v43 = vld [vmem:[%s6437_s27 + $0x9b8] sm:$0xff] }
 0x3ac   : > { %5078 = vmatpush2.bf16.msra.mxu0 %v5606_v60  ;;  %v5806_v60 = vcombine.low %v1768_v42, %v1772_v39  ;;  %v5799_v50 = vcombine.high %v1760_v38, %v1764_v43  ;;  %v1752_v62 = vld [vmem:[%s6437_s27 + $0x958] sm:$0xff]  ;;  %v5798_v61 = vcombine.low %v1760_v38, %v1764_v43 }
 0x3ad   : > { %5119 = vmatpush2.bf16.msra.mxu1 %v5734_v2  ;;  %5079 = vmatprep.subr.bf16.mxu0 %v5599_v44  ;;  %v1888_v2 = vld [vmem:[%s6437_s27 + $0xd98] sm:$0xff] }
 0x3ae   : > { %5120 = vmatprep.subr.bf16.mxu1 %v5727_v45  ;;  %v1892_v44 = vld [vmem:[%s6437_s27 + $0xdb8] sm:$0xff]  ;;  %v5934_v45 = vcombine.low %v1896_v9, %v1900_v26 }
 0x3af   : > { %v1884_v47 = vld [vmem:[%s6437_s27 + $0xd78] sm:$0xff] }
 0x3b0   : > { %5080 = vmatpush2.bf16.msra.mxu0 %v5598_v40  ;;  %v1756_v40 = vld [vmem:[%s6437_s27 + $0x978] sm:$0xff] }
 0x3b1   : > { %5121 = vmatpush2.bf16.msra.mxu1 %v5726_v11  ;;  %5081 = vmatprep.subr.bf16.mxu0 %v5591_v0  ;;  %v5927_v0 = vcombine.high %v1888_v2, %v1892_v44  ;;  %v1744_v58 = vld [vmem:[%s6437_s27 + $0x918] sm:$0xff] }
 0x3b2   : > { %5122 = vmatprep.subr.bf16.mxu1 %v5719_v49  ;;  %v1880_v49 = vld [vmem:[%s6437_s27 + $0xd58] sm:$0xff] }
 0x3b3   : > { %v1748_v46 = vld [vmem:[%s6437_s27 + $0x938] sm:$0xff] }
 0x3b4   : > { %5082 = vmatpush2.bf16.msra.mxu0 %v5590_v5  ;;  %v5783_v12 = vcombine.high %v1744_v58, %v1748_v46  ;;  %v1864_v10 = vld [vmem:[%s6437_s27 + $0xcd8] sm:$0xff]  ;;  %v5782_v52 = vcombine.low %v1744_v58, %v1748_v46 }
 0x3b5   : > { %5123 = vmatpush2.bf16.msra.mxu1 %v5718_v48  ;;  %5083 = vmatprep.subr.bf16.mxu0 %v5583_v20  ;;  %v5926_v48 = vcombine.low %v1888_v2, %v1892_v44  ;;  %v5253_v20 = vunpack.c.0.s8 %v5252_v13  ;;  %v1868_v19 = vld [vmem:[%s6437_s27 + $0xcf8] sm:$0xff] }
 0x3b6   : > { %5124 = vmatprep.subr.bf16.mxu1 %v5711_v29  ;;  %v5903_v42 = vcombine.high %v1864_v10, %v1868_v19  ;;  %v1728_v39 = vld [vmem:[%s6437_s27 + $0x898] sm:$0xff] }
 0x3b7   : > { %v7577_v33 = vsub.s32 %v5253_v20, %v7737_v1  ;;  %v1732_v9 = vld [vmem:[%s6437_s27 + $0x8b8] sm:$0xff] }
 0x3b8   : > { %5084 = vmatpush2.bf16.msra.mxu0 %v5582_v17  ;;  %v1876_v17 = vld [vmem:[%s6437_s27 + $0xd38] sm:$0xff] }
 0x3b9   : > { %5125 = vmatpush2.bf16.msra.mxu1 %v5710_v53  ;;  %5085 = vmatprep.subr.bf16.mxu0 %v5575_v21  ;;  %v1856_v26 = vld [vmem:[%s6437_s27 + $0xc98] sm:$0xff] }
 0x3ba   : > { %5126 = vmatprep.subr.bf16.mxu1 %v5703_v18  ;;  %v5790_v18 = vcombine.low %v1752_v62, %v1756_v40  ;;  %v1720_v43 = vld [vmem:[%s6437_s27 + $0x858] sm:$0xff] }
 0x3bb   : > { %v1848_v2 = vld [vmem:[%s6437_s27 + $0xc58] sm:$0xff] }
 0x3bc   : > { %5086 = vmatpush2.bf16.msra.mxu0 %v5574_v8  ;;  %v1852_v44 = vld [vmem:[%s6437_s27 + $0xc78] sm:$0xff] }
 0x3bd   : > { %5127 = vmatpush2.bf16.msra.mxu1 %v5702_v35  ;;  %5087 = vmatprep.subr.bf16.mxu0 %v5567_v28  ;;  %v1736_v28 = vld [vmem:[%s6437_s27 + $0x8d8] sm:$0xff] }
 0x3be   : > { %5128 = vmatprep.subr.bf16.mxu1 %v5695_v4  ;;  %v1740_v4 = vld [vmem:[%s6437_s27 + $0x8f8] sm:$0xff] }
 0x3bf   : > { %v1828_v58 = vld [vmem:[%s6437_s27 + $0xbb8] sm:$0xff] }
 0x3c0   : > { %5088 = vmatpush2.bf16.msra.mxu0 %v5566_v6  ;;  %v1952_v46 = vld [vmem:[%s6437_s27 + $0xf98] sm:$0xff] }
 0x3c1   : > { %5129 = vmatpush2.bf16.msra.mxu1 %v5694_v37  ;;  %5089 = vmatprep.subr.bf16.mxu0 %v5559_v22  ;;  %v5775_v37 = vcombine.high %v1736_v28, %v1740_v4  ;;  %v5257_v22 = vrot.slane %v7430_v7, %v7577_v33  ;;  %v5767_v7 = vcombine.high %v1728_v39, %v1732_v9 }
 0x3c2   : > { %5130 = vmatprep.subr.bf16.mxu1 %v5687_v3 }
 0x3c4   : > { %5090 = vmatpush2.bf16.msra.mxu0 %v5558_v14  ;;  %v1860_v14 = vld [vmem:[%s6437_s27 + $0xcb8] sm:$0xff] }
 0x3c5   : > { %5131 = vmatpush2.bf16.msra.mxu1 %v5686_v15  ;;  %5141 = vmatprep.subr.bf16.mxu0 %v5807_v57  ;;  %v5774_v57 = vcombine.low %v1736_v28, %v1740_v4  ;;  %v5895_v38 = vcombine.high %v1856_v26, %v1860_v14  ;;  %v5894_v51 = vcombine.low %v1856_v26, %v1860_v14  ;;  %v1808_v28 = vld [vmem:[%s6437_s27 + $0xb18] sm:$0xff] }
 0x3c6   : > { %5182 = vmatprep.subr.bf16.mxu1 %v5935_v24  ;;  %v5902_v24 = vcombine.low %v1864_v10, %v1868_v19  ;;  %v1812_v4 = vld [vmem:[%s6437_s27 + $0xb38] sm:$0xff] }
 0x3c7   : > { %v4847_v11 = vpop.f32.mrf.mxu0  ;;  %5092 = vmatmul.mubr.bf16.vlgmr.msra.gmra.mxu0 %v7103_v56  ;;  %v5791_v56 = vcombine.high %v1752_v62, %v1756_v40  ;;  %v1712_v62 = vld [vmem:[%s6437_s27 + $0x818] sm:$0xff] }
 0x3c8   : > { %v4848_v30 = vadd.f32 %v4847_v11, %v7497_v36  ;;  %v4888_v25 = vpop.f32.mrf.mxu1  ;;  %5133 = vmatmul.mubr.bf16.vlgmr.msra.gmra.mxu1 %v7097_v55  ;;  %5142 = vmatpush1.bf16.msra.mxu0 %v5806_v60  ;;  %v5919_v55 = vcombine.high %v1880_v49, %v1884_v47  ;;  %v1724_v60 = vld [vmem:[%s6437_s27 + $0x878] sm:$0xff] }
 0x3c9   : > { %5173 = vmatprep.mubr.bf16.mxu0 %v7167_v34  ;;  %5183 = vmatpush1.bf16.msra.mxu1 %v5934_v45  ;;  %v4849_v5 = vpop.f32.mrf.mxu0  ;;  %v1872_v34 = vld [vmem:[%s6437_s27 + $0xd18] sm:$0xff]  ;;  %v5766_v45 = vcombine.low %v1728_v39, %v1732_v9  ;;  %v5759_v13 = vcombine.high %v1720_v43, %v1724_v60  ;;  %v5846_v9 = vcombine.low %v1808_v28, %v1812_v4 }
 0x3ca   : > { %v4889_v29 = vadd.f32 %v4888_v25, %v4848_v30  ;;  %5214 = vmatprep.mubr.bf16.mxu1 %v7169_v59  ;;  %v4850_v36 = vadd.f32 %v4849_v5, %v7504_v41  ;;  %v4890_v23 = vpop.f32.mrf.mxu1  ;;  %5143 = vmatprep.subr.bf16.mxu0 %v5799_v50  ;;  %v5918_v41 = vcombine.low %v1880_v49, %v1884_v47  ;;  %v1716_v40 = vld [vmem:[%s6437_s27 + $0x838] sm:$0xff] }
 0x3cb   : > { %v4851_v16 = vpop.f32.mrf.mxu0  ;;  %5184 = vmatprep.subr.bf16.mxu1 %v5927_v0  ;;  %v5911_v35 = vcombine.high %v1872_v34, %v1876_v17  ;;  %v5910_v6 = vcombine.low %v1872_v34, %v1876_v17  ;;  %v5887_v50 = vcombine.high %v1848_v2, %v1852_v44  ;;  %v1840_v11 = vld [vmem:[%s6437_s27 + $0xc18] sm:$0xff]  ;;  %v5758_v49 = vcombine.low %v1720_v43, %v1724_v60 }
 0x3cc   : > { %v4891_v53 = vadd.f32 %v4890_v23, %v4850_v36  ;;  %v4892_v21 = vpop.f32.mrf.mxu1  ;;  %5144 = vmatpush1.bf16.msra.mxu0 %v5798_v61  ;;  %v5225_v63 = vmax.f32 %v4889_v29, 0.0  ;;  %v1844_v0 = vld [vmem:[%s6437_s27 + $0xc38] sm:$0xff]  ;;  %v5886_v47 = vcombine.low %v1848_v2, %v1852_v44  ;;  %v5751_v30 = vcombine.high %v1712_v62, %v1716_v40 }
 0x3cd   : > { %5185 = vmatpush1.bf16.msra.mxu1 %v5926_v48  ;;  %v4852_v59 = vpop.f32.mrf.mxu0  ;;  %5145 = vmatprep.subr.bf16.mxu0 %v5791_v56  ;;  %v5879_v25 = vcombine.high %v1840_v11, %v1844_v0  ;;  %v1832_v61 = vld [vmem:[%s6437_s27 + $0xbd8] sm:$0xff]  ;;  %v5750_v20 = vcombine.low %v1712_v62, %v1716_v40  ;;  %v5878_v29 = vcombine.low %v1840_v11, %v1844_v0 }
 0x3ce   : > { %v5226_v32 = vmax.f32 %v4891_v53, 0.0  ;;  %v4893_v8 = vpop.f32.mrf.mxu1  ;;  %5186 = vmatprep.subr.bf16.mxu1 %v5919_v55  ;;  %v1836_v5 = vld [vmem:[%s6437_s27 + $0xbf8] sm:$0xff] }
 0x3cf   : > { %v1960_v48 = vld [vmem:[%s6437_s27 + $0xfd8] sm:$0xff]  ;;  %v5871_v36 = vcombine.high %v1832_v61, %v1836_v5  ;;  %v5870_v34 = vcombine.low %v1832_v61, %v1836_v5 }
 0x3d0   : > { %v6001_v27 = vpack.c.bf16 %v5226_v32, %v5225_v63  ;;  %5146 = vmatpush1.bf16.msra.mxu0 %v5790_v18  ;;  %v1964_v56 = vld [vmem:[%s6437_s27 + $0xff8] sm:$0xff] }
 0x3d1   : > { %5187 = vmatpush1.bf16.msra.mxu1 %v5918_v41  ;;  %5147 = vmatprep.subr.bf16.mxu0 %v5783_v12  ;;  %v5999_v23 = vcombine.high %v1960_v48, %v1964_v56  ;;  %v1824_v55 = vld [vmem:[%s6437_s27 + $0xb98] sm:$0xff]  ;;  %v5998_v17 = vcombine.low %v1960_v48, %v1964_v56 }
 0x3d2   : > { %v5264_v3 = vrot.slane %v6001_v27, %v7577_v33  ;;  %5188 = vmatprep.subr.bf16.mxu1 %v5911_v35  ;;  %v1956_v16 = vld [vmem:[%s6437_s27 + $0xfb8] sm:$0xff]  ;;  %v5863_v53 = vcombine.high %v1824_v55, %v1828_v58  ;;  %v5862_v63 = vcombine.low %v1824_v55, %v1828_v58  ;;  %v7742_v55 = vsub.s32 4, %v7737_v1 }
 0x3d3   : > { %v5991_v21 = vcombine.high %v1952_v46, %v1956_v16  ;;  %v1816_v18 = vld [vmem:[%s6437_s27 + $0xb58] sm:$0xff]  ;;  %v5990_v32 = vcombine.low %v1952_v46, %v1956_v16  ;;  %v7743_v46 = vsub.s32 5, %v7737_v1 }
 0x3d4   : > { %v7590_v15 = vcombine.low %v5257_v22, %v5264_v3  ;;  %5148 = vmatpush1.bf16.msra.mxu0 %v5782_v52  ;;  %v1820_v59 = vld [vmem:[%s6437_s27 + $0xb78] sm:$0xff] }
 0x3d5   : > { %5189 = vmatpush1.bf16.msra.mxu1 %v5910_v6  ;;  %5149 = vmatprep.subr.bf16.mxu0 %v5775_v37  ;;  %v1944_v41 = vld [vmem:[%s6437_s27 + $0xf58] sm:$0xff]  ;;  %v5855_v8 = vcombine.high %v1816_v18, %v1820_v59  ;;  %v5854_v27 = vcombine.low %v1816_v18, %v1820_v59  ;;  %v5847_v6 = vcombine.high %v1808_v28, %v1812_v4 }
 0x3d6   : > { %5190 = vmatprep.subr.bf16.mxu1 %v5903_v42  ;;  %v1948_v12 = vld [vmem:[%s6437_s27 + $0xf78] sm:$0xff] }
 0x3d7   : > { %v5983_v35 = vcombine.high %v1944_v41, %v1948_v12  ;;  %v1936_v10 = vld [vmem:[%s6437_s27 + $0xf18] sm:$0xff]  ;;  %v5982_v52 = vcombine.low %v1944_v41, %v1948_v12 }
 0x3d8   : > { %5150 = vmatpush1.bf16.msra.mxu0 %v5774_v57  ;;  %v1940_v19 = vld [vmem:[%s6437_s27 + $0xf38] sm:$0xff] }
 0x3d9   : > { %5191 = vmatpush1.bf16.msra.mxu1 %v5902_v24  ;;  %5151 = vmatprep.subr.bf16.mxu0 %v5767_v7  ;;  %v5975_v37 = vcombine.high %v1936_v10, %v1940_v19  ;;  %v1800_v22 = vld [vmem:[%s6437_s27 + $0xad8] sm:$0xff]  ;;  %v5974_v26 = vcombine.low %v1936_v10, %v1940_v19 }
 0x3da   : > { %5192 = vmatprep.subr.bf16.mxu1 %v5895_v38  ;;  %v1804_v3 = vld [vmem:[%s6437_s27 + $0xaf8] sm:$0xff] }
 0x3db   : > { %v1928_v42 = vld [vmem:[%s6437_s27 + $0xed8] sm:$0xff]  ;;  %v5839_v14 = vcombine.high %v1800_v22, %v1804_v3  ;;  %v5838_v60 = vcombine.low %v1800_v22, %v1804_v3 }
 0x3dc   : > { %5152 = vmatpush1.bf16.msra.mxu0 %v5766_v45  ;;  %v1932_v39 = vld [vmem:[%s6437_s27 + $0xef8] sm:$0xff] }
 0x3dd   : > { %5193 = vmatpush1.bf16.msra.mxu1 %v5894_v51  ;;  %5153 = vmatprep.subr.bf16.mxu0 %v5759_v13  ;;  %v5967_v57 = vcombine.high %v1928_v42, %v1932_v39  ;;  %v1792_v24 = vld [vmem:[%s6437_s27 + $0xa98] sm:$0xff]  ;;  %v5966_v2 = vcombine.low %v1928_v42, %v1932_v39 }
 0x3de   : > { %5194 = vmatprep.subr.bf16.mxu1 %v5887_v50  ;;  %v1796_v7 = vld [vmem:[%s6437_s27 + $0xab8] sm:$0xff] }
 0x3df   : > { %v1920_v38 = vld [vmem:[%s6437_s27 + $0xe98] sm:$0xff]  ;;  %v5831_v44 = vcombine.high %v1792_v24, %v1796_v7  ;;  %v5830_v40 = vcombine.low %v1792_v24, %v1796_v7 }
 0x3e0   : > { %5154 = vmatpush1.bf16.msra.mxu0 %v5758_v49  ;;  %v1924_v43 = vld [vmem:[%s6437_s27 + $0xeb8] sm:$0xff] }
 0x3e1   : > { %5195 = vmatpush1.bf16.msra.mxu1 %v5886_v47  ;;  %5155 = vmatprep.subr.bf16.mxu0 %v5751_v30  ;;  %v5959_v45 = vcombine.high %v1920_v38, %v1924_v43  ;;  %v1784_v51 = vld [vmem:[%s6437_s27 + $0xa58] sm:$0xff]  ;;  %v5958_v11 = vcombine.low %v1920_v38, %v1924_v43 }
 0x3e2   : > { %5196 = vmatprep.subr.bf16.mxu1 %v5879_v25  ;;  %v1788_v13 = vld [vmem:[%s6437_s27 + $0xa78] sm:$0xff] }
 0x3e3   : > { %v1912_v50 = vld [vmem:[%s6437_s27 + $0xe58] sm:$0xff]  ;;  %v5823_v0 = vcombine.high %v1784_v51, %v1788_v13  ;;  %v5822_v5 = vcombine.low %v1784_v51, %v1788_v13 }
 0x3e4   : > { %5156 = vmatpush1.bf16.msra.mxu0 %v5750_v20  ;;  %v1916_v62 = vld [vmem:[%s6437_s27 + $0xe78] sm:$0xff] }
 0x3e5   : > { %5197 = vmatpush1.bf16.msra.mxu1 %v5878_v29  ;;  %5157 = vmatprep.subr.bf16.mxu0 %v5871_v36  ;;  %v5951_v49 = vcombine.high %v1912_v50, %v1916_v62  ;;  %v1776_v47 = vld [vmem:[%s6437_s27 + $0xa18] sm:$0xff]  ;;  %v5950_v48 = vcombine.low %v1912_v50, %v1916_v62 }
 0x3e6   : > { %5198 = vmatprep.subr.bf16.mxu1 %v5999_v23  ;;  %v1780_v30 = vld [vmem:[%s6437_s27 + $0xa38] sm:$0xff]  ;;  %v6082_v23 = vld [vmem:[%s291_s9] sm:$0xff] }
 0x3e7   : > { %v1904_v25 = vld [vmem:[%s6437_s27 + $0xe18] sm:$0xff]  ;;  %v5815_v56 = vcombine.high %v1776_v47, %v1780_v30  ;;  %v5814_v29 = vcombine.low %v1776_v47, %v1780_v30  ;;  %v1986_v58 = vrot.slane %v6082_v23, %v7742_v55  ;;  %v1990_v16 = vrot.slane %v6082_v23, %v7743_v46 }
 0x3e8   : > { %5158 = vmatpush2.bf16.msra.mxu0 %v5870_v34  ;;  %v1908_v61 = vld [vmem:[%s6437_s27 + $0xe38] sm:$0xff]  ;;  %s5415_s27 = sshll.u32 %s6298_s25, 3 }
 0x3e9   : > { %5199 = vmatpush2.bf16.msra.mxu1 %v5998_v17  ;;  %5159 = vmatprep.subr.bf16.mxu0 %v5863_v53  ;;  %v5943_v20 = vcombine.high %v1904_v25, %v1908_v61  ;;  %v5942_v36 = vcombine.low %v1904_v25, %v1908_v61  ;;  %p327_p0 = scmp.lt.s32.totalorder %s5415_s27, 15 }
 0x3ea   : > { %5200 = vmatprep.subr.bf16.mxu1 %v5991_v21 }
 0x3eb   : > { %s7751_s27 = smov (!%p327_p0, %s5415_s27), 15 }
 0x3ec   : > { %5160 = vmatpush2.bf16.msra.mxu0 %v5862_v63  ;;  %s329_s14 = scalar_lea.vmem %s7672_s6, %s7751_s27 }
 0x3ed   : > { %5201 = vmatpush2.bf16.msra.mxu1 %v5990_v32  ;;  %5161 = vmatprep.subr.bf16.mxu0 %v5855_v8 }
 0x3ee   : > { %5202 = vmatprep.subr.bf16.mxu1 %v5983_v35 }
 0x3f0   : > { %5162 = vmatpush2.bf16.msra.mxu0 %v5854_v27 }
 0x3f1   : > { %5203 = vmatpush2.bf16.msra.mxu1 %v5982_v52  ;;  %5163 = vmatprep.subr.bf16.mxu0 %v5847_v6 }
 0x3f2   : > { %5204 = vmatprep.subr.bf16.mxu1 %v5975_v37 }
 0x3f4   : > { %5164 = vmatpush2.bf16.msra.mxu0 %v5846_v9 }
 0x3f5   : > { %5205 = vmatpush2.bf16.msra.mxu1 %v5974_v26  ;;  %5165 = vmatprep.subr.bf16.mxu0 %v5839_v14 }
 0x3f6   : > { %5206 = vmatprep.subr.bf16.mxu1 %v5967_v57 }
 0x3f8   : > { %5166 = vmatpush2.bf16.msra.mxu0 %v5838_v60 }
 0x3f9   : > { %5207 = vmatpush2.bf16.msra.mxu1 %v5966_v2  ;;  %5167 = vmatprep.subr.bf16.mxu0 %v5831_v44  ;;  %v7744_v2 = vsub.s32 6, %v7737_v1 }
 0x3fa   : > { %5208 = vmatprep.subr.bf16.mxu1 %v5959_v45  ;;  %v7745_v45 = vsub.s32 7, %v7737_v1 }
 0x3fb   : > { %v1994_v44 = vrot.slane %v6082_v23, %v7744_v2 }
 0x3fc   : > { %5168 = vmatpush2.bf16.msra.mxu0 %v5830_v40  ;;  %v1998_v51 = vrot.slane %v6082_v23, %v7745_v45 }
 0x3fd   : > { %5209 = vmatpush2.bf16.msra.mxu1 %v5958_v11  ;;  %5169 = vmatprep.subr.bf16.mxu0 %v5823_v0 }
 0x3fe   : > { %5210 = vmatprep.subr.bf16.mxu1 %v5951_v49 }
 0x400   : > { %5170 = vmatpush2.bf16.msra.mxu0 %v5822_v5 }
 0x401   : > { %5211 = vmatpush2.bf16.msra.mxu1 %v5950_v48  ;;  %5171 = vmatprep.subr.bf16.mxu0 %v5815_v56 }
 0x402   : > { %5212 = vmatprep.subr.bf16.mxu1 %v5943_v20 }
 0x404   : > { %5172 = vmatpush2.bf16.msra.mxu0 %v5814_v29 }
 0x405   : > { %5213 = vmatpush2.bf16.msra.mxu1 %v5942_v36 }
 0x407   : > { %v4929_v34 = vpop.f32.mrf.mxu0  ;;  %5174 = vmatmul.mubr.bf16.vlgmr.msra.gmra.mxu0 %v7187_v54 }
 0x408   : > { %v4930_v17 = vadd.f32 %v4929_v34, %v1986_v58  ;;  %v4970_v53 = vpop.f32.mrf.mxu1  ;;  %5215 = vmatmul.mubr.bf16.vlgmr.msra.gmra.mxu1 %v7182_v31 }
 0x409   : > { %v4931_v21 = vpop.f32.mrf.mxu0 }
 0x40a   : > { %v4971_v18 = vadd.f32 %v4970_v53, %v4930_v17  ;;  %v4932_v59 = vadd.f32 %v4931_v21, %v1990_v16  ;;  %v4972_v41 = vpop.f32.mrf.mxu1  ;;  %v5287_v16 = vrot.slane %v7590_v15, %v7577_v33 }
 0x40b   : > { %v4933_v12 = vpop.f32.mrf.mxu0 }
 0x40c   : > { %v4973_v63 = vadd.f32 %v4972_v41, %v4932_v59  ;;  %v4974_v32 = vpop.f32.mrf.mxu1 }
 0x40d   : > { %v4934_v8 = vpop.f32.mrf.mxu0 }
 0x40e   : > { %v4975_v35 = vpop.f32.mrf.mxu1 }
 0x447   : > { %v5011_v28 = vpop.f32.mrf.mxu0 }
 0x448   : > { %v5012_v4 = vadd.f32 %v5011_v28, %v4971_v18  ;;  %v5052_v10 = vpop.f32.mrf.mxu1 }
 0x449   : > { %v5013_v19 = vpop.f32.mrf.mxu0 }
 0x44a   : > { %v5053_v27 = vadd.f32 %v5052_v10, %v5012_v4  ;;  %v5014_v52 = vadd.f32 %v5013_v19, %v4973_v63  ;;  %v5054_v54 = vpop.f32.mrf.mxu1 }
 0x44b   : > { %v5015_v6 = vpop.f32.mrf.mxu0 }
 0x44c   : > { %v5055_v37 = vadd.f32 %v5054_v54, %v5014_v52  ;;  %v5056_v22 = vpop.f32.mrf.mxu1  ;;  %v5227_v3 = vmax.f32 %v5053_v27, 0.0 }
 0x44d   : > { %v5016_v31 = vpop.f32.mrf.mxu0 }
 0x44e   : > { %v5228_v42 = vmax.f32 %v5055_v37, 0.0  ;;  %v5057_v39 = vpop.f32.mrf.mxu1 }
 0x450   : > { %v6002_v9 = vpack.c.bf16 %v5228_v42, %v5227_v3 }
 0x452   : > { %v5271_v55 = vrot.slane %v6002_v9, %v7577_v33 }
 0x487   : > { %v5093_v26 = vpop.f32.mrf.mxu0 }
 0x488   : > { %v5134_v14 = vpop.f32.mrf.mxu1  ;;  %v5094_v13 = vadd.f32 %v5093_v26, %v1994_v44 }
 0x489   : > { %v5095_v57 = vpop.f32.mrf.mxu0 }
 0x48a   : > { %v5136_v24 = vpop.f32.mrf.mxu1  ;;  %v5096_v50 = vadd.f32 %v5095_v57, %v1998_v51  ;;  %v5135_v62 = vadd.f32 %v5134_v14, %v5094_v13 }
 0x48b   : > { %v5097_v7 = vpop.f32.mrf.mxu0 }
 0x48c   : > { %v5138_v38 = vpop.f32.mrf.mxu1  ;;  %v5137_v11 = vadd.f32 %v5136_v24, %v5096_v50 }
 0x48d   : > { %v5098_v43 = vpop.f32.mrf.mxu0 }
 0x48e   : > { %v5139_v60 = vpop.f32.mrf.mxu1 }
 0x4c7   : > { %v5175_v40 = vpop.f32.mrf.mxu0 }
 0x4c8   : > { %v5176_v0 = vadd.f32 %v5175_v40, %v5135_v62  ;;  %v5216_v49 = vpop.f32.mrf.mxu1 }
 0x4c9   : > { %v5177_v47 = vpop.f32.mrf.mxu0 }
 0x4ca   : > { %v5217_v30 = vadd.f32 %v5216_v49, %v5176_v0  ;;  %v5178_v25 = vadd.f32 %v5177_v47, %v5137_v11  ;;  %v5218_v61 = vpop.f32.mrf.mxu1 }
 0x4cb   : > { %v5179_v5 = vpop.f32.mrf.mxu0 }
 0x4cc   : > { %v5219_v48 = vadd.f32 %v5218_v61, %v5178_v25  ;;  %v5220_v56 = vpop.f32.mrf.mxu1  ;;  %v5229_v29 = vmax.f32 %v5217_v30, 0.0 }
 0x4cd   : > { %v5180_v20 = vpop.f32.mrf.mxu0 }
 0x4ce   : > { %v5230_v36 = vmax.f32 %v5219_v48, 0.0  ;;  %v5221_v1 = vpop.f32.mrf.mxu1 }
 0x4d0   : > { %v6003_v23 = vpack.c.bf16 %v5230_v36, %v5229_v29 }
 0x4d2   : > { %v5278_v58 = vrot.slane %v6003_v23, %v7577_v33 }
 0x4d4   : > { %v5280_v46 = vcombine.low %v5271_v55, %v5278_v58 }
 0x4d6   : > { %v5294_v34 = vrot.slane %v5280_v46, %v7577_v33 }
 0x4d8   : > { %v5295_v17 = vcombine.low %v5287_v16, %v5294_v34 }
 0x4da   : > { %5297 = vst [vmem:[%s329_s14] sm:$0xff] %v5295_v17 }
 0x4db PF: > { %p15_p1 = scmp.ge.s32.totalorder %s6301_s26, 4   ;;  %s7746_s21 = smov %s6225_s22 }
 0x4dc   : > { %s7747_s22 = smov %s6229_s23  ;;  %s7748_s23 = smov %s6311_s29 }
 0x4dd   : > { %s7749_s24 = smov %s6301_s26  ;;  %17 = sbr.rel (!%p15_p1) target bundleno = 3 (0x3), region = 102 }
 0x4e2   :  { %5318 = vsyncpa [#allocation3], 1 }
 0x4e3   :  { %5320 = vsyncpa [#allocation3 + $0x1], 1 }
 0x4e4   :  { %5321 = vsyncpa [#allocation5], 1 }

// kernel: graphormer_hand_forward.3
= control target key start
LH: loop header
LB: loop body
LE: loop exit
PB: predicated region body
PF: predicated region fallthrough
CT: control target
= control target key end

     0   :  { %s7902_s0 = inlined_call_operand.vmem [shape: bf16[2,1,2048], index: 0, kind: input, shape index: {}]   ;;  %s7903_s1 = inlined_call_operand.vmem [shape: f32[2,49,3], index: 1, kind: input, shape index: {}]   ;;  %s7904_s2 = inlined_call_operand.vmem [shape: bf16[2048,64], index: 2, kind: input, shape index: {}]   ;;  %s7905_s3 = inlined_call_operand.vmem [shape: f32[1,64], index: 3, kind: input, shape index: {}]   ;;  %s7906_s4 = inlined_call_operand.vmem [shape: f32[3,1024], index: 4, kind: input, shape index: {}]   ;;  %s7907_s5 = inlined_call_operand.vmem [shape: f32[1,1024], index: 5, kind: input, shape index: {}]   ;;  %s7908_s6 = inlined_call_operand.vmem [shape: bf16[1024,64], index: 6, kind: input, shape index: {}]   ;;  %s7909_s7 = inlined_call_operand.vmem [shape: f32[1,64], index: 7, kind: input, shape index: {}]   ;;  %s7910_s8 = inlined_call_operand.vmem [shape: bf16[64,192], index: 8, kind: input, shape index: {}]   ;;  %s7911_s9 = inlined_call_operand.vmem [shape: f32[1,192], index: 9, kind: input, shape index: {}]   ;;  %s7912_s10 = inlined_call_operand.vmem [shape: bf16[64,64], index: 10, kind: input, shape index: {}]   ;;  %s7913_s11 = inlined_call_operand.vmem [shape: f32[1,64], index: 11, kind: input, shape index: {}]   ;;  %s7914_s12 = inlined_call_operand.vmem [shape: bf16[64,128], index: 12, kind: input, shape index: {}]   ;;  %s7915_s13 = inlined_call_operand.vmem [shape: f32[1,128], index: 13, kind: input, shape index: {}]   ;;  %s7916_s14 = inlined_call_operand.vmem [shape: bf16[128,64], index: 14, kind: input, shape index: {}]   ;;  %s7917_s15 = inlined_call_operand.vmem [shape: f32[1,64], index: 15, kind: input, shape index: {}]   ;;  %s7918_s16 = inlined_call_operand.vmem [shape: bf16[64,3], index: 16, kind: input, shape index: {}]   ;;  %s7919_s17 = inlined_call_operand.vmem [shape: f32[1,3], index: 17, kind: input, shape index: {}]   ;;  %s7920_s18 = inlined_call_operand.vmem [shape: f32[64,1], index: 18, kind: input, shape index: {}]   ;;  %s7921_s19 = inlined_call_operand.<no memory space> [shape: f32[1,1], index: 19, kind: input, shape index: {}]   ;;  %s7922_s20 = inlined_call_operand.vmem [shape: f32[70,7], index: 20, kind: input, shape index: {}]   ;;  %s7923_s21 = inlined_call_operand.vmem [shape: f32[1,7], index: 21, kind: input, shape index: {}]   ;;  %s7924_s22 = inlined_call_operand.vmem [shape: f32[2,21,3], index: 22, kind: output, shape index: {0}]   ;;  %s7925_s23 = inlined_call_operand.hbm [shape: f32[2,1,7], index: 23, kind: output, shape index: {1}]  }
   0x1   :  { %7938 = sst [smem:[#allocation13_spill]] %s7902_s0  ;;  %v29_v0 = vstv %s7921_s19 }
   0x2   :  { %7939 = sst [smem:[#allocation14_spill]] %s7903_s1  ;;  %30 = vst [vmem:[#allocation3] sm:$0x1] %v29_v0 }
   0x3   :  { %7940 = sst [smem:[#allocation15_spill]] %s7904_s2 }
   0x4   :  { %7941 = sst [smem:[#allocation16_spill]] %s7905_s3 }
   0x5   :  { %7942 = sst [smem:[#allocation17_spill]] %s7906_s4 }
   0x6   :  { %7943 = sst [smem:[#allocation18_spill]] %s7907_s5 }
   0x7   :  { %7944 = sst [smem:[#allocation19_spill]] %s7908_s6 }
   0x8   :  { %7945 = sst [smem:[#allocation20_spill]] %s7909_s7 }
   0x9   :  { %7946 = sst [smem:[#allocation21_spill]] %s7925_s23 }
   0xa   :  { %31 = vsyncpa [#allocation5], 0 }
   0xb   :  { %33 = vsyncpa [#allocation5 + $0x1], 0  ;;  %s6448_s24 = smov 0   ;;  %s6450_s25 = smov 0  }
   0xc   :  { %s6452_s5 = smov 0   ;;  %s6454_s1 = smov 0  }
   0xd LB: > { %7947 = sst [smem:[#allocation7_spill]] %s6305_s24  ;;  %s6469_s19 = sadd.s32 4294967295, %s6317_s1   ;;  %s6317_s1 = sphi %s6454_s1, %s7967_s1   ;;  %s6313_s5 = sphi %s6452_s5, %s7969_s5   ;;  %s6309_s25 = sphi %s6450_s25, %s7971_s25   ;;  %s6305_s24 = sphi %s6448_s24, %s7970_s24  }
   0xe   : > { %7948 = sst [smem:[#allocation8_spill]] %s6313_s5  ;;  %s5016_s26 = sadd.s32 4294967294, %s6317_s1  }
   0xf   : > { %7949 = sst [smem:[#allocation9_spill]] %s6317_s1  ;;  %s6473_s2 = sadd.s32 1, %s6317_s1  }
  0x10   : > { %7950 = sst [smem:[#allocation10_spill]] %s6473_s2  ;;  %s544_s6 = sadd.s32 1, %s6313_s5 }
  0x11   : > { %s541_s27 = ssub.s32 %s6317_s1, %s6473_s2  ;;  %p554_p0 = scmp.ne.s32.totalorder %s6313_s5, %s6309_s25 }
  0x12   : > { %p542_p1 = scmp.eq.s32.totalorder %s541_s27, 0  ;;  %p555_p2 = scmp.eq.s32.totalorder %s6469_s19, 1 }
  0x13   : > { %p560_p3 = scmp.ne.s32.totalorder %s6309_s25, %s6305_s24  ;;  %p561_p4 = scmp.eq.s32.totalorder %s5016_s26, 1 }
  0x14   : > { %s6484_s7 = scalar_select %p542_p1, %s6313_s5, %s544_s6  }
  0x15   : > { %p6486_p5 = por %p555_p2, %p554_p0  ;;  %p6490_p6 = por %p561_p4, %p560_p3 }
  0x16   : > { %7951 = sst [smem:[#allocation11_spill]] %s6484_s7  ;;  %p5019_p7 = scmp.ge.s32.totalorder %s6317_s1, 1 }
  0x17   : > { %s7953_s29 = scalar_select %p6490_p6, 1, 0 }
  0x18   : > { %p654_p8 = scmp.lt.s32.totalorder %s6317_s1, 3 }
  0x19   : > { %7954 = sst [smem:[#allocation12_spill]] %s7953_s29 }
  0x1a   : > { %p655_p9 = pnand %p5019_p7, %p654_p8 }
  0x1b   : > { %s7955_s4 = sld [smem:[#allocation15_spill]] (!%p655_p9)  ;;  %p726_p10 = scmp.lt.s32.totalorder (!%p655_p9), %s6469_s19, 1 }
  0x1c   : > { %658 = sbr.rel (%p655_p9) target bundleno = 2721 (0xaa1), region = 108  ;;  %s7956_s0 = sld [smem:[#allocation13_spill]] (!%p655_p9) }
  0x1d   : > { %s7957_s23 = sld [smem:[#allocation17_spill]] (!%p655_p9)  ;;  %s6322_s5 = smov (!%p655_p9), 64  }
  0x1e   : > { %s7958_s7 = sld [smem:[#allocation14_spill]] (!%p655_p9)  ;;  %s6324_s27 = smov (!%p655_p9), [#allocation4]  }
  0x1f   : > { %s7962_s24 = sld [smem:[#allocation20_spill]] (!%p655_p9) }
  0x20   : > { %s7963_s29 = sld [smem:[#allocation21_spill]] (!%p655_p9) }
  0x21   : > { %v5991_v1 = vld [vmem:[%s7955_s4 + $0x78] sm:$0xff]   ;;  %v5995_v5 = vld [vmem:[%s7955_s4 + $0x70] sm:$0xff]   ;;  %v5999_v9 = vld [vmem:[%s7955_s4 + $0x68] sm:$0xff]   ;;  %s6564_s6 = scalar_select %p726_p10, %s6469_s19, 1  ;;  %v1006_v30 = vlaneseq  ;;  %v6319_v34 = vmov 1966171168  }
  0x22   : > { %v5992_v2 = vld [vmem:[%s7955_s4 + $0x38] sm:$0xff]   ;;  %5324 = vmatprep.subr.bf16.mxu0 %v5991_v1  ;;  %v5996_v6 = vld [vmem:[%s7955_s4 + $0x30] sm:$0xff]   ;;  %v6000_v10 = vld [vmem:[%s7955_s4 + $0x28] sm:$0xff]   ;;  %v1004_v35 = vunpack.c.l.s4 %v6319_v34  ;;  %vm2287_vm0 = vcmask 1042432   ;;  %vm2265_vm1 = vcmask 23552   ;;  %vm3599_vm2 = vcmask 523264  }
  0x23   : > { %v5993_v3 = vld [vmem:[%s7955_s4 + $0xf8] sm:$0xff]   ;;  %5325 = vmatpush3.bf16.msra.mxu0 %v5992_v2  ;;  %v5997_v7 = vld [vmem:[%s7955_s4 + $0xf0] sm:$0xff]   ;;  %v6001_v11 = vld [vmem:[%s7955_s4 + $0xe8] sm:$0xff]   ;;  %s5020_s26 = sshll.u32 %s6564_s6, 4  ;;  %v6600_v36 = vshrl.u32 %v1006_v30, 7  ;;  %vm3602_vm3 = vcmask 520192  }
  0x24   : > { %v5994_v4 = vld [vmem:[%s7955_s4 + $0xb8] sm:$0xff]   ;;  %5346 = vmatprep.subr.bf16.mxu1 %v5993_v3  ;;  %5326 = vmatprep.subr.bf16.mxu0 %v5995_v5  ;;  %v5998_v8 = vld [vmem:[%s7955_s4 + $0xb0] sm:$0xff]   ;;  %v6002_v12 = vld [vmem:[%s7955_s4 + $0xa8] sm:$0xff]   ;;  %s6591_s30 = scalar_lea.vmem %s7956_s0, %s5020_s26  ;;  %v1005_v40 = vunpack.c.0.s8 %v1004_v35  ;;  %s5943_s26 = smul.u32 56, %s6564_s6  ;;  %vm3610_vm4 = vcmask 516096   ;;  %vm6323_vm5 = vmmov 0  }
  0x25   : > { %5347 = vmatpush3.bf16.msra.mxu1 %v5994_v4  ;;  %v6003_v13 = vld [vmem:[%s7955_s4 + $0x60] sm:$0xff]   ;;  %v6007_v17 = vld [vmem:[%s7955_s4 + $0x58] sm:$0xff]   ;;  %v6011_v21 = vld [vmem:[%s7955_s4 + $0x50] sm:$0xff]   ;;  %s7959_s0 = sld [smem:[#allocation19_spill]]  ;;  %vm3909_vm6 = vcmask 572416   ;;  %vm3934_vm7 = vcmask 570368  }
  0x26   : > { %5348 = vmatprep.subr.bf16.mxu1 %v5997_v7  ;;  %v6004_v14 = vld [vmem:[%s7955_s4 + $0x20] sm:$0xff]   ;;  %v6008_v18 = vld [vmem:[%s7955_s4 + $0x18] sm:$0xff]   ;;  %v6012_v22 = vld [vmem:[%s7955_s4 + $0x10] sm:$0xff]   ;;  %v6612_v42 = vsub.s32 %v1005_v40, %v6600_v36  ;;  %s734_s1 = scalar_lea.vmem %s7958_s7, %s5943_s26  ;;  %s7961_s26 = sld [smem:[#allocation18_spill]]  ;;  %vm4657_vm8 = vcmask 20480   ;;  %vm4874_vm9 = vcmask 56320  }
  0x27   : > { %5327 = vmatpush3.bf16.msra.mxu0 %v5996_v6  ;;  %v6005_v15 = vld [vmem:[%s7955_s4 + $0xe0] sm:$0xff]   ;;  %v6009_v19 = vld [vmem:[%s7955_s4 + $0xd8] sm:$0xff]   ;;  %v6013_v23 = vld [vmem:[%s7955_s4 + $0xd0] sm:$0xff]   ;;  %vm4890_vm10 = vcmask 54272   ;;  %vm4901_vm11 = vcmask 49152  }
  0x28   : > { %5328 = vmatprep.subr.bf16.mxu0 %v5999_v9  ;;  %v6006_v16 = vld [vmem:[%s7955_s4 + $0xa0] sm:$0xff]   ;;  %v6010_v20 = vld [vmem:[%s7955_s4 + $0x98] sm:$0xff]   ;;  %v6014_v24 = vld [vmem:[%s7955_s4 + $0x90] sm:$0xff]  }
  0x29   : > { %5349 = vmatpush3.bf16.msra.mxu1 %v5998_v8  ;;  %v6015_v25 = vld [vmem:[%s7955_s4 + $0x48] sm:$0xff]   ;;  %v6019_v29 = vld [vmem:[%s7955_s4 + $0x40] sm:$0xff]   ;;  %v6025_v38 = vld [vmem:[%s7955_s4 + $0x178] sm:$0xff]  }
  0x2a   : > { %5350 = vmatprep.subr.bf16.mxu1 %v6001_v11  ;;  %v6016_v26 = vld [vmem:[%s7955_s4 + $0x8] sm:$0xff]   ;;  %v6020_v31 = vld [vmem:[%s7955_s4] sm:$0xff]   ;;  %v6027_v41 = vld [vmem:[%s7955_s4 + $0x1f8] sm:$0xff]  }
  0x2b   : > { %5329 = vmatpush3.bf16.msra.mxu0 %v6000_v10  ;;  %v6017_v27 = vld [vmem:[%s7955_s4 + $0xc8] sm:$0xff]   ;;  %v6021_v32 = vld [vmem:[%s7955_s4 + $0xc0] sm:$0xff]   ;;  %v6026_v49 = vld [vmem:[%s7955_s4 + $0x138] sm:$0xff]  }
  0x2c   : > { %5330 = vmatprep.subr.bf16.mxu0 %v6003_v13  ;;  %v6018_v28 = vld [vmem:[%s7955_s4 + $0x88] sm:$0xff]   ;;  %v741_v33 = vld [vmem:[%s6591_s30] sm:$0xff]  ;;  %v6029_v52 = vld [vmem:[%s7955_s4 + $0x170] sm:$0xff]  }
  0x2d   : > { %5351 = vmatpush3.bf16.msra.mxu1 %v6002_v12  ;;  %v6024_v37 = vld [vmem:[%s7955_s4 + $0x80] sm:$0xff]   ;;  %v1002_v39 = vcombine.high %v741_v33, %v741_v33  ;;  %v1009_v43 = vrot.slane %v741_v33, %v6612_v42  ;;  %v6028_v54 = vld [vmem:[%s7955_s4 + $0x1b8] sm:$0xff]   ;;  %v6031_v55 = vld [vmem:[%s7955_s4 + $0x1f0] sm:$0xff]  }
  0x2e   : > { %5352 = vmatprep.subr.bf16.mxu1 %v6005_v15  ;;  %v6030_v57 = vld [vmem:[%s7955_s4 + $0x130] sm:$0xff]   ;;  %v6033_v58 = vld [vmem:[%s7955_s4 + $0x168] sm:$0xff]   ;;  %v6037_v62 = vld [vmem:[%s7955_s4 + $0x160] sm:$0xff]  }
  0x2f   : > { %5331 = vmatpush3.bf16.msra.mxu0 %v6004_v14  ;;  %v6616_v44 = vrot.slane %v1002_v39, %v6612_v42  ;;  %v1017_v45 = vcombine.high %v1009_v43, %v1009_v43  ;;  %v1025_v46 = vrot.slane %v1009_v43, %v6612_v42  ;;  %v6032_v59 = vld [vmem:[%s7955_s4 + $0x1b0] sm:$0xff]   ;;  %v6035_v60 = vld [vmem:[%s7955_s4 + $0x1e8] sm:$0xff]   ;;  %v6039_v0 = vld [vmem:[%s7955_s4 + $0x1e0] sm:$0xff]  }
  0x30   : > { %5332 = vmatprep.subr.bf16.mxu0 %v6007_v17  ;;  %v6034_v61 = vld [vmem:[%s7955_s4 + $0x128] sm:$0xff]   ;;  %v6038_v1 = vld [vmem:[%s7955_s4 + $0x120] sm:$0xff]   ;;  %v6041_v2 = vld [vmem:[%s7955_s4 + $0x158] sm:$0xff]  }
  0x31   : > { %5353 = vmatpush3.bf16.msra.mxu1 %v6006_v16  ;;  %v1018_v47 = vcombine.high %v6616_v44, %v6616_v44  ;;  %v1039_v48 = vrot.slane %v1017_v45, %v6612_v42  ;;  %v1047_v51 = vcombine.high %v1025_v46, %v1025_v46  ;;  %v6036_v63 = vld [vmem:[%s7955_s4 + $0x1a8] sm:$0xff]   ;;  %v6040_v3 = vld [vmem:[%s7955_s4 + $0x1a0] sm:$0xff]   ;;  %v6043_v4 = vld [vmem:[%s7955_s4 + $0x1d8] sm:$0xff]  }
  0x32   : > { %5354 = vmatprep.subr.bf16.mxu1 %v6009_v19  ;;  %v6042_v5 = vld [vmem:[%s7955_s4 + $0x118] sm:$0xff]   ;;  %v6675_v6 = vld [vmem:[%s6591_s30 + $0x8] sm:$0xff]  ;;  %v6045_v7 = vld [vmem:[%s7955_s4 + $0x150] sm:$0xff]   ;;  %s6261_s30 = sshll.u32 %s6324_s27, 4  ;;  %s6262_s30 = int_to_ptr.vmem [resolvable:$false] %s6261_s30 }
  0x33   : > { %5333 = vmatpush3.bf16.msra.mxu0 %v6008_v18  ;;  %v1046_v50 = vrot.slane %v1018_v47, %v6612_v42  ;;  %1916 = vmatprep.mubr.bf16.mxu0 %v1039_v48  ;;  %v1049_v53 = vcombine.high %v1039_v48, %v1039_v48  ;;  %v6044_v8 = vld [vmem:[%s7955_s4 + $0x198] sm:$0xff]   ;;  %v6047_v9 = vld [vmem:[%s7955_s4 + $0x1d0] sm:$0xff]   ;;  %v6049_v11 = vld [vmem:[%s7955_s4 + $0x148] sm:$0xff]   ;;  %v6697_v13 = vrot.slane %v6675_v6, %v6612_v42 }
  0x34   : > { %5334 = vmatprep.subr.bf16.mxu0 %v6011_v21  ;;  %v6046_v10 = vld [vmem:[%s7955_s4 + $0x110] sm:$0xff]   ;;  %v6051_v14 = vld [vmem:[%s7955_s4 + $0x1c8] sm:$0xff]   ;;  %v6053_v16 = vld [vmem:[%s7955_s4 + $0x140] sm:$0xff]   ;;  %v1032_v21 = vrot.slane %v6616_v44, %v6612_v42  ;;  %v1051_v48 = vcombine.high %v6675_v6, %v6675_v6 }
  0x35   : > { %5355 = vmatpush3.bf16.msra.mxu1 %v6010_v20  ;;  %v1050_v56 = vcombine.high %v1046_v50, %v1046_v50  ;;  %1956 = vmatprep.mubr.bf16.mxu1 %v1049_v53  ;;  %v6048_v12 = vld [vmem:[%s7955_s4 + $0x190] sm:$0xff]   ;;  %v6050_v15 = vld [vmem:[%s7955_s4 + $0x108] sm:$0xff]   ;;  %v1066_v18 = vcombine.high %v6697_v13, %v6697_v13  ;;  %v6055_v19 = vld [vmem:[%s7955_s4 + $0x1c0] sm:$0xff]  }
  0x36   : > { %5356 = vmatprep.subr.bf16.mxu1 %v6013_v23  ;;  %v6052_v17 = vld [vmem:[%s7955_s4 + $0x188] sm:$0xff]   ;;  %v6054_v20 = vld [vmem:[%s7955_s4 + $0x100] sm:$0xff]   ;;  %v6064_v34 = vld [vmem:[%s7955_s4 + $0x2b0] sm:$0xff]  }
  0x37   : > { %5335 = vmatpush3.bf16.msra.mxu0 %v6012_v22  ;;  %v6057_v22 = vld [vmem:[%s7955_s4 + $0x278] sm:$0xff]   ;;  %v6056_v23 = vld [vmem:[%s7955_s4 + $0x180] sm:$0xff]   ;;  %v6065_v33 = vld [vmem:[%s7955_s4 + $0x268] sm:$0xff]  }
  0x38   : > { %5336 = vmatprep.subr.bf16.mxu0 %v6015_v25  ;;  %v6059_v25 = vld [vmem:[%s7955_s4 + $0x2f8] sm:$0xff]   ;;  %v6067_v35 = vld [vmem:[%s7955_s4 + $0x2e8] sm:$0xff]   ;;  %v6071_v40 = vld [vmem:[%s7955_s4 + $0x2e0] sm:$0xff]  }
  0x39   : > { %5357 = vmatpush3.bf16.msra.mxu1 %v6014_v24  ;;  %v1088_v24 = vrot.slane %v1066_v18, %v6612_v42  ;;  %v6068_v39 = vld [vmem:[%s7955_s4 + $0x2a8] sm:$0xff]   ;;  %v6073_v43 = vld [vmem:[%s7955_s4 + $0x258] sm:$0xff]   ;;  %v6072_v44 = vld [vmem:[%s7955_s4 + $0x2a0] sm:$0xff]  }
  0x3a   : > { %5358 = vmatprep.subr.bf16.mxu1 %v6017_v27  ;;  %v1048_v27 = vcombine.high %v1032_v21, %v1032_v21  ;;  %v6075_v45 = vld [vmem:[%s7955_s4 + $0x2d8] sm:$0xff]   ;;  %v6077_v47 = vld [vmem:[%s7955_s4 + $0x250] sm:$0xff]  }
  0x3b   : > { %5337 = vmatpush3.bf16.msra.mxu0 %v6016_v26  ;;  %v6058_v26 = vld [vmem:[%s7955_s4 + $0x238] sm:$0xff]   ;;  %v1098_v30 = vcombine.high %v1088_v24, %v1088_v24  ;;  %v6080_v53 = vld [vmem:[%s7955_s4 + $0x290] sm:$0xff]  }
  0x3c   : > { %5338 = vmatprep.subr.bf16.mxu0 %v6019_v29  ;;  %v6060_v29 = vld [vmem:[%s7955_s4 + $0x2b8] sm:$0xff]  }
  0x3d   : > { %5359 = vmatpush3.bf16.msra.mxu1 %v6018_v28  ;;  %v6061_v28 = vld [vmem:[%s7955_s4 + $0x270] sm:$0xff]   ;;  %v6092_v6 = vld [vmem:[%s7955_s4 + $0x3b8] sm:$0xff]  }
  0x3e   : > { %5360 = vmatprep.subr.bf16.mxu1 %v6021_v32  ;;  %v6062_v32 = vld [vmem:[%s7955_s4 + $0x230] sm:$0xff]   ;;  %v6105_v18 = vld [vmem:[%s7955_s4 + $0x358] sm:$0xff]  }
  0x3f   : > { %5339 = vmatpush3.bf16.msra.mxu0 %v6020_v31  ;;  %v6063_v31 = vld [vmem:[%s7955_s4 + $0x2f0] sm:$0xff]  }
  0x40   : > { %5368 = vmatprep.subr.bf16.mxu0 %v6025_v38  ;;  %v6069_v38 = vld [vmem:[%s7955_s4 + $0x260] sm:$0xff]  }
  0x41   : > { %5361 = vmatpush3.bf16.msra.mxu1 %v6024_v37  ;;  %v6066_v37 = vld [vmem:[%s7955_s4 + $0x228] sm:$0xff]  }
  0x42   : > { %5390 = vmatprep.subr.bf16.mxu1 %v6027_v41  ;;  %1917 = vmatmul.mubr.bf16.vlgmr.msra.gmra.mxu0 %v1025_v46  ;;  %v6070_v41 = vld [vmem:[%s7955_s4 + $0x220] sm:$0xff]   ;;  %v6074_v46 = vld [vmem:[%s7955_s4 + $0x218] sm:$0xff]  }
  0x43   : > { %5369 = vmatpush3.bf16.msra.mxu0 %v6026_v49  ;;  %1996 = vmatprep.mubr.bf16.mxu0 %v1046_v50  ;;  %v6076_v49 = vld [vmem:[%s7955_s4 + $0x298] sm:$0xff]   ;;  %v6079_v50 = vld [vmem:[%s7955_s4 + $0x2d0] sm:$0xff]  }
  0x44   : > { %1957 = vmatmul.mubr.bf16.vlgmr.msra.gmra.mxu1 %v1047_v51  ;;  %5370 = vmatprep.subr.bf16.mxu0 %v6029_v52  ;;  %v6078_v51 = vld [vmem:[%s7955_s4 + $0x210] sm:$0xff]   ;;  %v6081_v52 = vld [vmem:[%s7955_s4 + $0x248] sm:$0xff]  }
  0x45   : > { %5391 = vmatpush3.bf16.msra.mxu1 %v6028_v54  ;;  %2036 = vmatprep.mubr.bf16.mxu1 %v1050_v56  ;;  %v6803_v54 = vrot.slane %v1051_v48, %v6612_v42  ;;  %v6082_v56 = vld [vmem:[%s7955_s4 + $0x208] sm:$0xff]  }
  0x46   : > { %5392 = vmatprep.subr.bf16.mxu1 %v6031_v55  ;;  %v6083_v55 = vld [vmem:[%s7955_s4 + $0x2c8] sm:$0xff]  }
  0x47   : > { %5371 = vmatpush3.bf16.msra.mxu0 %v6030_v57  ;;  %v6085_v57 = vld [vmem:[%s7955_s4 + $0x240] sm:$0xff]   ;;  %v2205_v48 = vld [vmem:[%s734_s1 + $0x8] sm:$0xff] }
  0x48   : > { %5372 = vmatprep.subr.bf16.mxu0 %v6033_v58  ;;  %v6084_v58 = vld [vmem:[%s7955_s4 + $0x288] sm:$0xff]  }
  0x49   : > { %5393 = vmatpush3.bf16.msra.mxu1 %v6032_v59  ;;  %v1067_v59 = vcombine.high %v6803_v54, %v6803_v54 }
  0x4a   : > { %5394 = vmatprep.subr.bf16.mxu1 %v6035_v60  ;;  %v6087_v60 = vld [vmem:[%s7955_s4 + $0x2c0] sm:$0xff]  }
  0x4b   : > { %5373 = vmatpush3.bf16.msra.mxu0 %v6034_v61  ;;  %v6086_v61 = vld [vmem:[%s7955_s4 + $0x200] sm:$0xff]  }
  0x4c   : > { %5374 = vmatprep.subr.bf16.mxu0 %v6037_v62  ;;  %v1074_v62 = vrot.slane %v6697_v13, %v6612_v42  ;;  %v6098_v13 = vld [vmem:[%s7955_s4 + $0x328] sm:$0xff]  }
  0x4d   : > { %5395 = vmatpush3.bf16.msra.mxu1 %v6036_v63  ;;  %v6089_v63 = vld [vmem:[%s7955_s4 + $0x378] sm:$0xff]  }
  0x4e   : > { %5396 = vmatprep.subr.bf16.mxu1 %v6039_v0  ;;  %v6088_v0 = vld [vmem:[%s7955_s4 + $0x280] sm:$0xff]  }
  0x4f   : > { %5375 = vmatpush3.bf16.msra.mxu0 %v6038_v1  ;;  %v1095_v1 = vrot.slane %v1067_v59, %v6612_v42  ;;  %v6130_v59 = vld [vmem:[%s7959_s0 + $0x28] sm:$0xff]  }
  0x50   : > { %5376 = vmatprep.subr.bf16.mxu0 %v6041_v2  ;;  %v6091_v2 = vld [vmem:[%s7955_s4 + $0x3f8] sm:$0xff]  }
  0x51   : > { %5397 = vmatpush3.bf16.msra.mxu1 %v6040_v3  ;;  %v6090_v3 = vld [vmem:[%s7955_s4 + $0x338] sm:$0xff]  }
  0x52   : > { %5398 = vmatprep.subr.bf16.mxu1 %v6043_v4  ;;  %v1096_v4 = vcombine.high %v1074_v62, %v1074_v62 }
  0x53   : > { %5377 = vmatpush3.bf16.msra.mxu0 %v6042_v5  ;;  %v6093_v5 = vld [vmem:[%s7955_s4 + $0x370] sm:$0xff]  }
  0x54   : > { %5378 = vmatprep.subr.bf16.mxu0 %v6045_v7  ;;  %v1099_v7 = vcombine.high %v1095_v1, %v1095_v1 }
  0x55   : > { %5399 = vmatpush3.bf16.msra.mxu1 %v6044_v8  ;;  %v6095_v8 = vld [vmem:[%s7955_s4 + $0x3f0] sm:$0xff]  }
  0x56   : > { %5400 = vmatprep.subr.bf16.mxu1 %v6047_v9  ;;  %v6094_v9 = vld [vmem:[%s7955_s4 + $0x330] sm:$0xff]  }
  0x57   : > { %5379 = vmatpush3.bf16.msra.mxu0 %v6046_v10  ;;  %v6097_v10 = vld [vmem:[%s7955_s4 + $0x368] sm:$0xff]  }
  0x58   : > { %5380 = vmatprep.subr.bf16.mxu0 %v6049_v11  ;;  %v6096_v11 = vld [vmem:[%s7955_s4 + $0x3b0] sm:$0xff]  }
  0x59   : > { %5401 = vmatpush3.bf16.msra.mxu1 %v6048_v12  ;;  %v6099_v12 = vld [vmem:[%s7955_s4 + $0x3e8] sm:$0xff]  }
  0x5a   : > { %5402 = vmatprep.subr.bf16.mxu1 %v6051_v14  ;;  %v6101_v14 = vld [vmem:[%s7955_s4 + $0x360] sm:$0xff]  }
  0x5b   : > { %5381 = vmatpush3.bf16.msra.mxu0 %v6050_v15  ;;  %v6100_v15 = vld [vmem:[%s7955_s4 + $0x3a8] sm:$0xff]  }
  0x5c   : > { %5382 = vmatprep.subr.bf16.mxu0 %v6053_v16  ;;  %v6103_v16 = vld [vmem:[%s7955_s4 + $0x3e0] sm:$0xff]  }
  0x5d   : > { %5403 = vmatpush3.bf16.msra.mxu1 %v6052_v17  ;;  %v6102_v17 = vld [vmem:[%s7955_s4 + $0x320] sm:$0xff]  }
  0x5e   : > { %5404 = vmatprep.subr.bf16.mxu1 %v6055_v19  ;;  %v6104_v19 = vld [vmem:[%s7955_s4 + $0x3a0] sm:$0xff]  }
  0x5f   : > { %5383 = vmatpush3.bf16.msra.mxu0 %v6054_v20  ;;  %v6107_v20 = vld [vmem:[%s7955_s4 + $0x3d8] sm:$0xff]  }
  0x60   : > { %5412 = vmatprep.subr.bf16.mxu0 %v6057_v22  ;;  %v6109_v22 = vld [vmem:[%s7955_s4 + $0x350] sm:$0xff]  }
  0x61   : > { %5405 = vmatpush3.bf16.msra.mxu1 %v6056_v23  ;;  %v6108_v23 = vld [vmem:[%s7955_s4 + $0x398] sm:$0xff]  }
  0x62   : > { %1997 = vmatmul.mubr.bf16.vlgmr.msra.gmra.mxu0 %v1032_v21  ;;  %5434 = vmatprep.subr.bf16.mxu1 %v6059_v25  ;;  %v6106_v21 = vld [vmem:[%s7955_s4 + $0x318] sm:$0xff]   ;;  %v6110_v25 = vld [vmem:[%s7955_s4 + $0x310] sm:$0xff]  }
  0x63   : > { %5413 = vmatpush3.bf16.msra.mxu0 %v6058_v26  ;;  %2076 = vmatprep.mubr.bf16.mxu0 %v1088_v24  ;;  %v6111_v24 = vld [vmem:[%s7955_s4 + $0x3d0] sm:$0xff]   ;;  %v6113_v26 = vld [vmem:[%s7955_s4 + $0x348] sm:$0xff]  }
  0x64   : > { %2037 = vmatmul.mubr.bf16.vlgmr.msra.gmra.mxu1 %v1048_v27  ;;  %5414 = vmatprep.subr.bf16.mxu0 %v6061_v28  ;;  %v6112_v27 = vld [vmem:[%s7955_s4 + $0x390] sm:$0xff]   ;;  %v6115_v28 = vld [vmem:[%s7955_s4 + $0x3c8] sm:$0xff]  }
  0x65   : > { %5435 = vmatpush3.bf16.msra.mxu1 %v6060_v29  ;;  %2116 = vmatprep.mubr.bf16.mxu1 %v1098_v30  ;;  %v6114_v29 = vld [vmem:[%s7955_s4 + $0x308] sm:$0xff]  }
  0x66   : > { %5436 = vmatprep.subr.bf16.mxu1 %v6063_v31  ;;  %v6116_v30 = vld [vmem:[%s7955_s4 + $0x388] sm:$0xff]   ;;  %v6117_v31 = vld [vmem:[%s7955_s4 + $0x340] sm:$0xff]  }
  0x67   : > { %5415 = vmatpush3.bf16.msra.mxu0 %v6062_v32  ;;  %v6118_v32 = vld [vmem:[%s7955_s4 + $0x300] sm:$0xff]  }
  0x68   : > { %5416 = vmatprep.subr.bf16.mxu0 %v6065_v33  ;;  %v6119_v33 = vld [vmem:[%s7955_s4 + $0x3c0] sm:$0xff]  }
  0x69   : > { %5437 = vmatpush3.bf16.msra.mxu1 %v6064_v34  ;;  %v2211_v34 = vld [vmem:[%s7957_s23] sm:$0x77] }
  0x6a   : > { %5438 = vmatprep.subr.bf16.mxu1 %v6067_v35  ;;  %v6120_v35 = vld [vmem:[%s7955_s4 + $0x380] sm:$0xff]   ;;  %s7960_s4 = sld [smem:[#allocation16_spill]] }
  0x6b   : > { %5417 = vmatpush3.bf16.msra.mxu0 %v6066_v37  ;;  %v2212_v37 = vld [vmem:[%s7957_s23 + $0x8] sm:$0x77] }
  0x6c   : > { %5418 = vmatprep.subr.bf16.mxu0 %v6069_v38  ;;  %v1081_v38 = vrot.slane %v6803_v54, %v6612_v42  ;;  %v6125_v54 = vld [vmem:[%s7959_s0 + $0x78] sm:$0xff]  }
  0x6d   : > { %5439 = vmatpush3.bf16.msra.mxu1 %v6068_v39  ;;  %v2261_v39 = vcombine.high %v2211_v34, %v2211_v34 }
  0x6e   : > { %5440 = vmatprep.subr.bf16.mxu1 %v6071_v40  ;;  %v2214_v40 = vld [vmem:[%s7957_s23 + $0x18] sm:$0x77] }
  0x6f   : > { %5419 = vmatpush3.bf16.msra.mxu0 %v6070_v41  ;;  %v1097_v41 = vcombine.high %v1081_v38, %v1081_v38  ;;  %v2264_v42 = vcombine.high %v2214_v40, %v2214_v40 }
  0x70   : > { %5420 = vmatprep.subr.bf16.mxu0 %v6073_v43  ;;  %v2262_v43 = vcombine.high %v2212_v37, %v2212_v37 }
  0x71   : > { %5441 = vmatpush3.bf16.msra.mxu1 %v6072_v44  ;;  %v6320_v44 = vmov 0.0  }
  0x72   : > { %5442 = vmatprep.subr.bf16.mxu1 %v6075_v45  ;;  %v2213_v45 = vld [vmem:[%s7957_s23 + $0x10] sm:$0x77] }
  0x73   : > { %5421 = vmatpush3.bf16.msra.mxu0 %v6074_v46  ;;  %v2204_v46 = vld [vmem:[%s734_s1] sm:$0xff] }
  0x74   : > { %5422 = vmatprep.subr.bf16.mxu0 %v6077_v47  ;;  %v2263_v47 = vcombine.high %v2213_v45, %v2213_v45 }
  0x75   : > { %5443 = vmatpush3.bf16.msra.mxu1 %v6076_v49  ;;  %v6953_v49 = vld [vmem:[%s734_s1 + $0x20] sm:$0xff] }
  0x76   : > { %5444 = vmatprep.subr.bf16.mxu1 %v6079_v50  ;;  %v2206_v50 = vld [vmem:[%s734_s1 + $0x10] sm:$0xff] }
  0x77   : > { %5423 = vmatpush3.bf16.msra.mxu0 %v6078_v51  ;;  %v6961_v51 = vld [vmem:[%s734_s1 + $0x28] sm:$0xff] }
  0x78   : > { %5424 = vmatprep.subr.bf16.mxu0 %v6081_v52  ;;  %v2207_v52 = vld [vmem:[%s734_s1 + $0x18] sm:$0xff] }
  0x79   : > { %5445 = vmatpush3.bf16.msra.mxu1 %v6080_v53  ;;  %v6969_v53 = vld [vmem:[%s734_s1 + $0x30] sm:$0x1] }
  0x7a   : > { %5446 = vmatprep.subr.bf16.mxu1 %v6083_v55  ;;  %v6126_v55 = vld [vmem:[%s7959_s0 + $0x38] sm:$0xff]  }
  0x7b   : > { %5425 = vmatpush3.bf16.msra.mxu0 %v6082_v56  ;;  %v6127_v56 = vld [vmem:[%s7959_s0 + $0x70] sm:$0xff]  }
  0x7c   : > { %5426 = vmatprep.subr.bf16.mxu0 %v6085_v57  ;;  %v6128_v57 = vld [vmem:[%s7959_s0 + $0x30] sm:$0xff]  }
  0x7d   : > { %5447 = vmatpush3.bf16.msra.mxu1 %v6084_v58  ;;  %v6129_v58 = vld [vmem:[%s7959_s0 + $0x68] sm:$0xff]  }
  0x7e   : > { %5448 = vmatprep.subr.bf16.mxu1 %v6087_v60  ;;  %v6131_v60 = vld [vmem:[%s7959_s0 + $0x60] sm:$0xff]  }
  0x7f   : > { %5427 = vmatpush3.bf16.msra.mxu0 %v6086_v61  ;;  %v6132_v61 = vld [vmem:[%s7959_s0 + $0x20] sm:$0xff]  }
  0x80   : > { %5456 = vmatprep.subr.bf16.mxu0 %v6089_v63  ;;  %v6134_v63 = vld [vmem:[%s7959_s0 + $0x18] sm:$0xff]  }
  0x81   : > { %5449 = vmatpush3.bf16.msra.mxu1 %v6088_v0  ;;  %v6135_v0 = vld [vmem:[%s7959_s0 + $0x50] sm:$0xff]  }
  0x82   : > { %2077 = vmatmul.mubr.bf16.vlgmr.msra.gmra.mxu0 %v1074_v62  ;;  %5478 = vmatprep.subr.bf16.mxu1 %v6091_v2  ;;  %v6133_v62 = vld [vmem:[%s7959_s0 + $0x58] sm:$0xff]   ;;  %v6137_v2 = vld [vmem:[%s7959_s0 + $0x48] sm:$0xff]  }
  0x83   : > { %5457 = vmatpush3.bf16.msra.mxu0 %v6090_v3  ;;  %2156 = vmatprep.mubr.bf16.mxu0 %v1095_v1  ;;  %v6136_v1 = vld [vmem:[%s7959_s0 + $0x10] sm:$0xff]   ;;  %v6138_v3 = vld [vmem:[%s7959_s0 + $0x8] sm:$0xff]  }
  0x84   : > { %2117 = vmatmul.mubr.bf16.vlgmr.msra.gmra.mxu1 %v1096_v4  ;;  %5458 = vmatprep.subr.bf16.mxu0 %v6093_v5  ;;  %v6139_v4 = vld [vmem:[%s7959_s0 + $0x40] sm:$0xff]   ;;  %v6140_v5 = vld [vmem:[%s7959_s0 + $0xf8] sm:$0xff]  }
  0x85   : > { %5479 = vmatpush3.bf16.msra.mxu1 %v6092_v6  ;;  %2196 = vmatprep.mubr.bf16.mxu1 %v1099_v7  ;;  %v6141_v6 = vld [vmem:[%s7959_s0] sm:$0xff]   ;;  %v6142_v7 = vld [vmem:[%s7959_s0 + $0xb8] sm:$0xff]  }
  0x86   : > { %5480 = vmatprep.subr.bf16.mxu1 %v6095_v8  ;;  %v6143_v8 = vld [vmem:[%s7959_s0 + $0xf0] sm:$0xff]  }
  0x87   : > { %5459 = vmatpush3.bf16.msra.mxu0 %v6094_v9  ;;  %v6144_v9 = vld [vmem:[%s7959_s0 + $0xb0] sm:$0xff]  }
  0x88   : > { %5460 = vmatprep.subr.bf16.mxu0 %v6097_v10  ;;  %v6145_v10 = vld [vmem:[%s7959_s0 + $0xe8] sm:$0xff]  }
  0x89   : > { %5481 = vmatpush3.bf16.msra.mxu1 %v6096_v11  ;;  %v6146_v11 = vld [vmem:[%s7959_s0 + $0xa8] sm:$0xff]  }
  0x8a   : > { %5482 = vmatprep.subr.bf16.mxu1 %v6099_v12  ;;  %v6147_v12 = vld [vmem:[%s7959_s0 + $0xe0] sm:$0xff]  }
  0x8b   : > { %5461 = vmatpush3.bf16.msra.mxu0 %v6098_v13  ;;  %v6148_v13 = vld [vmem:[%s7959_s0 + $0xa0] sm:$0xff]  }
  0x8c   : > { %5462 = vmatprep.subr.bf16.mxu0 %v6101_v14 }
  0x8d   : > { %5483 = vmatpush3.bf16.msra.mxu1 %v6100_v15  ;;  %v6149_v15 = vld [vmem:[%s7959_s0 + $0xd8] sm:$0xff]  }
  0x8e   : > { %5484 = vmatprep.subr.bf16.mxu1 %v6103_v16  ;;  %v6150_v16 = vld [vmem:[%s7959_s0 + $0x178] sm:$0xff]  }
  0x8f   : > { %5463 = vmatpush3.bf16.msra.mxu0 %v6102_v17  ;;  %v6151_v17 = vld [vmem:[%s7959_s0 + $0x98] sm:$0xff]  }
  0x90   : > { %5464 = vmatprep.subr.bf16.mxu0 %v6105_v18  ;;  %v999_v18 = vld [vmem:[%s7960_s4] sm:$0x1] }
  0x91   : > { %5485 = vmatpush3.bf16.msra.mxu1 %v6104_v19 }
  0x92   : > { %5486 = vmatprep.subr.bf16.mxu1 %v6107_v20 }
  0x93   : > { %5465 = vmatpush3.bf16.msra.mxu0 %v6106_v21 }
  0x94   : > { %5466 = vmatprep.subr.bf16.mxu0 %v6109_v22 }
  0x95   : > { %5487 = vmatpush3.bf16.msra.mxu1 %v6108_v23 }
  0x96   : > { %5488 = vmatprep.subr.bf16.mxu1 %v6111_v24  ;;  %v6153_v24 = vld [vmem:[%s7959_s0 + $0xd0] sm:$0xff]  }
  0x97   : > { %5467 = vmatpush3.bf16.msra.mxu0 %v6110_v25 }
  0x98   : > { %5468 = vmatprep.subr.bf16.mxu0 %v6113_v26 }
  0x99   : > { %5489 = vmatpush3.bf16.msra.mxu1 %v6112_v27  ;;  %v6155_v27 = vld [vmem:[%s7959_s0 + $0x90] sm:$0xff]  }
  0x9a   : > { %5490 = vmatprep.subr.bf16.mxu1 %v6115_v28 }
  0x9b   : > { %5469 = vmatpush3.bf16.msra.mxu0 %v6114_v29 }
  0x9c   : > { %5470 = vmatprep.subr.bf16.mxu0 %v6117_v31 }
  0x9d   : > { %5491 = vmatpush3.bf16.msra.mxu1 %v6116_v30 }
  0x9e   : > { %5492 = vmatprep.subr.bf16.mxu1 %v6119_v33  ;;  %v6159_v33 = vld [vmem:[%s7959_s0 + $0x88] sm:$0xff]  }
  0x9f   : > { %5471 = vmatpush3.bf16.msra.mxu0 %v6118_v32  ;;  %v6157_v32 = vld [vmem:[%s7959_s0 + $0xc8] sm:$0xff]  }
  0xa0   : > { %5151 = vmatprep.subr.msk.mxu0 %vm2287_vm0, %v2261_v39 }
  0xa1   : > { %5493 = vmatpush3.bf16.msra.mxu1 %v6120_v35  ;;  %v6163_v35 = vld [vmem:[%s7959_s0 + $0x80] sm:$0xff]  }
  0xa2   : > { %2157 = vmatmul.mubr.bf16.vlgmr.msra.gmra.mxu0 %v1081_v38  ;;  %5941 = vmatprep.subr.msk.mxu1 %vm2287_vm0, %v2262_v43 }
  0xa3   : > { %5152 = vmatpush1.msk.msra.mxu0 %vm2287_vm0, %v2211_v34  ;;  %2368 = vmatprep.mubr.f32.mxu0 %v6320_v44  ;;  %v6161_v34 = vld [vmem:[%s7959_s0 + $0xc0] sm:$0xff]  }
  0xa4   : > { %2197 = vmatmul.mubr.bf16.vlgmr.msra.gmra.mxu1 %v1097_v41  ;;  %5160 = vmatprep.subr.msk.mxu0 %vm2287_vm0, %v2262_v43 }
  0xa5   : > { %5942 = vmatpush1.msk.msra.mxu1 %vm2287_vm0, %v2212_v37  ;;  %2499 = vmatprep.mubr.f32.mxu1 %v6320_v44 }
  0xa6   : > { %5178 = vmatprep.subr.msk.mxu1 %vm2287_vm0, %v2264_v42 }
  0xaa   : > { %5153 = vmatmul.mubr.msk.f32.vlgmr.msra.gmra.mxu0 %vm2265_vm1, %v2204_v46 }
  0xab   : > { %5161 = vmatpush1.msk.msra.mxu0 %vm2287_vm0, %v2212_v37  ;;  %2374 = vmatprep.mubr.f32.mxu0 %v6320_v44  ;;  %v6166_v37 = vld [vmem:[%s7959_s0 + $0x1f8] sm:$0xff]  }
  0xac   : > { %5166 = vmatmul.mubr.msk.f32.vlgmr.msra.gmra.mxu1 %vm2265_vm1, %v6953_v49  ;;  %5169 = vmatprep.subr.msk.mxu0 %vm2287_vm0, %v2263_v47  ;;  %v6321_v47 = vmov 0  }
  0xad   : > { %2505 = vmatprep.mubr.f32.mxu1 %v6320_v44  ;;  %5179 = vmatpush1.msk.msra.mxu1 %vm2287_vm0, %v2214_v40 }
  0xae   : > { %5154 = vmatmul.mubr.msk.f32.gmra.mxu0 %vm2265_vm1, %v2205_v48  ;;  %5540 = vmatprep.subr.bf16.mxu1 %v6140_v5 }
  0xaf   : > { %2380 = vmatprep.mubr.f32.mxu0 %v6320_v44  ;;  %5989 = vset.pattern.permute.xlu0 %v6321_v47 }
  0xb0   : > { %5167 = vmatmul.mubr.msk.f32.gmra.mxu1 %vm2265_vm1, %v6961_v51  ;;  %5990 = vset.pattern.permute.xlu1 %v6321_v47 }
  0xb1   : > { %2511 = vmatprep.mubr.f32.mxu1 %v6320_v44 }
  0xb2   : > { %5155 = vmatmul.mubr.msk.f32.gmra.mxu0 %vm2265_vm1, %v2206_v50 }
  0xb3   : > { %2386 = vmatprep.mubr.f32.mxu0 %v6320_v44 }
  0xb4   : > { %5168 = vmatmul.mubr.msk.f32.gmra.mxu1 %vm2265_vm1, %v6969_v53 }
  0xb5   : > { %2689 = vmatprep.mubr.f32.mxu1 %v6320_v44 }
  0xb6   : > { %5156 = vmatmul.mubr.msk.f32.gmra.mxu0 %vm2265_vm1, %v2207_v52 }
  0xb7   : > { %2392 = vmatprep.mubr.f32.mxu0 %v6320_v44 }
  0xb8   : > { %5180 = vmatmul.mubr.msk.f32.vlgmr.msra.gmra.mxu1 %vm2265_vm1, %v2204_v46 }
  0xb9   : > { %2695 = vmatprep.mubr.f32.mxu1 %v6320_v44  ;;  %5541 = vmatpush3.bf16.msra.mxu1 %v6142_v7 }
  0xba   : > { %5157 = vmatmul.mubr.msk.f32.gmra.mxu0 %vm2265_vm1, %v6953_v49  ;;  %5542 = vmatprep.subr.bf16.mxu1 %v6143_v8  ;;  %v2223_v8 = vsub.s32 1, %v6600_v36 }
  0xbb   : > { %2398 = vmatprep.mubr.f32.mxu0 %v6320_v44 }
  0xbc   : > { %5181 = vmatmul.mubr.msk.f32.gmra.mxu1 %vm2265_vm1, %v2205_v48 }
  0xbd   : > { %2701 = vmatprep.mubr.f32.mxu1 %v6320_v44  ;;  %5543 = vmatpush3.bf16.msra.mxu1 %v6144_v9  ;;  %v7138_v9 = vsub.s32 0, %v6600_v36 }
  0xbe   : > { %5158 = vmatmul.mubr.msk.f32.gmra.mxu0 %vm2265_vm1, %v6961_v51  ;;  %5544 = vmatprep.subr.bf16.mxu1 %v6145_v10 }
  0xbf   : > { %2404 = vmatprep.mubr.f32.mxu0 %v6320_v44 }
  0xc0   : > { %5182 = vmatmul.mubr.msk.f32.gmra.mxu1 %vm2265_vm1, %v2206_v50 }
  0xc1   : > { %2707 = vmatprep.mubr.f32.mxu1 %v6320_v44  ;;  %5545 = vmatpush3.bf16.msra.mxu1 %v6146_v11 }
  0xc2   : > { %5159 = vmatmul.mubr.msk.f32.gmra.mxu0 %vm2265_vm1, %v6969_v53  ;;  %5546 = vmatprep.subr.bf16.mxu1 %v6147_v12 }
  0xc3   : > { %2475 = vmatprep.mubr.f32.mxu0 %v6320_v44 }
  0xc4   : > { %5183 = vmatmul.mubr.msk.f32.gmra.mxu1 %vm2265_vm1, %v2207_v52 }
  0xc5   : > { %2713 = vmatprep.mubr.f32.mxu1 %v6320_v44  ;;  %5547 = vmatpush3.bf16.msra.mxu1 %v6148_v13  ;;  %v7143_v13 = vld [vmem:[%s7961_s26] sm:$0xff] }
  0xc6   : > { %5162 = vmatmul.mubr.msk.f32.vlgmr.msra.gmra.mxu0 %vm2265_vm1, %v2204_v46  ;;  %5548 = vmatprep.subr.bf16.mxu1 %v6149_v15 }
  0xc7   : > { %2481 = vmatprep.mubr.f32.mxu0 %v6320_v44  ;;  %5170 = vmatpush1.msk.msra.mxu0 %vm2287_vm0, %v2213_v45 }
  0xc8   : > { %5184 = vmatmul.mubr.msk.f32.gmra.mxu1 %vm2265_vm1, %v6953_v49  ;;  %5500 = vmatprep.subr.bf16.mxu0 %v6125_v54 }
  0xc9   : > { %2719 = vmatprep.mubr.f32.mxu1 %v6320_v44  ;;  %5549 = vmatpush3.bf16.msra.mxu1 %v6151_v17 }
  0xca   : > { %5163 = vmatmul.mubr.msk.f32.gmra.mxu0 %vm2265_vm1, %v2205_v48  ;;  %5550 = vmatprep.subr.bf16.mxu1 %v6153_v24 }
  0xcb   : > { %2487 = vmatprep.mubr.f32.mxu0 %v6320_v44 }
  0xcc   : > { %5185 = vmatmul.mubr.msk.f32.gmra.mxu1 %vm2265_vm1, %v6961_v51 }
  0xcd   : > { %2725 = vmatprep.mubr.f32.mxu1 %v6320_v44  ;;  %5551 = vmatpush3.bf16.msra.mxu1 %v6155_v27 }
  0xce   : > { %5164 = vmatmul.mubr.msk.f32.gmra.mxu0 %vm2265_vm1, %v2206_v50  ;;  %5552 = vmatprep.subr.bf16.mxu1 %v6157_v32 }
  0xcf   : > { %2493 = vmatprep.mubr.f32.mxu0 %v6320_v44 }
  0xd0   : > { %5186 = vmatmul.mubr.msk.f32.gmra.mxu1 %vm2265_vm1, %v6969_v53 }
  0xd1   : > { %5553 = vmatpush3.bf16.msra.mxu1 %v6159_v33 }
  0xd2   : > { %5165 = vmatmul.mubr.msk.f32.gmra.mxu0 %vm2265_vm1, %v2207_v52  ;;  %5554 = vmatprep.subr.bf16.mxu1 %v6161_v34 }
  0xd3   : > { %2582 = vmatprep.mubr.f32.mxu0 %v6320_v44 }
  0xd5   : > { %5555 = vmatpush3.bf16.msra.mxu1 %v6163_v35 }
  0xd6   : > { %5171 = vmatmul.mubr.msk.f32.vlgmr.msra.gmra.mxu0 %vm2265_vm1, %v2204_v46  ;;  %5620 = vmatprep.subr.bf16.mxu1 %v6166_v37  ;;  %v6152_v37 = vld [vmem:[%s7959_s0 + $0x138] sm:$0xff]  }
  0xd7   : > { %2588 = vmatprep.mubr.f32.mxu0 %v6320_v44  ;;  %5501 = vmatpush3.bf16.msra.mxu0 %v6126_v55 }
  0xd8   : > { %5502 = vmatprep.subr.bf16.mxu0 %v6127_v56 }
  0xda   : > { %5172 = vmatmul.mubr.msk.f32.gmra.mxu0 %vm2265_vm1, %v2205_v48 }
  0xdb   : > { %2594 = vmatprep.mubr.f32.mxu0 %v6320_v44  ;;  %5503 = vmatpush3.bf16.msra.mxu0 %v6128_v57 }
  0xdc   : > { %5504 = vmatprep.subr.bf16.mxu0 %v6129_v58 }
  0xde   : > { %5173 = vmatmul.mubr.msk.f32.gmra.mxu0 %vm2265_vm1, %v2206_v50 }
  0xdf   : > { %2600 = vmatprep.mubr.f32.mxu0 %v6320_v44  ;;  %5505 = vmatpush3.bf16.msra.mxu0 %v6130_v59 }
  0xe0   : > { %5506 = vmatprep.subr.bf16.mxu0 %v6131_v60 }
  0xe2   : > { %5174 = vmatmul.mubr.msk.f32.gmra.mxu0 %vm2265_vm1, %v2207_v52 }
  0xe3   : > { %2606 = vmatprep.mubr.f32.mxu0 %v6320_v44  ;;  %5507 = vmatpush3.bf16.msra.mxu0 %v6132_v61 }
  0xe4   : > { %5508 = vmatprep.subr.bf16.mxu0 %v6133_v62 }
  0xe6   : > { %5175 = vmatmul.mubr.msk.f32.gmra.mxu0 %vm2265_vm1, %v6953_v49 }
  0xe7   : > { %2612 = vmatprep.mubr.f32.mxu0 %v6320_v44  ;;  %5509 = vmatpush3.bf16.msra.mxu0 %v6134_v63 }
  0xe8   : > { %5510 = vmatprep.subr.bf16.mxu0 %v6135_v0 }
  0xea   : > { %5176 = vmatmul.mubr.msk.f32.gmra.mxu0 %vm2265_vm1, %v6961_v51 }
  0xeb   : > { %2618 = vmatprep.mubr.f32.mxu0 %v6320_v44  ;;  %5511 = vmatpush3.bf16.msra.mxu0 %v6136_v1 }
  0xec   : > { %5512 = vmatprep.subr.bf16.mxu0 %v6137_v2 }
  0xee   : > { %5177 = vmatmul.mubr.msk.f32.gmra.mxu0 %vm2265_vm1, %v6969_v53 }
  0xef   : > { %5513 = vmatpush3.bf16.msra.mxu0 %v6138_v3 }
  0xf0   : > { %5514 = vmatprep.subr.bf16.mxu0 %v6139_v4 }
  0xf3   : > { %5515 = vmatpush3.bf16.msra.mxu0 %v6141_v6 }
  0xf4   : > { %5580 = vmatprep.subr.bf16.mxu0 %v6150_v16  ;;  %v7148_v16 = vrot.slane %v7143_v13, %v2223_v8 }
 0x102   : > { %v5340_v14 = vpop.f32.mrf.mxu0 }
 0x104   : > { %v5341_v19 = vpop.f32.mrf.mxu0  ;;  %v5362_v20 = vpop.f32.mrf.mxu1 }
 0x105   : > { %v5342_v21 = vadd.f32 %v5341_v19, %v5340_v14 }
 0x106   : > { %v5343_v22 = vpop.f32.mrf.mxu0  ;;  %v5363_v23 = vpop.f32.mrf.mxu1 }
 0x107   : > { %v1919_v25 = vadd.f32 %v5342_v21, %v999_v18  ;;  %v5364_v26 = vadd.f32 %v5363_v23, %v5362_v20  ;;  %v7153_v18 = vrot.slane %v7143_v13, %v7138_v9 }
 0x108   : > { %v5344_v28 = vpop.f32.mrf.mxu0  ;;  %v5365_v29 = vpop.f32.mrf.mxu1 }
 0x109   : > { %v1959_v30 = vadd.f32 %v5364_v26, %v1919_v25 }
 0x10a   : > { %v5366_v31 = vpop.f32.mrf.mxu1 }
 0x122   : > { %v5384_v38 = vpop.f32.mrf.mxu0 }
 0x124   : > { %v5385_v39 = vpop.f32.mrf.mxu0  ;;  %v5406_v40 = vpop.f32.mrf.mxu1 }
 0x125   : > { %v5386_v56 = vadd.f32 %v5385_v39, %v5384_v38 }
 0x126   : > { %v5387_v41 = vpop.f32.mrf.mxu0  ;;  %v5407_v43 = vpop.f32.mrf.mxu1 }
 0x127   : > { %v1999_v57 = vadd.f32 %v5386_v56, %v1959_v30  ;;  %v5408_v58 = vadd.f32 %v5407_v43, %v5406_v40  ;;  %v6154_v40 = vld [vmem:[%s7959_s0 + $0x170] sm:$0xff]  }
 0x128   : > { %v5388_v42 = vpop.f32.mrf.mxu0  ;;  %v5409_v45 = vpop.f32.mrf.mxu1 }
 0x129   : > { %v2039_v60 = vadd.f32 %v5408_v58, %v1999_v57 }
 0x12a   : > { %v5410_v46 = vpop.f32.mrf.mxu1 }
 0x142   : > { %v5428_v48 = vpop.f32.mrf.mxu0 }
 0x144   : > { %v5429_v49 = vpop.f32.mrf.mxu0  ;;  %v5450_v50 = vpop.f32.mrf.mxu1 }
 0x145   : > { %v5430_v59 = vadd.f32 %v5429_v49, %v5428_v48  ;;  %v6156_v49 = vld [vmem:[%s7959_s0 + $0x130] sm:$0xff]  }
 0x146   : > { %v5431_v51 = vpop.f32.mrf.mxu0  ;;  %v5451_v52 = vpop.f32.mrf.mxu1 }
 0x147   : > { %v2079_v61 = vadd.f32 %v5430_v59, %v2039_v60  ;;  %v5452_v62 = vadd.f32 %v5451_v52, %v5450_v50  ;;  %v6158_v52 = vld [vmem:[%s7959_s0 + $0x168] sm:$0xff]  }
 0x148   : > { %v5432_v53 = vpop.f32.mrf.mxu0  ;;  %v5453_v54 = vpop.f32.mrf.mxu1  ;;  %v6160_v59 = vld [vmem:[%s7959_s0 + $0x128] sm:$0xff]  }
 0x149   : > { %v2119_v2 = vadd.f32 %v5452_v62, %v2079_v61  ;;  %v6162_v62 = vld [vmem:[%s7959_s0 + $0x160] sm:$0xff]  }
 0x14a   : > { %v5454_v55 = vpop.f32.mrf.mxu1 }
 0x162   : > { %v5472_v63 = vpop.f32.mrf.mxu0 }
 0x164   : > { %v5473_v0 = vpop.f32.mrf.mxu0  ;;  %v5494_v1 = vpop.f32.mrf.mxu1 }
 0x165   : > { %v5474_v3 = vadd.f32 %v5473_v0, %v5472_v63 }
 0x166   : > { %v5475_v4 = vpop.f32.mrf.mxu0  ;;  %v5495_v5 = vpop.f32.mrf.mxu1 }
 0x167   : > { %v2159_v6 = vadd.f32 %v5474_v3, %v2119_v2  ;;  %v5496_v7 = vadd.f32 %v5495_v5, %v5494_v1  ;;  %v6164_v5 = vld [vmem:[%s7959_s0 + $0x120] sm:$0xff]  }
 0x168   : > { %v5476_v10 = vpop.f32.mrf.mxu0  ;;  %v5497_v11 = vpop.f32.mrf.mxu1 }
 0x169   : > { %v2199_v12 = vadd.f32 %v5496_v7, %v2159_v6  ;;  %v6165_v10 = vld [vmem:[%s7959_s0 + $0x158] sm:$0xff]  }
 0x16a   : > { %v2370_v14 = vpop.f32.mrf.mxu0  ;;  %v5498_v15 = vpop.f32.mrf.mxu1 }
 0x16b   : > { %v3598_v17 = vrot.slane %v2199_v12, %v7138_v9  ;;  %v2371_v24 = vadd.f32 %v2370_v14, %v7153_v18  ;;  %v2231_v15 = vsub.s32 3, %v6600_v36 }
 0x16c   : > { %v2372_v19 = vpop.f32.mrf.mxu0  ;;  %v7155_v20 = vpop.f32.mrf.mxu1 }
 0x16d   : > { %3600 = vst.msk [vmem:[#allocation2] sm:$0xff] %vm3599_vm2, %v3598_v17  ;;  %3601 = vst.msk [vmem:[#allocation2 + $0x8] sm:$0xff] %vm3599_vm2, %v3598_v17  ;;  %v2373_v22 = vadd.f32 %v2372_v19, %v7148_v16  ;;  %v2732_v32 = vmax.f32 %v2371_v24, 0.0  ;;  %v6167_v24 = vld [vmem:[%s7959_s0 + $0x118] sm:$0xff]  }
 0x16e   : > { %3603 = vst.msk [vmem:[#allocation2 + $0x10] sm:$0x1f] %vm3602_vm3, %v3598_v17  ;;  %v2376_v21 = vpop.f32.mrf.mxu0  ;;  %v7162_v26 = vpop.f32.mrf.mxu1 }
 0x16f   : > { %v2377_v23 = vadd.f32 %v2376_v21, %v7153_v18  ;;  %v2733_v30 = vmax.f32 %v2373_v22, 0.0  ;;  %v2227_v21 = vsub.s32 2, %v6600_v36 }
 0x170   : > { %v2378_v25 = vpop.f32.mrf.mxu0  ;;  %v7165_v34 = vpop.f32.mrf.mxu1 }
 0x171   : > { %v2379_v27 = vadd.f32 %v2378_v25, %v7148_v16  ;;  %v2740_v28 = vmax.f32 %v2377_v23, 0.0 }
 0x172   : > { %v2382_v29 = vpop.f32.mrf.mxu0  ;;  %v7176_v46 = vpop.f32.mrf.mxu1 }
 0x173   : > { %v2741_v31 = vmax.f32 %v2379_v27, 0.0  ;;  %v2788_v38 = vpack.c.bf16 %v2740_v28, %v2732_v32  ;;  %v2383_v42 = vadd.f32 %v2382_v29, %v7153_v18  ;;  %v6169_v29 = vld [vmem:[%s7959_s0 + $0x150] sm:$0xff]   ;;  %v7223_v32 = vrot.slane %v7143_v13, %v2227_v21 }
 0x174   : > { %v2384_v33 = vpop.f32.mrf.mxu0  ;;  %v7185_v53 = vpop.f32.mrf.mxu1 }
 0x175   : > { %v2789_v35 = vpack.c.bf16 %v2741_v31, %v2733_v30  ;;  %v2385_v41 = vadd.f32 %v2384_v33, %v7148_v16  ;;  %v2748_v56 = vmax.f32 %v2383_v42, 0.0 }
 0x176   : > { %v2388_v39 = vpop.f32.mrf.mxu0  ;;  %v7193_v63 = vpop.f32.mrf.mxu1 }
 0x177   : > { %v2389_v43 = vadd.f32 %v2388_v39, %v7153_v18  ;;  %3371 = vmatprep.mubr.bf16.mxu0 %v2789_v35  ;;  %v2749_v54 = vmax.f32 %v2385_v41, 0.0  ;;  %v6173_v39 = vld [vmem:[%s7959_s0 + $0x148] sm:$0xff]  }
 0x178   : > { %v2390_v45 = vpop.f32.mrf.mxu0  ;;  %3372 = vmatmul.mubr.bf16.vlgmr.msra.gmra.mxu0 %v2788_v38  ;;  %v7205_v11 = vpop.f32.mrf.mxu1 }
 0x179   : > { %v2391_v48 = vadd.f32 %v2390_v45, %v7148_v16  ;;  %5581 = vmatpush3.bf16.msra.mxu0 %v6152_v37  ;;  %v2756_v50 = vmax.f32 %v2389_v43, 0.0 }
 0x17a   : > { %v2394_v51 = vpop.f32.mrf.mxu0  ;;  %5582 = vmatprep.subr.bf16.mxu0 %v6154_v40  ;;  %v7217_v30 = vpop.f32.mrf.mxu1 }
 0x17b   : > { %v2757_v55 = vmax.f32 %v2391_v48, 0.0  ;;  %v2796_v60 = vpack.c.bf16 %v2756_v50, %v2748_v56  ;;  %v2395_v2 = vadd.f32 %v2394_v51, %v7153_v18 }
 0x17c   : > { %v2396_v57 = vpop.f32.mrf.mxu0  ;;  %v7231_v40 = vpop.f32.mrf.mxu1 }
 0x17d   : > { %v2797_v58 = vpack.c.bf16 %v2757_v55, %v2749_v54  ;;  %5583 = vmatpush3.bf16.msra.mxu0 %v6156_v49  ;;  %v2397_v0 = vadd.f32 %v2396_v57, %v7148_v16  ;;  %v2764_v17 = vmax.f32 %v2395_v2, 0.0  ;;  %v6175_v49 = vld [vmem:[%s7959_s0 + $0x108] sm:$0xff]   ;;  %v6177_v54 = vld [vmem:[%s7959_s0 + $0x140] sm:$0xff]   ;;  %v2239_v2 = vsub.s32 5, %v6600_v36 }
 0x17e   : > { %v2400_v61 = vpop.f32.mrf.mxu0  ;;  %5584 = vmatprep.subr.bf16.mxu0 %v6158_v52  ;;  %v7243_v55 = vpop.f32.mrf.mxu1 }
 0x17f   : > { %v2401_v1 = vadd.f32 %v2400_v61, %v7153_v18  ;;  %3379 = vmatprep.mubr.bf16.mxu0 %v2797_v58  ;;  %v2765_v12 = vmax.f32 %v2397_v0, 0.0  ;;  %v6168_v0 = vld [vmem:[%s7959_s0 + $0x1b8] sm:$0xff]  }
 0x180   : > { %v2402_v3 = vpop.f32.mrf.mxu0  ;;  %3380 = vmatmul.mubr.bf16.gmra.mxu0 %v2796_v60  ;;  %v2235_v60 = vsub.s32 4, %v6600_v36 }
 0x181   : > { %v2403_v4 = vadd.f32 %v2402_v3, %v7148_v16  ;;  %5585 = vmatpush3.bf16.msra.mxu0 %v6160_v59  ;;  %v2772_v6 = vmax.f32 %v2401_v1, 0.0  ;;  %v6179_v3 = vld [vmem:[%s7959_s0 + $0x100] sm:$0xff]  }
 0x182   : > { %v2406_v7 = vpop.f32.mrf.mxu0  ;;  %5586 = vmatprep.subr.bf16.mxu0 %v6162_v62 }
 0x183   : > { %v2773_v14 = vmax.f32 %v2403_v4, 0.0  ;;  %v2804_v25 = vpack.c.bf16 %v2772_v6, %v2764_v17  ;;  %v2407_v27 = vadd.f32 %v2406_v7, %v7153_v18  ;;  %v6171_v18 = vld [vmem:[%s7959_s0 + $0x110] sm:$0xff]   ;;  %v7260_v6 = vpop.f32.mrf.mxu1 }
 0x184   : > { %v2408_v19 = vpop.f32.mrf.mxu0 }
 0x185   : > { %v2409_v22 = vadd.f32 %v2408_v19, %v7148_v16  ;;  %v2805_v23 = vpack.c.bf16 %v2773_v14, %v2765_v12  ;;  %5587 = vmatpush3.bf16.msra.mxu0 %v6164_v5  ;;  %v7220_v16 = vrot.slane %v7143_v13, %v2231_v15  ;;  %v2780_v37 = vmax.f32 %v2407_v27, 0.0  ;;  %v6174_v27 = vld [vmem:[%s7959_s0 + $0x1e8] sm:$0xff]  }
 0x186   : > { %v2477_v28 = vpop.f32.mrf.mxu0  ;;  %5588 = vmatprep.subr.bf16.mxu0 %v6165_v10  ;;  %v7269_v15 = vrot.slane %v7143_v13, %v2235_v60 }
 0x187   : > { %v2781_v31 = vmax.f32 %v2409_v22, 0.0  ;;  %3387 = vmatprep.mubr.bf16.mxu0 %v2805_v23  ;;  %v2478_v42 = vadd.f32 %v2477_v28, %v7223_v32  ;;  %v2812_v50 = vpack.c.bf16 %v2780_v37, %v2780_v37  ;;  %v2504_v62 = vadd.f32 %v7162_v26, %v7220_v16  ;;  %v6170_v26 = vld [vmem:[%s7959_s0 + $0x1f0] sm:$0xff]   ;;  %v7281_v28 = vpop.f32.mrf.mxu1 }
 0x188   : > { %v2479_v33 = vpop.f32.mrf.mxu0  ;;  %3388 = vmatmul.mubr.bf16.gmra.mxu0 %v2804_v25  ;;  %v2510_v1 = vadd.f32 %v7176_v46, %v7220_v16  ;;  %v6191_v46 = vld [vmem:[%s7910_s8 + $0x34] ss:$8 sps:$4 sm:$0xff]   ;;  %v7273_v22 = vrot.slane %v7143_v13, %v2239_v2  ;;  %v2247_v37 = vsub.s32 7, %v6600_v36 }
 0x189   : > { %v2813_v35 = vpack.c.bf16 %v2781_v31, %v2781_v31  ;;  %5589 = vmatpush3.bf16.msra.mxu0 %v6167_v24  ;;  %v2480_v41 = vadd.f32 %v2479_v33, %v7220_v16  ;;  %v2734_v58 = vmax.f32 %v2478_v42, 0.0  ;;  %v2767_v17 = vmax.f32 %v2504_v62, 0.0  ;;  %v6172_v23 = vld [vmem:[%s7959_s0 + $0x1b0] sm:$0xff]  }
 0x18a   : > { %v2483_v38 = vpop.f32.mrf.mxu0  ;;  %5590 = vmatprep.subr.bf16.mxu0 %v6169_v29  ;;  %v2775_v21 = vmax.f32 %v2510_v1, 0.0  ;;  %v2516_v42 = vadd.f32 %v7193_v63, %v7220_v16 }
 0x18b   : > { %v2484_v43 = vadd.f32 %v2483_v38, %v7223_v32  ;;  %3395 = vmatprep.mubr.bf16.mxu0 %v2813_v35  ;;  %v2735_v56 = vmax.f32 %v2480_v41, 0.0  ;;  %v6176_v41 = vld [vmem:[%s7959_s0 + $0x1a8] sm:$0xff]  }
 0x18c   : > { %v2485_v45 = vpop.f32.mrf.mxu0 }
 0x18d   : > { %v2486_v48 = vadd.f32 %v2485_v45, %v7220_v16  ;;  %5591 = vmatpush3.bf16.msra.mxu0 %v6171_v18  ;;  %v2742_v51 = vmax.f32 %v2484_v43, 0.0  ;;  %v2807_v43 = vpack.c.bf16 %v2775_v21, %v2767_v17  ;;  %v2502_v45 = vadd.f32 %v7155_v20, %v7223_v32 }
 0x18e   : > { %v2489_v52 = vpop.f32.mrf.mxu0  ;;  %5592 = vmatprep.subr.bf16.mxu0 %v6173_v39  ;;  %v7302_v20 = vrot.slane %v7143_v13, %v2247_v37  ;;  %v2243_v21 = vsub.s32 6, %v6600_v36  ;;  %v6184_v37 = vld [vmem:[%s7959_s0 + $0x190] sm:$0xff]  }
 0x18f   : > { %v2743_v57 = vmax.f32 %v2486_v48, 0.0  ;;  %v2790_v4 = vpack.c.bf16 %v2742_v51, %v2734_v58  ;;  %v2490_v12 = vadd.f32 %v2489_v52, %v7223_v32  ;;  %v6178_v51 = vld [vmem:[%s7959_s0 + $0x1e0] sm:$0xff]   ;;  %v7298_v52 = vpop.f32.mrf.mxu1  ;;  %v2783_v58 = vmax.f32 %v2516_v42, 0.0 }
 0x190   : > { %v2491_v59 = vpop.f32.mrf.mxu0  ;;  %3396 = vmatmul.mubr.bf16.gmra.mxu0 %v2812_v50  ;;  %v2766_v60 = vmax.f32 %v2502_v45, 0.0  ;;  %v6192_v45 = vld [vmem:[%s7910_s8 + $0x20] ss:$8 sps:$4 sm:$0xff]  }
 0x191   : > { %v2791_v61 = vpack.c.bf16 %v2743_v57, %v2735_v56  ;;  %5593 = vmatpush3.bf16.msra.mxu0 %v6175_v49  ;;  %v2492_v7 = vadd.f32 %v2491_v59, %v7220_v16  ;;  %v2750_v33 = vmax.f32 %v2490_v12, 0.0  ;;  %v2508_v49 = vadd.f32 %v7165_v34, %v7223_v32  ;;  %v6180_v59 = vld [vmem:[%s7959_s0 + $0x1a0] sm:$0xff]   ;;  %v2711_v1 = vpop.f32.mrf.mxu1  ;;  %v6182_v12 = vld [vmem:[%s7959_s0 + $0x198] sm:$0xff]  }
 0x192   : > { %v2495_v5 = vpop.f32.mrf.mxu0  ;;  %5594 = vmatprep.subr.bf16.mxu0 %v6177_v54 }
 0x193   : > { %v2496_v10 = vadd.f32 %v2495_v5, %v7223_v32  ;;  %3435 = vmatprep.mubr.bf16.mxu1 %v2791_v61  ;;  %v2751_v29 = vmax.f32 %v2492_v7, 0.0  ;;  %v2774_v61 = vmax.f32 %v2508_v49, 0.0  ;;  %v2815_v7 = vpack.c.bf16 %v2783_v58, %v2783_v58  ;;  %v6197_v49 = vld [vmem:[%s7910_s8 + $0x14] ss:$8 sps:$4 sm:$0xff]  }
 0x194   : > { %v2497_v14 = vpop.f32.mrf.mxu0  ;;  %3436 = vmatmul.mubr.bf16.vlgmr.msra.gmra.mxu1 %v2790_v4 }
 0x195   : > { %v2498_v19 = vadd.f32 %v2497_v14, %v7220_v16  ;;  %5621 = vmatpush3.bf16.msra.mxu1 %v6168_v0  ;;  %5595 = vmatpush3.bf16.msra.mxu0 %v6179_v3  ;;  %v2758_v24 = vmax.f32 %v2496_v10, 0.0  ;;  %v6181_v0 = vld [vmem:[%s7959_s0 + $0x1d8] sm:$0xff]   ;;  %v2700_v14 = vadd.f32 %v7243_v55, %v7302_v20  ;;  %v2806_v17 = vpack.c.bf16 %v2774_v61, %v2766_v60 }
 0x196   : > { %v2584_v25 = vpop.f32.mrf.mxu0  ;;  %5622 = vmatprep.subr.bf16.mxu1 %v6170_v26  ;;  %3709 = vmatprep.subr.bf16.mxu0 %v6191_v46  ;;  %v2694_v26 = vadd.f32 %v7217_v30, %v7302_v20  ;;  %v6183_v30 = vld [vmem:[%s7959_s0 + $0x1d0] sm:$0xff]  }
 0x197   : > { %v2759_v31 = vmax.f32 %v2498_v19, 0.0  ;;  %v2585_v35 = vadd.f32 %v2584_v25, %v7269_v15  ;;  %v2798_v48 = vpack.c.bf16 %v2758_v24, %v2750_v33  ;;  %v2514_v19 = vadd.f32 %v7185_v53, %v7223_v32  ;;  %v7326_v24 = vpop.f32.mrf.mxu1  ;;  %v6189_v25 = vld [vmem:[%s7910_s8 + $0x30] ss:$8 sps:$4 sm:$0xff]   ;;  %v6194_v53 = vld [vmem:[%s7910_s8 + $0x24] ss:$8 sps:$4 sm:$0xff]  }
 0x198   : > { %v2586_v18 = vpop.f32.mrf.mxu0 }
 0x199   : > { %v2799_v38 = vpack.c.bf16 %v2759_v31, %v2751_v29  ;;  %v2587_v39 = vadd.f32 %v2586_v18, %v7273_v22  ;;  %5623 = vmatpush3.bf16.msra.mxu1 %v6172_v23  ;;  %v2736_v56 = vmax.f32 %v2585_v35, 0.0  ;;  %v2747_v18 = vmax.f32 %v2700_v14, 0.0  ;;  %v2717_v42 = vpop.f32.mrf.mxu1 }
 0x19a   : > { %v2590_v50 = vpop.f32.mrf.mxu0  ;;  %5624 = vmatprep.subr.bf16.mxu1 %v6174_v27  ;;  %v2739_v27 = vmax.f32 %v2694_v26, 0.0 }
 0x19b   : > { %v2591_v54 = vadd.f32 %v2590_v50, %v7269_v15  ;;  %3443 = vmatprep.mubr.bf16.mxu1 %v2799_v38  ;;  %v2737_v16 = vmax.f32 %v2587_v39, 0.0  ;;  %v2782_v38 = vmax.f32 %v2514_v19, 0.0  ;;  %v7340_v39 = vrot.slane %v7143_v13, %v2243_v21  ;;  %v6198_v19 = vld [vmem:[%s7910_s8] ss:$8 sps:$4 sm:$0xff]  }
 0x19c   : > { %v2592_v63 = vpop.f32.mrf.mxu0  ;;  %3444 = vmatmul.mubr.bf16.gmra.mxu1 %v2798_v48 }
 0x19d   : > { %v2744_v57 = vmax.f32 %v2591_v54, 0.0  ;;  %v2593_v34 = vadd.f32 %v2592_v63, %v7273_v22  ;;  %5625 = vmatpush3.bf16.msra.mxu1 %v6176_v41  ;;  %3451 = vmatprep.mubr.bf16.mxu1 %v2807_v43  ;;  %v6185_v43 = vld [vmem:[%s7959_s0 + $0x1c8] sm:$0xff]   ;;  %v2706_v54 = vadd.f32 %v7281_v28, %v7302_v20  ;;  %v2814_v58 = vpack.c.bf16 %v2782_v38, %v2782_v38  ;;  %v6187_v28 = vld [vmem:[%s7959_s0 + $0x1c0] sm:$0xff]  }
 0x19e   : > { %v2596_v62 = vpop.f32.mrf.mxu0  ;;  %5626 = vmatprep.subr.bf16.mxu1 %v6178_v51  ;;  %v2698_v60 = vadd.f32 %v7231_v40, %v7340_v39 }
 0x19f   : > { %v2745_v2 = vmax.f32 %v2593_v34, 0.0  ;;  %v2792_v3 = vpack.c.bf16 %v2744_v57, %v2736_v56  ;;  %v2597_v4 = vadd.f32 %v2596_v62, %v7269_v15  ;;  %v2795_v57 = vpack.c.bf16 %v2747_v18, %v2739_v27  ;;  %v2721_v62 = vpop.f32.mrf.mxu1 }
 0x1a0   : > { %v2598_v5 = vpop.f32.mrf.mxu0  ;;  %v2712_v34 = vadd.f32 %v2711_v1, %v7302_v20 }
 0x1a1   : > { %v2793_v46 = vpack.c.bf16 %v2745_v2, %v2737_v16  ;;  %v2599_v10 = vadd.f32 %v2598_v5, %v7273_v22  ;;  %5627 = vmatpush3.bf16.msra.mxu1 %v6180_v59  ;;  %v2752_v32 = vmax.f32 %v2597_v4, 0.0  ;;  %v6186_v16 = vld [vmem:[%s7959_s0 + $0x188] sm:$0xff]   ;;  %v2692_v59 = vadd.f32 %v7205_v11, %v7340_v39 }
 0x1a2   : > { %v2602_v23 = vpop.f32.mrf.mxu0  ;;  %5628 = vmatprep.subr.bf16.mxu1 %v6181_v0  ;;  %v6195_v0 = vld [vmem:[%s7910_s8 + $0x10] ss:$8 sps:$4 sm:$0xff]   ;;  %v6200_v11 = vld [vmem:[%s7910_s8 + $0x4] ss:$8 sps:$4 sm:$0xff]   ;;  %v2755_v2 = vmax.f32 %v2706_v54, 0.0 }
 0x1a3   : > { %v2603_v55 = vadd.f32 %v2602_v23, %v7269_v15  ;;  %3499 = vmatprep.mubr.bf16.mxu0 %v2793_v46  ;;  %v2753_v31 = vmax.f32 %v2599_v10, 0.0  ;;  %v2763_v46 = vmax.f32 %v2712_v34, 0.0  ;;  %v2738_v10 = vmax.f32 %v2692_v59, 0.0 }
 0x1a4   : > { %v2604_v29 = vpop.f32.mrf.mxu0  ;;  %3452 = vmatmul.mubr.bf16.gmra.mxu1 %v2806_v17  ;;  %3500 = vmatmul.mubr.bf16.vlgmr.msra.gmra.mxu0 %v2792_v3  ;;  %v2723_v17 = vpop.f32.mrf.mxu1 }
 0x1a5   : > { %v2760_v33 = vmax.f32 %v2603_v55, 0.0  ;;  %v2605_v35 = vadd.f32 %v2604_v29, %v7273_v22  ;;  %5629 = vmatpush3.bf16.msra.mxu1 %v6182_v12  ;;  %3459 = vmatprep.mubr.bf16.mxu1 %v2815_v7  ;;  %v6188_v7 = vld [vmem:[%s7959_s0 + $0x180] sm:$0xff]   ;;  %v2746_v12 = vmax.f32 %v2698_v60, 0.0  ;;  %v2803_v27 = vpack.c.bf16 %v2763_v46, %v2755_v2 }
 0x1a6   : > { %v2608_v41 = vpop.f32.mrf.mxu0  ;;  %5630 = vmatprep.subr.bf16.mxu1 %v6183_v30  ;;  %3710 = vmatpush1.bf16.msra.mxu0 %v6189_v25  ;;  %v2718_v25 = vadd.f32 %v2717_v42, %v7302_v20  ;;  %v2724_v29 = vadd.f32 %v2723_v17, %v7302_v20  ;;  %v2727_v18 = vpop.f32.mrf.mxu1 }
 0x1a7   : > { %v2761_v48 = vmax.f32 %v2605_v35, 0.0  ;;  %3711 = vmatprep.subr.bf16.mxu0 %v6194_v53  ;;  %v2800_v13 = vpack.c.bf16 %v2760_v33, %v2752_v32  ;;  %v2609_v50 = vadd.f32 %v2608_v41, %v7269_v15  ;;  %v2704_v33 = vadd.f32 %v7260_v6, %v7340_v39 }
 0x1a8   : > { %v2610_v51 = vpop.f32.mrf.mxu0  ;;  %v2710_v35 = vadd.f32 %v7298_v52, %v7340_v39  ;;  %v2779_v41 = vmax.f32 %v2724_v29, 0.0  ;;  %v2729_v42 = vpop.f32.mrf.mxu1 }
 0x1a9   : > { %v2801_v56 = vpack.c.bf16 %v2761_v48, %v2753_v31  ;;  %v2611_v63 = vadd.f32 %v2610_v51, %v7273_v22  ;;  %5631 = vmatpush3.bf16.msra.mxu1 %v6184_v37  ;;  %v2768_v40 = vmax.f32 %v2609_v50, 0.0  ;;  %v2794_v31 = vpack.c.bf16 %v2746_v12, %v2738_v10 }
 0x1aa   : > { %v2614_v61 = vpop.f32.mrf.mxu0  ;;  %5632 = vmatprep.subr.bf16.mxu1 %v6185_v43  ;;  %3712 = vmatpush1.bf16.msra.mxu0 %v6192_v45  ;;  %v2754_v43 = vmax.f32 %v2704_v33, 0.0  ;;  %v2762_v6 = vmax.f32 %v2710_v35, 0.0  ;;  %v2730_v48 = vadd.f32 %v2729_v42, %v7302_v20  ;;  %v2722_v50 = vadd.f32 %v2721_v62, %v7340_v39 }
 0x1ab   : > { %v2615_v1 = vadd.f32 %v2614_v61, %v7269_v15  ;;  %3507 = vmatprep.mubr.bf16.mxu0 %v2801_v56  ;;  %3713 = vmatprep.subr.bf16.mxu0 %v6197_v49  ;;  %v2769_v4 = vmax.f32 %v2611_v63, 0.0  ;;  %v7395_v63 = vld [vmem:[#allocation2] sm:$0xff]  ;;  %v2728_v20 = vadd.f32 %v2727_v18, %v7340_v39 }
 0x1ac   : > { %v2616_v3 = vpop.f32.mrf.mxu0  ;;  %3460 = vmatmul.mubr.bf16.gmra.mxu1 %v2814_v58  ;;  %3508 = vmatmul.mubr.bf16.gmra.mxu0 %v2800_v13  ;;  %v2802_v49 = vpack.c.bf16 %v2762_v6, %v2754_v43  ;;  %v2716_v13 = vadd.f32 %v7326_v24, %v7340_v39  ;;  %v2787_v51 = vmax.f32 %v2730_v48, 0.0  ;;  %v2778_v56 = vmax.f32 %v2722_v50, 0.0 }
 0x1ad   : > { %v2776_v5 = vmax.f32 %v2615_v1, 0.0  ;;  %v2617_v26 = vadd.f32 %v2616_v3, %v7273_v22  ;;  %5633 = vmatpush3.bf16.msra.mxu1 %v6186_v16  ;;  %3563 = vmatprep.mubr.bf16.mxu1 %v2795_v57  ;;  %v7397_v16 = vld [vmem:[#allocation2 + $0x8] sm:$0xff]  ;;  %v2786_v58 = vmax.f32 %v2728_v20, 0.0 }
 0x1ae   : > { %5634 = vmatprep.subr.bf16.mxu1 %v6187_v28  ;;  %v2620_v14 = vpop.f32.mrf.mxu0  ;;  %3714 = vmatpush1.bf16.msra.mxu0 %v6195_v0  ;;  %v2770_v54 = vmax.f32 %v2716_v13, 0.0  ;;  %v2819_v57 = vpack.c.bf16 %v2787_v51, %v2787_v51  ;;  %v3621_v24 = vpack.c.bf16 %v7397_v16, %v7395_v63 }
 0x1af   : > { %v2777_v21 = vmax.f32 %v2617_v26, 0.0  ;;  %3715 = vmatprep.subr.bf16.mxu0 %v6200_v11  ;;  %v2808_v23 = vpack.c.bf16 %v2776_v5, %v2768_v40  ;;  %v2621_v30 = vadd.f32 %v2620_v14, %v7269_v15  ;;  %v2818_v59 = vpack.c.bf16 %v2786_v58, %v2786_v58 }
 0x1b0   : > { %v2622_v55 = vpop.f32.mrf.mxu0  ;;  %v2810_v34 = vpack.c.bf16 %v2778_v56, %v2770_v54 }
 0x1b1   : > { %v2809_v53 = vpack.c.bf16 %v2777_v21, %v2769_v4  ;;  %5635 = vmatpush3.bf16.msra.mxu1 %v6188_v7  ;;  %v2623_v32 = vadd.f32 %v2622_v55, %v7273_v22  ;;  %v2784_v37 = vmax.f32 %v2621_v30, 0.0  ;;  %v2771_v22 = vmax.f32 %v2718_v25, 0.0 }
 0x1b2   : > { %3716 = vmatpush1.bf16.msra.mxu0 %v6198_v19  ;;  %5734 = vmatprep.subr.bf16.mxu1 %v6320_v44 }
 0x1b3   : > { %3515 = vmatprep.mubr.bf16.mxu0 %v2809_v53  ;;  %v2785_v15 = vmax.f32 %v2623_v32, 0.0  ;;  %5764 = vmatprep.subr.bf16.mxu0 %v6320_v44  ;;  %v2816_v52 = vpack.c.bf16 %v2784_v37, %v2784_v37  ;;  %v2811_v45 = vpack.c.bf16 %v2779_v41, %v2771_v22 }
 0x1b4   : > { %3516 = vmatmul.mubr.bf16.gmra.mxu0 %v2808_v23  ;;  %3564 = vmatmul.mubr.bf16.vlgmr.msra.gmra.mxu1 %v2794_v31 }
 0x1b5   : > { %v2817_v38 = vpack.c.bf16 %v2785_v15, %v2785_v15  ;;  %3571 = vmatprep.mubr.bf16.mxu1 %v2803_v27 }
 0x1b7   : > { %3523 = vmatprep.mubr.bf16.mxu0 %v2817_v38  ;;  %v7427_v38 = vld [vmem:[%s7962_s24] ss:$0 sm:$0xff]  ;;  %s5944_s24 = smul.u32 24, %s6564_s6 }
 0x1b9   : > { %s739_s1 = scalar_lea.vmem %s7924_s22, %s5944_s24  ;;  %s724_s24 = sand.u32 1, %s6309_s25  }
 0x1ba   : > { %s725_s7 = scalar_lea.vmem [#allocation4], %s724_s24  ;;  %s4909_s26 = scalar_lea.sflag [#allocation5], %s724_s24 }
 0x1bc   : > { %3524 = vmatmul.mubr.bf16.gmra.mxu0 %v2816_v52  ;;  %3572 = vmatmul.mubr.bf16.gmra.mxu1 %v2802_v49 }
 0x1bd   : > { %3579 = vmatprep.mubr.bf16.mxu1 %v2811_v45  ;;  %3733 = vmatprep.mubr.bf16.mxu0 %v6321_v47 }
 0x1c4   : > { %3580 = vmatmul.mubr.bf16.gmra.mxu1 %v2810_v34  ;;  %5260 = vmatmul.mubr.msk.bf16.vlgmr.msra.gmra.mxu0 %vm3599_vm2, %v3621_v24 }
 0x1c5   : > { %3587 = vmatprep.mubr.bf16.mxu1 %v2819_v57  ;;  %3743 = vmatprep.mubr.bf16.mxu0 %v6321_v47 }
 0x1cc   : > { %3588 = vmatmul.mubr.bf16.gmra.mxu1 %v2818_v59 }
 0x1cd   : > { %5744 = vmatprep.mubr.msk.bf16.mxu1 %vm6323_vm5, %v6320_v44 }
 0x238   : > { %v5516_v60 = vpop.f32.mrf.mxu0 }
 0x23a   : > { %v5517_v61 = vpop.f32.mrf.mxu0 }
 0x23b   : > { %v5518_v22 = vadd.f32 %v5517_v61, %v5516_v60 }
 0x23c   : > { %v5519_v28 = vpop.f32.mrf.mxu0 }
 0x23d   : > { %v3374_v48 = vadd.f32 %v5518_v22, %v7427_v38 }
 0x23e   : > { %v5520_v62 = vpop.f32.mrf.mxu0 }
 0x23f   : > { %v5521_v42 = vadd.f32 %v5520_v62, %v5519_v28 }
 0x240   : > { %v5522_v0 = vpop.f32.mrf.mxu0 }
 0x241   : > { %v3377_v56 = vadd.f32 %v5521_v42, %v7427_v38 }
 0x242   : > { %v5523_v39 = vpop.f32.mrf.mxu0 }
 0x243   : > { %v5524_v34 = vadd.f32 %v5523_v39, %v5522_v0 }
 0x244   : > { %v5525_v1 = vpop.f32.mrf.mxu0 }
 0x246   : > { %v5526_v11 = vpop.f32.mrf.mxu0 }
 0x248   : > { %v7404_v40 = vpop.f32.mrf.mxu0 }
 0x24a   : > { %v7406_v2 = vpop.f32.mrf.mxu0 }
 0x24c   : > { %v7408_v3 = vpop.f32.mrf.mxu0 }
 0x24e   : > { %v7410_v4 = vpop.f32.mrf.mxu0 }
 0x250   : > { %v7412_v5 = vpop.f32.mrf.mxu0 }
 0x252   : > { %v7414_v26 = vpop.f32.mrf.mxu0 }
 0x254   : > { %v5537_v46 = vpop.f32.mrf.mxu0  ;;  %v5556_v7 = vpop.f32.mrf.mxu1 }
 0x256   : > { %v5538_v10 = vpop.f32.mrf.mxu0  ;;  %v5557_v12 = vpop.f32.mrf.mxu1 }
 0x257   : > { %v5558_v6 = vadd.f32 %v5557_v12, %v5556_v7  ;;  %v5527_v7 = vadd.f32 %v5526_v11, %v5525_v1  ;;  %v5530_v1 = vadd.f32 %v7406_v2, %v7404_v40 }
 0x258   : > { %v5559_v14 = vpop.f32.mrf.mxu1 }
 0x259   : > { %v3438_v51 = vadd.f32 %v5558_v6, %v3374_v48 }
 0x25a   : > { %v5560_v17 = vpop.f32.mrf.mxu1 }
 0x25b   : > { %v5561_v54 = vadd.f32 %v5560_v17, %v5559_v14 }
 0x25c   : > { %v5562_v19 = vpop.f32.mrf.mxu1 }
 0x25d   : > { %v3441_v28 = vadd.f32 %v5561_v54, %v3377_v56 }
 0x25e   : > { %v5563_v21 = vpop.f32.mrf.mxu1 }
 0x25f   : > { %v5564_v62 = vadd.f32 %v5563_v21, %v5562_v19 }
 0x260   : > { %v5565_v23 = vpop.f32.mrf.mxu1 }
 0x262   : > { %v5566_v30 = vpop.f32.mrf.mxu1 }
 0x264   : > { %v5568_v25 = vpop.f32.mrf.mxu1  ;;  %v5596_v55 = vpop.f32.mrf.mxu0 }
 0x266   : > { %v5569_v53 = vpop.f32.mrf.mxu1  ;;  %v5597_v32 = vpop.f32.mrf.mxu0 }
 0x267   : > { %v5598_v49 = vadd.f32 %v5597_v32, %v5596_v55  ;;  %v3382_v55 = vadd.f32 %v5524_v34, %v7427_v38  ;;  %v5570_v48 = vadd.f32 %v5569_v53, %v5568_v25 }
 0x268   : > { %v7416_v27 = vpop.f32.mrf.mxu1  ;;  %v5599_v29 = vpop.f32.mrf.mxu0 }
 0x269   : > { %v3502_v24 = vadd.f32 %v5598_v49, %v3438_v51  ;;  %v3446_v39 = vadd.f32 %v5564_v62, %v3382_v55  ;;  %v3390_v51 = vadd.f32 %v5530_v1, %v7427_v38 }
 0x26a   : > { %v7418_v31 = vpop.f32.mrf.mxu1  ;;  %v5600_v33 = vpop.f32.mrf.mxu0 }
 0x26b   : > { %v5601_v58 = vadd.f32 %v5600_v33, %v5599_v29  ;;  %v5567_v29 = vadd.f32 %v5566_v30, %v5565_v23  ;;  %v5533_v23 = vadd.f32 %v7410_v4, %v7408_v3  ;;  %v5536_v3 = vadd.f32 %v7414_v26, %v7412_v5 }
 0x26c   : > { %v7420_v35 = vpop.f32.mrf.mxu1  ;;  %v5602_v18 = vpop.f32.mrf.mxu0 }
 0x26d   : > { %v3505_v32 = vadd.f32 %v5601_v58, %v3441_v28  ;;  %v3393_v25 = vadd.f32 %v5533_v23, %v7427_v38  ;;  %v3398_v26 = vadd.f32 %v5536_v3, %v7427_v38 }
 0x26e   : > { %v7422_v15 = vpop.f32.mrf.mxu1  ;;  %v5603_v37 = vpop.f32.mrf.mxu0 }
 0x26f   : > { %v5604_v14 = vadd.f32 %v5603_v37, %v5602_v18 }
 0x270   : > { %v5577_v41 = vpop.f32.mrf.mxu1  ;;  %v5605_v43 = vpop.f32.mrf.mxu0 }
 0x271   : > { %v3385_v41 = vadd.f32 %v5527_v7, %v7427_v38  ;;  %v3510_v11 = vadd.f32 %v5604_v14, %v3446_v39 }
 0x272   : > { %v5578_v52 = vpop.f32.mrf.mxu1  ;;  %v5606_v45 = vpop.f32.mrf.mxu0 }
 0x273   : > { %v5607_v21 = vadd.f32 %v5606_v45, %v5605_v43  ;;  %v3449_v52 = vadd.f32 %v5567_v29, %v3385_v41  ;;  %v3454_v43 = vadd.f32 %v5570_v48, %v3390_v51  ;;  %v5573_v45 = vadd.f32 %v7418_v31, %v7416_v27 }
 0x274   : > { %v5608_v13 = vpop.f32.mrf.mxu0  ;;  %v5636_v50 = vpop.f32.mrf.mxu1 }
 0x275   : > { %v3513_v54 = vadd.f32 %v5607_v21, %v3449_v52  ;;  %v3457_v31 = vadd.f32 %v5573_v45, %v3393_v25  ;;  %v3634_v52 = vld [vmem:[%s7911_s9] sm:$0x3] }
 0x276   : > { %v5609_v20 = vpop.f32.mrf.mxu0  ;;  %v5637_v57 = vpop.f32.mrf.mxu1  ;;  %v3643_v3 = vrot.slane %v3634_v52, %v2223_v8 }
 0x277   : > { %v5638_v59 = vadd.f32 %v5637_v57, %v5636_v50  ;;  %v5610_v56 = vadd.f32 %v5609_v20, %v5608_v13 }
 0x278   : > { %v5611_v60 = vpop.f32.mrf.mxu0  ;;  %v5639_v61 = vpop.f32.mrf.mxu1 }
 0x279   : > { %v3566_v46 = vadd.f32 %v5638_v59, %v3502_v24  ;;  %v3518_v13 = vadd.f32 %v5610_v56, %v3454_v43  ;;  %v5576_v59 = vadd.f32 %v7422_v15, %v7420_v35 }
 0x27a   : > { %v5612_v10 = vpop.f32.mrf.mxu0  ;;  %v5640_v12 = vpop.f32.mrf.mxu1 }
 0x27b   : > { %3604 = vst.msk [vmem:[#allocation2 + $0x15] sm:$0xff] %vm3599_vm2, %v3566_v46  ;;  %v5641_v17 = vadd.f32 %v5640_v12, %v5639_v61  ;;  %v5613_v20 = vadd.f32 %v5612_v10, %v5611_v60  ;;  %v3462_v7 = vadd.f32 %v5576_v59, %v3398_v26 }
 0x27c   : > { %v5614_v22 = vpop.f32.mrf.mxu0  ;;  %v5642_v0 = vpop.f32.mrf.mxu1 }
 0x27d   : > { %v3569_v33 = vadd.f32 %v5641_v17, %v3505_v32  ;;  %v3521_v60 = vadd.f32 %v5613_v20, %v3457_v31 }
 0x27e   : > { %v5615_v6 = vpop.f32.mrf.mxu0  ;;  %v5643_v19 = vpop.f32.mrf.mxu1 }
 0x27f   : > { %3605 = vst.msk [vmem:[#allocation2 + $0x1d] sm:$0xff] %vm3599_vm2, %v3569_v33  ;;  %v5644_v18 = vadd.f32 %v5643_v19, %v5642_v0  ;;  %v5616_v28 = vadd.f32 %v5615_v6, %v5614_v22 }
 0x280   : > { %v5617_v37 = vpop.f32.mrf.mxu0  ;;  %v5645_v42 = vpop.f32.mrf.mxu1 }
 0x281   : > { %v3574_v49 = vadd.f32 %v5644_v18, %v3510_v11  ;;  %v3526_v15 = vadd.f32 %v5616_v28, %v3462_v7 }
 0x282   : > { %v5618_v30 = vpop.f32.mrf.mxu0  ;;  %v5646_v50 = vpop.f32.mrf.mxu1  ;;  %v7446_v53 = vld [vmem:[#allocation2 + $0x10] sm:$0xff] }
 0x283   : > { %3606 = vst.msk [vmem:[#allocation2 + $0x25] sm:$0xff] %vm3599_vm2, %v3574_v49  ;;  %v5647_v40 = vadd.f32 %v5646_v50, %v5645_v42  ;;  %v3639_v49 = vrot.slane %v3634_v52, %v7138_v9 }
 0x284   : > { %v5648_v2 = vpop.f32.mrf.mxu1  ;;  %v3735_v6 = vpop.f32.mrf.mxu0 }
 0x285   : > { %v3577_v57 = vadd.f32 %v5647_v40, %v3513_v54  ;;  %v3736_v8 = vadd.f32 %v3735_v6, %v3639_v49 }
 0x286   : > { %v5649_v4 = vpop.f32.mrf.mxu1  ;;  %v7448_v34 = vld [vmem:[#allocation2 + $0x18] sm:$0xff]  ;;  %v3737_v19 = vpop.f32.mrf.mxu0 }
 0x287   : > { %3607 = vst.msk [vmem:[#allocation2 + $0x2d] sm:$0xff] %vm3599_vm2, %v3577_v57  ;;  %v5650_v24 = vadd.f32 %v5649_v4, %v5648_v2  ;;  %v3622_v58 = vpack.c.bf16 %v7448_v34, %v7446_v53 }
 0x288   : > { %v5651_v27 = vpop.f32.mrf.mxu1  ;;  %v3739_v1 = vpop.f32.mrf.mxu0 }
 0x289   : > { %v3582_v61 = vadd.f32 %v5650_v24, %v3518_v13  ;;  %5261 = vmatmul.mubr.msk.bf16.gmra.mxu0 %vm3599_vm2, %v3622_v58  ;;  %v3740_v26 = vadd.f32 %v3739_v1, %v3639_v49 }
 0x28a   : > { %v5652_v5 = vpop.f32.mrf.mxu1  ;;  %3753 = vmatprep.mubr.bf16.mxu0 %v6321_v47  ;;  %v7459_v55 = vld [vmem:[#allocation2 + $0x20] sm:$0xff]  ;;  %v3741_v11 = vpop.f32.mrf.mxu0 }
 0x28b   : > { %3608 = vst.msk [vmem:[#allocation2 + $0x35] sm:$0xff] %vm3599_vm2, %v3582_v61  ;;  %v5653_v62 = vadd.f32 %v5652_v5, %v5651_v27  ;;  %v3782_v7 = vpack.c.bf16 %v3740_v26, %v3736_v8 }
 0x28c   : > { %v5654_v46 = vpop.f32.mrf.mxu1 }
 0x28d   : > { %v3585_v10 = vadd.f32 %v5653_v62, %v3521_v60 }
 0x28e   : > { %v5655_v12 = vpop.f32.mrf.mxu1  ;;  %v7461_v35 = vld [vmem:[#allocation2 + $0x28] sm:$0xff] }
 0x28f   : > { %3609 = vst.msk [vmem:[#allocation2 + $0x3d] sm:$0xff] %vm3599_vm2, %v3585_v10  ;;  %v5656_v32 = vadd.f32 %v5655_v12, %v5654_v46  ;;  %v3623_v38 = vpack.c.bf16 %v7461_v35, %v7459_v55 }
 0x290   : > { %v5657_v14 = vpop.f32.mrf.mxu1 }
 0x291   : > { %v3590_v17 = vadd.f32 %v5656_v32, %v3526_v15  ;;  %5262 = vmatmul.mubr.msk.bf16.gmra.mxu0 %vm3599_vm2, %v3623_v38  ;;  %v3742_v38 = vadd.f32 %v3741_v11, %v3643_v3 }
 0x292   : > { %v5658_v22 = vpop.f32.mrf.mxu1  ;;  %3763 = vmatprep.mubr.bf16.mxu0 %v6321_v47  ;;  %v7468_v0 = vld [vmem:[#allocation2 + $0x30] sm:$0xff] }
 0x293   : > { %3611 = vst.msk [vmem:[#allocation2 + $0x45] sm:$0x1] %vm3610_vm4, %v3590_v17  ;;  %v3738_v17 = vadd.f32 %v3737_v19, %v3643_v3 }
 0x295   : > { %v3787_v22 = vpack.c.bf16 %v3742_v38, %v3738_v17 }
 0x296   : > { %v7470_v39 = vld [vmem:[#allocation2 + $0x38] sm:$0xff] }
 0x297   : > { %v3624_v29 = vpack.c.bf16 %v7470_v39, %v7468_v0 }
 0x299   : > { %5263 = vmatmul.mubr.msk.bf16.gmra.mxu0 %vm3599_vm2, %v3624_v29 }
 0x29a   : > { %3773 = vmatprep.mubr.bf16.mxu0 %v6321_v47  ;;  %v7476_v33 = vld [vmem:[#allocation2 + $0x40] sm:$0x3f] }
 0x29b   : > { %v3625_v41 = vpack.c.bf16 %v7476_v33, %v7476_v33 }
 0x2a1   : > { %5264 = vmatmul.mubr.msk.bf16.gmra.mxu0 %vm3599_vm2, %v3625_v41 }
 0x2a2   : > { %5774 = vmatprep.mubr.msk.bf16.mxu0 %vm6323_vm5, %v6320_v44 }
 0x349   : > { %v3745_v21 = vpop.f32.mrf.mxu0 }
 0x34a   : > { %v3746_v2 = vadd.f32 %v3745_v21, %v3639_v49 }
 0x34b   : > { %v3747_v18 = vpop.f32.mrf.mxu0 }
 0x34c   : > { %v3748_v32 = vadd.f32 %v3747_v18, %v3643_v3 }
 0x34d   : > { %v3749_v37 = vpop.f32.mrf.mxu0 }
 0x34e   : > { %v3750_v54 = vadd.f32 %v3749_v37, %v3639_v49 }
 0x34f   : > { %v3751_v42 = vpop.f32.mrf.mxu0 }
 0x350   : > { %v7489_v45 = vpack.c.bf16 %v3750_v54, %v3746_v2  ;;  %v3752_v12 = vadd.f32 %v3751_v42, %v3643_v3 }
 0x351   : > { %v3755_v47 = vpop.f32.mrf.mxu0 }
 0x352   : > { %v3756_v30 = vadd.f32 %v3755_v47, %v3639_v49  ;;  %v3788_v14 = vpack.c.bf16 %v3752_v12, %v3748_v32 }
 0x353   : > { %v3757_v48 = vpop.f32.mrf.mxu0 }
 0x354   : > { %v3758_v10 = vadd.f32 %v3757_v48, %v3643_v3 }
 0x355   : > { %v3759_v23 = vpop.f32.mrf.mxu0 }
 0x356   : > { %v3760_v50 = vadd.f32 %v3759_v23, %v3639_v49 }
 0x357   : > { %v3761_v51 = vpop.f32.mrf.mxu0 }
 0x358   : > { %v7485_v56 = vpack.c.bf16 %v3760_v50, %v3756_v30  ;;  %v3762_v62 = vadd.f32 %v3761_v51, %v3643_v3 }
 0x359   : > { %v3765_v40 = vpop.f32.mrf.mxu0 }
 0x35a   : > { %3801 = vrot.lane.b32.xlu1 %v7485_v56, %s6322_s5  ;;  %v3766_v31 = vadd.f32 %v3765_v40, %v3639_v49  ;;  %v3789_v15 = vpack.c.bf16 %v3762_v62, %v3758_v10 }
 0x35b   : > { %v3767_v43 = vpop.f32.mrf.mxu0 }
 0x35c   : > { %v3768_v36 = vadd.f32 %v3767_v43, %v3643_v3 }
 0x35d   : > { %v3769_v57 = vpop.f32.mrf.mxu0 }
 0x35e   : > { %3799 = vrot.lane.b32.xlu1 %v7489_v45, %s6322_s5  ;;  %v3770_v20 = vadd.f32 %v3769_v57, %v3639_v49 }
 0x35f   : > { %v3771_v9 = vpop.f32.mrf.mxu0 }
 0x360   : > { %v3772_v61 = vadd.f32 %v3771_v9, %v3643_v3  ;;  %v3785_v60 = vpack.c.bf16 %v3770_v20, %v3766_v31 }
 0x361   : > { %v3775_v25 = vpop.f32.mrf.mxu0 }
 0x362   : > { %v3776_v4 = vadd.f32 %v3775_v25, %v3639_v49  ;;  %v3790_v46 = vpack.c.bf16 %v3772_v61, %v3768_v36 }
 0x363   : > { %v3777_v13 = vpop.f32.mrf.mxu0 }
 0x364   : > { %v7495_v24 = vpack.c.bf16 %v3776_v4, %v3776_v4  ;;  %v3778_v58 = vadd.f32 %v3777_v13, %v3643_v3 }
 0x365   : > { %v3779_v27 = vpop.f32.mrf.mxu0 }
 0x366   : > { %v3791_v59 = vpack.c.bf16 %v3778_v58, %v3778_v58  ;;  %3805 = vrot.lane.b32.xlu0 %v7495_v24, %s6322_s5 }
 0x367   : > { %v3780_v5 = vpop.f32.mrf.mxu0 }
 0x368   : > { %v4031_v28 = vsel %vm2287_vm0, %v3791_v59, 0 }
 0x369   : > { %5765 = vmatpush3.bf16.msra.mxu0 %v4031_v28 }
 0x36a   : > { %3803 = vrot.lane.b32.xlu0 %v3785_v60, %s6322_s5  ;;  %5766 = vmatprep.subr.bf16.mxu0 %v6320_v44 }
 0x36d   : > { %5767 = vmatpush3.bf16.msra.mxu0 %v3790_v46 }
 0x36e   : > { %3797 = vrot.lane.b32.xlu0 %v3782_v7, %s6322_s5  ;;  %5768 = vmatprep.subr.bf16.mxu0 %v6320_v44  ;;  %s5321_s5 = sshll.u32 %s6469_s19, 4  ;;  %s6263_s19 = scalar_lea.vmem %s6262_s30, 32 }
 0x36f   : > { %s4922_s4 = scalar_lea.hbm %s7963_s29, %s5321_s5 }
 0x371   : > { %5769 = vmatpush3.bf16.msra.mxu0 %v3789_v15 }
 0x372   : > { %5770 = vmatprep.subr.bf16.mxu0 %v6320_v44 }
 0x375   : > { %5771 = vmatpush3.bf16.msra.mxu0 %v3788_v14 }
 0x376   : > { %5772 = vmatprep.subr.bf16.mxu0 %v6320_v44 }
 0x379   : > { %5773 = vmatpush3.bf16.msra.mxu0 %v3787_v22 }
 0x37a   : > { %5822 = vmatprep.subr.bf16.mxu0 %v6320_v44 }
 0x3cc   : > { %v3802_v1 = vpop.permute.xlu1 %3801 }
 0x3cd   : > { %v3829_v11 = vsel %vm3599_vm2, %v3802_v1, 0 }
 0x3d0   : > { %v3800_v21 = vpop.permute.xlu1 %3799 }
 0x3d1   : > { %v3826_v18 = vsel %vm3599_vm2, %v3800_v21, 0 }
 0x3d8   : > { %v3806_v29 = vpop.permute.xlu0 %3805 }
 0x3d9   : > { %v3835_v41 = vsel %vm3599_vm2, %v3806_v29, 0 }
 0x3da   : > { %5735 = vmatpush3.bf16.xpose.msra.mxu1 %v3835_v41 }
 0x3db   : > { %5736 = vmatprep.subr.bf16.mxu1 %v6320_v44 }
 0x3dc   : > { %v3804_v6 = vpop.permute.xlu0 %3803 }
 0x3dd   : > { %v3832_v19 = vsel %vm3599_vm2, %v3804_v6, 0 }
 0x3e0   : > { %v3798_v37 = vpop.permute.xlu0 %3797 }
 0x3e1   : > { %v3823_v42 = vsel %vm3599_vm2, %v3798_v37, 0 }
 0x3e2   : > { %5737 = vmatpush3.bf16.xpose.msra.mxu1 %v3832_v19 }
 0x3e3   : > { %5738 = vmatprep.subr.bf16.mxu1 %v6320_v44 }
 0x3ea   : > { %5739 = vmatpush3.bf16.xpose.msra.mxu1 %v3829_v11 }
 0x3eb   : > { %5740 = vmatprep.subr.bf16.mxu1 %v6320_v44 }
 0x3f2   : > { %5741 = vmatpush3.bf16.xpose.msra.mxu1 %v3826_v18 }
 0x3f3   : > { %5742 = vmatprep.subr.bf16.mxu1 %v6320_v44 }
 0x3fa   : > { %5743 = vmatpush3.bf16.xpose.msra.mxu1 %v3823_v42 }
 0x3fb   : > { %5794 = vmatprep.subr.bf16.mxu1 %v6320_v44 }
 0x401   : > { %5745 = vmatmul.mubr.msk.bf16.vlgmr.msra.gmra.mxu1 %vm3599_vm2, %v3782_v7 }
 0x402   : > { %5748 = vmatprep.mubr.msk.bf16.mxu1 %vm6323_vm5, %v6320_v44 }
 0x409   : > { %5749 = vmatmul.mubr.msk.bf16.gmra.mxu1 %vm3599_vm2, %v7489_v45 }
 0x40a   : > { %5752 = vmatprep.mubr.msk.bf16.mxu1 %vm6323_vm5, %v6320_v44 }
 0x411   : > { %5753 = vmatmul.mubr.msk.bf16.gmra.mxu1 %vm3599_vm2, %v7485_v56 }
 0x412   : > { %5756 = vmatprep.mubr.msk.bf16.mxu1 %vm6323_vm5, %v6320_v44 }
 0x419   : > { %5757 = vmatmul.mubr.msk.bf16.gmra.mxu1 %vm3599_vm2, %v3785_v60 }
 0x41a   : > { %5760 = vmatprep.mubr.msk.bf16.mxu1 %vm6323_vm5, %v6320_v44 }
 0x421   : > { %5761 = vmatmul.mubr.msk.bf16.gmra.mxu1 %vm3599_vm2, %v7495_v24 }
 0x422   : > { %5802 = vmatprep.mubr.msk.bf16.mxu1 %vm6323_vm5, %v6320_v44 }
 0x4c1   : > { %v3871_v52 = vpop.f32.mrf.mxu1 }
 0x4c2   : > { %v3910_v47 = vsel %vm3909_vm6, %v3871_v52, -inf }
 0x4c3   : > { %3911 = vmax.xlane.f32.xlu1 %v3910_v47  ;;  %v5746_v48 = vpop.f32.mrf.mxu1 }
 0x4c5   : > { %v3874_v49 = vpop.f32.mrf.mxu1 }
 0x4c6   : > { %v3913_v23 = vsel %vm3909_vm6, %v3874_v49, -inf }
 0x4c7   : > { %3914 = vmax.xlane.f32.xlu0 %v3913_v23  ;;  %v5747_v30 = vpop.f32.mrf.mxu1 }
 0x4c9   : > { %v3879_v50 = vpop.f32.mrf.mxu1 }
 0x4ca   : > { %v3916_v51 = vsel %vm3909_vm6, %v3879_v50, -inf }
 0x4cb   : > { %3917 = vmax.xlane.f32.xlu0 %v3916_v51  ;;  %v5750_v54 = vpop.f32.mrf.mxu1 }
 0x4cd   : > { %v3882_v56 = vpop.f32.mrf.mxu1 }
 0x4ce   : > { %v3919_v40 = vsel %vm3909_vm6, %v3882_v56, -inf }
 0x4cf   : > { %3920 = vmax.xlane.f32.xlu1 %v3919_v40  ;;  %v5751_v2 = vpop.f32.mrf.mxu1 }
 0x4d1   : > { %v3887_v43 = vpop.f32.mrf.mxu1 }
 0x4d2   : > { %v3922_v45 = vsel %vm3909_vm6, %v3887_v43, -inf }
 0x4d3   : > { %3923 = vmax.xlane.f32.xlu0 %v3922_v45  ;;  %v5754_v57 = vpop.f32.mrf.mxu1 }
 0x4d5   : > { %v3890_v9 = vpop.f32.mrf.mxu1 }
 0x4d6   : > { %v3925_v25 = vsel %vm3909_vm6, %v3890_v9, -inf }
 0x4d7   : > { %3926 = vmax.xlane.f32.xlu1 %v3925_v25  ;;  %v5755_v3 = vpop.f32.mrf.mxu1 }
 0x4d9   : > { %v3895_v4 = vpop.f32.mrf.mxu1 }
 0x4da   : > { %v3928_v13 = vsel %vm3909_vm6, %v3895_v4, -inf }
 0x4db   : > { %3929 = vmax.xlane.f32.xlu0 %v3928_v13  ;;  %v5758_v20 = vpop.f32.mrf.mxu1 }
 0x4dc   : > { %v6201_v20 = vld [vmem:[%s7912_s10 + $0x18] sm:$0xff]  }
 0x4dd   : > { %v3898_v24 = vpop.f32.mrf.mxu1  ;;  %5795 = vmatpush3.bf16.msra.mxu1 %v6201_v20 }
 0x4de   : > { %v3931_v58 = vsel %vm3909_vm6, %v3898_v24, -inf  ;;  %5796 = vmatprep.subr.bf16.mxu1 %v6320_v44 }
 0x4df   : > { %3932 = vmax.xlane.f32.xlu1 %v3931_v58  ;;  %v5759_v27 = vpop.f32.mrf.mxu1  ;;  %v6203_v58 = vld [vmem:[%s7912_s10 + $0x8] sm:$0xff]  }
 0x4e0   : > { %v6204_v27 = vld [vmem:[%s7912_s10] sm:$0xff]  }
 0x4e1   : > { %v3903_v31 = vpop.f32.mrf.mxu1 }
 0x4e2   : > { %v3935_v59 = vsel %vm3934_vm7, %v3903_v31, -inf }
 0x4e3   : > { %3936 = vmax.xlane.f32.xlu0 %v3935_v59  ;;  %v5762_v61 = vpop.f32.mrf.mxu1 }
 0x4e5   : > { %v3906_v5 = vpop.f32.mrf.mxu1 }
 0x4e7   : > { %v5763_v26 = vpop.f32.mrf.mxu1 }
 0x54c   : > { %v3912_v60 = vpop.xlane.xlu1 %3911 }
 0x54d   : > { %v3938_v28 = vsub.f32 %v3871_v52, %v3912_v60 }
 0x54f   : > { %v3947_v36 = vmul.f32 1.442695, %v3938_v28 }
 0x550   : > { %v3915_v8 = vpop.xlane.xlu0 %3914 }
 0x551   : > { %6221 = vpow2.f32 %v3947_v36  ;;  %v3939_v62 = vsub.f32 %v3874_v49, %v3915_v8 }
 0x553   : > { %v3949_v46 = vmul.f32 1.442695, %v3939_v62 }
 0x554   : > { %v3918_v7 = vpop.xlane.xlu0 %3917 }
 0x555   : > { %6223 = vpow2.f32 %v3949_v46  ;;  %v3940_v10 = vsub.f32 %v3879_v50, %v3918_v7 }
 0x557   : > { %v3951_v12 = vmul.f32 1.442695, %v3940_v10 }
 0x558   : > { %v3921_v15 = vpop.xlane.xlu1 %3920 }
 0x559   : > { %6225 = vpow2.f32 %v3951_v12  ;;  %v3941_v32 = vsub.f32 %v3882_v56, %v3921_v15 }
 0x55b   : > { %v3953_v38 = vmul.f32 1.442695, %v3941_v32 }
 0x55c   : > { %v3924_v14 = vpop.xlane.xlu0 %3923 }
 0x55d   : > { %6227 = vpow2.f32 %v3953_v38  ;;  %v3942_v17 = vsub.f32 %v3887_v43, %v3924_v14 }
 0x55e   : > { %v7548_v22 = vpop.eup %6221 }
 0x55f   : > { %v3955_v29 = vmul.f32 1.442695, %v3942_v17  ;;  %v3965_v41 = vsel %vm3909_vm6, %v7548_v22, 0.0 }
 0x560   : > { %v3927_v6 = vpop.xlane.xlu1 %3926  ;;  %3966 = vadd.xlane.f32.xlu1 %v3965_v41 }
 0x561   : > { %6229 = vpow2.f32 %v3955_v29  ;;  %v3943_v19 = vsub.f32 %v3890_v9, %v3927_v6 }
 0x562   : > { %v6224_v1 = vpop.eup %6223 }
 0x563   : > { %v3957_v11 = vmul.f32 1.442695, %v3943_v19  ;;  %v3968_v21 = vsel %vm3909_vm6, %v6224_v1, 0.0 }
 0x564   : > { %v3930_v18 = vpop.xlane.xlu0 %3929  ;;  %3969 = vadd.xlane.f32.xlu0 %v3968_v21 }
 0x565   : > { %6231 = vpow2.f32 %v3957_v11  ;;  %v3944_v37 = vsub.f32 %v3895_v4, %v3930_v18 }
 0x566   : > { %v7553_v42 = vpop.eup %6225 }
 0x567   : > { %v3959_v52 = vmul.f32 1.442695, %v3944_v37  ;;  %v3971_v47 = vsel %vm3909_vm6, %v7553_v42, 0.0 }
 0x568   : > { %3972 = vadd.xlane.f32.xlu1 %v3971_v47  ;;  %v3933_v48 = vpop.xlane.xlu1 %3932 }
 0x569   : > { %6233 = vpow2.f32 %v3959_v52  ;;  %v3945_v49 = vsub.f32 %v3898_v24, %v3933_v48  ;;  %v6202_v24 = vld [vmem:[%s7912_s10 + $0x10] sm:$0xff]   ;;  %v6205_v48 = vld [vmem:[%s7914_s12 + $0x18] sm:$0xff]  }
 0x56a   : > { %v6228_v23 = vpop.eup %6227  ;;  %5797 = vmatpush3.bf16.msra.mxu1 %v6202_v24 }
 0x56b   : > { %v3961_v30 = vmul.f32 1.442695, %v3945_v49  ;;  %v3974_v50 = vsel %vm3909_vm6, %v6228_v23, 0.0  ;;  %5798 = vmatprep.subr.bf16.mxu1 %v6320_v44  ;;  %v6206_v49 = vld [vmem:[%s7914_s12 + $0x10] sm:$0xff]  }
 0x56c   : > { %3975 = vadd.xlane.f32.xlu0 %v3974_v50  ;;  %v3937_v51 = vpop.xlane.xlu0 %3936 }
 0x56d   : > { %6235 = vpow2.f32 %v3961_v30  ;;  %v3946_v54 = vsub.f32 %v3903_v31, %v3937_v51 }
 0x56e   : > { %v7558_v56 = vpop.eup %6229  ;;  %5799 = vmatpush3.bf16.msra.mxu1 %v6203_v58 }
 0x56f   : > { %v3963_v40 = vmul.f32 1.442695, %v3946_v54  ;;  %v3977_v2 = vsel %vm3909_vm6, %v7558_v56, 0.0  ;;  %5800 = vmatprep.subr.bf16.mxu1 %v6320_v44 }
 0x570   : > { %3978 = vadd.xlane.f32.xlu1 %v3977_v2 }
 0x571   : > { %6237 = vpow2.f32 %v3963_v40 }
 0x572   : > { %v6232_v43 = vpop.eup %6231  ;;  %5801 = vmatpush3.bf16.msra.mxu1 %v6204_v27 }
 0x573   : > { %v3980_v45 = vsel %vm3909_vm6, %v6232_v43, 0.0  ;;  %5850 = vmatprep.subr.bf16.mxu1 %v6320_v44 }
 0x574   : > { %3981 = vadd.xlane.f32.xlu0 %v3980_v45 }
 0x576   : > { %v6234_v57 = vpop.eup %6233 }
 0x577   : > { %v3983_v9 = vsel %vm3909_vm6, %v6234_v57, 0.0 }
 0x578   : > { %3984 = vadd.xlane.f32.xlu1 %v3983_v9 }
 0x57a   : > { %v6236_v25 = vpop.eup %6235 }
 0x57b   : > { %v3986_v3 = vsel %vm3909_vm6, %v6236_v25, 0.0 }
 0x57c   : > { %3987 = vadd.xlane.f32.xlu0 %v3986_v3 }
 0x57e   : > { %v6238_v4 = vpop.eup %6237 }
 0x57f   : > { %v3989_v13 = vsel %vm3934_vm7, %v6238_v4, 0.0 }
 0x580   : > { %3990 = vadd.xlane.f32.xlu1 %v3989_v13 }
 0x5e9   : > { %v3967_v31 = vpop.xlane.xlu1 %3966 }
 0x5ea   : > { %6239 = vrcp.f32 %v3967_v31 }
 0x5ed   : > { %v3970_v59 = vpop.xlane.xlu0 %3969 }
 0x5ee   : > { %6241 = vrcp.f32 %v3970_v59 }
 0x5f1   : > { %v3973_v61 = vpop.xlane.xlu1 %3972 }
 0x5f2   : > { %6243 = vrcp.f32 %v3973_v61 }
 0x5f5   : > { %v3976_v5 = vpop.xlane.xlu0 %3975 }
 0x5f6   : > { %6245 = vrcp.f32 %v3976_v5 }
 0x5f7   : > { %v6240_v26 = vpop.eup %6239 }
 0x5f8   : > { %v4001_v36 = vmul.f32 %v6240_v26, %v7548_v22 }
 0x5f9   : > { %v3979_v60 = vpop.xlane.xlu1 %3978 }
 0x5fa   : > { %6247 = vrcp.f32 %v3979_v60 }
 0x5fb   : > { %v6242_v28 = vpop.eup %6241 }
 0x5fc   : > { %v4002_v8 = vmul.f32 %v6242_v28, %v6224_v1  ;;  %v6208_v28 = vld [vmem:[%s7914_s12] sm:$0xff]  }
 0x5fd   : > { %v3982_v62 = vpop.xlane.xlu0 %3981 }
 0x5fe   : > { %v4010_v46 = vpack.c.bf16 %v4002_v8, %v4001_v36  ;;  %6249 = vrcp.f32 %v3982_v62  ;;  %v6209_v36 = vld [vmem:[%s7916_s14 + $0x38] sm:$0xff]   ;;  %v6210_v8 = vld [vmem:[%s7916_s14 + $0x30] sm:$0xff]   ;;  %v6211_v62 = vld [vmem:[%s7916_s14 + $0x28] sm:$0xff]  }
 0x5ff   : > { %v6244_v7 = vpop.eup %6243 }
 0x600   : > { %5775 = vmatmul.mubr.msk.bf16.vlgmr.msra.gmra.mxu0 %vm3909_vm6, %v4010_v46  ;;  %v4003_v15 = vmul.f32 %v6244_v7, %v7553_v42  ;;  %v6212_v46 = vld [vmem:[%s7916_s14 + $0x20] sm:$0xff]   ;;  %v6213_v7 = vld [vmem:[%s7916_s14 + $0x18] sm:$0xff]  }
 0x601   : > { %v3985_v10 = vpop.xlane.xlu1 %3984  ;;  %5778 = vmatprep.mubr.msk.bf16.mxu0 %vm6323_vm5, %v6320_v44  ;;  %5823 = vmatpush3.bf16.msra.mxu0 %v6205_v48 }
 0x602   : > { %6251 = vrcp.f32 %v3985_v10  ;;  %5824 = vmatprep.subr.bf16.mxu0 %v6320_v44  ;;  %v6214_v10 = vld [vmem:[%s7916_s14 + $0x10] sm:$0xff]  }
 0x603   : > { %v6246_v12 = vpop.eup %6245 }
 0x604   : > { %v4004_v32 = vmul.f32 %v6246_v12, %v6228_v23  ;;  %v6207_v23 = vld [vmem:[%s7914_s12 + $0x8] sm:$0xff]  }
 0x605   : > { %v3988_v38 = vpop.xlane.xlu0 %3987  ;;  %5825 = vmatpush3.bf16.msra.mxu0 %v6206_v49 }
 0x606   : > { %6253 = vrcp.f32 %v3988_v38  ;;  %v4011_v14 = vpack.c.bf16 %v4004_v32, %v4003_v15  ;;  %5826 = vmatprep.subr.bf16.mxu0 %v6320_v44  ;;  %v5284_v38 = vld [vmem:[%s7913_s11] ss:$0 sm:$0xff] }
 0x607   : > { %v6248_v17 = vpop.eup %6247 }
 0x608   : > { %5779 = vmatmul.mubr.msk.bf16.gmra.mxu0 %vm3909_vm6, %v4011_v14  ;;  %v4005_v41 = vmul.f32 %v6248_v17, %v7558_v56 }
 0x609   : > { %v3991_v22 = vpop.xlane.xlu1 %3990  ;;  %5782 = vmatprep.mubr.msk.bf16.mxu0 %vm6323_vm5, %v6320_v44  ;;  %5827 = vmatpush3.bf16.msra.mxu0 %v6207_v23 }
 0x60a   : > { %6255 = vrcp.f32 %v3991_v22  ;;  %5828 = vmatprep.subr.bf16.mxu0 %v6320_v44 }
 0x60b   : > { %v6250_v29 = vpop.eup %6249 }
 0x60c   : > { %v4006_v6 = vmul.f32 %v6250_v29, %v6232_v43 }
 0x60d   : > { %5829 = vmatpush3.bf16.msra.mxu0 %v6208_v28 }
 0x60e   : > { %v4012_v19 = vpack.c.bf16 %v4006_v6, %v4005_v41 }
 0x60f   : > { %v6252_v1 = vpop.eup %6251 }
 0x610   : > { %5783 = vmatmul.mubr.msk.bf16.gmra.mxu0 %vm3909_vm6, %v4012_v19  ;;  %v4007_v21 = vmul.f32 %v6252_v1, %v6234_v57 }
 0x611   : > { %5786 = vmatprep.mubr.msk.bf16.mxu0 %vm6323_vm5, %v6320_v44 }
 0x613   : > { %v6254_v11 = vpop.eup %6253 }
 0x614   : > { %v4008_v18 = vmul.f32 %v6254_v11, %v6236_v25 }
 0x616   : > { %v4013_v37 = vpack.c.bf16 %v4008_v18, %v4007_v21 }
 0x617   : > { %v6256_v42 = vpop.eup %6255 }
 0x618   : > { %5787 = vmatmul.mubr.msk.bf16.gmra.mxu0 %vm3909_vm6, %v4013_v37  ;;  %v4009_v52 = vmul.f32 %v6256_v42, %v6238_v4 }
 0x619   : > { %5790 = vmatprep.mubr.msk.bf16.mxu0 %vm6323_vm5, %v6320_v44 }
 0x61a   : > { %v4014_v47 = vpack.c.bf16 %v4009_v52, %v4009_v52 }
 0x620   : > { %5791 = vmatmul.mubr.msk.bf16.gmra.mxu0 %vm3909_vm6, %v4014_v47 }
 0x621   : > { %5830 = vmatprep.mubr.msk.bf16.mxu0 %vm6323_vm5, %v6320_v44 }
 0x6c0   : > { %v4067_v30 = vpop.f32.mrf.mxu0 }
 0x6c2   : > { %v5776_v50 = vpop.f32.mrf.mxu0 }
 0x6c4   : > { %v4070_v51 = vpop.f32.mrf.mxu0 }
 0x6c5   : > { %v4105_v54 = vpack.c.bf16 %v4070_v51, %v4067_v30 }
 0x6c6   : > { %v5777_v56 = vpop.f32.mrf.mxu0 }
 0x6c7   : > { %5803 = vmatmul.mubr.msk.bf16.vlgmr.msra.gmra.mxu1 %vm3599_vm2, %v4105_v54 }
 0x6c8   : > { %v4075_v40 = vpop.f32.mrf.mxu0  ;;  %5806 = vmatprep.mubr.msk.bf16.mxu1 %vm6323_vm5, %v6320_v44  ;;  %5851 = vmatpush3.bf16.msra.mxu1 %v6209_v36 }
 0x6c9   : > { %5852 = vmatprep.subr.bf16.mxu1 %v6320_v44 }
 0x6ca   : > { %v5780_v2 = vpop.f32.mrf.mxu0 }
 0x6cc   : > { %v4078_v43 = vpop.f32.mrf.mxu0  ;;  %5853 = vmatpush3.bf16.msra.mxu1 %v6210_v8  ;;  %v4666_v8 = vld [vmem:[%s7920_s18 + $0x38] sm:$0xff] }
 0x6cd   : > { %v4106_v45 = vpack.c.bf16 %v4078_v43, %v4075_v40  ;;  %5854 = vmatprep.subr.bf16.mxu1 %v6320_v44 }
 0x6ce   : > { %v5781_v57 = vpop.f32.mrf.mxu0 }
 0x6cf   : > { %5807 = vmatmul.mubr.msk.bf16.gmra.mxu1 %vm3599_vm2, %v4106_v45 }
 0x6d0   : > { %v4083_v9 = vpop.f32.mrf.mxu0  ;;  %5810 = vmatprep.mubr.msk.bf16.mxu1 %vm6323_vm5, %v6320_v44  ;;  %5855 = vmatpush3.bf16.msra.mxu1 %v6211_v62 }
 0x6d1   : > { %5856 = vmatprep.subr.bf16.mxu1 %v6320_v44 }
 0x6d2   : > { %v5784_v25 = vpop.f32.mrf.mxu0 }
 0x6d4   : > { %v4086_v3 = vpop.f32.mrf.mxu0  ;;  %5857 = vmatpush3.bf16.msra.mxu1 %v6212_v46 }
 0x6d5   : > { %v4107_v4 = vpack.c.bf16 %v4086_v3, %v4083_v9  ;;  %5858 = vmatprep.subr.bf16.mxu1 %v6320_v44 }
 0x6d6   : > { %v5785_v13 = vpop.f32.mrf.mxu0 }
 0x6d7   : > { %5811 = vmatmul.mubr.msk.bf16.gmra.mxu1 %vm3599_vm2, %v4107_v4  ;;  %v6215_v13 = vld [vmem:[%s7916_s14 + $0x8] sm:$0xff]  }
 0x6d8   : > { %v4091_v20 = vpop.f32.mrf.mxu0  ;;  %5814 = vmatprep.mubr.msk.bf16.mxu1 %vm6323_vm5, %v6320_v44  ;;  %5859 = vmatpush3.bf16.msra.mxu1 %v6213_v7  ;;  %v4665_v7 = vld [vmem:[%s7920_s18 + $0x30] sm:$0xff] }
 0x6d9   : > { %5860 = vmatprep.subr.bf16.mxu1 %v6320_v44 }
 0x6da   : > { %v5788_v24 = vpop.f32.mrf.mxu0 }
 0x6db   : > { %v7721_v24 = vld [vmem:[%s7915_s13] ss:$0 sm:$0xff] }
 0x6dc   : > { %v4094_v58 = vpop.f32.mrf.mxu0  ;;  %5861 = vmatpush3.bf16.msra.mxu1 %v6214_v10 }
 0x6dd   : > { %v4108_v27 = vpack.c.bf16 %v4094_v58, %v4091_v20  ;;  %5862 = vmatprep.subr.bf16.mxu1 %v6320_v44  ;;  %v6217_v20 = vld [vmem:[%s7918_s16 + $0x18] sm:$0xff]  }
 0x6de   : > { %v5789_v31 = vpop.f32.mrf.mxu0  ;;  %5886 = vmatprep.subr.bf16.mxu0 %v6217_v20 }
 0x6df   : > { %5815 = vmatmul.mubr.msk.bf16.gmra.mxu1 %vm3599_vm2, %v4108_v27 }
 0x6e0   : > { %v4099_v59 = vpop.f32.mrf.mxu0  ;;  %5818 = vmatprep.mubr.msk.bf16.mxu1 %vm6323_vm5, %v6320_v44  ;;  %5863 = vmatpush3.bf16.msra.mxu1 %v6215_v13  ;;  %v6218_v13 = vld [vmem:[%s7918_s16 + $0x10] sm:$0xff]  }
 0x6e1   : > { %v4109_v26 = vpack.c.bf16 %v4099_v59, %v4099_v59  ;;  %5864 = vmatprep.subr.bf16.mxu1 %v6320_v44 }
 0x6e2   : > { %v5792_v61 = vpop.f32.mrf.mxu0 }
 0x6e4   : > { %v4102_v5 = vpop.f32.mrf.mxu0 }
 0x6e6   : > { %v5793_v60 = vpop.f32.mrf.mxu0 }
 0x6e7   : > { %5819 = vmatmul.mubr.msk.bf16.gmra.mxu1 %vm3599_vm2, %v4109_v26 }
 0x6e8   : > { %5866 = vmatprep.mubr.msk.bf16.mxu1 %vm6323_vm5, %v6320_v44 }
 0x787   : > { %v4191_v12 = vpop.f32.mrf.mxu1 }
 0x788   : > { %v4229_v32 = vadd.f32 %v4191_v12, %v7395_v63 }
 0x789   : > { %v5804_v15 = vpop.f32.mrf.mxu1 }
 0x78a   : > { %v7659_v29 = vadd.f32 %v5284_v38, %v4229_v32  ;;  %v4664_v15 = vld [vmem:[%s7920_s18 + $0x28] sm:$0xff] }
 0x78b   : > { %v4194_v14 = vpop.f32.mrf.mxu1 }
 0x78c   : > { %v4230_v17 = vadd.f32 %v4194_v14, %v7397_v16 }
 0x78d   : > { %v5805_v22 = vpop.f32.mrf.mxu1 }
 0x78e   : > { %v7661_v41 = vadd.f32 %v5284_v38, %v4230_v17  ;;  %v4663_v17 = vld [vmem:[%s7920_s18 + $0x20] sm:$0xff] }
 0x78f   : > { %v4199_v6 = vpop.f32.mrf.mxu1 }
 0x790   : > { %v4254_v19 = vpack.c.bf16 %v7661_v41, %v7659_v29  ;;  %v4231_v11 = vadd.f32 %v4199_v6, %v7446_v53 }
 0x791   : > { %v5808_v1 = vpop.f32.mrf.mxu1 }
 0x792   : > { %5831 = vmatmul.mubr.msk.bf16.vlgmr.msra.gmra.mxu0 %vm3599_vm2, %v4254_v19  ;;  %v7670_v18 = vadd.f32 %v5284_v38, %v4231_v11  ;;  %v4662_v19 = vld [vmem:[%s7920_s18 + $0x18] sm:$0xff] }
 0x793   : > { %v4202_v63 = vpop.f32.mrf.mxu1  ;;  %5834 = vmatprep.mubr.msk.bf16.mxu0 %vm6323_vm5, %v6320_v44  ;;  %5887 = vmatpush3.bf16.msra.mxu0 %v6217_v20  ;;  %v6219_v20 = vld [vmem:[%s7918_s16 + $0x8] sm:$0xff]  }
 0x794   : > { %v4232_v16 = vadd.f32 %v4202_v63, %v7448_v34  ;;  %v4661_v63 = vld [vmem:[%s7920_s18 + $0x10] sm:$0xff]  ;;  %5888 = vmatprep.subr.bf16.mxu0 %v6218_v13 }
 0x795   : > { %v5809_v21 = vpop.f32.mrf.mxu1 }
 0x796   : > { %v7672_v37 = vadd.f32 %v5284_v38, %v4232_v16 }
 0x797   : > { %v4207_v42 = vpop.f32.mrf.mxu1  ;;  %5889 = vmatpush3.bf16.msra.mxu0 %v6218_v13 }
 0x798   : > { %v4255_v52 = vpack.c.bf16 %v7672_v37, %v7670_v18  ;;  %v4233_v53 = vadd.f32 %v4207_v42, %v7459_v55  ;;  %v4660_v42 = vld [vmem:[%s7920_s18 + $0x8] sm:$0xff]  ;;  %5890 = vmatprep.subr.bf16.mxu0 %v6219_v20 }
 0x799   : > { %v5812_v47 = vpop.f32.mrf.mxu1 }
 0x79a   : > { %5835 = vmatmul.mubr.msk.bf16.gmra.mxu0 %vm3599_vm2, %v4255_v52  ;;  %v7681_v23 = vadd.f32 %v5284_v38, %v4233_v53 }
 0x79b   : > { %v4210_v48 = vpop.f32.mrf.mxu1  ;;  %5838 = vmatprep.mubr.msk.bf16.mxu0 %vm6323_vm5, %v6320_v44  ;;  %5891 = vmatpush3.bf16.msra.mxu0 %v6219_v20 }
 0x79c   : > { %v4234_v34 = vadd.f32 %v4210_v48, %v7461_v35 }
 0x79d   : > { %v5813_v49 = vpop.f32.mrf.mxu1 }
 0x79e   : > { %v7683_v30 = vadd.f32 %v5284_v38, %v4234_v34 }
 0x79f   : > { %v4215_v50 = vpop.f32.mrf.mxu1 }
 0x7a0   : > { %v4256_v51 = vpack.c.bf16 %v7683_v30, %v7681_v23  ;;  %v4235_v55 = vadd.f32 %v4215_v50, %v7468_v0 }
 0x7a1   : > { %v5816_v54 = vpop.f32.mrf.mxu1 }
 0x7a2   : > { %5839 = vmatmul.mubr.msk.bf16.gmra.mxu0 %vm3599_vm2, %v4256_v51  ;;  %v7692_v2 = vadd.f32 %v5284_v38, %v4235_v55 }
 0x7a3   : > { %v4218_v56 = vpop.f32.mrf.mxu1  ;;  %5842 = vmatprep.mubr.msk.bf16.mxu0 %vm6323_vm5, %v6320_v44 }
 0x7a4   : > { %v4236_v35 = vadd.f32 %v4218_v56, %v7470_v39 }
 0x7a5   : > { %v5817_v40 = vpop.f32.mrf.mxu1 }
 0x7a6   : > { %v7694_v43 = vadd.f32 %v5284_v38, %v4236_v35 }
 0x7a7   : > { %v4223_v45 = vpop.f32.mrf.mxu1 }
 0x7a8   : > { %v4257_v57 = vpack.c.bf16 %v7694_v43, %v7692_v2  ;;  %v4237_v9 = vadd.f32 %v4223_v45, %v7476_v33  ;;  %v6216_v33 = vld [vmem:[%s7916_s14] sm:$0xff]  }
 0x7a9   : > { %v5820_v0 = vpop.f32.mrf.mxu1  ;;  %5865 = vmatpush3.bf16.msra.mxu1 %v6216_v33  ;;  %v4659_v33 = vld [vmem:[%s7920_s18] sm:$0xff] }
 0x7aa   : > { %5843 = vmatmul.mubr.msk.bf16.gmra.mxu0 %vm3599_vm2, %v4257_v57  ;;  %v7702_v3 = vadd.f32 %v5284_v38, %v4237_v9  ;;  %5898 = vmatprep.subr.mxu1 %v6320_v44 }
 0x7ab   : > { %v4226_v25 = vpop.f32.mrf.mxu1  ;;  %5846 = vmatprep.mubr.msk.bf16.mxu0 %vm6323_vm5, %v6320_v44 }
 0x7ac   : > { %v4258_v4 = vpack.c.bf16 %v7702_v3, %v7702_v3 }
 0x7ad   : > { %v5821_v39 = vpop.f32.mrf.mxu1 }
 0x7b2   : > { %5847 = vmatmul.mubr.msk.bf16.gmra.mxu0 %vm3599_vm2, %v4258_v4 }
 0x852   : > { %v4347_v58 = vpop.f32.mrf.mxu0 }
 0x853   : > { %v4348_v31 = vadd.f32 %v7721_v24, %v4347_v58 }
 0x854   : > { %v5832_v27 = vpop.f32.mrf.mxu0 }
 0x855   : > { %v4385_v26 = vmax.f32 %v4348_v31, 0.0  ;;  %v5303_v27 = vld [vmem:[%s7917_s15] ss:$0 sm:$0xff] }
 0x856   : > { %v4350_v59 = vpop.f32.mrf.mxu0 }
 0x857   : > { %v4351_v61 = vadd.f32 %v7721_v24, %v4350_v59 }
 0x858   : > { %v5833_v5 = vpop.f32.mrf.mxu0 }
 0x859   : > { %v4386_v60 = vmax.f32 %v4351_v61, 0.0 }
 0x85a   : > { %v4355_v28 = vpop.f32.mrf.mxu0 }
 0x85b   : > { %v4394_v36 = vpack.c.bf16 %v4386_v60, %v4385_v26  ;;  %v4356_v46 = vadd.f32 %v7721_v24, %v4355_v28 }
 0x85c   : > { %v5836_v62 = vpop.f32.mrf.mxu0 }
 0x85d   : > { %5867 = vmatmul.mubr.bf16.vlgmr.msra.gmra.mxu1 %v4394_v36  ;;  %v4387_v38 = vmax.f32 %v4356_v46, 0.0 }
 0x85e   : > { %v4358_v10 = vpop.f32.mrf.mxu0  ;;  %5870 = vmatprep.mubr.msk.bf16.mxu1 %vm6323_vm5, %v6320_v44  ;;  %5899 = vmatpush3.msra.mxu1 %v4666_v8 }
 0x85f   : > { %v4359_v12 = vadd.f32 %v7721_v24, %v4358_v10  ;;  %5900 = vmatprep.subr.mxu1 %v6320_v44 }
 0x860   : > { %v5837_v32 = vpop.f32.mrf.mxu0  ;;  %5901 = vmatpush3.msra.mxu1 %v4665_v7 }
 0x861   : > { %v4388_v14 = vmax.f32 %v4359_v12, 0.0  ;;  %5902 = vmatprep.subr.mxu1 %v6320_v44 }
 0x862   : > { %v4363_v22 = vpop.f32.mrf.mxu0  ;;  %5903 = vmatpush3.msra.mxu1 %v4664_v15 }
 0x863   : > { %v4395_v6 = vpack.c.bf16 %v4388_v14, %v4387_v38  ;;  %5904 = vmatprep.subr.mxu1 %v6320_v44  ;;  %v4364_v11 = vadd.f32 %v7721_v24, %v4363_v22 }
 0x864   : > { %v5840_v1 = vpop.f32.mrf.mxu0  ;;  %5905 = vmatpush3.msra.mxu1 %v4663_v17 }
 0x865   : > { %5871 = vmatmul.mubr.bf16.gmra.mxu1 %v4395_v6  ;;  %5906 = vmatprep.subr.mxu1 %v6320_v44  ;;  %v4389_v47 = vmax.f32 %v4364_v11, 0.0 }
 0x866   : > { %v4366_v16 = vpop.f32.mrf.mxu0  ;;  %5874 = vmatprep.mubr.msk.bf16.mxu1 %vm6323_vm5, %v6320_v44  ;;  %5907 = vmatpush3.msra.mxu1 %v4662_v19 }
 0x867   : > { %v4367_v21 = vadd.f32 %v7721_v24, %v4366_v16  ;;  %5908 = vmatprep.subr.mxu1 %v6320_v44 }
 0x868   : > { %v5841_v52 = vpop.f32.mrf.mxu0  ;;  %5909 = vmatpush3.msra.mxu1 %v4661_v63 }
 0x869   : > { %v4390_v53 = vmax.f32 %v4367_v21, 0.0  ;;  %5910 = vmatprep.subr.mxu1 %v6320_v44 }
 0x86a   : > { %v4371_v48 = vpop.f32.mrf.mxu0  ;;  %5911 = vmatpush3.msra.mxu1 %v4660_v42 }
 0x86b   : > { %v4396_v34 = vpack.c.bf16 %v4390_v53, %v4389_v47  ;;  %5912 = vmatprep.subr.mxu1 %v6320_v44  ;;  %v4372_v50 = vadd.f32 %v7721_v24, %v4371_v48  ;;  %v5311_v48 = vld [vmem:[#allocation3] ss:$0 sm:$0xff] }
 0x86c   : > { %v5844_v49 = vpop.f32.mrf.mxu0  ;;  %5913 = vmatpush3.msra.mxu1 %v4659_v33 }
 0x86d   : > { %5875 = vmatmul.mubr.bf16.gmra.mxu1 %v4396_v34  ;;  %v4391_v56 = vmax.f32 %v4372_v50, 0.0 }
 0x86e   : > { %v4374_v51 = vpop.f32.mrf.mxu0  ;;  %5878 = vmatprep.mubr.msk.bf16.mxu1 %vm6323_vm5, %v6320_v44 }
 0x86f   : > { %v4375_v54 = vadd.f32 %v7721_v24, %v4374_v51 }
 0x870   : > { %v5845_v55 = vpop.f32.mrf.mxu0 }
 0x871   : > { %v4392_v35 = vmax.f32 %v4375_v54, 0.0 }
 0x872   : > { %v4379_v40 = vpop.f32.mrf.mxu0 }
 0x873   : > { %v4397_v45 = vpack.c.bf16 %v4392_v35, %v4391_v56  ;;  %v4380_v57 = vadd.f32 %v7721_v24, %v4379_v40  ;;  %v6220_v24 = vld [vmem:[%s7918_s16] sm:$0xff]  }
 0x874   : > { %v5848_v9 = vpop.f32.mrf.mxu0  ;;  %5892 = vmatprep.subr.bf16.mxu0 %v6220_v24 }
 0x875   : > { %5879 = vmatmul.mubr.bf16.gmra.mxu1 %v4397_v45  ;;  %v4393_v25 = vmax.f32 %v4380_v57, 0.0  ;;  %5893 = vmatpush3.bf16.msra.mxu0 %v6220_v24 }
 0x876   : > { %v4382_v0 = vpop.f32.mrf.mxu0  ;;  %5882 = vmatprep.mubr.msk.bf16.mxu1 %vm6323_vm5, %v6320_v44 }
 0x877   : > { %v4398_v4 = vpack.c.bf16 %v4393_v25, %v4393_v25 }
 0x878   : > { %v5849_v39 = vpop.f32.mrf.mxu0 }
 0x87d   : > { %5883 = vmatmul.mubr.bf16.gmra.mxu1 %v4398_v4 }
 0x87e   : > { %5914 = vmatprep.mubr.msk.f32.mxu1 %vm6323_vm5, %v6320_v44 }
 0x91d   : > { %v4497_v58 = vpop.f32.mrf.mxu1 }
 0x91e   : > { %v4535_v31 = vadd.f32 %v4497_v58, %v7659_v29 }
 0x91f   : > { %v5868_v59 = vpop.f32.mrf.mxu1 }
 0x920   : > { %v4551_v61 = vadd.f32 %v5303_v27, %v4535_v31 }
 0x921   : > { %v4500_v5 = vpop.f32.mrf.mxu1 }
 0x922   : > { %v4536_v26 = vadd.f32 %v4500_v5, %v7661_v41  ;;  %5915 = vmatmul.mubr.msk.f32.vlgmr.msra.gmra.mxu1 %vm3599_vm2, %v4551_v61 }
 0x923   : > { %v5869_v60 = vpop.f32.mrf.mxu1  ;;  %5917 = vmatprep.mubr.msk.f32.mxu1 %vm6323_vm5, %v6320_v44 }
 0x924   : > { %v4552_v28 = vadd.f32 %v5303_v27, %v4536_v26 }
 0x925   : > { %v4505_v36 = vpop.f32.mrf.mxu1 }
 0x926   : > { %v4560_v8 = vpack.c.bf16 %v4552_v28, %v4551_v61  ;;  %v4537_v62 = vadd.f32 %v4505_v36, %v7670_v18  ;;  %5918 = vmatmul.mubr.msk.f32.gmra.mxu1 %vm3599_vm2, %v4552_v28 }
 0x927   : > { %v5872_v46 = vpop.f32.mrf.mxu1  ;;  %5920 = vmatprep.mubr.msk.f32.mxu1 %vm6323_vm5, %v6320_v44 }
 0x928   : > { %v4553_v29 = vadd.f32 %v5303_v27, %v4537_v62  ;;  %5894 = vmatprep.mubr.msk.bf16.mxu0 %vm3599_vm2, %v4560_v8 }
 0x929   : > { %v4508_v41 = vpop.f32.mrf.mxu1 }
 0x92a   : > { %v4561_v7 = vpack.c.bf16 %v4553_v29, %v4553_v29  ;;  %v4538_v10 = vadd.f32 %v4508_v41, %v7672_v37  ;;  %5921 = vmatmul.mubr.msk.f32.gmra.mxu1 %vm3599_vm2, %v4553_v29 }
 0x92b   : > { %v5873_v12 = vpop.f32.mrf.mxu1  ;;  %5923 = vmatprep.mubr.msk.f32.mxu1 %vm6323_vm5, %v6320_v44 }
 0x92c   : > { %v4554_v18 = vadd.f32 %v5303_v27, %v4538_v10  ;;  %5895 = vmatmul.mubr.msk.bf16.vlgmr.msra.gmra.mxu0 %vm3599_vm2, %v4561_v7  ;;  %v4812_v7 = vld [vmem:[%s7922_s20 + $0x8] sm:$0xff]  ;;  %v4811_v12 = vld [vmem:[%s7922_s20] sm:$0xff] }
 0x92d   : > { %v4513_v15 = vpop.f32.mrf.mxu1 }
 0x92e   : > { %v4539_v32 = vadd.f32 %v4513_v15, %v7681_v23  ;;  %5924 = vmatmul.mubr.msk.f32.gmra.mxu1 %vm3599_vm2, %v4554_v18  ;;  %v4813_v15 = vld [vmem:[%s7922_s20 + $0x10] sm:$0xff] }
 0x92f   : > { %v5876_v38 = vpop.f32.mrf.mxu1  ;;  %5926 = vmatprep.mubr.msk.f32.mxu1 %vm6323_vm5, %v6320_v44 }
 0x930   : > { %v4555_v14 = vadd.f32 %v5303_v27, %v4539_v32  ;;  %v4814_v38 = vld [vmem:[%s7922_s20 + $0x18] sm:$0xff] }
 0x931   : > { %v4516_v37 = vpop.f32.mrf.mxu1 }
 0x932   : > { %v4540_v17 = vadd.f32 %v4516_v37, %v7683_v30  ;;  %5927 = vmatmul.mubr.msk.f32.gmra.mxu1 %vm3599_vm2, %v4555_v14 }
 0x933   : > { %v5877_v22 = vpop.f32.mrf.mxu1  ;;  %5929 = vmatprep.mubr.msk.f32.mxu1 %vm6323_vm5, %v6320_v44 }
 0x934   : > { %v4556_v6 = vadd.f32 %v5303_v27, %v4540_v17  ;;  %v4815_v22 = vld [vmem:[%s7922_s20 + $0x20] sm:$0xff] }
 0x935   : > { %v4521_v19 = vpop.f32.mrf.mxu1 }
 0x936   : > { %v4541_v23 = vadd.f32 %v4521_v19, %v7692_v2  ;;  %5930 = vmatmul.mubr.msk.f32.gmra.mxu1 %vm3599_vm2, %v4556_v6 }
 0x937   : > { %v5880_v1 = vpop.f32.mrf.mxu1  ;;  %5932 = vmatprep.mubr.msk.f32.mxu1 %vm6323_vm5, %v6320_v44 }
 0x938   : > { %v4557_v11 = vadd.f32 %v5303_v27, %v4541_v23  ;;  %v4816_v23 = vld [vmem:[%s7922_s20 + $0x28] sm:$0xff] }
 0x939   : > { %v4524_v63 = vpop.f32.mrf.mxu1 }
 0x93a   : > { %v4542_v30 = vadd.f32 %v4524_v63, %v7694_v43  ;;  %5933 = vmatmul.mubr.msk.f32.gmra.mxu1 %vm3599_vm2, %v4557_v11 }
 0x93b   : > { %v5881_v16 = vpop.f32.mrf.mxu1  ;;  %5935 = vmatprep.mubr.msk.f32.mxu1 %vm6323_vm5, %v6320_v44 }
 0x93c   : > { %v4558_v21 = vadd.f32 %v5303_v27, %v4542_v30 }
 0x93d   : > { %v4529_v42 = vpop.f32.mrf.mxu1 }
 0x93e   : > { %v4543_v2 = vadd.f32 %v4529_v42, %v7702_v3  ;;  %5936 = vmatmul.mubr.msk.f32.gmra.mxu1 %vm3599_vm2, %v4558_v21  ;;  %v4817_v21 = vld [vmem:[%s7922_s20 + $0x30] sm:$0xff] }
 0x93f   : > { %v5884_v52 = vpop.f32.mrf.mxu1  ;;  %5938 = vmatprep.mubr.msk.f32.mxu1 %vm6323_vm5, %v6320_v44  ;;  %v5304_v44 = vld [vmem:[%s7919_s17] ss:$0 sm:$0xff] }
 0x940   : > { %v4559_v47 = vadd.f32 %v5303_v27, %v4543_v2 }
 0x941   : > { %v4532_v53 = vpop.f32.mrf.mxu1 }
 0x942   : > { %5939 = vmatmul.mubr.msk.f32.gmra.mxu1 %vm3599_vm2, %v4559_v47 }
 0x943   : > { %v5885_v43 = vpop.f32.mrf.mxu1 }
 0x9e2   : > { %v4767_v34 = vpop.f32.mrf.mxu1 }
 0x9e3   : > { %v4768_v49 = vadd.f32 %v5311_v48, %v4767_v34  ;;  %v4818_v34 = vld [vmem:[%s7922_s20 + $0x38] sm:$0xff] }
 0x9e4   : > { %v5916_v50 = vpop.f32.mrf.mxu1 }
 0x9e5   : > { %4822 = vperm.xlu0 %5989, %v4768_v49  }
 0x9e6   : > { %v4772_v51 = vpop.f32.mrf.mxu1 }
 0x9e7   : > { %v4773_v54 = vadd.f32 %v5311_v48, %v4772_v51 }
 0x9e8   : > { %v5919_v3 = vpop.f32.mrf.mxu1 }
 0x9e9   : > { %4827 = vperm.xlu1 %5990, %v4773_v54  }
 0x9ea   : > { %v4777_v55 = vpop.f32.mrf.mxu1 }
 0x9eb   : > { %v4778_v56 = vadd.f32 %v5311_v48, %v4777_v55 }
 0x9ec   : > { %v5896_v35 = vpop.f32.mrf.mxu0  ;;  %v5922_v40 = vpop.f32.mrf.mxu1 }
 0x9ed   : > { %v4650_v45 = vadd.f32 %v5896_v35, %v5304_v44  ;;  %4832 = vperm.xlu1 %5990, %v4778_v56  }
 0x9ee   : > { %v4641_v57 = vpop.f32.mrf.mxu0  ;;  %v4782_v9 = vpop.f32.mrf.mxu1 }
 0x9ef   : > { %4658 = vst.msk [vmem:[%s739_s1 + $0x10] sm:$0x1f] %vm4657_vm8, %v4650_v45  ;;  %v4642_v0 = vadd.f32 %v5304_v44, %v4641_v57  ;;  %v4783_v25 = vadd.f32 %v5311_v48, %v4782_v9 }
 0x9f0   : > { %v5897_v39 = vpop.f32.mrf.mxu0  ;;  %v5925_v4 = vpop.f32.mrf.mxu1 }
 0x9f1   : > { %4655 = vst.msk [vmem:[%s739_s1] sm:$0xff] %vm2265_vm1, %v4642_v0  ;;  %4837 = vperm.xlu1 %5990, %v4783_v25  }
 0x9f2   : > { %v4644_v13 = vpop.f32.mrf.mxu0  ;;  %v4787_v33 = vpop.f32.mrf.mxu1 }
 0x9f3   : > { %v4645_v20 = vadd.f32 %v5304_v44, %v4644_v13  ;;  %v4788_v24 = vadd.f32 %v5311_v48, %v4787_v33  ;;  %v4819_v44 = vld [vmem:[%s7922_s20 + $0x40] sm:$0x3f] }
 0x9f4   : > { %v5928_v58 = vpop.f32.mrf.mxu1 }
 0x9f5   : > { %4656 = vst.msk [vmem:[%s739_s1 + $0x8] sm:$0xff] %vm2265_vm1, %v4645_v20  ;;  %4842 = vperm.xlu1 %5990, %v4788_v24   ;;  %v4899_v20 = vld [vmem:[%s7923_s21] sm:$0x1]  ;;  %s4924_s1 = sshll.u32 %s725_s7, 4  ;;  %s4925_s1 = int_to_ptr.vmem [resolvable:$true] %s4924_s1 }
 0x9f6   : > { %v4792_v27 = vpop.f32.mrf.mxu1  ;;  %s6257_s3 = scalar_lea.vmem %s4925_s1, 16  ;;  %p6264_p0 = scmp.lt.s32.totalorder %s4925_s1, %s6262_s30 }
 0x9f7   : > { %v4793_v31 = vadd.f32 %v5311_v48, %v4792_v27  ;;  %p6258_p11 = scmp.ne.s32.totalorder %s4925_s1, %s6257_s3  ;;  %p6265_p1 = scmp.lt.s32.totalorder %s6263_s19, %s6257_s3 }
 0x9f8   : > { %v5931_v59 = vpop.f32.mrf.mxu1 }
 0x9f9   : > { %4847 = vperm.xlu1 %5990, %v4793_v31   ;;  %p6259_p12 = pnand %p6258_p11, %p6486_p5  ;;  %p6266_p2 = por %p6265_p1, %p6264_p0 }
 0x9fa   : > { %v4797_v61 = vpop.f32.mrf.mxu1 }
 0x9fb   : > { %v4798_v5 = vadd.f32 %v5311_v48, %v4797_v61  ;;  %p6260_p13 = pneg %p6259_p12 }
 0x9fc   : > { %v5934_v26 = vpop.f32.mrf.mxu1 }
 0x9fd   : > { %4852 = vperm.xlu1 %5990, %v4798_v5   ;;  %p6267_p3 = pnand %p6266_p2, %p6260_p13 }
 0x9fe   : > { %v4802_v60 = vpop.f32.mrf.mxu1 }
 0x9ff   : > { %v4803_v28 = vadd.f32 %v5311_v48, %v4802_v60 }
 0xa00   : > { %v5937_v36 = vpop.f32.mrf.mxu1 }
 0xa01   : > { %4857 = vperm.xlu1 %5990, %v4803_v28  }
 0xa02   : > { %v4807_v8 = vpop.f32.mrf.mxu1 }
 0xa03   : > { %v4808_v62 = vadd.f32 %v5311_v48, %v4807_v8 }
 0xa04   : > { %v5940_v46 = vpop.f32.mrf.mxu1 }
 0xa05   : > { %4862 = vperm.xlu1 %5990, %v4808_v62  }
 0xa60   : > { %v4823_v18 = vpop.permute.xlu0 %4822 }
 0xa61   : > { %v4865_v37 = vmul.f32 %v4823_v18, %v4811_v12 }
 0xa63   : > { %v4875_v11 = vsel %vm4874_vm9, %v4865_v37, 0.0 }
 0xa64   : > { %v4828_v29 = vpop.permute.xlu1 %4827 }
 0xa65   : > { %v4866_v32 = vmul.f32 %v4828_v29, %v4812_v7 }
 0xa67   : > { %v4876_v6 = vsel %vm4874_vm9, %v4866_v32, 0.0 }
 0xa68   : > { %v4833_v41 = vpop.permute.xlu1 %4832  ;;  %v4877_v16 = vadd.f32 %v4876_v6, %v4875_v11 }
 0xa69   : > { %v4867_v17 = vmul.f32 %v4833_v41, %v4813_v15 }
 0xa6b   : > { %v4878_v63 = vsel %vm4874_vm9, %v4867_v17, 0.0 }
 0xa6c   : > { %v4838_v10 = vpop.permute.xlu1 %4837  ;;  %v4879_v52 = vadd.f32 %v4878_v63, %v4877_v16 }
 0xa6d   : > { %v4868_v19 = vmul.f32 %v4838_v10, %v4814_v38 }
 0xa6f   : > { %v4880_v42 = vsel %vm4874_vm9, %v4868_v19, 0.0 }
 0xa70   : > { %v4843_v14 = vpop.permute.xlu1 %4842  ;;  %v4881_v48 = vadd.f32 %v4880_v42, %v4879_v52 }
 0xa71   : > { %v4869_v30 = vmul.f32 %v4843_v14, %v4815_v22 }
 0xa73   : > { %v4882_v53 = vsel %vm4874_vm9, %v4869_v30, 0.0 }
 0xa74   : > { %v4848_v1 = vpop.permute.xlu1 %4847  ;;  %v4883_v50 = vadd.f32 %v4882_v53, %v4881_v48 }
 0xa75   : > { %v4870_v2 = vmul.f32 %v4848_v1, %v4816_v23 }
 0xa77   : > { %v4884_v49 = vsel %vm4874_vm9, %v4870_v2, 0.0 }
 0xa78   : > { %v4853_v47 = vpop.permute.xlu1 %4852  ;;  %v4885_v55 = vadd.f32 %v4884_v49, %v4883_v50 }
 0xa79   : > { %v4871_v43 = vmul.f32 %v4853_v47, %v4817_v21 }
 0xa7b   : > { %v4886_v54 = vsel %vm4874_vm9, %v4871_v43, 0.0 }
 0xa7c   : > { %v4858_v51 = vpop.permute.xlu1 %4857  ;;  %v4887_v35 = vadd.f32 %v4886_v54, %v4885_v55 }
 0xa7d   : > { %v4872_v3 = vmul.f32 %v4858_v51, %v4818_v34 }
 0xa7f   : > { %v4888_v56 = vsel %vm4874_vm9, %v4872_v3, 0.0 }
 0xa80   : > { %v4863_v40 = vpop.permute.xlu1 %4862  ;;  %v4889_v57 = vadd.f32 %v4888_v56, %v4887_v35 }
 0xa81   : > { %v4873_v45 = vmul.f32 %v4863_v40, %v4819_v44 }
 0xa83   : > { %v4891_v9 = vsel %vm4890_vm10, %v4873_v45, 0.0 }
 0xa84   : > { %v4892_v0 = vadd.f32 %v4891_v9, %v4889_v57 }
 0xa86   : > { %v4893_v25 = vrot.slane %v4892_v0, 4 }
 0xa88   : > { %v4894_v39 = vadd.f32 %v4893_v25, %v4892_v0 }
 0xa8a   : > { %v4895_v4 = vrot.slane %v4894_v39, 2 }
 0xa8c   : > { %v4896_v13 = vadd.f32 %v4895_v4, %v4894_v39 }
 0xa8e   : > { %v4897_v33 = vrot.slane %v4896_v13, 1 }
 0xa90   : > { %v4898_v24 = vadd.f32 %v4897_v33, %v4896_v13 }
 0xa92   : > { %v4900_v58 = vadd.f32 %v4899_v20, %v4898_v24 }
 0xa94   : > { %4902 = vst.msk [vmem:[%s725_s7] sm:$0x1] %vm4901_vm11, %v4900_v58 }
 0xa95   : > { %6270 = shalt.err (!%p6267_p3)
}
 0xa96   : > { %s6271_s0 = scalar_lea.hbm %s4922_s4, 16  ;;  %s6275_s7 = scalar_lea.hbm %s7963_s29, 32 }
 0xa97   : > { %p6272_p4 = scmp.ne.s32.totalorder %s4922_s4, %s6271_s0  ;;  %p6276_p9 = scmp.lt.s32.totalorder %s4922_s4, %s7963_s29 }
 0xa98   : > { %p6277_p10 = scmp.lt.s32.totalorder %s6275_s7, %s6271_s0 }
 0xa99   : > { %p6273_p7 = pnand %p6272_p4, %p6486_p5 }
 0xa9a   : > { %p6278_p11 = por %p6277_p10, %p6276_p9 }
 0xa9b   : > { %p6274_p8 = pneg %p6273_p7 }
 0xa9d   : > { %p6279_p12 = pnand %p6278_p11, %p6274_p8 }
 0xa9f   : > { %6282 = shalt.err (!%p6279_p12)
}
 0xaa0   : > { %5945 = dma.vmem_to_hbm [thread:$0]  (%p6486_p5), %s4925_s1, 16, %s4922_s4, %s4909_s26  }
 0xaa1 PF: > { %s7964_s3 = sld [smem:[#allocation9_spill]] }
 0xaa2   : > { %s7965_s27 = sld [smem:[#allocation7_spill]] }
 0xaa7   : > { %p5951_p13 = scmp.ge.s32.totalorder %s7964_s3, 2 }
 0xaa8   : > { %s4944_s19 = sand.u32 1, %s7965_s27  }
 0xaa9   : > { %p5948_p0 = pnand %p5951_p13, %p6490_p6  ;;  %s4945_s24 = scalar_lea.sflag [#allocation5], %s4944_s19 }
 0xaab   : > { %p5949_p1 = pneg %p5948_p0 }
 0xaad   : > { %6300 = dma.done.wait (%p5949_p1), %s4945_s24, 16  }
 0xaae   : > { %6302 = vsyncadd (%p5949_p1), %s4945_s24, 4294967280  ;;  %s7967_s1 = sld [smem:[#allocation10_spill]]  ;;  %s7970_s24 = smov %s6309_s25 }
 0xaaf   : > { %s7968_s0 = sld [smem:[#allocation8_spill]] }
 0xab0   : > { %s7969_s5 = sld [smem:[#allocation11_spill]] }
 0xab4   : > { %p36_p2 = scmp.ge.s32.totalorder %s7967_s1, 4  }
 0xab5   : > { %s7971_s25 = smov %s7968_s0 }
 0xab6   :  { %38 = sbr.rel (!%p36_p2) target bundleno = 13 (0xd), region = 158 }
 0xabb   :  { %4949 = vsyncpa [#allocation5], 1 }
 0xabc   :  { %4951 = vsyncpa [#allocation5 + $0x1], 1 }

</bundles_post_ra>
